<compile_context>
chip_gen: v5e
topology: v5e:2x2
jax: 0.10.0
libtpu: 0.0.40
codegen_flags: <defaults>
</compile_context>

<pallas_src>
import math
import jax
import jax.numpy as jnp
from jax.experimental import pallas as pl
from jax.experimental.pallas import tpu as pltpu


CONV_DTYPE = jnp.bfloat16  # conv matmul operand dtype (accumulation is always f32)


def stride_generator(N, reverse=False):
    strides = [1, 2] * 10
    return list(reversed(strides[:N])) if reverse else strides[:N]


def _out_hw(h, w, s):
    return (h + 2 - 3) // s + 1, (w + 2 - 3) // s + 1


def _col_select_matrix(ho, w, wo, dtype=jnp.float32):
    """(ho*wo, ho*w) 0/1 matrix keeping the even columns of a (ho, w) grid.

    Rows of the conv matmul are already subsampled (even output rows only); this
    finishes the stride-2 subsample along the column direction.
    """
    rows = jnp.arange(ho * wo)
    src = (rows // wo) * w + 2 * (rows % wo)
    return (src[:, None] == jnp.arange(ho * w)[None, :]).astype(dtype)


# ---------------------------------------------------------------------------
# In-kernel GroupNorm(2 groups) + LeakyReLU(0.2) epilogue (f32)
# ---------------------------------------------------------------------------
def _gn_lrelu(y, gamma, beta, gmask):
    # y: (P, C) f32 ; gamma/beta: (1, C) f32 ; gmask: (1, C) f32 (1. grp0 / 0. grp1)
    C = y.shape[1]
    Cg = C // 2
    g0 = y[:, :Cg]
    g1 = y[:, Cg:]
    m0 = jnp.mean(g0)
    m1 = jnp.mean(g1)
    v0 = jnp.mean((g0 - m0) ** 2)                 # biased var, matches torch GN
    v1 = jnp.mean((g1 - m1) ** 2)
    eps = 1e-5
    r0 = jax.lax.rsqrt(v0 + eps)
    r1 = jax.lax.rsqrt(v1 + eps)
    mean_c = m0 * gmask + m1 * (1.0 - gmask)
    scale_c = (r0 * gmask + r1 * (1.0 - gmask)) * gamma   # fold gamma into rstd
    yn = (y - mean_c) * scale_c + beta
    return jnp.where(yn >= 0.0, yn, 0.2 * yn)     # LeakyReLU(0.2)


# ---------------------------------------------------------------------------
# Fused encoder kernel: all ConvSC blocks for one sample per grid step
# ---------------------------------------------------------------------------
def make_encoder_kernel(blocks, C_hid, conv_dtype):
    nb = len(blocks)
    n_s2 = sum(1 for b in blocks if b["stride"] == 2)

    def kernel(*refs):
        it = iter(refs)
        x_ref = next(it)                                   # (1, P0, cin0) f32
        w_refs = [next(it) for _ in range(nb)]             # (9*cin_i, C) conv_dtype
        b_ref = next(it)                                   # (nb, C) f32
        g_ref = next(it)
        bt_ref = next(it)
        s_refs = [next(it) for _ in range(n_s2)]           # column-select matrices
        enc1_ref = next(it)                                # (1, P1, C) f32
        lat_ref = next(it)                                 # (1, Plat, C) f32
        pad_refs, col_refs = [], []
        for _ in range(nb):
            pad_refs.append(next(it))                      # padded input scratch (f32)
            col_refs.append(next(it))                      # im2col scratch (conv_dtype)

        # GroupNorm(2 groups) channel mask, hoisted once for all blocks.
        ch = jax.lax.broadcasted_iota(jnp.int32, (1, C_hid), 1)
        gmask = (ch < (C_hid // 2)).astype(jnp.float32)

        cur = x_ref[0]                                     # (h0*w0, cin0) f32
        s2_i = 0
        for i, blk in enumerate(blocks):
            h, w, cin = blk["h"], blk["w"], blk["cin"]
            ho = blk["ho"]
            stride = blk["stride"]
            xpad, col = pad_refs[i], col_refs[i]

            if stride == 1:
                # 1-px zero border only; interior fully rewritten every step.
                xpad[0:1] = jnp.zeros((1, w + 2, cin), jnp.float32)
                xpad[h + 1:h + 2] = jnp.zeros((1, w + 2, cin), jnp.float32)
                xpad[:, 0:1, :] = jnp.zeros((h + 2, 1, cin), jnp.float32)
                xpad[:, w + 1:w + 2, :] = jnp.zeros((h + 2, 1, cin), jnp.float32)
                xpad[1:h + 1, 1:w + 1, :] = cur.reshape(h, w, cin)

                # im2col: 9 writes into a lane-dense (h*w, 9*cin) tile, ONE matmul.
                for t in range(9):
                    dh, dw = t // 3, t % 3
                    src = xpad[dh:dh + h, dw:dw + w, :]
                    col[:, t * cin:(t + 1) * cin] = (
                        src.reshape(h * w, cin).astype(conv_dtype))
            else:
                # Parity-split padded buffer: padded row q lives at [q // 2, q % 2]
                # so the row subsample of the stride-2 conv is a contiguous slice.
                hp = h // 2 + 1
                xpad[0:1, 0:1] = jnp.zeros((1, 1, w + 2, cin), jnp.float32)
                xpad[:, :, 0:1, :] = jnp.zeros((hp, 2, 1, cin), jnp.float32)
                xpad[:, :, w + 1:w + 2, :] = jnp.zeros((hp, 2, 1, cin), jnp.float32)
                c4 = cur.reshape(h // 2, 2, w, cin)
                # even input rows -> padded rows 1,3,..,h-1 (parity 1)
                xpad[0:h // 2, 1:2, 1:w + 1, :] = c4[:, 0:1]
                # odd input rows  -> padded rows 2,4,..,h   (parity 0)
                xpad[1:h // 2 + 1, 0:1, 1:w + 1, :] = c4[:, 1:2]

                # im2col for even output rows only (M = ho*w instead of h*w).
                for t in range(9):
                    dh, dw = t // 3, t % 3
                    if dh == 0:          # padded rows 0,2,..,h-2
                        src = xpad[0:ho, 0:1, dw:dw + w, :]
                    elif dh == 1:        # padded rows 1,3,..,h-1
                        src = xpad[0:ho, 1:2, dw:dw + w, :]
                    else:                # padded rows 2,4,..,h
                        src = xpad[1:ho + 1, 0:1, dw:dw + w, :]
                    col[:, t * cin:(t + 1) * cin] = (
                        src.reshape(ho * w, cin).astype(conv_dtype))

            # Single fused-K conv matmul (f32 accumulation on the MXU).
            acc = jnp.dot(col[...], w_refs[i][...],
                          preferred_element_type=jnp.float32)

            # stride-2: finish the subsample along columns with a tiny 0/1 matmul.
            if stride == 2:
                acc = jnp.dot(s_refs[s2_i][...], acc,
                              preferred_element_type=jnp.float32)
                s2_i += 1

            y = acc + b_ref[i:i + 1, :]
            y = _gn_lrelu(y, g_ref[i:i + 1, :], bt_ref[i:i + 1, :], gmask)

            if i == 0:
                enc1_ref[0] = y
            cur = y

        lat_ref[0] = cur

    return kernel


# ---------------------------------------------------------------------------
# Wrapper: build operands / specs, one pallas_call for the whole encoder
# ---------------------------------------------------------------------------
def encoder_forward(x_nchw, params, strides, conv_dtype=CONV_DTYPE):
    N, C_in, H, W = x_nchw.shape
    C_hid = params[0][0].shape[0]
    nb = len(strides)
    assert nb == len(params)

    # Pad C_in so the im2col K (= 9*cin0) fills at least one 128-lane group.
    cin0 = -(-C_in // 8) * 8
    if 9 * cin0 < 128:
        cin0 = 16

    # Per-block static geometry.
    blocks = []
    h_cur, w_cur, cin_cur = H, W, cin0
    for s in strides:
        if s == 2:
            assert h_cur % 2 == 0 and w_cur % 2 == 0, "stride-2 needs even H/W"
        ho, wo = _out_hw(h_cur, w_cur, s)
        blocks.append(dict(stride=s, h=h_cur, w=w_cur, ho=ho, wo=wo, cin=cin_cur))
        h_cur, w_cur, cin_cur = ho, wo, C_hid
    h1, w1 = blocks[0]["ho"], blocks[0]["wo"]
    h_lat, w_lat = h_cur, w_cur

    # Input as (N, H*W, cin0): channels-last so the conv is a patch matmul.
    x_p = jnp.transpose(x_nchw.reshape(N, C_in, H * W), (0, 2, 1))
    if cin0 != C_in:
        x_p = jnp.pad(x_p, ((0, 0), (0, 0), (0, cin0 - C_in)))

    def wmat(wq, cin_pad):
        # (Cout, Cin, 3, 3) -> (9*cin_pad, Cout), row index = (3*dh+dw)*cin_pad + ci
        t = jnp.transpose(wq, (2, 3, 1, 0))                  # (3, 3, Cin, Cout)
        if cin_pad != wq.shape[1]:
            t = jnp.pad(t, ((0, 0), (0, 0), (0, cin_pad - wq.shape[1]), (0, 0)))
        return t.reshape(9 * cin_pad, wq.shape[0]).astype(conv_dtype)

    args = [x_p]
    in_specs = [pl.BlockSpec((1, H * W, cin0), lambda n: (n, 0, 0))]
    for i, blk in enumerate(blocks):
        wm = wmat(params[i][0], blk["cin"])
        args.append(wm)
        in_specs.append(pl.BlockSpec(wm.shape, lambda n: (0, 0)))

    b_all = jnp.stack([p[1] for p in params], axis=0)        # (nb, C_hid)
    g_all = jnp.stack([p[2] for p in params], axis=0)
    bt_all = jnp.stack([p[3] for p in params], axis=0)
    for a in (b_all, g_all, bt_all):
        args.append(a)
        in_specs.append(pl.BlockSpec(a.shape, lambda n: (0, 0)))

    for blk in blocks:
        if blk["stride"] == 2:
            S = _col_select_matrix(blk["ho"], blk["w"], blk["wo"])
            args.append(S)
            in_specs.append(pl.BlockSpec(S.shape, lambda n: (0, 0)))

    out_shape = (
        jax.ShapeDtypeStruct((N, h1 * w1, C_hid), jnp.float32),        # enc1   (P, C)
        jax.ShapeDtypeStruct((N, h_lat * w_lat, C_hid), jnp.float32),  # latent (P, C)
    )
    out_specs = (
        pl.BlockSpec((1, h1 * w1, C_hid), lambda n: (n, 0, 0)),
        pl.BlockSpec((1, h_lat * w_lat, C_hid), lambda n: (n, 0, 0)),
    )

    scratch_shapes = []
    for blk in blocks:
        h, w, cin = blk["h"], blk["w"], blk["cin"]
        if blk["stride"] == 1:
            scratch_shapes.append(pltpu.VMEM((h + 2, w + 2, cin), jnp.float32))
        else:
            scratch_shapes.append(
                pltpu.VMEM((h // 2 + 1, 2, w + 2, cin), jnp.float32))
        scratch_shapes.append(pltpu.VMEM((blk["ho"] * w, 9 * cin), conv_dtype))

    enc1_pc, lat_pc = pl.pallas_call(
        make_encoder_kernel(blocks, C_hid, conv_dtype),
        out_shape=out_shape,
        grid=(N,),
        in_specs=in_specs,
        out_specs=out_specs,
        scratch_shapes=scratch_shapes,
        compiler_params=pltpu.CompilerParams(
            dimension_semantics=("parallel",)),
    )(*args)

    # Tiny relayout back to the PyTorch NCHW convention (<= 64 KB per output).
    enc1 = jnp.transpose(enc1_pc, (0, 2, 1)).reshape(N, C_hid, h1, w1)
    latent = jnp.transpose(lat_pc, (0, 2, 1)).reshape(N, C_hid, h_lat, w_lat)
    return latent, enc1


# ---------------------------------------------------------------------------
# Pure-JAX reference (sanity check)
# ---------------------------------------------------------------------------
def ref_convsc(x_nchw, w, b, gamma, beta, stride):
    y = jax.lax.conv_general_dilated(
        x_nchw, w, (stride, stride), [(1, 1), (1, 1)],
        dimension_numbers=('NCHW', 'OIHW', 'NCHW'))
    y = y + b[None, :, None, None]
    N, C, H, W = y.shape
    yg = y.reshape(N, 2, C // 2, H, W)
    mean = yg.mean(axis=(2, 3, 4), keepdims=True)
    var = ((yg - mean) ** 2).mean(axis=(2, 3, 4), keepdims=True)
    yn = (yg - mean) / jnp.sqrt(var + 1e-5)
    yn = yn.reshape(N, C, H, W) * gamma[None, :, None, None] + beta[None, :, None, None]
    return jnp.where(yn >= 0, yn, 0.2 * yn)


def ref_encoder(x_nchw, params, strides):
    h = x_nchw
    enc1 = None
    for i, (s, (w, b, g, bt)) in enumerate(zip(strides, params)):
        h = ref_convsc(h, w, b, g, bt, s)
        if i == 0:
            enc1 = h
    return h, enc1


if __name__ == "__main__":
    # batch=2, C_in=4, C_hid=32, H=W=16, N_S=4 -> strides [1,2,1,2]
    N, C_in, C_hid, H, W, N_S = 2, 4, 32, 16, 16, 4
    strides = stride_generator(N_S)

    key = jax.random.PRNGKey(0)
    key, kx = jax.random.split(key)
    x = jax.random.normal(kx, (N, C_in, H, W), jnp.float32)

    # Deterministic synthetic parameters (GN affine made non-trivial on purpose).
    params = []
    cin = C_in
    for s in strides:
        key, k1, k2, k3, k4 = jax.random.split(key, 5)
        fan_in = cin * 9
        w = jax.random.normal(k1, (C_hid, cin, 3, 3), jnp.float32) / math.sqrt(fan_in)
        b = 0.05 * jax.random.normal(k2, (C_hid,), jnp.float32)
        gamma = 1.0 + 0.1 * jax.random.normal(k3, (C_hid,), jnp.float32)
        beta = 0.05 * jax.random.normal(k4, (C_hid,), jnp.float32)
        params.append((w, b, gamma, beta))
        cin = C_hid

    latent_r, enc1_r = ref_encoder(x, params, strides)

    # Default perf path: bf16 conv operands, f32 accumulation (v6e/v7x MXU-native).
    run_bf16 = jax.jit(lambda xx, pp: encoder_forward(xx, pp, strides, jnp.bfloat16))
    latent, enc1 = run_bf16(x, params)
    latent = jax.block_until_ready(latent)
    enc1 = jax.block_until_ready(enc1)
    assert latent.shape == (N, C_hid, 4, 4), latent.shape
    assert enc1.shape == (N, C_hid, 16, 16), enc1.shape
    err_lat = float(jnp.max(jnp.abs(latent - latent_r)))
    err_enc = float(jnp.max(jnp.abs(enc1 - enc1_r)))
    # bf16 operand rounding bound (typical max err ~2e-2 at these shapes).
    assert err_lat < 1e-1 and err_enc < 1e-1, (err_lat, err_enc)

    # Exact f32 path (tight tolerance, catches structural regressions).
    run_f32 = jax.jit(lambda xx, pp: encoder_forward(xx, pp, strides, jnp.float32))
    latent32, enc132 = run_f32(x, params)
    latent32 = jax.block_until_ready(latent32)
    enc132 = jax.block_until_ready(enc132)
    err_lat32 = float(jnp.max(jnp.abs(latent32 - latent_r)))
    err_enc32 = float(jnp.max(jnp.abs(enc132 - enc1_r)))
    assert err_lat32 < 2e-4 and err_enc32 < 2e-4, (err_lat32, err_enc32)

    print("KERNEL_OK")
</pallas_src>

<mosaic_0001>
module attributes {stable_mosaic.version = 11 : i64} {
  func.func @kernel(%arg0: i32, %arg1: memref<1x256x16xf32, #tpu.memory_space<vmem>>, %arg2: memref<144x32xbf16, #tpu.memory_space<vmem>>, %arg3: memref<288x32xbf16, #tpu.memory_space<vmem>>, %arg4: memref<288x32xbf16, #tpu.memory_space<vmem>>, %arg5: memref<288x32xbf16, #tpu.memory_space<vmem>>, %arg6: memref<4x32xf32, #tpu.memory_space<vmem>>, %arg7: memref<4x32xf32, #tpu.memory_space<vmem>>, %arg8: memref<4x32xf32, #tpu.memory_space<vmem>>, %arg9: memref<64x128xf32, #tpu.memory_space<vmem>>, %arg10: memref<16x32xf32, #tpu.memory_space<vmem>>, %arg11: memref<1x256x32xf32, #tpu.memory_space<vmem>>, %arg12: memref<1x16x32xf32, #tpu.memory_space<vmem>>, %arg13: memref<18x18x16xf32, #tpu.memory_space<vmem>>, %arg14: memref<256x144xbf16, #tpu.memory_space<vmem>>, %arg15: memref<9x2x18x32xf32, #tpu.memory_space<vmem>>, %arg16: memref<128x288xbf16, #tpu.memory_space<vmem>>, %arg17: memref<10x10x32xf32, #tpu.memory_space<vmem>>, %arg18: memref<64x288xbf16, #tpu.memory_space<vmem>>, %arg19: memref<5x2x10x32xf32, #tpu.memory_space<vmem>>, %arg20: memref<32x288xbf16, #tpu.memory_space<vmem>>) attributes {dimension_semantics = [#tpu.dimension_semantics<parallel>], iteration_bounds = array<i64: 2>, scalar_prefetch = 0 : i64, scratch_operands = 8 : i64, tpu.core_type = #tpu.core_type<tc>, window_params = [{transform_indices = @transform_0, window_bounds = array<i64: 1, 256, 16>}, {pipeline_mode = #tpu.pipeline_mode<synchronous>, transform_indices = @transform_1, window_bounds = array<i64: 144, 32>}, {pipeline_mode = #tpu.pipeline_mode<synchronous>, transform_indices = @transform_2, window_bounds = array<i64: 288, 32>}, {pipeline_mode = #tpu.pipeline_mode<synchronous>, transform_indices = @transform_3, window_bounds = array<i64: 288, 32>}, {pipeline_mode = #tpu.pipeline_mode<synchronous>, transform_indices = @transform_4, window_bounds = array<i64: 288, 32>}, {pipeline_mode = #tpu.pipeline_mode<synchronous>, transform_indices = @transform_5, window_bounds = array<i64: 4, 32>}, {pipeline_mode = #tpu.pipeline_mode<synchronous>, transform_indices = @transform_6, window_bounds = array<i64: 4, 32>}, {pipeline_mode = #tpu.pipeline_mode<synchronous>, transform_indices = @transform_7, window_bounds = array<i64: 4, 32>}, {pipeline_mode = #tpu.pipeline_mode<synchronous>, transform_indices = @transform_8, window_bounds = array<i64: 64, 128>}, {pipeline_mode = #tpu.pipeline_mode<synchronous>, transform_indices = @transform_9, window_bounds = array<i64: 16, 32>}, {transform_indices = @transform_10, window_bounds = array<i64: 1, 256, 32>}, {transform_indices = @transform_11, window_bounds = array<i64: 1, 16, 32>}]} {
    %0 = tpu.iota {dimensions = array<i32: 1>} : vector<1x32xi32>
    %c16_i32 = arith.constant 16 : i32
    %1 = vector.broadcast %c16_i32 : i32 to vector<1x32xi32>
    %2 = arith.cmpi slt, %0, %1 : vector<1x32xi32>
    %3 = arith.extui %2 : vector<1x32xi1> to vector<1x32xi32>
    %4 = arith.sitofp %3 : vector<1x32xi32> to vector<1x32xf32>
    %c0 = arith.constant 0 : index
    %c0_0 = arith.constant 0 : index
    %c0_1 = arith.constant 0 : index
    %5 = vector.load %arg1[%c0, %c0_0, %c0_1] : memref<1x256x16xf32, #tpu.memory_space<vmem>>, vector<1x256x16xf32>
    %6 = vector.shape_cast %5 : vector<1x256x16xf32> to vector<256x16xf32>
    %cst = arith.constant 0.000000e+00 : f32
    %7 = vector.broadcast %cst : f32 to vector<1x18x16xf32>
    %c0_2 = arith.constant 0 : index
    %c0_3 = arith.constant 0 : index
    %c0_4 = arith.constant 0 : index
    %8 = vector.load %arg13[%c0_2, %c0_3, %c0_4] : memref<18x18x16xf32, #tpu.memory_space<vmem>>, vector<1x18x16xf32>
    tpu.vector_store %arg13[%c0_2, %c0_3, %c0_4], %7 {strides = array<i32>} : memref<18x18x16xf32, #tpu.memory_space<vmem>>, vector<1x18x16xf32>,
    %cst_5 = arith.constant 0.000000e+00 : f32
    %9 = vector.broadcast %cst_5 : f32 to vector<1x18x16xf32>
    %c17 = arith.constant 17 : index
    %c0_6 = arith.constant 0 : index
    %c0_7 = arith.constant 0 : index
    %10 = vector.load %arg13[%c17, %c0_6, %c0_7] : memref<18x18x16xf32, #tpu.memory_space<vmem>>, vector<1x18x16xf32>
    tpu.vector_store %arg13[%c17, %c0_6, %c0_7], %9 {strides = array<i32>} : memref<18x18x16xf32, #tpu.memory_space<vmem>>, vector<1x18x16xf32>,
    %cst_8 = arith.constant 0.000000e+00 : f32
    %11 = vector.broadcast %cst_8 : f32 to vector<18x1x16xf32>
    %c0_9 = arith.constant 0 : index
    %c0_10 = arith.constant 0 : index
    %c0_11 = arith.constant 0 : index
    %12 = vector.load %arg13[%c0_9, %c0_10, %c0_11] : memref<18x18x16xf32, #tpu.memory_space<vmem>>, vector<18x1x16xf32>
    tpu.vector_store %arg13[%c0_9, %c0_10, %c0_11], %11 {strides = array<i32>} : memref<18x18x16xf32, #tpu.memory_space<vmem>>, vector<18x1x16xf32>,
    %cst_12 = arith.constant 0.000000e+00 : f32
    %13 = vector.broadcast %cst_12 : f32 to vector<18x1x16xf32>
    %c0_13 = arith.constant 0 : index
    %c17_14 = arith.constant 17 : index
    %c0_15 = arith.constant 0 : index
    %14 = vector.load %arg13[%c0_13, %c17_14, %c0_15] : memref<18x18x16xf32, #tpu.memory_space<vmem>>, vector<18x1x16xf32>
    tpu.vector_store %arg13[%c0_13, %c17_14, %c0_15], %13 {strides = array<i32>} : memref<18x18x16xf32, #tpu.memory_space<vmem>>, vector<18x1x16xf32>,
    %15 = vector.shape_cast %6 : vector<256x16xf32> to vector<16x16x16xf32>
    %c1 = arith.constant 1 : index
    %c1_16 = arith.constant 1 : index
    %c0_17 = arith.constant 0 : index
    %16 = vector.load %arg13[%c1, %c1_16, %c0_17] : memref<18x18x16xf32, #tpu.memory_space<vmem>>, vector<16x16x16xf32>
    tpu.vector_store %arg13[%c1, %c1_16, %c0_17], %15 {strides = array<i32>} : memref<18x18x16xf32, #tpu.memory_space<vmem>>, vector<16x16x16xf32>,
    %c0_18 = arith.constant 0 : index
    %c0_19 = arith.constant 0 : index
    %c0_20 = arith.constant 0 : index
    %17 = vector.load %arg13[%c0_18, %c0_19, %c0_20] : memref<18x18x16xf32, #tpu.memory_space<vmem>>, vector<16x16x16xf32>
    %18 = vector.shape_cast %17 : vector<16x16x16xf32> to vector<256x16xf32>
    %19 = arith.truncf %18 : vector<256x16xf32> to vector<256x16xbf16>
    %c0_21 = arith.constant 0 : index
    %c0_22 = arith.constant 0 : index
    %20 = vector.load %arg14[%c0_21, %c0_22] : memref<256x144xbf16, #tpu.memory_space<vmem>>, vector<256x16xbf16>
    tpu.vector_store %arg14[%c0_21, %c0_22], %19 {strides = array<i32>} : memref<256x144xbf16, #tpu.memory_space<vmem>>, vector<256x16xbf16>,
    %c0_23 = arith.constant 0 : index
    %c1_24 = arith.constant 1 : index
    %c0_25 = arith.constant 0 : index
    %21 = vector.load %arg13[%c0_23, %c1_24, %c0_25] : memref<18x18x16xf32, #tpu.memory_space<vmem>>, vector<16x16x16xf32>
    %22 = vector.shape_cast %21 : vector<16x16x16xf32> to vector<256x16xf32>
    %23 = arith.truncf %22 : vector<256x16xf32> to vector<256x16xbf16>
    %c0_26 = arith.constant 0 : index
    %c16 = arith.constant 16 : index
    %24 = vector.load %arg14[%c0_26, %c16] : memref<256x144xbf16, #tpu.memory_space<vmem>>, vector<256x16xbf16>
    tpu.vector_store %arg14[%c0_26, %c16], %23 {strides = array<i32>} : memref<256x144xbf16, #tpu.memory_space<vmem>>, vector<256x16xbf16>,
    %c0_27 = arith.constant 0 : index
    %c2 = arith.constant 2 : index
    %c0_28 = arith.constant 0 : index
    %25 = vector.load %arg13[%c0_27, %c2, %c0_28] : memref<18x18x16xf32, #tpu.memory_space<vmem>>, vector<16x16x16xf32>
    %26 = vector.shape_cast %25 : vector<16x16x16xf32> to vector<256x16xf32>
    %27 = arith.truncf %26 : vector<256x16xf32> to vector<256x16xbf16>
    %c0_29 = arith.constant 0 : index
    %c32 = arith.constant 32 : index
    %28 = vector.load %arg14[%c0_29, %c32] : memref<256x144xbf16, #tpu.memory_space<vmem>>, vector<256x16xbf16>
    tpu.vector_store %arg14[%c0_29, %c32], %27 {strides = array<i32>} : memref<256x144xbf16, #tpu.memory_space<vmem>>, vector<256x16xbf16>,
    %c1_30 = arith.constant 1 : index
    %c0_31 = arith.constant 0 : index
    %c0_32 = arith.constant 0 : index
    %29 = vector.load %arg13[%c1_30, %c0_31, %c0_32] : memref<18x18x16xf32, #tpu.memory_space<vmem>>, vector<16x16x16xf32>
    %30 = vector.shape_cast %29 : vector<16x16x16xf32> to vector<256x16xf32>
    %31 = arith.truncf %30 : vector<256x16xf32> to vector<256x16xbf16>
    %c0_33 = arith.constant 0 : index
    %c48 = arith.constant 48 : index
    %32 = vector.load %arg14[%c0_33, %c48] : memref<256x144xbf16, #tpu.memory_space<vmem>>, vector<256x16xbf16>
    tpu.vector_store %arg14[%c0_33, %c48], %31 {strides = array<i32>} : memref<256x144xbf16, #tpu.memory_space<vmem>>, vector<256x16xbf16>,
    %c1_34 = arith.constant 1 : index
    %c1_35 = arith.constant 1 : index
    %c0_36 = arith.constant 0 : index
    %33 = vector.load %arg13[%c1_34, %c1_35, %c0_36] : memref<18x18x16xf32, #tpu.memory_space<vmem>>, vector<16x16x16xf32>
    %34 = vector.shape_cast %33 : vector<16x16x16xf32> to vector<256x16xf32>
    %35 = arith.truncf %34 : vector<256x16xf32> to vector<256x16xbf16>
    %c0_37 = arith.constant 0 : index
    %c64 = arith.constant 64 : index
    %36 = vector.load %arg14[%c0_37, %c64] : memref<256x144xbf16, #tpu.memory_space<vmem>>, vector<256x16xbf16>
    tpu.vector_store %arg14[%c0_37, %c64], %35 {strides = array<i32>} : memref<256x144xbf16, #tpu.memory_space<vmem>>, vector<256x16xbf16>,
    %c1_38 = arith.constant 1 : index
    %c2_39 = arith.constant 2 : index
    %c0_40 = arith.constant 0 : index
    %37 = vector.load %arg13[%c1_38, %c2_39, %c0_40] : memref<18x18x16xf32, #tpu.memory_space<vmem>>, vector<16x16x16xf32>
    %38 = vector.shape_cast %37 : vector<16x16x16xf32> to vector<256x16xf32>
    %39 = arith.truncf %38 : vector<256x16xf32> to vector<256x16xbf16>
    %c0_41 = arith.constant 0 : index
    %c80 = arith.constant 80 : index
    %40 = vector.load %arg14[%c0_41, %c80] : memref<256x144xbf16, #tpu.memory_space<vmem>>, vector<256x16xbf16>
    tpu.vector_store %arg14[%c0_41, %c80], %39 {strides = array<i32>} : memref<256x144xbf16, #tpu.memory_space<vmem>>, vector<256x16xbf16>,
    %c2_42 = arith.constant 2 : index
    %c0_43 = arith.constant 0 : index
    %c0_44 = arith.constant 0 : index
    %41 = vector.load %arg13[%c2_42, %c0_43, %c0_44] : memref<18x18x16xf32, #tpu.memory_space<vmem>>, vector<16x16x16xf32>
    %42 = vector.shape_cast %41 : vector<16x16x16xf32> to vector<256x16xf32>
    %43 = arith.truncf %42 : vector<256x16xf32> to vector<256x16xbf16>
    %c0_45 = arith.constant 0 : index
    %c96 = arith.constant 96 : index
    %44 = vector.load %arg14[%c0_45, %c96] : memref<256x144xbf16, #tpu.memory_space<vmem>>, vector<256x16xbf16>
    tpu.vector_store %arg14[%c0_45, %c96], %43 {strides = array<i32>} : memref<256x144xbf16, #tpu.memory_space<vmem>>, vector<256x16xbf16>,
    %c2_46 = arith.constant 2 : index
    %c1_47 = arith.constant 1 : index
    %c0_48 = arith.constant 0 : index
    %45 = vector.load %arg13[%c2_46, %c1_47, %c0_48] : memref<18x18x16xf32, #tpu.memory_space<vmem>>, vector<16x16x16xf32>
    %46 = vector.shape_cast %45 : vector<16x16x16xf32> to vector<256x16xf32>
    %47 = arith.truncf %46 : vector<256x16xf32> to vector<256x16xbf16>
    %c0_49 = arith.constant 0 : index
    %c112 = arith.constant 112 : index
    %48 = vector.load %arg14[%c0_49, %c112] : memref<256x144xbf16, #tpu.memory_space<vmem>>, vector<256x16xbf16>
    tpu.vector_store %arg14[%c0_49, %c112], %47 {strides = array<i32>} : memref<256x144xbf16, #tpu.memory_space<vmem>>, vector<256x16xbf16>,
    %c2_50 = arith.constant 2 : index
    %c2_51 = arith.constant 2 : index
    %c0_52 = arith.constant 0 : index
    %49 = vector.load %arg13[%c2_50, %c2_51, %c0_52] : memref<18x18x16xf32, #tpu.memory_space<vmem>>, vector<16x16x16xf32>
    %50 = vector.shape_cast %49 : vector<16x16x16xf32> to vector<256x16xf32>
    %51 = arith.truncf %50 : vector<256x16xf32> to vector<256x16xbf16>
    %c0_53 = arith.constant 0 : index
    %c128 = arith.constant 128 : index
    %52 = vector.load %arg14[%c0_53, %c128] : memref<256x144xbf16, #tpu.memory_space<vmem>>, vector<256x16xbf16>
    tpu.vector_store %arg14[%c0_53, %c128], %51 {strides = array<i32>} : memref<256x144xbf16, #tpu.memory_space<vmem>>, vector<256x16xbf16>,
    %c0_54 = arith.constant 0 : index
    %c0_55 = arith.constant 0 : index
    %53 = vector.load %arg14[%c0_54, %c0_55] : memref<256x144xbf16, #tpu.memory_space<vmem>>, vector<256x144xbf16>
    %c0_56 = arith.constant 0 : index
    %c0_57 = arith.constant 0 : index
    %54 = vector.load %arg2[%c0_56, %c0_57] : memref<144x32xbf16, #tpu.memory_space<vmem>>, vector<144x32xbf16>
    %cst_58 = arith.constant dense<0.000000e+00> : vector<256x32xf32>
    %55 = tpu.matmul %53, %54, %cst_58 {dimension_numbers = #tpu.dot_dimension_numbers<[1], [0], [0], [1], [0, 0, 1, 1], [], []>} : vector<256x144xbf16>, vector<144x32xbf16>, vector<256x32xf32> -> vector<256x32xf32>
    %c0_59 = arith.constant 0 : index
    %c0_60 = arith.constant 0 : index
    %56 = vector.load %arg6[%c0_59, %c0_60] : memref<4x32xf32, #tpu.memory_space<vmem>>, vector<1x32xf32>
    %57 = vector.broadcast %56 : vector<1x32xf32> to vector<256x32xf32>
    %58 = arith.addf %55, %57 : vector<256x32xf32>
    %c0_61 = arith.constant 0 : index
    %c0_62 = arith.constant 0 : index
    %59 = vector.load %arg7[%c0_61, %c0_62] : memref<4x32xf32, #tpu.memory_space<vmem>>, vector<1x32xf32>
    %c0_63 = arith.constant 0 : index
    %c0_64 = arith.constant 0 : index
    %60 = vector.load %arg8[%c0_63, %c0_64] : memref<4x32xf32, #tpu.memory_space<vmem>>, vector<1x32xf32>
    %61 = vector.extract_strided_slice %58 {offsets = [0, 0], sizes = [256, 16], strides = [1, 1]} : vector<256x32xf32> to vector<256x16xf32>
    %62 = vector.extract_strided_slice %58 {offsets = [0, 16], sizes = [256, 16], strides = [1, 1]} : vector<256x32xf32> to vector<256x16xf32>
    %63 = vector.shape_cast %61 : vector<256x16xf32> to vector<1x256x16xf32>
    %cst_65 = arith.constant dense<0.000000e+00> : vector<1xf32>
    %64 = vector.multi_reduction <add>, %63, %cst_65 [1, 2] : vector<1x256x16xf32> to vector<1xf32>
    %65 = vector.shape_cast %64 : vector<1xf32> to vector<1x1x1xf32>
    %66 = vector.extract %65[0, 0, 0] : f32 from vector<1x1x1xf32>
    %cst_66 = arith.constant 4.096000e+03 : f32
    %67 = arith.divf %66, %cst_66 : f32
    %68 = vector.shape_cast %62 : vector<256x16xf32> to vector<1x256x16xf32>
    %cst_67 = arith.constant dense<0.000000e+00> : vector<1xf32>
    %69 = vector.multi_reduction <add>, %68, %cst_67 [1, 2] : vector<1x256x16xf32> to vector<1xf32>
    %70 = vector.shape_cast %69 : vector<1xf32> to vector<1x1x1xf32>
    %71 = vector.extract %70[0, 0, 0] : f32 from vector<1x1x1xf32>
    %cst_68 = arith.constant 4.096000e+03 : f32
    %72 = arith.divf %71, %cst_68 : f32
    %73 = vector.broadcast %67 : f32 to vector<256x16xf32>
    %74 = arith.subf %61, %73 : vector<256x16xf32>
    %75 = arith.mulf %74, %74 : vector<256x16xf32>
    %76 = vector.shape_cast %75 : vector<256x16xf32> to vector<1x256x16xf32>
    %cst_69 = arith.constant dense<0.000000e+00> : vector<1xf32>
    %77 = vector.multi_reduction <add>, %76, %cst_69 [1, 2] : vector<1x256x16xf32> to vector<1xf32>
    %78 = vector.shape_cast %77 : vector<1xf32> to vector<1x1x1xf32>
    %79 = vector.extract %78[0, 0, 0] : f32 from vector<1x1x1xf32>
    %cst_70 = arith.constant 4.096000e+03 : f32
    %80 = arith.divf %79, %cst_70 : f32
    %81 = vector.broadcast %72 : f32 to vector<256x16xf32>
    %82 = arith.subf %62, %81 : vector<256x16xf32>
    %83 = arith.mulf %82, %82 : vector<256x16xf32>
    %84 = vector.shape_cast %83 : vector<256x16xf32> to vector<1x256x16xf32>
    %cst_71 = arith.constant dense<0.000000e+00> : vector<1xf32>
    %85 = vector.multi_reduction <add>, %84, %cst_71 [1, 2] : vector<1x256x16xf32> to vector<1xf32>
    %86 = vector.shape_cast %85 : vector<1xf32> to vector<1x1x1xf32>
    %87 = vector.extract %86[0, 0, 0] : f32 from vector<1x1x1xf32>
    %cst_72 = arith.constant 4.096000e+03 : f32
    %88 = arith.divf %87, %cst_72 : f32
    %cst_73 = arith.constant 9.99999974E-6 : f32
    %89 = arith.addf %80, %cst_73 : f32
    %90 = math.rsqrt %89 : f32
    %cst_74 = arith.constant 9.99999974E-6 : f32
    %91 = arith.addf %88, %cst_74 : f32
    %92 = math.rsqrt %91 : f32
    %93 = vector.broadcast %67 : f32 to vector<1x32xf32>
    %94 = arith.mulf %93, %4 : vector<1x32xf32>
    %cst_75 = arith.constant 1.000000e+00 : f32
    %95 = vector.broadcast %cst_75 : f32 to vector<1x32xf32>
    %96 = arith.subf %95, %4 : vector<1x32xf32>
    %97 = vector.broadcast %72 : f32 to vector<1x32xf32>
    %98 = arith.mulf %97, %96 : vector<1x32xf32>
    %99 = arith.addf %94, %98 : vector<1x32xf32>
    %100 = vector.broadcast %90 : f32 to vector<1x32xf32>
    %101 = arith.mulf %100, %4 : vector<1x32xf32>
    %cst_76 = arith.constant 1.000000e+00 : f32
    %102 = vector.broadcast %cst_76 : f32 to vector<1x32xf32>
    %103 = arith.subf %102, %4 : vector<1x32xf32>
    %104 = vector.broadcast %92 : f32 to vector<1x32xf32>
    %105 = arith.mulf %104, %103 : vector<1x32xf32>
    %106 = arith.addf %101, %105 : vector<1x32xf32>
    %107 = arith.mulf %106, %59 : vector<1x32xf32>
    %108 = vector.broadcast %99 : vector<1x32xf32> to vector<256x32xf32>
    %109 = arith.subf %58, %108 : vector<256x32xf32>
    %110 = vector.broadcast %107 : vector<1x32xf32> to vector<256x32xf32>
    %111 = arith.mulf %109, %110 : vector<256x32xf32>
    %112 = vector.broadcast %60 : vector<1x32xf32> to vector<256x32xf32>
    %113 = arith.addf %111, %112 : vector<256x32xf32>
    %cst_77 = arith.constant 0.000000e+00 : f32
    %114 = vector.broadcast %cst_77 : f32 to vector<256x32xf32>
    %115 = arith.cmpf oge, %113, %114 : vector<256x32xf32>
    %cst_78 = arith.constant 2.000000e-01 : f32
    %116 = vector.broadcast %cst_78 : f32 to vector<256x32xf32>
    %117 = arith.mulf %116, %113 : vector<256x32xf32>
    %118 = arith.select %115, %113, %117 : vector<256x32xi1>, vector<256x32xf32>
    %c0_79 = arith.constant 0 : index
    %c0_80 = arith.constant 0 : index
    %c0_81 = arith.constant 0 : index
    %119 = vector.load %arg11[%c0_79, %c0_80, %c0_81] : memref<1x256x32xf32, #tpu.memory_space<vmem>>, vector<1x256x32xf32>
    %120 = vector.shape_cast %119 : vector<1x256x32xf32> to vector<256x32xf32>
    %121 = vector.shape_cast %118 : vector<256x32xf32> to vector<1x256x32xf32>
    tpu.vector_store %arg11[%c0_79, %c0_80, %c0_81], %121 {strides = array<i32>} : memref<1x256x32xf32, #tpu.memory_space<vmem>>, vector<1x256x32xf32>,
    %cst_82 = arith.constant 0.000000e+00 : f32
    %122 = vector.broadcast %cst_82 : f32 to vector<1x1x18x32xf32>
    %c0_83 = arith.constant 0 : index
    %c0_84 = arith.constant 0 : index
    %c0_85 = arith.constant 0 : index
    %c0_86 = arith.constant 0 : index
    %123 = vector.load %arg15[%c0_83, %c0_84, %c0_85, %c0_86] : memref<9x2x18x32xf32, #tpu.memory_space<vmem>>, vector<1x1x18x32xf32>
    tpu.vector_store %arg15[%c0_83, %c0_84, %c0_85, %c0_86], %122 {strides = array<i32>} : memref<9x2x18x32xf32, #tpu.memory_space<vmem>>, vector<1x1x18x32xf32>,
    %cst_87 = arith.constant 0.000000e+00 : f32
    %124 = vector.broadcast %cst_87 : f32 to vector<9x2x1x32xf32>
    %c0_88 = arith.constant 0 : index
    %c0_89 = arith.constant 0 : index
    %c0_90 = arith.constant 0 : index
    %c0_91 = arith.constant 0 : index
    %125 = vector.load %arg15[%c0_88, %c0_89, %c0_90, %c0_91] : memref<9x2x18x32xf32, #tpu.memory_space<vmem>>, vector<9x2x1x32xf32>
    tpu.vector_store %arg15[%c0_88, %c0_89, %c0_90, %c0_91], %124 {strides = array<i32>} : memref<9x2x18x32xf32, #tpu.memory_space<vmem>>, vector<9x2x1x32xf32>,
    %cst_92 = arith.constant 0.000000e+00 : f32
    %126 = vector.broadcast %cst_92 : f32 to vector<9x2x1x32xf32>
    %c0_93 = arith.constant 0 : index
    %c0_94 = arith.constant 0 : index
    %c17_95 = arith.constant 17 : index
    %c0_96 = arith.constant 0 : index
    %127 = vector.load %arg15[%c0_93, %c0_94, %c17_95, %c0_96] : memref<9x2x18x32xf32, #tpu.memory_space<vmem>>, vector<9x2x1x32xf32>
    tpu.vector_store %arg15[%c0_93, %c0_94, %c17_95, %c0_96], %126 {strides = array<i32>} : memref<9x2x18x32xf32, #tpu.memory_space<vmem>>, vector<9x2x1x32xf32>,
    %128 = vector.shape_cast %118 : vector<256x32xf32> to vector<8x2x16x32xf32>
    %129 = vector.extract_strided_slice %128 {offsets = [0, 0, 0, 0], sizes = [8, 1, 16, 32], strides = [1, 1, 1, 1]} : vector<8x2x16x32xf32> to vector<8x1x16x32xf32>
    %c0_97 = arith.constant 0 : index
    %c1_98 = arith.constant 1 : index
    %c1_99 = arith.constant 1 : index
    %c0_100 = arith.constant 0 : index
    %130 = vector.load %arg15[%c0_97, %c1_98, %c1_99, %c0_100] : memref<9x2x18x32xf32, #tpu.memory_space<vmem>>, vector<8x1x16x32xf32>
    tpu.vector_store %arg15[%c0_97, %c1_98, %c1_99, %c0_100], %129 {strides = array<i32>} : memref<9x2x18x32xf32, #tpu.memory_space<vmem>>, vector<8x1x16x32xf32>,
    %131 = vector.extract_strided_slice %128 {offsets = [0, 1, 0, 0], sizes = [8, 1, 16, 32], strides = [1, 1, 1, 1]} : vector<8x2x16x32xf32> to vector<8x1x16x32xf32>
    %c1_101 = arith.constant 1 : index
    %c0_102 = arith.constant 0 : index
    %c1_103 = arith.constant 1 : index
    %c0_104 = arith.constant 0 : index
    %132 = vector.load %arg15[%c1_101, %c0_102, %c1_103, %c0_104] : memref<9x2x18x32xf32, #tpu.memory_space<vmem>>, vector<8x1x16x32xf32>
    tpu.vector_store %arg15[%c1_101, %c0_102, %c1_103, %c0_104], %131 {strides = array<i32>} : memref<9x2x18x32xf32, #tpu.memory_space<vmem>>, vector<8x1x16x32xf32>,
    %c0_105 = arith.constant 0 : index
    %c0_106 = arith.constant 0 : index
    %c0_107 = arith.constant 0 : index
    %c0_108 = arith.constant 0 : index
    %133 = vector.load %arg15[%c0_105, %c0_106, %c0_107, %c0_108] : memref<9x2x18x32xf32, #tpu.memory_space<vmem>>, vector<8x1x16x32xf32>
    %134 = vector.shape_cast %133 : vector<8x1x16x32xf32> to vector<128x32xf32>
    %135 = arith.truncf %134 : vector<128x32xf32> to vector<128x32xbf16>
    %c0_109 = arith.constant 0 : index
    %c0_110 = arith.constant 0 : index
    %136 = vector.load %arg16[%c0_109, %c0_110] : memref<128x288xbf16, #tpu.memory_space<vmem>>, vector<128x32xbf16>
    tpu.vector_store %arg16[%c0_109, %c0_110], %135 {strides = array<i32>} : memref<128x288xbf16, #tpu.memory_space<vmem>>, vector<128x32xbf16>,
    %c0_111 = arith.constant 0 : index
    %c0_112 = arith.constant 0 : index
    %c1_113 = arith.constant 1 : index
    %c0_114 = arith.constant 0 : index
    %137 = vector.load %arg15[%c0_111, %c0_112, %c1_113, %c0_114] : memref<9x2x18x32xf32, #tpu.memory_space<vmem>>, vector<8x1x16x32xf32>
    %138 = vector.shape_cast %137 : vector<8x1x16x32xf32> to vector<128x32xf32>
    %139 = arith.truncf %138 : vector<128x32xf32> to vector<128x32xbf16>
    %c0_115 = arith.constant 0 : index
    %c32_116 = arith.constant 32 : index
    %140 = vector.load %arg16[%c0_115, %c32_116] : memref<128x288xbf16, #tpu.memory_space<vmem>>, vector<128x32xbf16>
    tpu.vector_store %arg16[%c0_115, %c32_116], %139 {strides = array<i32>} : memref<128x288xbf16, #tpu.memory_space<vmem>>, vector<128x32xbf16>,
    %c0_117 = arith.constant 0 : index
    %c0_118 = arith.constant 0 : index
    %c2_119 = arith.constant 2 : index
    %c0_120 = arith.constant 0 : index
    %141 = vector.load %arg15[%c0_117, %c0_118, %c2_119, %c0_120] : memref<9x2x18x32xf32, #tpu.memory_space<vmem>>, vector<8x1x16x32xf32>
    %142 = vector.shape_cast %141 : vector<8x1x16x32xf32> to vector<128x32xf32>
    %143 = arith.truncf %142 : vector<128x32xf32> to vector<128x32xbf16>
    %c0_121 = arith.constant 0 : index
    %c64_122 = arith.constant 64 : index
    %144 = vector.load %arg16[%c0_121, %c64_122] : memref<128x288xbf16, #tpu.memory_space<vmem>>, vector<128x32xbf16>
    tpu.vector_store %arg16[%c0_121, %c64_122], %143 {strides = array<i32>} : memref<128x288xbf16, #tpu.memory_space<vmem>>, vector<128x32xbf16>,
    %c0_123 = arith.constant 0 : index
    %c1_124 = arith.constant 1 : index
    %c0_125 = arith.constant 0 : index
    %c0_126 = arith.constant 0 : index
    %145 = vector.load %arg15[%c0_123, %c1_124, %c0_125, %c0_126] : memref<9x2x18x32xf32, #tpu.memory_space<vmem>>, vector<8x1x16x32xf32>
    %146 = vector.shape_cast %145 : vector<8x1x16x32xf32> to vector<128x32xf32>
    %147 = arith.truncf %146 : vector<128x32xf32> to vector<128x32xbf16>
    %c0_127 = arith.constant 0 : index
    %c96_128 = arith.constant 96 : index
    %148 = vector.load %arg16[%c0_127, %c96_128] : memref<128x288xbf16, #tpu.memory_space<vmem>>, vector<128x32xbf16>
    tpu.vector_store %arg16[%c0_127, %c96_128], %147 {strides = array<i32>} : memref<128x288xbf16, #tpu.memory_space<vmem>>, vector<128x32xbf16>,
    %c0_129 = arith.constant 0 : index
    %c1_130 = arith.constant 1 : index
    %c1_131 = arith.constant 1 : index
    %c0_132 = arith.constant 0 : index
    %149 = vector.load %arg15[%c0_129, %c1_130, %c1_131, %c0_132] : memref<9x2x18x32xf32, #tpu.memory_space<vmem>>, vector<8x1x16x32xf32>
    %150 = vector.shape_cast %149 : vector<8x1x16x32xf32> to vector<128x32xf32>
    %151 = arith.truncf %150 : vector<128x32xf32> to vector<128x32xbf16>
    %c0_133 = arith.constant 0 : index
    %c128_134 = arith.constant 128 : index
    %152 = vector.load %arg16[%c0_133, %c128_134] : memref<128x288xbf16, #tpu.memory_space<vmem>>, vector<128x32xbf16>
    tpu.vector_store %arg16[%c0_133, %c128_134], %151 {strides = array<i32>} : memref<128x288xbf16, #tpu.memory_space<vmem>>, vector<128x32xbf16>,
    %c0_135 = arith.constant 0 : index
    %c1_136 = arith.constant 1 : index
    %c2_137 = arith.constant 2 : index
    %c0_138 = arith.constant 0 : index
    %153 = vector.load %arg15[%c0_135, %c1_136, %c2_137, %c0_138] : memref<9x2x18x32xf32, #tpu.memory_space<vmem>>, vector<8x1x16x32xf32>
    %154 = vector.shape_cast %153 : vector<8x1x16x32xf32> to vector<128x32xf32>
    %155 = arith.truncf %154 : vector<128x32xf32> to vector<128x32xbf16>
    %c0_139 = arith.constant 0 : index
    %c160 = arith.constant 160 : index
    %156 = vector.load %arg16[%c0_139, %c160] : memref<128x288xbf16, #tpu.memory_space<vmem>>, vector<128x32xbf16>
    tpu.vector_store %arg16[%c0_139, %c160], %155 {strides = array<i32>} : memref<128x288xbf16, #tpu.memory_space<vmem>>, vector<128x32xbf16>,
    %c1_140 = arith.constant 1 : index
    %c0_141 = arith.constant 0 : index
    %c0_142 = arith.constant 0 : index
    %c0_143 = arith.constant 0 : index
    %157 = vector.load %arg15[%c1_140, %c0_141, %c0_142, %c0_143] : memref<9x2x18x32xf32, #tpu.memory_space<vmem>>, vector<8x1x16x32xf32>
    %158 = vector.shape_cast %157 : vector<8x1x16x32xf32> to vector<128x32xf32>
    %159 = arith.truncf %158 : vector<128x32xf32> to vector<128x32xbf16>
    %c0_144 = arith.constant 0 : index
    %c192 = arith.constant 192 : index
    %160 = vector.load %arg16[%c0_144, %c192] : memref<128x288xbf16, #tpu.memory_space<vmem>>, vector<128x32xbf16>
    tpu.vector_store %arg16[%c0_144, %c192], %159 {strides = array<i32>} : memref<128x288xbf16, #tpu.memory_space<vmem>>, vector<128x32xbf16>,
    %c1_145 = arith.constant 1 : index
    %c0_146 = arith.constant 0 : index
    %c1_147 = arith.constant 1 : index
    %c0_148 = arith.constant 0 : index
    %161 = vector.load %arg15[%c1_145, %c0_146, %c1_147, %c0_148] : memref<9x2x18x32xf32, #tpu.memory_space<vmem>>, vector<8x1x16x32xf32>
    %162 = vector.shape_cast %161 : vector<8x1x16x32xf32> to vector<128x32xf32>
    %163 = arith.truncf %162 : vector<128x32xf32> to vector<128x32xbf16>
    %c0_149 = arith.constant 0 : index
    %c224 = arith.constant 224 : index
    %164 = vector.load %arg16[%c0_149, %c224] : memref<128x288xbf16, #tpu.memory_space<vmem>>, vector<128x32xbf16>
    tpu.vector_store %arg16[%c0_149, %c224], %163 {strides = array<i32>} : memref<128x288xbf16, #tpu.memory_space<vmem>>, vector<128x32xbf16>,
    %c1_150 = arith.constant 1 : index
    %c0_151 = arith.constant 0 : index
    %c2_152 = arith.constant 2 : index
    %c0_153 = arith.constant 0 : index
    %165 = vector.load %arg15[%c1_150, %c0_151, %c2_152, %c0_153] : memref<9x2x18x32xf32, #tpu.memory_space<vmem>>, vector<8x1x16x32xf32>
    %166 = vector.shape_cast %165 : vector<8x1x16x32xf32> to vector<128x32xf32>
    %167 = arith.truncf %166 : vector<128x32xf32> to vector<128x32xbf16>
    %c0_154 = arith.constant 0 : index
    %c256 = arith.constant 256 : index
    %168 = vector.load %arg16[%c0_154, %c256] : memref<128x288xbf16, #tpu.memory_space<vmem>>, vector<128x32xbf16>
    tpu.vector_store %arg16[%c0_154, %c256], %167 {strides = array<i32>} : memref<128x288xbf16, #tpu.memory_space<vmem>>, vector<128x32xbf16>,
    %c0_155 = arith.constant 0 : index
    %c0_156 = arith.constant 0 : index
    %169 = vector.load %arg16[%c0_155, %c0_156] : memref<128x288xbf16, #tpu.memory_space<vmem>>, vector<128x288xbf16>
    %c0_157 = arith.constant 0 : index
    %c0_158 = arith.constant 0 : index
    %170 = vector.load %arg3[%c0_157, %c0_158] : memref<288x32xbf16, #tpu.memory_space<vmem>>, vector<288x32xbf16>
    %cst_159 = arith.constant dense<0.000000e+00> : vector<128x32xf32>
    %171 = tpu.matmul %169, %170, %cst_159 {dimension_numbers = #tpu.dot_dimension_numbers<[1], [0], [0], [1], [0, 0, 1, 1], [], []>} : vector<128x288xbf16>, vector<288x32xbf16>, vector<128x32xf32> -> vector<128x32xf32>
    %c0_160 = arith.constant 0 : index
    %c0_161 = arith.constant 0 : index
    %172 = vector.load %arg9[%c0_160, %c0_161] : memref<64x128xf32, #tpu.memory_space<vmem>>, vector<64x128xf32>
    %cst_162 = arith.constant dense<0.000000e+00> : vector<64x32xf32>
    %173 = tpu.matmul %172, %171, %cst_162 {dimension_numbers = #tpu.dot_dimension_numbers<[1], [0], [0], [1], [0, 0, 1, 1], [], []>} : vector<64x128xf32>, vector<128x32xf32>, vector<64x32xf32> -> vector<64x32xf32>
    %c1_163 = arith.constant 1 : index
    %c0_164 = arith.constant 0 : index
    %174 = vector.load %arg6[%c1_163, %c0_164] : memref<4x32xf32, #tpu.memory_space<vmem>>, vector<1x32xf32>
    %175 = vector.broadcast %174 : vector<1x32xf32> to vector<64x32xf32>
    %176 = arith.addf %173, %175 : vector<64x32xf32>
    %c1_165 = arith.constant 1 : index
    %c0_166 = arith.constant 0 : index
    %177 = vector.load %arg7[%c1_165, %c0_166] : memref<4x32xf32, #tpu.memory_space<vmem>>, vector<1x32xf32>
    %c1_167 = arith.constant 1 : index
    %c0_168 = arith.constant 0 : index
    %178 = vector.load %arg8[%c1_167, %c0_168] : memref<4x32xf32, #tpu.memory_space<vmem>>, vector<1x32xf32>
    %179 = vector.extract_strided_slice %176 {offsets = [0, 0], sizes = [64, 16], strides = [1, 1]} : vector<64x32xf32> to vector<64x16xf32>
    %180 = vector.extract_strided_slice %176 {offsets = [0, 16], sizes = [64, 16], strides = [1, 1]} : vector<64x32xf32> to vector<64x16xf32>
    %181 = vector.shape_cast %179 : vector<64x16xf32> to vector<1x64x16xf32>
    %cst_169 = arith.constant dense<0.000000e+00> : vector<1xf32>
    %182 = vector.multi_reduction <add>, %181, %cst_169 [1, 2] : vector<1x64x16xf32> to vector<1xf32>
    %183 = vector.shape_cast %182 : vector<1xf32> to vector<1x1x1xf32>
    %184 = vector.extract %183[0, 0, 0] : f32 from vector<1x1x1xf32>
    %cst_170 = arith.constant 1.024000e+03 : f32
    %185 = arith.divf %184, %cst_170 : f32
    %186 = vector.shape_cast %180 : vector<64x16xf32> to vector<1x64x16xf32>
    %cst_171 = arith.constant dense<0.000000e+00> : vector<1xf32>
    %187 = vector.multi_reduction <add>, %186, %cst_171 [1, 2] : vector<1x64x16xf32> to vector<1xf32>
    %188 = vector.shape_cast %187 : vector<1xf32> to vector<1x1x1xf32>
    %189 = vector.extract %188[0, 0, 0] : f32 from vector<1x1x1xf32>
    %cst_172 = arith.constant 1.024000e+03 : f32
    %190 = arith.divf %189, %cst_172 : f32
    %191 = vector.broadcast %185 : f32 to vector<64x16xf32>
    %192 = arith.subf %179, %191 : vector<64x16xf32>
    %193 = arith.mulf %192, %192 : vector<64x16xf32>
    %194 = vector.shape_cast %193 : vector<64x16xf32> to vector<1x64x16xf32>
    %cst_173 = arith.constant dense<0.000000e+00> : vector<1xf32>
    %195 = vector.multi_reduction <add>, %194, %cst_173 [1, 2] : vector<1x64x16xf32> to vector<1xf32>
    %196 = vector.shape_cast %195 : vector<1xf32> to vector<1x1x1xf32>
    %197 = vector.extract %196[0, 0, 0] : f32 from vector<1x1x1xf32>
    %cst_174 = arith.constant 1.024000e+03 : f32
    %198 = arith.divf %197, %cst_174 : f32
    %199 = vector.broadcast %190 : f32 to vector<64x16xf32>
    %200 = arith.subf %180, %199 : vector<64x16xf32>
    %201 = arith.mulf %200, %200 : vector<64x16xf32>
    %202 = vector.shape_cast %201 : vector<64x16xf32> to vector<1x64x16xf32>
    %cst_175 = arith.constant dense<0.000000e+00> : vector<1xf32>
    %203 = vector.multi_reduction <add>, %202, %cst_175 [1, 2] : vector<1x64x16xf32> to vector<1xf32>
    %204 = vector.shape_cast %203 : vector<1xf32> to vector<1x1x1xf32>
    %205 = vector.extract %204[0, 0, 0] : f32 from vector<1x1x1xf32>
    %cst_176 = arith.constant 1.024000e+03 : f32
    %206 = arith.divf %205, %cst_176 : f32
    %cst_177 = arith.constant 9.99999974E-6 : f32
    %207 = arith.addf %198, %cst_177 : f32
    %208 = math.rsqrt %207 : f32
    %cst_178 = arith.constant 9.99999974E-6 : f32
    %209 = arith.addf %206, %cst_178 : f32
    %210 = math.rsqrt %209 : f32
    %211 = vector.broadcast %185 : f32 to vector<1x32xf32>
    %212 = arith.mulf %211, %4 : vector<1x32xf32>
    %cst_179 = arith.constant 1.000000e+00 : f32
    %213 = vector.broadcast %cst_179 : f32 to vector<1x32xf32>
    %214 = arith.subf %213, %4 : vector<1x32xf32>
    %215 = vector.broadcast %190 : f32 to vector<1x32xf32>
    %216 = arith.mulf %215, %214 : vector<1x32xf32>
    %217 = arith.addf %212, %216 : vector<1x32xf32>
    %218 = vector.broadcast %208 : f32 to vector<1x32xf32>
    %219 = arith.mulf %218, %4 : vector<1x32xf32>
    %cst_180 = arith.constant 1.000000e+00 : f32
    %220 = vector.broadcast %cst_180 : f32 to vector<1x32xf32>
    %221 = arith.subf %220, %4 : vector<1x32xf32>
    %222 = vector.broadcast %210 : f32 to vector<1x32xf32>
    %223 = arith.mulf %222, %221 : vector<1x32xf32>
    %224 = arith.addf %219, %223 : vector<1x32xf32>
    %225 = arith.mulf %224, %177 : vector<1x32xf32>
    %226 = vector.broadcast %217 : vector<1x32xf32> to vector<64x32xf32>
    %227 = arith.subf %176, %226 : vector<64x32xf32>
    %228 = vector.broadcast %225 : vector<1x32xf32> to vector<64x32xf32>
    %229 = arith.mulf %227, %228 : vector<64x32xf32>
    %230 = vector.broadcast %178 : vector<1x32xf32> to vector<64x32xf32>
    %231 = arith.addf %229, %230 : vector<64x32xf32>
    %cst_181 = arith.constant 0.000000e+00 : f32
    %232 = vector.broadcast %cst_181 : f32 to vector<64x32xf32>
    %233 = arith.cmpf oge, %231, %232 : vector<64x32xf32>
    %cst_182 = arith.constant 2.000000e-01 : f32
    %234 = vector.broadcast %cst_182 : f32 to vector<64x32xf32>
    %235 = arith.mulf %234, %231 : vector<64x32xf32>
    %236 = arith.select %233, %231, %235 : vector<64x32xi1>, vector<64x32xf32>
    %cst_183 = arith.constant 0.000000e+00 : f32
    %237 = vector.broadcast %cst_183 : f32 to vector<1x10x32xf32>
    %c0_184 = arith.constant 0 : index
    %c0_185 = arith.constant 0 : index
    %c0_186 = arith.constant 0 : index
    %238 = vector.load %arg17[%c0_184, %c0_185, %c0_186] : memref<10x10x32xf32, #tpu.memory_space<vmem>>, vector<1x10x32xf32>
    tpu.vector_store %arg17[%c0_184, %c0_185, %c0_186], %237 {strides = array<i32>} : memref<10x10x32xf32, #tpu.memory_space<vmem>>, vector<1x10x32xf32>,
    %cst_187 = arith.constant 0.000000e+00 : f32
    %239 = vector.broadcast %cst_187 : f32 to vector<1x10x32xf32>
    %c9 = arith.constant 9 : index
    %c0_188 = arith.constant 0 : index
    %c0_189 = arith.constant 0 : index
    %240 = vector.load %arg17[%c9, %c0_188, %c0_189] : memref<10x10x32xf32, #tpu.memory_space<vmem>>, vector<1x10x32xf32>
    tpu.vector_store %arg17[%c9, %c0_188, %c0_189], %239 {strides = array<i32>} : memref<10x10x32xf32, #tpu.memory_space<vmem>>, vector<1x10x32xf32>,
    %cst_190 = arith.constant 0.000000e+00 : f32
    %241 = vector.broadcast %cst_190 : f32 to vector<10x1x32xf32>
    %c0_191 = arith.constant 0 : index
    %c0_192 = arith.constant 0 : index
    %c0_193 = arith.constant 0 : index
    %242 = vector.load %arg17[%c0_191, %c0_192, %c0_193] : memref<10x10x32xf32, #tpu.memory_space<vmem>>, vector<10x1x32xf32>
    tpu.vector_store %arg17[%c0_191, %c0_192, %c0_193], %241 {strides = array<i32>} : memref<10x10x32xf32, #tpu.memory_space<vmem>>, vector<10x1x32xf32>,
    %cst_194 = arith.constant 0.000000e+00 : f32
    %243 = vector.broadcast %cst_194 : f32 to vector<10x1x32xf32>
    %c0_195 = arith.constant 0 : index
    %c9_196 = arith.constant 9 : index
    %c0_197 = arith.constant 0 : index
    %244 = vector.load %arg17[%c0_195, %c9_196, %c0_197] : memref<10x10x32xf32, #tpu.memory_space<vmem>>, vector<10x1x32xf32>
    tpu.vector_store %arg17[%c0_195, %c9_196, %c0_197], %243 {strides = array<i32>} : memref<10x10x32xf32, #tpu.memory_space<vmem>>, vector<10x1x32xf32>,
    %245 = vector.shape_cast %236 : vector<64x32xf32> to vector<8x8x32xf32>
    %c1_198 = arith.constant 1 : index
    %c1_199 = arith.constant 1 : index
    %c0_200 = arith.constant 0 : index
    %246 = vector.load %arg17[%c1_198, %c1_199, %c0_200] : memref<10x10x32xf32, #tpu.memory_space<vmem>>, vector<8x8x32xf32>
    tpu.vector_store %arg17[%c1_198, %c1_199, %c0_200], %245 {strides = array<i32>} : memref<10x10x32xf32, #tpu.memory_space<vmem>>, vector<8x8x32xf32>,
    %c0_201 = arith.constant 0 : index
    %c0_202 = arith.constant 0 : index
    %c0_203 = arith.constant 0 : index
    %247 = vector.load %arg17[%c0_201, %c0_202, %c0_203] : memref<10x10x32xf32, #tpu.memory_space<vmem>>, vector<8x8x32xf32>
    %248 = vector.shape_cast %247 : vector<8x8x32xf32> to vector<64x32xf32>
    %249 = arith.truncf %248 : vector<64x32xf32> to vector<64x32xbf16>
    %c0_204 = arith.constant 0 : index
    %c0_205 = arith.constant 0 : index
    %250 = vector.load %arg18[%c0_204, %c0_205] : memref<64x288xbf16, #tpu.memory_space<vmem>>, vector<64x32xbf16>
    tpu.vector_store %arg18[%c0_204, %c0_205], %249 {strides = array<i32>} : memref<64x288xbf16, #tpu.memory_space<vmem>>, vector<64x32xbf16>,
    %c0_206 = arith.constant 0 : index
    %c1_207 = arith.constant 1 : index
    %c0_208 = arith.constant 0 : index
    %251 = vector.load %arg17[%c0_206, %c1_207, %c0_208] : memref<10x10x32xf32, #tpu.memory_space<vmem>>, vector<8x8x32xf32>
    %252 = vector.shape_cast %251 : vector<8x8x32xf32> to vector<64x32xf32>
    %253 = arith.truncf %252 : vector<64x32xf32> to vector<64x32xbf16>
    %c0_209 = arith.constant 0 : index
    %c32_210 = arith.constant 32 : index
    %254 = vector.load %arg18[%c0_209, %c32_210] : memref<64x288xbf16, #tpu.memory_space<vmem>>, vector<64x32xbf16>
    tpu.vector_store %arg18[%c0_209, %c32_210], %253 {strides = array<i32>} : memref<64x288xbf16, #tpu.memory_space<vmem>>, vector<64x32xbf16>,
    %c0_211 = arith.constant 0 : index
    %c2_212 = arith.constant 2 : index
    %c0_213 = arith.constant 0 : index
    %255 = vector.load %arg17[%c0_211, %c2_212, %c0_213] : memref<10x10x32xf32, #tpu.memory_space<vmem>>, vector<8x8x32xf32>
    %256 = vector.shape_cast %255 : vector<8x8x32xf32> to vector<64x32xf32>
    %257 = arith.truncf %256 : vector<64x32xf32> to vector<64x32xbf16>
    %c0_214 = arith.constant 0 : index
    %c64_215 = arith.constant 64 : index
    %258 = vector.load %arg18[%c0_214, %c64_215] : memref<64x288xbf16, #tpu.memory_space<vmem>>, vector<64x32xbf16>
    tpu.vector_store %arg18[%c0_214, %c64_215], %257 {strides = array<i32>} : memref<64x288xbf16, #tpu.memory_space<vmem>>, vector<64x32xbf16>,
    %c1_216 = arith.constant 1 : index
    %c0_217 = arith.constant 0 : index
    %c0_218 = arith.constant 0 : index
    %259 = vector.load %arg17[%c1_216, %c0_217, %c0_218] : memref<10x10x32xf32, #tpu.memory_space<vmem>>, vector<8x8x32xf32>
    %260 = vector.shape_cast %259 : vector<8x8x32xf32> to vector<64x32xf32>
    %261 = arith.truncf %260 : vector<64x32xf32> to vector<64x32xbf16>
    %c0_219 = arith.constant 0 : index
    %c96_220 = arith.constant 96 : index
    %262 = vector.load %arg18[%c0_219, %c96_220] : memref<64x288xbf16, #tpu.memory_space<vmem>>, vector<64x32xbf16>
    tpu.vector_store %arg18[%c0_219, %c96_220], %261 {strides = array<i32>} : memref<64x288xbf16, #tpu.memory_space<vmem>>, vector<64x32xbf16>,
    %c1_221 = arith.constant 1 : index
    %c1_222 = arith.constant 1 : index
    %c0_223 = arith.constant 0 : index
    %263 = vector.load %arg17[%c1_221, %c1_222, %c0_223] : memref<10x10x32xf32, #tpu.memory_space<vmem>>, vector<8x8x32xf32>
    %264 = vector.shape_cast %263 : vector<8x8x32xf32> to vector<64x32xf32>
    %265 = arith.truncf %264 : vector<64x32xf32> to vector<64x32xbf16>
    %c0_224 = arith.constant 0 : index
    %c128_225 = arith.constant 128 : index
    %266 = vector.load %arg18[%c0_224, %c128_225] : memref<64x288xbf16, #tpu.memory_space<vmem>>, vector<64x32xbf16>
    tpu.vector_store %arg18[%c0_224, %c128_225], %265 {strides = array<i32>} : memref<64x288xbf16, #tpu.memory_space<vmem>>, vector<64x32xbf16>,
    %c1_226 = arith.constant 1 : index
    %c2_227 = arith.constant 2 : index
    %c0_228 = arith.constant 0 : index
    %267 = vector.load %arg17[%c1_226, %c2_227, %c0_228] : memref<10x10x32xf32, #tpu.memory_space<vmem>>, vector<8x8x32xf32>
    %268 = vector.shape_cast %267 : vector<8x8x32xf32> to vector<64x32xf32>
    %269 = arith.truncf %268 : vector<64x32xf32> to vector<64x32xbf16>
    %c0_229 = arith.constant 0 : index
    %c160_230 = arith.constant 160 : index
    %270 = vector.load %arg18[%c0_229, %c160_230] : memref<64x288xbf16, #tpu.memory_space<vmem>>, vector<64x32xbf16>
    tpu.vector_store %arg18[%c0_229, %c160_230], %269 {strides = array<i32>} : memref<64x288xbf16, #tpu.memory_space<vmem>>, vector<64x32xbf16>,
    %c2_231 = arith.constant 2 : index
    %c0_232 = arith.constant 0 : index
    %c0_233 = arith.constant 0 : index
    %271 = vector.load %arg17[%c2_231, %c0_232, %c0_233] : memref<10x10x32xf32, #tpu.memory_space<vmem>>, vector<8x8x32xf32>
    %272 = vector.shape_cast %271 : vector<8x8x32xf32> to vector<64x32xf32>
    %273 = arith.truncf %272 : vector<64x32xf32> to vector<64x32xbf16>
    %c0_234 = arith.constant 0 : index
    %c192_235 = arith.constant 192 : index
    %274 = vector.load %arg18[%c0_234, %c192_235] : memref<64x288xbf16, #tpu.memory_space<vmem>>, vector<64x32xbf16>
    tpu.vector_store %arg18[%c0_234, %c192_235], %273 {strides = array<i32>} : memref<64x288xbf16, #tpu.memory_space<vmem>>, vector<64x32xbf16>,
    %c2_236 = arith.constant 2 : index
    %c1_237 = arith.constant 1 : index
    %c0_238 = arith.constant 0 : index
    %275 = vector.load %arg17[%c2_236, %c1_237, %c0_238] : memref<10x10x32xf32, #tpu.memory_space<vmem>>, vector<8x8x32xf32>
    %276 = vector.shape_cast %275 : vector<8x8x32xf32> to vector<64x32xf32>
    %277 = arith.truncf %276 : vector<64x32xf32> to vector<64x32xbf16>
    %c0_239 = arith.constant 0 : index
    %c224_240 = arith.constant 224 : index
    %278 = vector.load %arg18[%c0_239, %c224_240] : memref<64x288xbf16, #tpu.memory_space<vmem>>, vector<64x32xbf16>
    tpu.vector_store %arg18[%c0_239, %c224_240], %277 {strides = array<i32>} : memref<64x288xbf16, #tpu.memory_space<vmem>>, vector<64x32xbf16>,
    %c2_241 = arith.constant 2 : index
    %c2_242 = arith.constant 2 : index
    %c0_243 = arith.constant 0 : index
    %279 = vector.load %arg17[%c2_241, %c2_242, %c0_243] : memref<10x10x32xf32, #tpu.memory_space<vmem>>, vector<8x8x32xf32>
    %280 = vector.shape_cast %279 : vector<8x8x32xf32> to vector<64x32xf32>
    %281 = arith.truncf %280 : vector<64x32xf32> to vector<64x32xbf16>
    %c0_244 = arith.constant 0 : index
    %c256_245 = arith.constant 256 : index
    %282 = vector.load %arg18[%c0_244, %c256_245] : memref<64x288xbf16, #tpu.memory_space<vmem>>, vector<64x32xbf16>
    tpu.vector_store %arg18[%c0_244, %c256_245], %281 {strides = array<i32>} : memref<64x288xbf16, #tpu.memory_space<vmem>>, vector<64x32xbf16>,
    %c0_246 = arith.constant 0 : index
    %c0_247 = arith.constant 0 : index
    %283 = vector.load %arg18[%c0_246, %c0_247] : memref<64x288xbf16, #tpu.memory_space<vmem>>, vector<64x288xbf16>
    %c0_248 = arith.constant 0 : index
    %c0_249 = arith.constant 0 : index
    %284 = vector.load %arg4[%c0_248, %c0_249] : memref<288x32xbf16, #tpu.memory_space<vmem>>, vector<288x32xbf16>
    %cst_250 = arith.constant dense<0.000000e+00> : vector<64x32xf32>
    %285 = tpu.matmul %283, %284, %cst_250 {dimension_numbers = #tpu.dot_dimension_numbers<[1], [0], [0], [1], [0, 0, 1, 1], [], []>} : vector<64x288xbf16>, vector<288x32xbf16>, vector<64x32xf32> -> vector<64x32xf32>
    %c2_251 = arith.constant 2 : index
    %c0_252 = arith.constant 0 : index
    %286 = vector.load %arg6[%c2_251, %c0_252] : memref<4x32xf32, #tpu.memory_space<vmem>>, vector<1x32xf32>
    %287 = vector.broadcast %286 : vector<1x32xf32> to vector<64x32xf32>
    %288 = arith.addf %285, %287 : vector<64x32xf32>
    %c2_253 = arith.constant 2 : index
    %c0_254 = arith.constant 0 : index
    %289 = vector.load %arg7[%c2_253, %c0_254] : memref<4x32xf32, #tpu.memory_space<vmem>>, vector<1x32xf32>
    %c2_255 = arith.constant 2 : index
    %c0_256 = arith.constant 0 : index
    %290 = vector.load %arg8[%c2_255, %c0_256] : memref<4x32xf32, #tpu.memory_space<vmem>>, vector<1x32xf32>
    %291 = vector.extract_strided_slice %288 {offsets = [0, 0], sizes = [64, 16], strides = [1, 1]} : vector<64x32xf32> to vector<64x16xf32>
    %292 = vector.extract_strided_slice %288 {offsets = [0, 16], sizes = [64, 16], strides = [1, 1]} : vector<64x32xf32> to vector<64x16xf32>
    %293 = vector.shape_cast %291 : vector<64x16xf32> to vector<1x64x16xf32>
    %cst_257 = arith.constant dense<0.000000e+00> : vector<1xf32>
    %294 = vector.multi_reduction <add>, %293, %cst_257 [1, 2] : vector<1x64x16xf32> to vector<1xf32>
    %295 = vector.shape_cast %294 : vector<1xf32> to vector<1x1x1xf32>
    %296 = vector.extract %295[0, 0, 0] : f32 from vector<1x1x1xf32>
    %cst_258 = arith.constant 1.024000e+03 : f32
    %297 = arith.divf %296, %cst_258 : f32
    %298 = vector.shape_cast %292 : vector<64x16xf32> to vector<1x64x16xf32>
    %cst_259 = arith.constant dense<0.000000e+00> : vector<1xf32>
    %299 = vector.multi_reduction <add>, %298, %cst_259 [1, 2] : vector<1x64x16xf32> to vector<1xf32>
    %300 = vector.shape_cast %299 : vector<1xf32> to vector<1x1x1xf32>
    %301 = vector.extract %300[0, 0, 0] : f32 from vector<1x1x1xf32>
    %cst_260 = arith.constant 1.024000e+03 : f32
    %302 = arith.divf %301, %cst_260 : f32
    %303 = vector.broadcast %297 : f32 to vector<64x16xf32>
    %304 = arith.subf %291, %303 : vector<64x16xf32>
    %305 = arith.mulf %304, %304 : vector<64x16xf32>
    %306 = vector.shape_cast %305 : vector<64x16xf32> to vector<1x64x16xf32>
    %cst_261 = arith.constant dense<0.000000e+00> : vector<1xf32>
    %307 = vector.multi_reduction <add>, %306, %cst_261 [1, 2] : vector<1x64x16xf32> to vector<1xf32>
    %308 = vector.shape_cast %307 : vector<1xf32> to vector<1x1x1xf32>
    %309 = vector.extract %308[0, 0, 0] : f32 from vector<1x1x1xf32>
    %cst_262 = arith.constant 1.024000e+03 : f32
    %310 = arith.divf %309, %cst_262 : f32
    %311 = vector.broadcast %302 : f32 to vector<64x16xf32>
    %312 = arith.subf %292, %311 : vector<64x16xf32>
    %313 = arith.mulf %312, %312 : vector<64x16xf32>
    %314 = vector.shape_cast %313 : vector<64x16xf32> to vector<1x64x16xf32>
    %cst_263 = arith.constant dense<0.000000e+00> : vector<1xf32>
    %315 = vector.multi_reduction <add>, %314, %cst_263 [1, 2] : vector<1x64x16xf32> to vector<1xf32>
    %316 = vector.shape_cast %315 : vector<1xf32> to vector<1x1x1xf32>
    %317 = vector.extract %316[0, 0, 0] : f32 from vector<1x1x1xf32>
    %cst_264 = arith.constant 1.024000e+03 : f32
    %318 = arith.divf %317, %cst_264 : f32
    %cst_265 = arith.constant 9.99999974E-6 : f32
    %319 = arith.addf %310, %cst_265 : f32
    %320 = math.rsqrt %319 : f32
    %cst_266 = arith.constant 9.99999974E-6 : f32
    %321 = arith.addf %318, %cst_266 : f32
    %322 = math.rsqrt %321 : f32
    %323 = vector.broadcast %297 : f32 to vector<1x32xf32>
    %324 = arith.mulf %323, %4 : vector<1x32xf32>
    %cst_267 = arith.constant 1.000000e+00 : f32
    %325 = vector.broadcast %cst_267 : f32 to vector<1x32xf32>
    %326 = arith.subf %325, %4 : vector<1x32xf32>
    %327 = vector.broadcast %302 : f32 to vector<1x32xf32>
    %328 = arith.mulf %327, %326 : vector<1x32xf32>
    %329 = arith.addf %324, %328 : vector<1x32xf32>
    %330 = vector.broadcast %320 : f32 to vector<1x32xf32>
    %331 = arith.mulf %330, %4 : vector<1x32xf32>
    %cst_268 = arith.constant 1.000000e+00 : f32
    %332 = vector.broadcast %cst_268 : f32 to vector<1x32xf32>
    %333 = arith.subf %332, %4 : vector<1x32xf32>
    %334 = vector.broadcast %322 : f32 to vector<1x32xf32>
    %335 = arith.mulf %334, %333 : vector<1x32xf32>
    %336 = arith.addf %331, %335 : vector<1x32xf32>
    %337 = arith.mulf %336, %289 : vector<1x32xf32>
    %338 = vector.broadcast %329 : vector<1x32xf32> to vector<64x32xf32>
    %339 = arith.subf %288, %338 : vector<64x32xf32>
    %340 = vector.broadcast %337 : vector<1x32xf32> to vector<64x32xf32>
    %341 = arith.mulf %339, %340 : vector<64x32xf32>
    %342 = vector.broadcast %290 : vector<1x32xf32> to vector<64x32xf32>
    %343 = arith.addf %341, %342 : vector<64x32xf32>
    %cst_269 = arith.constant 0.000000e+00 : f32
    %344 = vector.broadcast %cst_269 : f32 to vector<64x32xf32>
    %345 = arith.cmpf oge, %343, %344 : vector<64x32xf32>
    %cst_270 = arith.constant 2.000000e-01 : f32
    %346 = vector.broadcast %cst_270 : f32 to vector<64x32xf32>
    %347 = arith.mulf %346, %343 : vector<64x32xf32>
    %348 = arith.select %345, %343, %347 : vector<64x32xi1>, vector<64x32xf32>
    %cst_271 = arith.constant 0.000000e+00 : f32
    %349 = vector.broadcast %cst_271 : f32 to vector<1x1x10x32xf32>
    %c0_272 = arith.constant 0 : index
    %c0_273 = arith.constant 0 : index
    %c0_274 = arith.constant 0 : index
    %c0_275 = arith.constant 0 : index
    %350 = vector.load %arg19[%c0_272, %c0_273, %c0_274, %c0_275] : memref<5x2x10x32xf32, #tpu.memory_space<vmem>>, vector<1x1x10x32xf32>
    tpu.vector_store %arg19[%c0_272, %c0_273, %c0_274, %c0_275], %349 {strides = array<i32>} : memref<5x2x10x32xf32, #tpu.memory_space<vmem>>, vector<1x1x10x32xf32>,
    %cst_276 = arith.constant 0.000000e+00 : f32
    %351 = vector.broadcast %cst_276 : f32 to vector<5x2x1x32xf32>
    %c0_277 = arith.constant 0 : index
    %c0_278 = arith.constant 0 : index
    %c0_279 = arith.constant 0 : index
    %c0_280 = arith.constant 0 : index
    %352 = vector.load %arg19[%c0_277, %c0_278, %c0_279, %c0_280] : memref<5x2x10x32xf32, #tpu.memory_space<vmem>>, vector<5x2x1x32xf32>
    tpu.vector_store %arg19[%c0_277, %c0_278, %c0_279, %c0_280], %351 {strides = array<i32>} : memref<5x2x10x32xf32, #tpu.memory_space<vmem>>, vector<5x2x1x32xf32>,
    %cst_281 = arith.constant 0.000000e+00 : f32
    %353 = vector.broadcast %cst_281 : f32 to vector<5x2x1x32xf32>
    %c0_282 = arith.constant 0 : index
    %c0_283 = arith.constant 0 : index
    %c9_284 = arith.constant 9 : index
    %c0_285 = arith.constant 0 : index
    %354 = vector.load %arg19[%c0_282, %c0_283, %c9_284, %c0_285] : memref<5x2x10x32xf32, #tpu.memory_space<vmem>>, vector<5x2x1x32xf32>
    tpu.vector_store %arg19[%c0_282, %c0_283, %c9_284, %c0_285], %353 {strides = array<i32>} : memref<5x2x10x32xf32, #tpu.memory_space<vmem>>, vector<5x2x1x32xf32>,
    %355 = vector.shape_cast %348 : vector<64x32xf32> to vector<4x2x8x32xf32>
    %356 = vector.extract_strided_slice %355 {offsets = [0, 0, 0, 0], sizes = [4, 1, 8, 32], strides = [1, 1, 1, 1]} : vector<4x2x8x32xf32> to vector<4x1x8x32xf32>
    %c0_286 = arith.constant 0 : index
    %c1_287 = arith.constant 1 : index
    %c1_288 = arith.constant 1 : index
    %c0_289 = arith.constant 0 : index
    %357 = vector.load %arg19[%c0_286, %c1_287, %c1_288, %c0_289] : memref<5x2x10x32xf32, #tpu.memory_space<vmem>>, vector<4x1x8x32xf32>
    tpu.vector_store %arg19[%c0_286, %c1_287, %c1_288, %c0_289], %356 {strides = array<i32>} : memref<5x2x10x32xf32, #tpu.memory_space<vmem>>, vector<4x1x8x32xf32>,
    %358 = vector.extract_strided_slice %355 {offsets = [0, 1, 0, 0], sizes = [4, 1, 8, 32], strides = [1, 1, 1, 1]} : vector<4x2x8x32xf32> to vector<4x1x8x32xf32>
    %c1_290 = arith.constant 1 : index
    %c0_291 = arith.constant 0 : index
    %c1_292 = arith.constant 1 : index
    %c0_293 = arith.constant 0 : index
    %359 = vector.load %arg19[%c1_290, %c0_291, %c1_292, %c0_293] : memref<5x2x10x32xf32, #tpu.memory_space<vmem>>, vector<4x1x8x32xf32>
    tpu.vector_store %arg19[%c1_290, %c0_291, %c1_292, %c0_293], %358 {strides = array<i32>} : memref<5x2x10x32xf32, #tpu.memory_space<vmem>>, vector<4x1x8x32xf32>,
    %c0_294 = arith.constant 0 : index
    %c0_295 = arith.constant 0 : index
    %c0_296 = arith.constant 0 : index
    %c0_297 = arith.constant 0 : index
    %360 = vector.load %arg19[%c0_294, %c0_295, %c0_296, %c0_297] : memref<5x2x10x32xf32, #tpu.memory_space<vmem>>, vector<4x1x8x32xf32>
    %361 = vector.shape_cast %360 : vector<4x1x8x32xf32> to vector<32x32xf32>
    %362 = arith.truncf %361 : vector<32x32xf32> to vector<32x32xbf16>
    %c0_298 = arith.constant 0 : index
    %c0_299 = arith.constant 0 : index
    %363 = vector.load %arg20[%c0_298, %c0_299] : memref<32x288xbf16, #tpu.memory_space<vmem>>, vector<32x32xbf16>
    tpu.vector_store %arg20[%c0_298, %c0_299], %362 {strides = array<i32>} : memref<32x288xbf16, #tpu.memory_space<vmem>>, vector<32x32xbf16>,
    %c0_300 = arith.constant 0 : index
    %c0_301 = arith.constant 0 : index
    %c1_302 = arith.constant 1 : index
    %c0_303 = arith.constant 0 : index
    %364 = vector.load %arg19[%c0_300, %c0_301, %c1_302, %c0_303] : memref<5x2x10x32xf32, #tpu.memory_space<vmem>>, vector<4x1x8x32xf32>
    %365 = vector.shape_cast %364 : vector<4x1x8x32xf32> to vector<32x32xf32>
    %366 = arith.truncf %365 : vector<32x32xf32> to vector<32x32xbf16>
    %c0_304 = arith.constant 0 : index
    %c32_305 = arith.constant 32 : index
    %367 = vector.load %arg20[%c0_304, %c32_305] : memref<32x288xbf16, #tpu.memory_space<vmem>>, vector<32x32xbf16>
    tpu.vector_store %arg20[%c0_304, %c32_305], %366 {strides = array<i32>} : memref<32x288xbf16, #tpu.memory_space<vmem>>, vector<32x32xbf16>,
    %c0_306 = arith.constant 0 : index
    %c0_307 = arith.constant 0 : index
    %c2_308 = arith.constant 2 : index
    %c0_309 = arith.constant 0 : index
    %368 = vector.load %arg19[%c0_306, %c0_307, %c2_308, %c0_309] : memref<5x2x10x32xf32, #tpu.memory_space<vmem>>, vector<4x1x8x32xf32>
    %369 = vector.shape_cast %368 : vector<4x1x8x32xf32> to vector<32x32xf32>
    %370 = arith.truncf %369 : vector<32x32xf32> to vector<32x32xbf16>
    %c0_310 = arith.constant 0 : index
    %c64_311 = arith.constant 64 : index
    %371 = vector.load %arg20[%c0_310, %c64_311] : memref<32x288xbf16, #tpu.memory_space<vmem>>, vector<32x32xbf16>
    tpu.vector_store %arg20[%c0_310, %c64_311], %370 {strides = array<i32>} : memref<32x288xbf16, #tpu.memory_space<vmem>>, vector<32x32xbf16>,
    %c0_312 = arith.constant 0 : index
    %c1_313 = arith.constant 1 : index
    %c0_314 = arith.constant 0 : index
    %c0_315 = arith.constant 0 : index
    %372 = vector.load %arg19[%c0_312, %c1_313, %c0_314, %c0_315] : memref<5x2x10x32xf32, #tpu.memory_space<vmem>>, vector<4x1x8x32xf32>
    %373 = vector.shape_cast %372 : vector<4x1x8x32xf32> to vector<32x32xf32>
    %374 = arith.truncf %373 : vector<32x32xf32> to vector<32x32xbf16>
    %c0_316 = arith.constant 0 : index
    %c96_317 = arith.constant 96 : index
    %375 = vector.load %arg20[%c0_316, %c96_317] : memref<32x288xbf16, #tpu.memory_space<vmem>>, vector<32x32xbf16>
    tpu.vector_store %arg20[%c0_316, %c96_317], %374 {strides = array<i32>} : memref<32x288xbf16, #tpu.memory_space<vmem>>, vector<32x32xbf16>,
    %c0_318 = arith.constant 0 : index
    %c1_319 = arith.constant 1 : index
    %c1_320 = arith.constant 1 : index
    %c0_321 = arith.constant 0 : index
    %376 = vector.load %arg19[%c0_318, %c1_319, %c1_320, %c0_321] : memref<5x2x10x32xf32, #tpu.memory_space<vmem>>, vector<4x1x8x32xf32>
    %377 = vector.shape_cast %376 : vector<4x1x8x32xf32> to vector<32x32xf32>
    %378 = arith.truncf %377 : vector<32x32xf32> to vector<32x32xbf16>
    %c0_322 = arith.constant 0 : index
    %c128_323 = arith.constant 128 : index
    %379 = vector.load %arg20[%c0_322, %c128_323] : memref<32x288xbf16, #tpu.memory_space<vmem>>, vector<32x32xbf16>
    tpu.vector_store %arg20[%c0_322, %c128_323], %378 {strides = array<i32>} : memref<32x288xbf16, #tpu.memory_space<vmem>>, vector<32x32xbf16>,
    %c0_324 = arith.constant 0 : index
    %c1_325 = arith.constant 1 : index
    %c2_326 = arith.constant 2 : index
    %c0_327 = arith.constant 0 : index
    %380 = vector.load %arg19[%c0_324, %c1_325, %c2_326, %c0_327] : memref<5x2x10x32xf32, #tpu.memory_space<vmem>>, vector<4x1x8x32xf32>
    %381 = vector.shape_cast %380 : vector<4x1x8x32xf32> to vector<32x32xf32>
    %382 = arith.truncf %381 : vector<32x32xf32> to vector<32x32xbf16>
    %c0_328 = arith.constant 0 : index
    %c160_329 = arith.constant 160 : index
    %383 = vector.load %arg20[%c0_328, %c160_329] : memref<32x288xbf16, #tpu.memory_space<vmem>>, vector<32x32xbf16>
    tpu.vector_store %arg20[%c0_328, %c160_329], %382 {strides = array<i32>} : memref<32x288xbf16, #tpu.memory_space<vmem>>, vector<32x32xbf16>,
    %c1_330 = arith.constant 1 : index
    %c0_331 = arith.constant 0 : index
    %c0_332 = arith.constant 0 : index
    %c0_333 = arith.constant 0 : index
    %384 = vector.load %arg19[%c1_330, %c0_331, %c0_332, %c0_333] : memref<5x2x10x32xf32, #tpu.memory_space<vmem>>, vector<4x1x8x32xf32>
    %385 = vector.shape_cast %384 : vector<4x1x8x32xf32> to vector<32x32xf32>
    %386 = arith.truncf %385 : vector<32x32xf32> to vector<32x32xbf16>
    %c0_334 = arith.constant 0 : index
    %c192_335 = arith.constant 192 : index
    %387 = vector.load %arg20[%c0_334, %c192_335] : memref<32x288xbf16, #tpu.memory_space<vmem>>, vector<32x32xbf16>
    tpu.vector_store %arg20[%c0_334, %c192_335], %386 {strides = array<i32>} : memref<32x288xbf16, #tpu.memory_space<vmem>>, vector<32x32xbf16>,
    %c1_336 = arith.constant 1 : index
    %c0_337 = arith.constant 0 : index
    %c1_338 = arith.constant 1 : index
    %c0_339 = arith.constant 0 : index
    %388 = vector.load %arg19[%c1_336, %c0_337, %c1_338, %c0_339] : memref<5x2x10x32xf32, #tpu.memory_space<vmem>>, vector<4x1x8x32xf32>
    %389 = vector.shape_cast %388 : vector<4x1x8x32xf32> to vector<32x32xf32>
    %390 = arith.truncf %389 : vector<32x32xf32> to vector<32x32xbf16>
    %c0_340 = arith.constant 0 : index
    %c224_341 = arith.constant 224 : index
    %391 = vector.load %arg20[%c0_340, %c224_341] : memref<32x288xbf16, #tpu.memory_space<vmem>>, vector<32x32xbf16>
    tpu.vector_store %arg20[%c0_340, %c224_341], %390 {strides = array<i32>} : memref<32x288xbf16, #tpu.memory_space<vmem>>, vector<32x32xbf16>,
    %c1_342 = arith.constant 1 : index
    %c0_343 = arith.constant 0 : index
    %c2_344 = arith.constant 2 : index
    %c0_345 = arith.constant 0 : index
    %392 = vector.load %arg19[%c1_342, %c0_343, %c2_344, %c0_345] : memref<5x2x10x32xf32, #tpu.memory_space<vmem>>, vector<4x1x8x32xf32>
    %393 = vector.shape_cast %392 : vector<4x1x8x32xf32> to vector<32x32xf32>
    %394 = arith.truncf %393 : vector<32x32xf32> to vector<32x32xbf16>
    %c0_346 = arith.constant 0 : index
    %c256_347 = arith.constant 256 : index
    %395 = vector.load %arg20[%c0_346, %c256_347] : memref<32x288xbf16, #tpu.memory_space<vmem>>, vector<32x32xbf16>
    tpu.vector_store %arg20[%c0_346, %c256_347], %394 {strides = array<i32>} : memref<32x288xbf16, #tpu.memory_space<vmem>>, vector<32x32xbf16>,
    %c0_348 = arith.constant 0 : index
    %c0_349 = arith.constant 0 : index
    %396 = vector.load %arg20[%c0_348, %c0_349] : memref<32x288xbf16, #tpu.memory_space<vmem>>, vector<32x288xbf16>
    %c0_350 = arith.constant 0 : index
    %c0_351 = arith.constant 0 : index
    %397 = vector.load %arg5[%c0_350, %c0_351] : memref<288x32xbf16, #tpu.memory_space<vmem>>, vector<288x32xbf16>
    %cst_352 = arith.constant dense<0.000000e+00> : vector<32x32xf32>
    %398 = tpu.matmul %396, %397, %cst_352 {dimension_numbers = #tpu.dot_dimension_numbers<[1], [0], [0], [1], [0, 0, 1, 1], [], []>} : vector<32x288xbf16>, vector<288x32xbf16>, vector<32x32xf32> -> vector<32x32xf32>
    %c0_353 = arith.constant 0 : index
    %c0_354 = arith.constant 0 : index
    %399 = vector.load %arg10[%c0_353, %c0_354] : memref<16x32xf32, #tpu.memory_space<vmem>>, vector<16x32xf32>
    %cst_355 = arith.constant dense<0.000000e+00> : vector<16x32xf32>
    %400 = tpu.matmul %399, %398, %cst_355 {dimension_numbers = #tpu.dot_dimension_numbers<[1], [0], [0], [1], [0, 0, 1, 1], [], []>} : vector<16x32xf32>, vector<32x32xf32>, vector<16x32xf32> -> vector<16x32xf32>
    %c3 = arith.constant 3 : index
    %c0_356 = arith.constant 0 : index
    %401 = vector.load %arg6[%c3, %c0_356] : memref<4x32xf32, #tpu.memory_space<vmem>>, vector<1x32xf32>
    %402 = vector.broadcast %401 : vector<1x32xf32> to vector<16x32xf32>
    %403 = arith.addf %400, %402 : vector<16x32xf32>
    %c3_357 = arith.constant 3 : index
    %c0_358 = arith.constant 0 : index
    %404 = vector.load %arg7[%c3_357, %c0_358] : memref<4x32xf32, #tpu.memory_space<vmem>>, vector<1x32xf32>
    %c3_359 = arith.constant 3 : index
    %c0_360 = arith.constant 0 : index
    %405 = vector.load %arg8[%c3_359, %c0_360] : memref<4x32xf32, #tpu.memory_space<vmem>>, vector<1x32xf32>
    %406 = vector.extract_strided_slice %403 {offsets = [0, 0], sizes = [16, 16], strides = [1, 1]} : vector<16x32xf32> to vector<16x16xf32>
    %407 = vector.extract_strided_slice %403 {offsets = [0, 16], sizes = [16, 16], strides = [1, 1]} : vector<16x32xf32> to vector<16x16xf32>
    %408 = vector.shape_cast %406 : vector<16x16xf32> to vector<1x16x16xf32>
    %cst_361 = arith.constant dense<0.000000e+00> : vector<1xf32>
    %409 = vector.multi_reduction <add>, %408, %cst_361 [1, 2] : vector<1x16x16xf32> to vector<1xf32>
    %410 = vector.shape_cast %409 : vector<1xf32> to vector<1x1x1xf32>
    %411 = vector.extract %410[0, 0, 0] : f32 from vector<1x1x1xf32>
    %cst_362 = arith.constant 2.560000e+02 : f32
    %412 = arith.divf %411, %cst_362 : f32
    %413 = vector.shape_cast %407 : vector<16x16xf32> to vector<1x16x16xf32>
    %cst_363 = arith.constant dense<0.000000e+00> : vector<1xf32>
    %414 = vector.multi_reduction <add>, %413, %cst_363 [1, 2] : vector<1x16x16xf32> to vector<1xf32>
    %415 = vector.shape_cast %414 : vector<1xf32> to vector<1x1x1xf32>
    %416 = vector.extract %415[0, 0, 0] : f32 from vector<1x1x1xf32>
    %cst_364 = arith.constant 2.560000e+02 : f32
    %417 = arith.divf %416, %cst_364 : f32
    %418 = vector.broadcast %412 : f32 to vector<16x16xf32>
    %419 = arith.subf %406, %418 : vector<16x16xf32>
    %420 = arith.mulf %419, %419 : vector<16x16xf32>
    %421 = vector.shape_cast %420 : vector<16x16xf32> to vector<1x16x16xf32>
    %cst_365 = arith.constant dense<0.000000e+00> : vector<1xf32>
    %422 = vector.multi_reduction <add>, %421, %cst_365 [1, 2] : vector<1x16x16xf32> to vector<1xf32>
    %423 = vector.shape_cast %422 : vector<1xf32> to vector<1x1x1xf32>
    %424 = vector.extract %423[0, 0, 0] : f32 from vector<1x1x1xf32>
    %cst_366 = arith.constant 2.560000e+02 : f32
    %425 = arith.divf %424, %cst_366 : f32
    %426 = vector.broadcast %417 : f32 to vector<16x16xf32>
    %427 = arith.subf %407, %426 : vector<16x16xf32>
    %428 = arith.mulf %427, %427 : vector<16x16xf32>
    %429 = vector.shape_cast %428 : vector<16x16xf32> to vector<1x16x16xf32>
    %cst_367 = arith.constant dense<0.000000e+00> : vector<1xf32>
    %430 = vector.multi_reduction <add>, %429, %cst_367 [1, 2] : vector<1x16x16xf32> to vector<1xf32>
    %431 = vector.shape_cast %430 : vector<1xf32> to vector<1x1x1xf32>
    %432 = vector.extract %431[0, 0, 0] : f32 from vector<1x1x1xf32>
    %cst_368 = arith.constant 2.560000e+02 : f32
    %433 = arith.divf %432, %cst_368 : f32
    %cst_369 = arith.constant 9.99999974E-6 : f32
    %434 = arith.addf %425, %cst_369 : f32
    %435 = math.rsqrt %434 : f32
    %cst_370 = arith.constant 9.99999974E-6 : f32
    %436 = arith.addf %433, %cst_370 : f32
    %437 = math.rsqrt %436 : f32
    %438 = vector.broadcast %412 : f32 to vector<1x32xf32>
    %439 = arith.mulf %438, %4 : vector<1x32xf32>
    %cst_371 = arith.constant 1.000000e+00 : f32
    %440 = vector.broadcast %cst_371 : f32 to vector<1x32xf32>
    %441 = arith.subf %440, %4 : vector<1x32xf32>
    %442 = vector.broadcast %417 : f32 to vector<1x32xf32>
    %443 = arith.mulf %442, %441 : vector<1x32xf32>
    %444 = arith.addf %439, %443 : vector<1x32xf32>
    %445 = vector.broadcast %435 : f32 to vector<1x32xf32>
    %446 = arith.mulf %445, %4 : vector<1x32xf32>
    %cst_372 = arith.constant 1.000000e+00 : f32
    %447 = vector.broadcast %cst_372 : f32 to vector<1x32xf32>
    %448 = arith.subf %447, %4 : vector<1x32xf32>
    %449 = vector.broadcast %437 : f32 to vector<1x32xf32>
    %450 = arith.mulf %449, %448 : vector<1x32xf32>
    %451 = arith.addf %446, %450 : vector<1x32xf32>
    %452 = arith.mulf %451, %404 : vector<1x32xf32>
    %453 = vector.broadcast %444 : vector<1x32xf32> to vector<16x32xf32>
    %454 = arith.subf %403, %453 : vector<16x32xf32>
    %455 = vector.broadcast %452 : vector<1x32xf32> to vector<16x32xf32>
    %456 = arith.mulf %454, %455 : vector<16x32xf32>
    %457 = vector.broadcast %405 : vector<1x32xf32> to vector<16x32xf32>
    %458 = arith.addf %456, %457 : vector<16x32xf32>
    %cst_373 = arith.constant 0.000000e+00 : f32
    %459 = vector.broadcast %cst_373 : f32 to vector<16x32xf32>
    %460 = arith.cmpf oge, %458, %459 : vector<16x32xf32>
    %cst_374 = arith.constant 2.000000e-01 : f32
    %461 = vector.broadcast %cst_374 : f32 to vector<16x32xf32>
    %462 = arith.mulf %461, %458 : vector<16x32xf32>
    %463 = arith.select %460, %458, %462 : vector<16x32xi1>, vector<16x32xf32>
    %c0_375 = arith.constant 0 : index
    %c0_376 = arith.constant 0 : index
    %c0_377 = arith.constant 0 : index
    %464 = vector.load %arg12[%c0_375, %c0_376, %c0_377] : memref<1x16x32xf32, #tpu.memory_space<vmem>>, vector<1x16x32xf32>
    %465 = vector.shape_cast %464 : vector<1x16x32xf32> to vector<16x32xf32>
    %466 = vector.shape_cast %463 : vector<16x32xf32> to vector<1x16x32xf32>
    tpu.vector_store %arg12[%c0_375, %c0_376, %c0_377], %466 {strides = array<i32>} : memref<1x16x32xf32, #tpu.memory_space<vmem>>, vector<1x16x32xf32>,
    return
  }
  func.func @transform_0(%arg0: i32) -> (i32, i32, i32) {
    %c0_i32 = arith.constant 0 : i32
    %c0_i32_0 = arith.constant 0 : i32
    %c0_i32_1 = arith.constant 0 : i32
    return %arg0, %c0_i32, %c0_i32_0 : i32, i32, i32
  }
  func.func @transform_1(%arg0: i32) -> (i32, i32) {
    %c0_i32 = arith.constant 0 : i32
    %c0_i32_0 = arith.constant 0 : i32
    %c0_i32_1 = arith.constant 0 : i32
    return %c0_i32, %c0_i32_0 : i32, i32
  }
  func.func @transform_2(%arg0: i32) -> (i32, i32) {
    %c0_i32 = arith.constant 0 : i32
    %c0_i32_0 = arith.constant 0 : i32
    %c0_i32_1 = arith.constant 0 : i32
    return %c0_i32, %c0_i32_0 : i32, i32
  }
  func.func @transform_3(%arg0: i32) -> (i32, i32) {
    %c0_i32 = arith.constant 0 : i32
    %c0_i32_0 = arith.constant 0 : i32
    %c0_i32_1 = arith.constant 0 : i32
    return %c0_i32, %c0_i32_0 : i32, i32
  }
  func.func @transform_4(%arg0: i32) -> (i32, i32) {
    %c0_i32 = arith.constant 0 : i32
    %c0_i32_0 = arith.constant 0 : i32
    %c0_i32_1 = arith.constant 0 : i32
    return %c0_i32, %c0_i32_0 : i32, i32
  }
  func.func @transform_5(%arg0: i32) -> (i32, i32) {
    %c0_i32 = arith.constant 0 : i32
    %c0_i32_0 = arith.constant 0 : i32
    %c0_i32_1 = arith.constant 0 : i32
    return %c0_i32, %c0_i32_0 : i32, i32
  }
  func.func @transform_6(%arg0: i32) -> (i32, i32) {
    %c0_i32 = arith.constant 0 : i32
    %c0_i32_0 = arith.constant 0 : i32
    %c0_i32_1 = arith.constant 0 : i32
    return %c0_i32, %c0_i32_0 : i32, i32
  }
  func.func @transform_7(%arg0: i32) -> (i32, i32) {
    %c0_i32 = arith.constant 0 : i32
    %c0_i32_0 = arith.constant 0 : i32
    %c0_i32_1 = arith.constant 0 : i32
    return %c0_i32, %c0_i32_0 : i32, i32
  }
  func.func @transform_8(%arg0: i32) -> (i32, i32) {
    %c0_i32 = arith.constant 0 : i32
    %c0_i32_0 = arith.constant 0 : i32
    %c0_i32_1 = arith.constant 0 : i32
    return %c0_i32, %c0_i32_0 : i32, i32
  }
  func.func @transform_9(%arg0: i32) -> (i32, i32) {
    %c0_i32 = arith.constant 0 : i32
    %c0_i32_0 = arith.constant 0 : i32
    %c0_i32_1 = arith.constant 0 : i32
    return %c0_i32, %c0_i32_0 : i32, i32
  }
  func.func @transform_10(%arg0: i32) -> (i32, i32, i32) {
    %c0_i32 = arith.constant 0 : i32
    %c0_i32_0 = arith.constant 0 : i32
    %c0_i32_1 = arith.constant 0 : i32
    return %arg0, %c0_i32, %c0_i32_0 : i32, i32, i32
  }
  func.func @transform_11(%arg0: i32) -> (i32, i32, i32) {
    %c0_i32 = arith.constant 0 : i32
    %c0_i32_0 = arith.constant 0 : i32
    %c0_i32_1 = arith.constant 0 : i32
    return %arg0, %c0_i32, %c0_i32_0 : i32, i32, i32
  }
}

</mosaic_0001>

<bundles_post_ra>
// kernel: _lambda_.1
= control target key start
LH: loop header
LB: loop body
LE: loop exit
PB: predicated region body
PF: predicated region fallthrough
CT: control target
= control target key end

     0   :  { %s11938_s0 = inlined_call_operand.vmem [shape: f32[2,256,16], index: 0, kind: input, shape index: {}]   ;;  %s11939_s1 = inlined_call_operand.vmem [shape: bf16[144,32], index: 1, kind: input, shape index: {}]   ;;  %s11940_s2 = inlined_call_operand.vmem [shape: bf16[288,32], index: 2, kind: input, shape index: {}]   ;;  %s11941_s3 = inlined_call_operand.vmem [shape: bf16[288,32], index: 3, kind: input, shape index: {}]   ;;  %s11942_s4 = inlined_call_operand.vmem [shape: bf16[288,32], index: 4, kind: input, shape index: {}]   ;;  %s11943_s5 = inlined_call_operand.vmem [shape: f32[4,32], index: 5, kind: input, shape index: {}]   ;;  %s11944_s6 = inlined_call_operand.vmem [shape: f32[4,32], index: 6, kind: input, shape index: {}]   ;;  %s11945_s7 = inlined_call_operand.vmem [shape: f32[4,32], index: 7, kind: input, shape index: {}]   ;;  %s11946_s8 = inlined_call_operand.vmem [shape: f32[64,128], index: 8, kind: input, shape index: {}]   ;;  %s11947_s9 = inlined_call_operand.vmem [shape: f32[16,32], index: 9, kind: input, shape index: {}]   ;;  %s11948_s10 = inlined_call_operand.hbm [shape: f32[2,256,32], index: 10, kind: output, shape index: {0}]   ;;  %s11949_s11 = inlined_call_operand.hbm [shape: f32[2,16,32], index: 11, kind: output, shape index: {1}]  }
   0x1   :  { %11963 = sst [smem:[#allocation18_spill]] %s11938_s0 }
   0x2   :  { %11964 = sst [smem:[#allocation19_spill]] %s11939_s1 }
   0x3   :  { %11965 = sst [smem:[#allocation20_spill]] %s11940_s2 }
   0x4   :  { %11966 = sst [smem:[#allocation21_spill]] %s11941_s3 }
   0x5   :  { %11967 = sst [smem:[#allocation22_spill]] %s11942_s4 }
   0x6   :  { %17 = vsyncpa [#allocation11], 0 }
   0x7   :  { %19 = vsyncpa [#allocation11 + $0x1], 0 }
   0x8   :  { %20 = vsyncpa [#allocation13], 0 }
   0x9   :  { %22 = vsyncpa [#allocation13 + $0x1], 0  ;;  %s8402_s17 = smov 0   ;;  %s8404_s18 = smov 0  }
   0xa   :  { %s8406_s19 = smov 0   ;;  %s8408_s20 = smov 0  }
   0xb LB: > { %11968 = sst [smem:[#allocation16_spill]] %s8323_s19  ;;  %s8423_s21 = sadd.s32 4294967295, %s8327_s20   ;;  %s8327_s20 = sphi %s8408_s20, %s11987_s20   ;;  %s8323_s19 = sphi %s8406_s19, %s11984_s19   ;;  %s8319_s18 = sphi %s8404_s18, %s11986_s18   ;;  %s8315_s17 = sphi %s8402_s17, %s11985_s17  }
   0xc   : > { %s7354_s22 = sadd.s32 4294967294, %s8327_s20   ;;  %s8427_s23 = sadd.s32 1, %s8327_s20  }
   0xd   : > { %s250_s24 = sadd.s32 1, %s8323_s19  ;;  %s247_s25 = ssub.s32 %s8327_s20, %s8427_s23 }
   0xe   : > { %p260_p0 = scmp.ne.s32.totalorder %s8323_s19, %s8319_s18  ;;  %p248_p1 = scmp.eq.s32.totalorder %s247_s25, 0 }
   0xf   : > { %p261_p2 = scmp.eq.s32.totalorder %s8423_s21, 1  ;;  %p266_p3 = scmp.ne.s32.totalorder %s8319_s18, %s8315_s17 }
  0x10   : > { %p267_p4 = scmp.eq.s32.totalorder %s7354_s22, 1  ;;  %p7357_p7 = scmp.ge.s32.totalorder %s8327_s20, 1 }
  0x11   : > { %s8438_s26 = scalar_select %p248_p1, %s8323_s19, %s250_s24  }
  0x12   : > { %p8440_p5 = por %p261_p2, %p260_p0  ;;  %p8444_p6 = por %p267_p4, %p266_p3 }
  0x13   : > { %11969 = sst [smem:[#allocation17_spill]] %s8438_s26  ;;  %p346_p8 = scmp.lt.s32.totalorder %s8327_s20, 3 }
  0x15   : > { %p347_p9 = pnand %p7357_p7, %p346_p8 }
  0x16   : > { %s11960_s29 = smov (!%p347_p9), 32   ;;  %s11958_s30 = smov (!%p347_p9), 16  }
  0x17   : > { %350 = sbr.rel (%p347_p9) target bundleno = 5533 (0x159d), region = 60  ;;  %p391_p10 = scmp.lt.s32.totalorder (!%p347_p9), %s8423_s21, 1 }
  0x18   : > { %s11972_s0 = sld [smem:[#allocation18_spill]] (!%p347_p9)  ;;  %s11952_s22 = smov (!%p347_p9), 48  }
  0x19   : > { %s11950_s24 = smov (!%p347_p9), 64   ;;  %s8334_s25 = smov (!%p347_p9), 80  }
  0x1a   : > { %s11973_s1 = sld [smem:[#allocation19_spill]] (!%p347_p9)  ;;  %s11977_s14 = smov (!%p347_p9), 112  }
  0x1b   : > { %s11978_s15 = smov (!%p347_p9), 16   ;;  %s11979_s2 = sld [smem:[#allocation20_spill]] (!%p347_p9) }
  0x1c   : > { %vm434_vm0 = vcmask 130048   ;;  %v8329_v0 = vmov 0.0   ;;  %vm443_vm1 = vcmask 122880   ;;  %s392_s12 = scalar_select %p391_p10, %s8423_s21, 1  ;;  %vm437_vm2 = vcmask 123904  }
  0x1d   : > { %435 = vst.msk [vmem:[#allocation2] sm:$0xff] %vm434_vm0, %v8329_v0  ;;  %vm577_vm3 = vcmask 125952   ;;  %vm802_vm4 = vcmask 257152   ;;  %vm1027_vm5 = vcmask 388352   ;;  %vm1252_vm6 = vcmask 519552   ;;  %s11981_s3 = sld [smem:[#allocation21_spill]] }
  0x1e   : > { %436 = vst.msk [vmem:[#allocation2 + $0x8] sm:$0xff] %vm434_vm0, %v8329_v0  ;;  %s7951_s13 = sshll.u32 %s392_s12, 8  ;;  %s11956_s12 = smov 96   ;;  %vm1477_vm7 = vcmask 650752   ;;  %vm1702_vm8 = vcmask 781952   ;;  %vm1928_vm9 = vcmask 913152  }
  0x1f   : > { %444 = vst.msk [vmem:[#allocation2] sm:$0x1] %vm443_vm1, %v8329_v0  ;;  %s8523_s16 = scalar_lea.vmem %s11972_s0, %s7951_s13  ;;  %s11954_s13 = smov 112   ;;  %vm2153_vm10 = vcmask 1044352   ;;  %vm3700_vm11 = vcmask 261120  }
  0x20   : > { %440 = vst.msk [vmem:[#allocation2 + $0x198] sm:$0xff] %vm434_vm0, %v8329_v0  ;;  %v402_v5 = vld [vmem:[%s8523_s16] sm:$0xff]  ;;  %v403_v6 = vld [vmem:[%s8523_s16 + $0x8] sm:$0xff]  ;;  %v404_v7 = vld [vmem:[%s8523_s16 + $0x10] sm:$0xff]  ;;  %s11982_s4 = sld [smem:[#allocation22_spill]] }
  0x21   : > { %441 = vst.msk [vmem:[#allocation2 + $0x1a0] sm:$0xff] %vm434_vm0, %v8329_v0  ;;  %v405_v8 = vld [vmem:[%s8523_s16 + $0x18] sm:$0xff]  ;;  %v406_v27 = vld [vmem:[%s8523_s16 + $0x20] sm:$0xff]  ;;  %v407_v28 = vld [vmem:[%s8523_s16 + $0x28] sm:$0xff] }
  0x22   : > { %445 = vst.msk [vmem:[#allocation2 + $0x18] sm:$0x1] %vm443_vm1, %v8329_v0  ;;  %v408_v42 = vld [vmem:[%s8523_s16 + $0x30] sm:$0xff]  ;;  %v409_v44 = vld [vmem:[%s8523_s16 + $0x38] sm:$0xff]  ;;  %v410_v62 = vld [vmem:[%s8523_s16 + $0x40] sm:$0xff] }
  0x23   : > { %446 = vst.msk [vmem:[#allocation2 + $0x30] sm:$0x1] %vm443_vm1, %v8329_v0  ;;  %v7991_v59 = vld [vmem:[%s11973_s1 + $0x38] sm:$0xff] }
  0x24   : > { %447 = vst.msk [vmem:[#allocation2 + $0x48] sm:$0x1] %vm443_vm1, %v8329_v0  ;;  %2580 = vmatpush.bf16.msra.mxu0 %v7991_v59 }
  0x25   : > { %v835_v1 = vld [vmem:[#allocation2 + $0x2] sm:$0xff]  ;;  %448 = vst.msk [vmem:[#allocation2 + $0x60] sm:$0x1] %vm443_vm1, %v8329_v0 }
  0x26   : > { %v610_v2 = vld [vmem:[#allocation2 + $0x1] sm:$0xff]  ;;  %v867_v3 = vpack.c.bf16 %v835_v1, %v835_v1  ;;  %449 = vst.msk [vmem:[#allocation2 + $0x78] sm:$0x1] %vm443_vm1, %v8329_v0 }
  0x27   : > { %v642_v4 = vpack.c.bf16 %v610_v2, %v610_v2  ;;  %450 = vst.msk [vmem:[#allocation2 + $0x90] sm:$0x1] %vm443_vm1, %v8329_v0  ;;  %v513_v49 = vld [vmem:[#allocation2] sm:$0xff]  ;;  %v514_v55 = vld [vmem:[#allocation2 + $0x8] sm:$0xff] }
  0x28   : > { %931 = vrot.lane.b32.xlu1 %v867_v3, %s11960_s29  ;;  %451 = vst.msk [vmem:[#allocation2 + $0xa8] sm:$0x1] %vm443_vm1, %v8329_v0  ;;  %v545_v50 = vpack.c.bf16 %v513_v49, %v513_v49  ;;  %v546_v56 = vpack.c.bf16 %v514_v55, %v514_v55  ;;  %v7990_v3 = vld [vmem:[%s11973_s1 + $0x30] sm:$0xff] }
  0x29   : > { %706 = vrot.lane.b32.xlu0 %v642_v4, %s11958_s30  ;;  %452 = vst.msk [vmem:[#allocation2 + $0xc0] sm:$0x1] %vm443_vm1, %v8329_v0  ;;  %2581 = vmatpush.bf16.msra.mxu0 %v7990_v3 }
  0x2a   : > { %453 = vst.msk [vmem:[#allocation2 + $0xd8] sm:$0x1] %vm443_vm1, %v8329_v0 }
  0x2b   : > { %454 = vst.msk [vmem:[#allocation2 + $0xf0] sm:$0x1] %vm443_vm1, %v8329_v0 }
  0x2c   : > { %455 = vst.msk [vmem:[#allocation2 + $0x108] sm:$0x1] %vm443_vm1, %v8329_v0 }
  0x2d   : > { %456 = vst.msk [vmem:[#allocation2 + $0x120] sm:$0x1] %vm443_vm1, %v8329_v0 }
  0x2e   : > { %457 = vst.msk [vmem:[#allocation2 + $0x138] sm:$0x1] %vm443_vm1, %v8329_v0 }
  0x2f   : > { %458 = vst.msk [vmem:[#allocation2 + $0x150] sm:$0x1] %vm443_vm1, %v8329_v0 }
  0x30   : > { %459 = vst.msk [vmem:[#allocation2 + $0x168] sm:$0x1] %vm443_vm1, %v8329_v0 }
  0x31   : > { %460 = vst.msk [vmem:[#allocation2 + $0x180] sm:$0x1] %vm443_vm1, %v8329_v0 }
  0x32   : > { %463 = vst.msk [vmem:[#allocation2 + $0x29] sm:$0x1] %vm443_vm1, %v8329_v0 }
  0x33   : > { %464 = vst.msk [vmem:[#allocation2 + $0x41] sm:$0x1] %vm443_vm1, %v8329_v0 }
  0x34   : > { %465 = vst.msk [vmem:[#allocation2 + $0x59] sm:$0x1] %vm443_vm1, %v8329_v0 }
  0x35   : > { %466 = vst.msk [vmem:[#allocation2 + $0x71] sm:$0x1] %vm443_vm1, %v8329_v0 }
  0x36   : > { %467 = vst.msk [vmem:[#allocation2 + $0x89] sm:$0x1] %vm443_vm1, %v8329_v0 }
  0x37   : > { %468 = vst.msk [vmem:[#allocation2 + $0xa1] sm:$0x1] %vm443_vm1, %v8329_v0 }
  0x38   : > { %469 = vst.msk [vmem:[#allocation2 + $0xb9] sm:$0x1] %vm443_vm1, %v8329_v0 }
  0x39   : > { %470 = vst.msk [vmem:[#allocation2 + $0xd1] sm:$0x1] %vm443_vm1, %v8329_v0 }
  0x3a   : > { %471 = vst.msk [vmem:[#allocation2 + $0xe9] sm:$0x1] %vm443_vm1, %v8329_v0 }
  0x3b   : > { %472 = vst.msk [vmem:[#allocation2 + $0x101] sm:$0x1] %vm443_vm1, %v8329_v0 }
  0x3c   : > { %473 = vst.msk [vmem:[#allocation2 + $0x119] sm:$0x1] %vm443_vm1, %v8329_v0 }
  0x3d   : > { %474 = vst.msk [vmem:[#allocation2 + $0x131] sm:$0x1] %vm443_vm1, %v8329_v0 }
  0x3e   : > { %475 = vst.msk [vmem:[#allocation2 + $0x149] sm:$0x1] %vm443_vm1, %v8329_v0 }
  0x3f   : > { %476 = vst.msk [vmem:[#allocation2 + $0x161] sm:$0x1] %vm443_vm1, %v8329_v0 }
  0x40   : > { %477 = vst.msk [vmem:[#allocation2 + $0x179] sm:$0x1] %vm443_vm1, %v8329_v0 }
  0x41   : > { %478 = vst.msk [vmem:[#allocation2 + $0x191] sm:$0x1] %vm443_vm1, %v8329_v0 }
  0x42   : > { %461 = vst.msk [vmem:[#allocation2 + $0x198] sm:$0x1] %vm443_vm1, %v8329_v0 }
  0x43   : > { %481 = vst.msk [vmem:[#allocation2 + $0x19] sm:$0xff] %vm434_vm0, %v402_v5  ;;  %v7989_v5 = vld [vmem:[%s11973_s1 + $0x28] sm:$0xff] }
  0x44   : > { %438 = vst.msk [vmem:[#allocation2 + $0x10] sm:$0x3] %vm437_vm2, %v8329_v0  ;;  %2582 = vmatpush.bf16.msra.mxu0 %v7989_v5 }
  0x45   : > { %442 = vst.msk [vmem:[#allocation2 + $0x1a8] sm:$0x3] %vm437_vm2, %v8329_v0 }
  0x46   : > { %462 = vst.msk [vmem:[#allocation2 + $0x11] sm:$0x1] %vm443_vm1, %v8329_v0 }
  0x47   : > { %479 = vst.msk [vmem:[#allocation2 + $0x1a9] sm:$0x1] %vm443_vm1, %v8329_v0 }
  0x48   : > { %482 = vst.msk [vmem:[#allocation2 + $0x21] sm:$0xff] %vm434_vm0, %v403_v6 }
  0x49   : > { %483 = vst.msk [vmem:[#allocation2 + $0x31] sm:$0xff] %vm434_vm0, %v404_v7  ;;  %v411_v7 = vld [vmem:[%s8523_s16 + $0x48] sm:$0xff] }
  0x4a   : > { %v1060_v9 = vld [vmem:[#allocation2 + $0x18] sm:$0xff]  ;;  %484 = vst.msk [vmem:[#allocation2 + $0x39] sm:$0xff] %vm434_vm0, %v405_v8 }
  0x4b   : > { %v8549_v10 = vpack.c.bf16 %v1060_v9, %v1060_v9  ;;  %v611_v11 = vld [vmem:[#allocation2 + $0x9] sm:$0xff]  ;;  %v1285_v16 = vld [vmem:[#allocation2 + $0x19] sm:$0xff]  ;;  %485 = vst.msk [vmem:[#allocation2 + $0x49] sm:$0xff] %vm434_vm0, %v406_v27 }
  0x4c   : > { %v643_v12 = vpack.c.bf16 %v611_v11, %v611_v11  ;;  %v1317_v19 = vpack.c.bf16 %v1285_v16, %v1285_v16  ;;  %486 = vst.msk [vmem:[#allocation2 + $0x51] sm:$0xff] %vm434_vm0, %v407_v28  ;;  %v7988_v16 = vld [vmem:[%s11973_s1 + $0x20] sm:$0xff] }
  0x4d   : > { %1156 = vrot.lane.b32.xlu2 %v8549_v10, %s11952_s22  ;;  %v836_v13 = vld [vmem:[#allocation2 + $0xa] sm:$0xff]  ;;  %487 = vst.msk [vmem:[#allocation2 + $0x61] sm:$0xff] %vm434_vm0, %v408_v42  ;;  %2583 = vmatpush.bf16.msra.mxu0 %v7988_v16  ;;  %v7992_v28 = vld [vmem:[%s11973_s1 + $0x40] sm:$0xff] }
  0x4e   : > { %v868_v14 = vpack.c.bf16 %v836_v13, %v836_v13  ;;  %708 = vrot.lane.b32.xlu0 %v643_v12, %s11958_s30  ;;  %488 = vst.msk [vmem:[#allocation2 + $0x69] sm:$0xff] %vm434_vm0, %v409_v44  ;;  %2676 = vmatpush.bf16.msra.mxu1 %v7992_v28 }
  0x4f   : > { %v1061_v15 = vld [vmem:[#allocation2 + $0x20] sm:$0xff]  ;;  %580 = vst.msk [vmem:[#allocation3 + $0x10] sm:$0xf] %vm577_vm3, %v8549_v10 }
  0x50   : > { %933 = vrot.lane.b32.xlu1 %v868_v14, %s11960_s29  ;;  %v8555_v17 = vpack.c.bf16 %v1061_v15, %v1061_v15  ;;  %v1286_v18 = vld [vmem:[#allocation2 + $0x21] sm:$0xff]  ;;  %v1736_v24 = vld [vmem:[#allocation2 + $0x30] sm:$0xff]  ;;  %578 = vst.msk [vmem:[#allocation3] sm:$0xf] %vm577_vm3, %v545_v50 }
  0x51   : > { %v1318_v20 = vpack.c.bf16 %v1286_v18, %v1286_v18  ;;  %v1510_v21 = vld [vmem:[#allocation2 + $0x1a] sm:$0xff]  ;;  %v1511_v22 = vld [vmem:[#allocation2 + $0x22] sm:$0xff]  ;;  %v8561_v26 = vpack.c.bf16 %v1736_v24, %v1736_v24  ;;  %v1961_v30 = vld [vmem:[#allocation2 + $0x31] sm:$0xff]  ;;  %579 = vst.msk [vmem:[#allocation3 + $0x8] sm:$0xf] %vm577_vm3, %v546_v56 }
  0x52   : > { %v1542_v23 = vpack.c.bf16 %v1510_v21, %v1510_v21  ;;  %v1543_v25 = vpack.c.bf16 %v1511_v22, %v1511_v22  ;;  %v1737_v29 = vld [vmem:[#allocation2 + $0x38] sm:$0xff]  ;;  %v1993_v33 = vpack.c.bf16 %v1961_v30, %v1961_v30  ;;  %v1738_v38 = vld [vmem:[#allocation2 + $0x48] sm:$0xff]  ;;  %581 = vst.msk [vmem:[#allocation3 + $0x18] sm:$0xf] %vm577_vm3, %v8555_v17  ;;  %v7986_v22 = vld [vmem:[%s11973_s1 + $0x10] sm:$0xff] }
  0x53   : > { %v8571_v31 = vpack.c.bf16 %v1737_v29, %v1737_v29  ;;  %v1962_v32 = vld [vmem:[#allocation2 + $0x39] sm:$0xff]  ;;  %v1739_v40 = vld [vmem:[#allocation2 + $0x50] sm:$0xff]  ;;  %v1770_v41 = vpack.c.bf16 %v1738_v38, %v1738_v38  ;;  %582 = vst.msk [vmem:[#allocation3 + $0x20] sm:$0xf] %vm577_vm3, %v8561_v26 }
  0x54   : > { %v1994_v34 = vpack.c.bf16 %v1962_v32, %v1962_v32  ;;  %v1512_v35 = vld [vmem:[#allocation2 + $0x32] sm:$0xff]  ;;  %v1513_v37 = vld [vmem:[#allocation2 + $0x3a] sm:$0xff]  ;;  %v1771_v43 = vpack.c.bf16 %v1739_v40, %v1739_v40  ;;  %v1963_v45 = vld [vmem:[#allocation2 + $0x49] sm:$0xff]  ;;  %489 = vst.msk [vmem:[#allocation2 + $0x79] sm:$0xff] %vm434_vm0, %v410_v62 }
  0x55   : > { %1158 = vrot.lane.b32.xlu2 %v8555_v17, %s11952_s22  ;;  %v1544_v36 = vpack.c.bf16 %v1512_v35, %v1512_v35  ;;  %v1545_v39 = vpack.c.bf16 %v1513_v37, %v1513_v37  ;;  %v1964_v46 = vld [vmem:[#allocation2 + $0x51] sm:$0xff]  ;;  %v8595_v47 = vpack.c.bf16 %v1963_v45, %v1963_v45  ;;  %583 = vst.msk [vmem:[#allocation3 + $0x28] sm:$0xf] %vm577_vm3, %v8571_v31  ;;  %v1740_v60 = vld [vmem:[#allocation2 + $0x60] sm:$0xff]  ;;  %v1741_v61 = vld [vmem:[#allocation2 + $0x68] sm:$0xff] }
  0x56   : > { %1381 = vrot.lane.b32.xlu0 %v1317_v19, %s11950_s24  ;;  %v8597_v48 = vpack.c.bf16 %v1964_v46, %v1964_v46  ;;  %v1514_v53 = vld [vmem:[#allocation2 + $0x4a] sm:$0xff]  ;;  %v1515_v54 = vld [vmem:[#allocation2 + $0x52] sm:$0xff]  ;;  %584 = vst.msk [vmem:[#allocation3 + $0x30] sm:$0xf] %vm577_vm3, %v1770_v41  ;;  %v1772_v1 = vpack.c.bf16 %v1740_v60, %v1740_v60  ;;  %v1773_v2 = vpack.c.bf16 %v1741_v61, %v1741_v61  ;;  %v1965_v4 = vld [vmem:[#allocation2 + $0x61] sm:$0xff] }
  0x57   : > { %2250 = vst.msk [vmem:[#allocation3 + $0x4] sm:$0xf] %vm577_vm3, %v1544_v36  ;;  %v1546_v57 = vpack.c.bf16 %v1514_v53, %v1514_v53  ;;  %v1547_v58 = vpack.c.bf16 %v1515_v54, %v1515_v54  ;;  %v1516_v6 = vld [vmem:[#allocation2 + $0x62] sm:$0xff]  ;;  %v8648_v8 = vpack.c.bf16 %v1965_v4, %v1965_v4  ;;  %v1517_v10 = vld [vmem:[#allocation2 + $0x6a] sm:$0xff]  ;;  %v7987_v18 = vld [vmem:[%s11973_s1 + $0x18] sm:$0xff] }
  0x58   : > { %1383 = vrot.lane.b32.xlu1 %v1318_v20, %s11950_s24  ;;  %2251 = vst.msk [vmem:[#allocation3 + $0xc] sm:$0xf] %vm577_vm3, %v1545_v39  ;;  %v8650_v9 = vpack.c.bf16 %v1516_v6, %v1516_v6  ;;  %v1966_v12 = vld [vmem:[#allocation2 + $0x69] sm:$0xff]  ;;  %v8655_v13 = vpack.c.bf16 %v1517_v10, %v1517_v10  ;;  %2584 = vmatpush.bf16.msra.mxu0 %v7987_v18  ;;  %v413_v37 = vld [vmem:[%s8523_s16 + $0x58] sm:$0xff] }
  0x59   : > { %2252 = vst.msk [vmem:[#allocation3 + $0x14] sm:$0xf] %vm577_vm3, %v1546_v57  ;;  %v8668_v17 = vpack.c.bf16 %v1966_v12, %v1966_v12 }
  0x5a   : > { %2253 = vst.msk [vmem:[#allocation3 + $0x1c] sm:$0xf] %vm577_vm3, %v1547_v58 }
  0x5b   : > { %585 = vst.msk [vmem:[#allocation3 + $0x38] sm:$0xf] %vm577_vm3, %v1771_v43  ;;  %v1742_v11 = vld [vmem:[#allocation2 + $0x78] sm:$0xff] }
  0x5c   : > { %586 = vst.msk [vmem:[#allocation3 + $0x40] sm:$0xf] %vm577_vm3, %v1772_v1  ;;  %v8659_v15 = vpack.c.bf16 %v1742_v11, %v1742_v11  ;;  %2585 = vmatpush.bf16.msra.mxu0 %v7986_v22  ;;  %v1967_v40 = vld [vmem:[#allocation2 + $0x79] sm:$0xff] }
  0x5d   : > { %1606 = vrot.lane.b32.xlu2 %v1542_v23, %s8334_s25  ;;  %587 = vst.msk [vmem:[#allocation3 + $0x48] sm:$0xf] %vm577_vm3, %v1773_v2  ;;  %v8729_v44 = vpack.c.bf16 %v1967_v40, %v1967_v40 }
  0x5e   : > { %1608 = vrot.lane.b32.xlu0 %v1543_v25, %s8334_s25  ;;  %490 = vst.msk [vmem:[#allocation2 + $0x81] sm:$0xff] %vm434_vm0, %v411_v7  ;;  %v7952_v29 = vld [vmem:[#allocation3 + $0x4] sm:$0xf]  ;;  %v414_v7 = vld [vmem:[%s8523_s16 + $0x60] sm:$0xff] }
  0x5f   : > { %2254 = vst.msk [vmem:[#allocation3 + $0x24] sm:$0xf] %vm577_vm3, %v8650_v9  ;;  %v7367_v30 = vld [vmem:[#allocation3 + $0x8] sm:$0xf0] }
  0x60   : > { %1832 = vrot.lane.b32.xlu1 %v8561_v26, %s11956_s12  ;;  %2255 = vst.msk [vmem:[#allocation3 + $0x2c] sm:$0xf] %vm577_vm3, %v8655_v13 }
  0x61   : > { %588 = vst.msk [vmem:[#allocation3 + $0x50] sm:$0xf] %vm577_vm3, %v8659_v15 }
  0x62   : > { %492 = vst.msk [vmem:[#allocation2 + $0x99] sm:$0xff] %vm434_vm0, %v413_v37 }
  0x63   : > { %493 = vst.msk [vmem:[#allocation2 + $0xa9] sm:$0xff] %vm434_vm0, %v414_v7 }
  0x64   : > { %3733 = vst.msk [vmem:[#allocation4] sm:$0xff] %vm3700_vm11, %v8329_v0 }
  0x65   : > { %1834 = vrot.lane.b32.xlu2 %v8571_v31, %s11956_s12  ;;  %v1518_v35 = vld [vmem:[#allocation2 + $0x7a] sm:$0xff]  ;;  %v1519_v45 = vld [vmem:[#allocation2 + $0x82] sm:$0xff]  ;;  %3734 = vst.msk [vmem:[#allocation4 + $0x8] sm:$0xff] %vm3700_vm11, %v8329_v0 }
  0x66   : > { %2057 = vrot.lane.b32.xlu0 %v1993_v33, %s11954_s13  ;;  %v8719_v38 = vpack.c.bf16 %v1518_v35, %v1518_v35  ;;  %v1968_v42 = vld [vmem:[#allocation2 + $0x81] sm:$0xff]  ;;  %5463 = vst.msk [vmem:[#allocation6] sm:$0xff] %vm3700_vm11, %v8329_v0 }
  0x67   : > { %v8732_v46 = vpack.c.bf16 %v1968_v42, %v1968_v42  ;;  %5466 = vst.msk [vmem:[#allocation6 + $0x90] sm:$0xff] %vm3700_vm11, %v8329_v0 }
  0x68   : > { %2059 = vrot.lane.b32.xlu1 %v1994_v34, %s11954_s13  ;;  %2256 = vst.msk [vmem:[#allocation3 + $0x34] sm:$0xf] %vm577_vm3, %v8719_v38 }
  0x69   : > { %6544 = vst.msk [vmem:[#allocation8] sm:$0xff] %vm3700_vm11, %v8329_v0 }
  0x6a   : > { %v1971_v42 = vld [vmem:[#allocation2 + $0xa9] sm:$0xff] }
  0x6d   : > { %710 = vrot.lane.b32.xlu2 %v1317_v19, %s11958_s30  ;;  %v1743_v19 = vld [vmem:[#allocation2 + $0x80] sm:$0xff] }
  0x6e   : > { %712 = vrot.lane.b32.xlu0 %v1318_v20, %s11958_s30  ;;  %v8675_v20 = vpack.c.bf16 %v1743_v19, %v1743_v19 }
  0x70   : > { %935 = vrot.lane.b32.xlu1 %v1542_v23, %s11960_s29  ;;  %589 = vst.msk [vmem:[#allocation3 + $0x58] sm:$0xf] %vm577_vm3, %v8675_v20  ;;  %v7985_v23 = vld [vmem:[%s11973_s1 + $0x8] sm:$0xff] }
  0x71   : > { %2586 = vmatpush.bf16.msra.mxu0 %v7985_v23 }
  0x75   : > { %937 = vrot.lane.b32.xlu2 %v1543_v25, %s11960_s29 }
  0x76   : > { %1160 = vrot.lane.b32.xlu0 %v8561_v26, %s11952_s22  ;;  %v7984_v26 = vld [vmem:[%s11973_s1] sm:$0xff] }
  0x77   : > { %2587 = vmatpush.bf16.msra.mxu0 %v7984_v26 }
  0x78   : > { %1162 = vrot.lane.b32.xlu1 %v8571_v31, %s11952_s22  ;;  %v7370_v31 = vor.u32 %v7952_v29, %v7367_v30 }
  0x7a   : > { %7527 = vmatmul.msk.bf16.vlgmr.msra.gmra.mxu1 %vm434_vm0, %v7370_v31 }
  0x7d   : > { %1385 = vrot.lane.b32.xlu2 %v1993_v33, %s11950_s24 }
  0x7e   : > { %1387 = vrot.lane.b32.xlu0 %v1994_v34, %s11950_s24 }
  0x80   : > { %1610 = vrot.lane.b32.xlu1 %v1544_v36, %s8334_s25 }
  0x85   : > { %1612 = vrot.lane.b32.xlu2 %v1545_v39, %s8334_s25 }
  0x86   : > { %1836 = vrot.lane.b32.xlu0 %v1770_v41, %s11956_s12 }
  0x88   : > { %1838 = vrot.lane.b32.xlu1 %v1771_v43, %s11956_s12 }
  0x8d   : > { %2061 = vrot.lane.b32.xlu2 %v8595_v47, %s11954_s13 }
  0x8e   : > { %2063 = vrot.lane.b32.xlu0 %v8597_v48, %s11954_s13 }
  0x90   : > { %714 = vrot.lane.b32.xlu1 %v1993_v33, %s11958_s30 }
  0x95   : > { %716 = vrot.lane.b32.xlu2 %v1994_v34, %s11958_s30 }
  0x96   : > { %939 = vrot.lane.b32.xlu0 %v1544_v36, %s11960_s29  ;;  %v412_v36 = vld [vmem:[%s8523_s16 + $0x50] sm:$0xff] }
  0x97   : > { %491 = vst.msk [vmem:[#allocation2 + $0x91] sm:$0xff] %vm434_vm0, %v412_v36 }
  0x98   : > { %941 = vrot.lane.b32.xlu1 %v1545_v39, %s11960_s29 }
  0x9a   : > { %v932_v51 = vpop.permute.xlu1 %931 }
  0x9b   : > { %v707_v52 = vpop.permute.xlu0 %706 }
  0x9c   : > { %803 = vst.msk [vmem:[#allocation3] sm:$0xf] %vm802_vm4, %v707_v52 }
  0x9d   : > { %1028 = vst.msk [vmem:[#allocation3] sm:$0xf] %vm1027_vm5, %v932_v51  ;;  %1164 = vrot.lane.b32.xlu2 %v1770_v41, %s11952_s22 }
  0x9e   : > { %1166 = vrot.lane.b32.xlu0 %v1771_v43, %s11952_s22  ;;  %v1745_v50 = vld [vmem:[#allocation2 + $0x98] sm:$0xff] }
  0x9f   : > { %v8746_v53 = vpack.c.bf16 %v1745_v50, %v1745_v50  ;;  %v1969_v10 = vld [vmem:[#allocation2 + $0x91] sm:$0xff] }
  0xa0   : > { %1389 = vrot.lane.b32.xlu1 %v8595_v47, %s11950_s24  ;;  %v8798_v16 = vpack.c.bf16 %v1969_v10, %v1969_v10 }
  0xa1   : > { %591 = vst.msk [vmem:[#allocation3 + $0x68] sm:$0xf] %vm577_vm3, %v8746_v53 }
  0xa5   : > { %1391 = vrot.lane.b32.xlu2 %v8597_v48, %s11950_s24 }
  0xa6   : > { %1614 = vrot.lane.b32.xlu0 %v1546_v57, %s8334_s25 }
  0xa7   : > { %v1157_v63 = vpop.permute.xlu2 %1156 }
  0xa8   : > { %1616 = vrot.lane.b32.xlu1 %v1547_v58, %s8334_s25  ;;  %1253 = vst.msk [vmem:[#allocation3] sm:$0xf] %vm1252_vm6, %v1157_v63 }
  0xad   : > { %1840 = vrot.lane.b32.xlu2 %v1772_v1, %s11956_s12 }
  0xae   : > { %1842 = vrot.lane.b32.xlu0 %v1773_v2, %s11956_s12  ;;  %s11976_s12 = smov 96  }
  0xaf   : > { %v1159_v14 = vpop.permute.xlu2 %1158 }
  0xb0   : > { %2065 = vrot.lane.b32.xlu1 %v8648_v8, %s11954_s13 }
  0xb5   : > { %2067 = vrot.lane.b32.xlu2 %v8668_v17, %s11954_s13  ;;  %s11974_s13 = smov 48  }
  0xb6   : > { %718 = vrot.lane.b32.xlu0 %v8595_v47, %s11958_s30  ;;  %v8734_v47 = vpack.c.bf16 %v1519_v45, %v1519_v45  ;;  %v417_v45 = vld [vmem:[%s8523_s16 + $0x78] sm:$0xff] }
  0xb7   : > { %v1607_v21 = vpop.permute.xlu2 %1606  ;;  %496 = vst.msk [vmem:[#allocation2 + $0xc9] sm:$0xff] %vm434_vm0, %v417_v45 }
  0xb8   : > { %720 = vrot.lane.b32.xlu1 %v8597_v48, %s11958_s30  ;;  %s11975_s30 = smov 64   ;;  %v1744_v48 = vld [vmem:[#allocation2 + $0x90] sm:$0xff]  ;;  %2257 = vst.msk [vmem:[#allocation3 + $0x3c] sm:$0xf] %vm577_vm3, %v8734_v47 }
  0xb9   : > { %v8740_v49 = vpack.c.bf16 %v1744_v48, %v1744_v48 }
  0xbb   : > { %590 = vst.msk [vmem:[#allocation3 + $0x60] sm:$0xf] %vm577_vm3, %v8740_v49 }
  0xbd   : > { %943 = vrot.lane.b32.xlu2 %v1546_v57, %s11960_s29 }
  0xbe   : > { %945 = vrot.lane.b32.xlu0 %v1547_v58, %s11960_s29 }
  0xbf   : > { %v1835_v24 = vpop.permute.xlu2 %1834 }
  0xc0   : > { %1168 = vrot.lane.b32.xlu1 %v1772_v1, %s11974_s13  ;;  %v709_v25 = vpop.permute.xlu0 %708  ;;  %v7954_v1 = vld [vmem:[#allocation3 + $0x14] sm:$0xf] }
  0xc1   : > { %804 = vst.msk [vmem:[#allocation3 + $0x8] sm:$0xf] %vm802_vm4, %v709_v25 }
  0xc2   : > { %v934_v27 = vpop.permute.xlu1 %933 }
  0xc3   : > { %1029 = vst.msk [vmem:[#allocation3 + $0x8] sm:$0xf] %vm1027_vm5, %v934_v27 }
  0xc4   : > { %1254 = vst.msk [vmem:[#allocation3 + $0x8] sm:$0xf] %vm1252_vm6, %v1159_v14  ;;  %v1521_v14 = vld [vmem:[#allocation2 + $0x9a] sm:$0xff] }
  0xc5   : > { %1170 = vrot.lane.b32.xlu2 %v1773_v2, %s11974_s13  ;;  %v7375_v2 = vld [vmem:[#allocation3 + $0x18] sm:$0xf0]  ;;  %v8803_v19 = vpack.c.bf16 %v1521_v14, %v1521_v14 }
  0xc6   : > { %1393 = vrot.lane.b32.xlu0 %v8648_v8, %s11975_s30  ;;  %v7378_v3 = vor.u32 %v7954_v1, %v7375_v2 }
  0xc7   : > { %v711_v32 = vpop.permute.xlu2 %710  ;;  %2259 = vst.msk [vmem:[#allocation3 + $0x4c] sm:$0xf] %vm577_vm3, %v8803_v19 }
  0xc8   : > { %1395 = vrot.lane.b32.xlu1 %v8668_v17, %s11975_s30  ;;  %805 = vst.msk [vmem:[#allocation3 + $0x10] sm:$0xf] %vm802_vm4, %v711_v32  ;;  %v1382_v33 = vpop.permute.xlu0 %1381  ;;  %7528 = vmatmul.msk.bf16.gmra.mxu1 %vm434_vm0, %v7378_v3 }
  0xc9   : > { %1478 = vst.msk [vmem:[#allocation3] sm:$0xf] %vm1477_vm7, %v1382_v33  ;;  %v7956_v33 = vld [vmem:[#allocation3 + $0x24] sm:$0xf] }
  0xca   : > { %v1384_v34 = vpop.permute.xlu1 %1383  ;;  %1703 = vst.msk [vmem:[#allocation3] sm:$0xf] %vm1702_vm8, %v1607_v21 }
  0xcb   : > { %1479 = vst.msk [vmem:[#allocation3 + $0x8] sm:$0xf] %vm1477_vm7, %v1384_v34  ;;  %v7383_v34 = vld [vmem:[#allocation3 + $0x28] sm:$0xf0] }
  0xcc   : > { %v7386_v35 = vor.u32 %v7956_v33, %v7383_v34 }
  0xcd   : > { %1618 = vrot.lane.b32.xlu2 %v8650_v9, %s8334_s25 }
  0xce   : > { %1620 = vrot.lane.b32.xlu0 %v8655_v13, %s8334_s25 }
  0xcf   : > { %v938_v39 = vpop.permute.xlu2 %937 }
  0xd0   : > { %1844 = vrot.lane.b32.xlu1 %v8659_v15, %s11976_s12  ;;  %v1609_v41 = vpop.permute.xlu0 %1608 }
  0xd1   : > { %1704 = vst.msk [vmem:[#allocation3 + $0x8] sm:$0xf] %vm1702_vm8, %v1609_v41 }
  0xd2   : > { %v1833_v43 = vpop.permute.xlu1 %1832  ;;  %1930 = vst.msk [vmem:[#allocation3 + $0x8] sm:$0xf] %vm1928_vm9, %v1835_v24 }
  0xd3   : > { %1929 = vst.msk [vmem:[#allocation3] sm:$0xf] %vm1928_vm9, %v1833_v43 }
  0xd5   : > { %1846 = vrot.lane.b32.xlu2 %v8675_v20, %s11976_s12 }
  0xd6   : > { %2069 = vrot.lane.b32.xlu0 %v8729_v44, %s11977_s14 }
  0xd7   : > { %v1386_v51 = vpop.permute.xlu2 %1385 }
  0xd8   : > { %2071 = vrot.lane.b32.xlu1 %v8732_v46, %s11977_s14  ;;  %v2058_v52 = vpop.permute.xlu0 %2057  ;;  %7529 = vmatmul.msk.bf16.gmra.mxu1 %vm434_vm0, %v7386_v35 }
  0xd9   : > { %2154 = vst.msk [vmem:[#allocation3] sm:$0xf] %vm2153_vm10, %v2058_v52 }
  0xda   : > { %v2060_v54 = vpop.permute.xlu1 %2059 }
  0xdb   : > { %2155 = vst.msk [vmem:[#allocation3 + $0x8] sm:$0xf] %vm2153_vm10, %v2060_v54 }
  0xdd   : > { %722 = vrot.lane.b32.xlu2 %v8648_v8, %s11978_s15  ;;  %v1520_v8 = vld [vmem:[#allocation2 + $0x92] sm:$0xff] }
  0xde   : > { %724 = vrot.lane.b32.xlu0 %v8668_v17, %s11978_s15  ;;  %v8790_v11 = vpack.c.bf16 %v1520_v8, %v1520_v8 }
  0xdf   : > { %v1613_v55 = vpop.permute.xlu2 %1612 }
  0xe0   : > { %947 = vrot.lane.b32.xlu1 %v8650_v9, %s11960_s29  ;;  %v713_v56 = vpop.permute.xlu0 %712  ;;  %v7365_v57 = vld [vmem:[#allocation3] sm:$0xf]  ;;  %v415_v9 = vld [vmem:[%s8523_s16 + $0x68] sm:$0xff]  ;;  %2258 = vst.msk [vmem:[#allocation3 + $0x44] sm:$0xf] %vm577_vm3, %v8790_v11 }
  0xe1   : > { %806 = vst.msk [vmem:[#allocation3 + $0x18] sm:$0xf] %vm802_vm4, %v713_v56 }
  0xe2   : > { %1031 = vst.msk [vmem:[#allocation3 + $0x18] sm:$0xf] %vm1027_vm5, %v938_v39  ;;  %v936_v58 = vpop.permute.xlu1 %935  ;;  %v7953_v59 = vld [vmem:[#allocation3 + $0x4] sm:$0xf0]  ;;  %v416_v39 = vld [vmem:[%s8523_s16 + $0x70] sm:$0xff] }
  0xe3   : > { %1030 = vst.msk [vmem:[#allocation3 + $0x10] sm:$0xf] %vm1027_vm5, %v936_v58  ;;  %v7366_v60 = vor.u32 %v7953_v59, %v7365_v57 }
  0xe4   : > { %494 = vst.msk [vmem:[#allocation2 + $0xb1] sm:$0xff] %vm434_vm0, %v415_v9 }
  0xe5   : > { %2588 = vmatmul.bf16.vlgmr.msra.gmra.mxu0 %v7366_v60  ;;  %949 = vrot.lane.b32.xlu2 %v8655_v13, %s11960_s29  ;;  %v1970_v13 = vld [vmem:[#allocation2 + $0x99] sm:$0xff]  ;;  %495 = vst.msk [vmem:[#allocation2 + $0xc1] sm:$0xff] %vm434_vm0, %v416_v39 }
  0xe6   : > { %1172 = vrot.lane.b32.xlu0 %v8659_v15, %s11974_s13  ;;  %v8801_v18 = vpack.c.bf16 %v1970_v13, %v1970_v13  ;;  %v419_v13 = vld [vmem:[%s8523_s16 + $0x88] sm:$0xff] }
  0xe7   : > { %v2062_v61 = vpop.permute.xlu2 %2061  ;;  %498 = vst.msk [vmem:[#allocation2 + $0xe1] sm:$0xff] %vm434_vm0, %v419_v13 }
  0xe8   : > { %1174 = vrot.lane.b32.xlu1 %v8675_v20, %s11974_s13  ;;  %v1161_v62 = vpop.permute.xlu0 %1160  ;;  %v1746_v20 = vld [vmem:[#allocation2 + $0xa8] sm:$0xff] }
  0xe9   : > { %1255 = vst.msk [vmem:[#allocation3 + $0x10] sm:$0xf] %vm1252_vm6, %v1161_v62  ;;  %v8806_v21 = vpack.c.bf16 %v1746_v20, %v1746_v20 }
  0xea   : > { %1480 = vst.msk [vmem:[#allocation3 + $0x10] sm:$0xf] %vm1477_vm7, %v1386_v51  ;;  %v1163_v63 = vpop.permute.xlu1 %1162 }
  0xeb   : > { %1256 = vst.msk [vmem:[#allocation3 + $0x18] sm:$0xf] %vm1252_vm6, %v1163_v63  ;;  %v1747_v22 = vld [vmem:[#allocation2 + $0xb0] sm:$0xff] }
  0xec   : > { %v8814_v23 = vpack.c.bf16 %v1747_v22, %v1747_v22  ;;  %592 = vst.msk [vmem:[#allocation3 + $0x70] sm:$0xf] %vm577_vm3, %v8806_v21  ;;  %v1523_v48 = vld [vmem:[#allocation2 + $0xb2] sm:$0xff]  ;;  %v1748_v52 = vld [vmem:[#allocation2 + $0xc0] sm:$0xff]  ;;  %v1749_v57 = vld [vmem:[#allocation2 + $0xc8] sm:$0xff] }
  0xed   : > { %1397 = vrot.lane.b32.xlu2 %v8729_v44, %s11975_s30  ;;  %v8864_v50 = vpack.c.bf16 %v1523_v48, %v1523_v48  ;;  %v8876_v56 = vpack.c.bf16 %v1748_v52, %v1748_v52  ;;  %v8879_v58 = vpack.c.bf16 %v1749_v57, %v1749_v57 }
  0xee   : > { %1399 = vrot.lane.b32.xlu0 %v8732_v46, %s11975_s30  ;;  %593 = vst.msk [vmem:[#allocation3 + $0x78] sm:$0xf] %vm577_vm3, %v8814_v23  ;;  %v1976_v57 = vld [vmem:[#allocation2 + $0xe1] sm:$0xff] }
  0xef   : > { %v717_v4 = vpop.permute.xlu2 %716  ;;  %2261 = vst.msk [vmem:[#allocation3 + $0x5c] sm:$0xf] %vm577_vm3, %v8864_v50 }
  0xf0   : > { %1622 = vrot.lane.b32.xlu1 %v8719_v38, %s8334_s25  ;;  %808 = vst.msk [vmem:[#allocation3 + $0x28] sm:$0xf] %vm802_vm4, %v717_v4  ;;  %v1388_v5 = vpop.permute.xlu0 %1387 }
  0xf1   : > { %1481 = vst.msk [vmem:[#allocation3 + $0x18] sm:$0xf] %vm1477_vm7, %v1388_v5  ;;  %v7958_v5 = vld [vmem:[#allocation3 + $0x34] sm:$0xf] }
  0xf2   : > { %1706 = vst.msk [vmem:[#allocation3 + $0x18] sm:$0xf] %vm1702_vm8, %v1613_v55  ;;  %v1611_v6 = vpop.permute.xlu1 %1610 }
  0xf3   : > { %1705 = vst.msk [vmem:[#allocation3 + $0x10] sm:$0xf] %vm1702_vm8, %v1611_v6  ;;  %v7391_v6 = vld [vmem:[#allocation3 + $0x38] sm:$0xf0] }
  0xf4   : > { %594 = vst.msk [vmem:[#allocation3 + $0x80] sm:$0xf] %vm577_vm3, %v8876_v56  ;;  %v7394_v7 = vor.u32 %v7958_v5, %v7391_v6 }
  0xf5   : > { %1624 = vrot.lane.b32.xlu2 %v8734_v47, %s8334_s25  ;;  %595 = vst.msk [vmem:[#allocation3 + $0x88] sm:$0xf] %vm577_vm3, %v8879_v58 }
  0xf6   : > { %1848 = vrot.lane.b32.xlu0 %v8740_v49, %s11976_s12  ;;  %7530 = vmatmul.msk.bf16.gmra.mxu1 %vm434_vm0, %v7394_v7 }
  0xf7   : > { %v1165_v12 = vpop.permute.xlu2 %1164 }
  0xf8   : > { %1850 = vrot.lane.b32.xlu1 %v8746_v53, %s11976_s12  ;;  %v1837_v15 = vpop.permute.xlu0 %1836 }
  0xf9   : > { %1931 = vst.msk [vmem:[#allocation3 + $0x10] sm:$0xf] %vm1928_vm9, %v1837_v15 }
  0xfa   : > { %2156 = vst.msk [vmem:[#allocation3 + $0x10] sm:$0xf] %vm2153_vm10, %v2062_v61  ;;  %v1839_v17 = vpop.permute.xlu1 %1838 }
  0xfb   : > { %1932 = vst.msk [vmem:[#allocation3 + $0x18] sm:$0xf] %vm1928_vm9, %v1839_v17 }
  0xfd   : > { %2073 = vrot.lane.b32.xlu2 %v8798_v16, %s11977_s14 }
  0xfe   : > { %2075 = vrot.lane.b32.xlu0 %v8801_v18, %s11977_s14 }
  0xff   : > { %v1392_v24 = vpop.permute.xlu2 %1391 }
 0x100   : > { %726 = vrot.lane.b32.xlu1 %v8729_v44, %s11978_s15  ;;  %v2064_v25 = vpop.permute.xlu0 %2063  ;;  %v1522_v44 = vld [vmem:[#allocation2 + $0xaa] sm:$0xff] }
 0x101   : > { %2157 = vst.msk [vmem:[#allocation3 + $0x18] sm:$0xf] %vm2153_vm10, %v2064_v25  ;;  %v7373_v27 = vld [vmem:[#allocation3 + $0x10] sm:$0xf] }
 0x102   : > { %v715_v26 = vpop.permute.xlu1 %714 }
 0x103   : > { %807 = vst.msk [vmem:[#allocation3 + $0x20] sm:$0xf] %vm802_vm4, %v715_v26 }
 0x105   : > { %728 = vrot.lane.b32.xlu2 %v8732_v46, %s11978_s15  ;;  %v8855_v46 = vpack.c.bf16 %v1971_v42, %v1971_v42 }
 0x106   : > { %951 = vrot.lane.b32.xlu0 %v8719_v38, %s11960_s29 }
 0x107   : > { %v1841_v28 = vpop.permute.xlu2 %1840 }
 0x108   : > { %953 = vrot.lane.b32.xlu1 %v8734_v47, %s11960_s29  ;;  %v940_v29 = vpop.permute.xlu0 %939  ;;  %v7955_v30 = vld [vmem:[#allocation3 + $0x14] sm:$0xf0]  ;;  %v8857_v47 = vpack.c.bf16 %v1522_v44, %v1522_v44  ;;  %v8990_v44 = vld [vmem:[%s11943_s5] ss:$0 sm:$0xff] }
 0x109   : > { %1032 = vst.msk [vmem:[#allocation3 + $0x20] sm:$0xf] %vm1027_vm5, %v940_v29  ;;  %v7374_v31 = vor.u32 %v7955_v30, %v7373_v27 }
 0x10a   : > { %1257 = vst.msk [vmem:[#allocation3 + $0x20] sm:$0xf] %vm1252_vm6, %v1165_v12  ;;  %v942_v32 = vpop.permute.xlu1 %941  ;;  %v418_v12 = vld [vmem:[%s8523_s16 + $0x80] sm:$0xff] }
 0x10b   : > { %1033 = vst.msk [vmem:[#allocation3 + $0x28] sm:$0xf] %vm1027_vm5, %v942_v32  ;;  %2593 = vmatmul.bf16.gmra.mxu0 %v7374_v31 }
 0x10c   : > { %2260 = vst.msk [vmem:[#allocation3 + $0x54] sm:$0xf] %vm577_vm3, %v8857_v47 }
 0x10d   : > { %1176 = vrot.lane.b32.xlu2 %v8740_v49, %s11974_s13  ;;  %v1972_v49 = vld [vmem:[#allocation2 + $0xb1] sm:$0xff]  ;;  %497 = vst.msk [vmem:[#allocation2 + $0xd9] sm:$0xff] %vm434_vm0, %v418_v12 }
 0x10e   : > { %1178 = vrot.lane.b32.xlu0 %v8746_v53, %s11974_s13  ;;  %v8873_v54 = vpack.c.bf16 %v1972_v49, %v1972_v49 }
 0x10f   : > { %v2068_v36 = vpop.permute.xlu2 %2067 }
 0x110   : > { %1401 = vrot.lane.b32.xlu1 %v8798_v16, %s11975_s30  ;;  %v1167_v37 = vpop.permute.xlu0 %1166 }
 0x111   : > { %1258 = vst.msk [vmem:[#allocation3 + $0x28] sm:$0xf] %vm1252_vm6, %v1167_v37 }
 0x112   : > { %1483 = vst.msk [vmem:[#allocation3 + $0x28] sm:$0xf] %vm1477_vm7, %v1392_v24  ;;  %v1390_v38 = vpop.permute.xlu1 %1389 }
 0x113   : > { %1482 = vst.msk [vmem:[#allocation3 + $0x20] sm:$0xf] %vm1477_vm7, %v1390_v38 }
 0x114   : > { %v1750_v27 = vld [vmem:[#allocation2 + $0xd8] sm:$0xff] }
 0x115   : > { %1403 = vrot.lane.b32.xlu2 %v8801_v18, %s11975_s30  ;;  %v8957_v29 = vpack.c.bf16 %v1750_v27, %v1750_v27  ;;  %v1526_v52 = vld [vmem:[#allocation2 + $0xda] sm:$0xff] }
 0x116   : > { %1626 = vrot.lane.b32.xlu0 %v8790_v11, %s8334_s25 }
 0x117   : > { %v944_v40 = vpop.permute.xlu2 %943  ;;  %596 = vst.msk [vmem:[#allocation3 + $0x90] sm:$0xf] %vm577_vm3, %v8957_v29 }
 0x118   : > { %1628 = vrot.lane.b32.xlu1 %v8803_v19, %s8334_s25  ;;  %v1615_v41 = vpop.permute.xlu0 %1614 }
 0x119   : > { %1707 = vst.msk [vmem:[#allocation3 + $0x20] sm:$0xf] %vm1702_vm8, %v1615_v41  ;;  %v7399_v41 = vld [vmem:[#allocation3 + $0x48] sm:$0xf0] }
 0x11a   : > { %1933 = vst.msk [vmem:[#allocation3 + $0x20] sm:$0xf] %vm1928_vm9, %v1841_v28  ;;  %v1617_v43 = vpop.permute.xlu1 %1616  ;;  %v1751_v28 = vld [vmem:[#allocation2 + $0xe0] sm:$0xff] }
 0x11b   : > { %1708 = vst.msk [vmem:[#allocation3 + $0x28] sm:$0xf] %vm1702_vm8, %v1617_v43  ;;  %v8963_v30 = vpack.c.bf16 %v1751_v28, %v1751_v28 }
 0x11d   : > { %1852 = vrot.lane.b32.xlu2 %v8806_v21, %s11976_s12  ;;  %597 = vst.msk [vmem:[#allocation3 + $0x98] sm:$0xf] %vm577_vm3, %v8963_v30 }
 0x11e   : > { %1854 = vrot.lane.b32.xlu0 %v8814_v23, %s11976_s12 }
 0x11f   : > { %v1171_v51 = vpop.permute.xlu2 %1170 }
 0x120   : > { %2077 = vrot.lane.b32.xlu1 %v8855_v46, %s11977_s14  ;;  %v1843_v53 = vpop.permute.xlu0 %1842 }
 0x121   : > { %1934 = vst.msk [vmem:[#allocation3 + $0x28] sm:$0xf] %vm1928_vm9, %v1843_v53  ;;  %v421_v53 = vld [vmem:[%s8523_s16 + $0x98] sm:$0xff] }
 0x122   : > { %2159 = vst.msk [vmem:[#allocation3 + $0x28] sm:$0xf] %vm2153_vm10, %v2068_v36  ;;  %v2066_v55 = vpop.permute.xlu1 %2065 }
 0x123   : > { %2158 = vst.msk [vmem:[#allocation3 + $0x20] sm:$0xf] %vm2153_vm10, %v2066_v55  ;;  %v9009_v55 = vpack.c.bf16 %v1526_v52, %v1526_v52 }
 0x124   : > { %500 = vst.msk [vmem:[#allocation2 + $0xf9] sm:$0xff] %vm434_vm0, %v421_v53 }
 0x125   : > { %2079 = vrot.lane.b32.xlu2 %v8873_v54, %s11977_s14  ;;  %2264 = vst.msk [vmem:[#allocation3 + $0x74] sm:$0xf] %vm577_vm3, %v9009_v55 }
 0x126   : > { %730 = vrot.lane.b32.xlu0 %v8798_v16, %s11978_s15  ;;  %v1973_v16 = vld [vmem:[#allocation2 + $0xc1] sm:$0xff] }
 0x127   : > { %v1619_v59 = vpop.permute.xlu2 %1618  ;;  %v8930_v20 = vpack.c.bf16 %v1973_v16, %v1973_v16 }
 0x128   : > { %732 = vrot.lane.b32.xlu1 %v8801_v18, %s11978_s15  ;;  %v719_v60 = vpop.permute.xlu0 %718  ;;  %v1974_v18 = vld [vmem:[#allocation2 + $0xc9] sm:$0xff] }
 0x129   : > { %809 = vst.msk [vmem:[#allocation3 + $0x30] sm:$0xf] %vm802_vm4, %v719_v60  ;;  %v7957_v61 = vld [vmem:[#allocation3 + $0x24] sm:$0xf0]  ;;  %v8933_v22 = vpack.c.bf16 %v1974_v18, %v1974_v18 }
 0x12a   : > { %1034 = vst.msk [vmem:[#allocation3 + $0x30] sm:$0xf] %vm1027_vm5, %v944_v40  ;;  %v721_v62 = vpop.permute.xlu1 %720  ;;  %v7381_v63 = vld [vmem:[#allocation3 + $0x20] sm:$0xf]  ;;  %v7960_v40 = vld [vmem:[#allocation3 + $0x44] sm:$0xf] }
 0x12b   : > { %810 = vst.msk [vmem:[#allocation3 + $0x38] sm:$0xf] %vm802_vm4, %v721_v62  ;;  %v7382_v1 = vor.u32 %v7957_v61, %v7381_v63  ;;  %v7402_v42 = vor.u32 %v7960_v40, %v7399_v41  ;;  %v9020_v62 = vpack.c.bf16 %v1976_v57, %v1976_v57 }
 0x12d   : > { %955 = vrot.lane.b32.xlu2 %v8790_v11, %s11960_s29  ;;  %2598 = vmatmul.bf16.gmra.mxu0 %v7382_v1  ;;  %v1524_v11 = vld [vmem:[#allocation2 + $0xc2] sm:$0xff] }
 0x12e   : > { %957 = vrot.lane.b32.xlu0 %v8803_v19, %s11960_s29  ;;  %v8920_v14 = vpack.c.bf16 %v1524_v11, %v1524_v11  ;;  %7531 = vmatmul.msk.bf16.gmra.mxu1 %vm434_vm0, %v7402_v42 }
 0x12f   : > { %v1847_v2 = vpop.permute.xlu2 %1846 }
 0x130   : > { %1180 = vrot.lane.b32.xlu1 %v8806_v21, %s11974_s13  ;;  %v946_v3 = vpop.permute.xlu0 %945  ;;  %2262 = vst.msk [vmem:[#allocation3 + $0x64] sm:$0xf] %vm577_vm3, %v8920_v14  ;;  %v1525_v21 = vld [vmem:[#allocation2 + $0xca] sm:$0xff] }
 0x131   : > { %1035 = vst.msk [vmem:[#allocation3 + $0x38] sm:$0xf] %vm1027_vm5, %v946_v3 }
 0x132   : > { %1260 = vst.msk [vmem:[#allocation3 + $0x38] sm:$0xf] %vm1252_vm6, %v1171_v51  ;;  %v1169_v4 = vpop.permute.xlu1 %1168 }
 0x133   : > { %1259 = vst.msk [vmem:[#allocation3 + $0x30] sm:$0xf] %vm1252_vm6, %v1169_v4 }
 0x135   : > { %1182 = vrot.lane.b32.xlu2 %v8814_v23, %s11974_s13  ;;  %v8935_v23 = vpack.c.bf16 %v1525_v21, %v1525_v21 }
 0x136   : > { %1405 = vrot.lane.b32.xlu0 %v8855_v46, %s11975_s30 }
 0x137   : > { %v723_v8 = vpop.permute.xlu2 %722  ;;  %2263 = vst.msk [vmem:[#allocation3 + $0x6c] sm:$0xf] %vm577_vm3, %v8935_v23 }
 0x138   : > { %1407 = vrot.lane.b32.xlu1 %v8873_v54, %s11975_s30  ;;  %811 = vst.msk [vmem:[#allocation3 + $0x40] sm:$0xf] %vm802_vm4, %v723_v8  ;;  %v1394_v9 = vpop.permute.xlu0 %1393 }
 0x139   : > { %1484 = vst.msk [vmem:[#allocation3 + $0x30] sm:$0xf] %vm1477_vm7, %v1394_v9 }
 0x13a   : > { %1709 = vst.msk [vmem:[#allocation3 + $0x30] sm:$0xf] %vm1702_vm8, %v1619_v59  ;;  %v1396_v10 = vpop.permute.xlu1 %1395 }
 0x13b   : > { %1485 = vst.msk [vmem:[#allocation3 + $0x38] sm:$0xf] %vm1477_vm7, %v1396_v10 }
 0x13d   : > { %1630 = vrot.lane.b32.xlu2 %v8857_v47, %s8334_s25 }
 0x13e   : > { %1632 = vrot.lane.b32.xlu0 %v8864_v50, %s8334_s25 }
 0x13f   : > { %v950_v15 = vpop.permute.xlu2 %949 }
 0x140   : > { %1856 = vrot.lane.b32.xlu1 %v8876_v56, %s11976_s12  ;;  %v1621_v17 = vpop.permute.xlu0 %1620 }
 0x141   : > { %1710 = vst.msk [vmem:[#allocation3 + $0x38] sm:$0xf] %vm1702_vm8, %v1621_v17 }
 0x142   : > { %1936 = vst.msk [vmem:[#allocation3 + $0x38] sm:$0xf] %vm1928_vm9, %v1847_v2  ;;  %v1845_v19 = vpop.permute.xlu1 %1844 }
 0x143   : > { %1935 = vst.msk [vmem:[#allocation3 + $0x30] sm:$0xf] %vm1928_vm9, %v1845_v19 }
 0x145   : > { %1858 = vrot.lane.b32.xlu2 %v8879_v58, %s11976_s12 }
 0x146   : > { %2081 = vrot.lane.b32.xlu0 %v8930_v20, %s11977_s14 }
 0x147   : > { %v1398_v24 = vpop.permute.xlu2 %1397 }
 0x148   : > { %2083 = vrot.lane.b32.xlu1 %v8933_v22, %s11977_s14  ;;  %v2070_v25 = vpop.permute.xlu0 %2069 }
 0x149   : > { %2160 = vst.msk [vmem:[#allocation3 + $0x30] sm:$0xf] %vm2153_vm10, %v2070_v25 }
 0x14a   : > { %v2072_v26 = vpop.permute.xlu1 %2071 }
 0x14b   : > { %2161 = vst.msk [vmem:[#allocation3 + $0x38] sm:$0xf] %vm2153_vm10, %v2072_v26 }
 0x14d   : > { %734 = vrot.lane.b32.xlu2 %v8855_v46, %s11978_s15  ;;  %v2678_v46 = vpop.f32.mrf.mxu1 }
 0x14e   : > { %736 = vrot.lane.b32.xlu0 %v8873_v54, %s11978_s15  ;;  %v1975_v54 = vld [vmem:[#allocation2 + $0xd9] sm:$0xff] }
 0x14f   : > { %v1625_v31 = vpop.permute.xlu2 %1624  ;;  %v9017_v60 = vpack.c.bf16 %v1975_v54, %v1975_v54 }
 0x150   : > { %959 = vrot.lane.b32.xlu1 %v8857_v47, %s11960_s29  ;;  %v725_v32 = vpop.permute.xlu0 %724  ;;  %v7389_v33 = vld [vmem:[#allocation3 + $0x30] sm:$0xf] }
 0x151   : > { %812 = vst.msk [vmem:[#allocation3 + $0x48] sm:$0xf] %vm802_vm4, %v725_v32  ;;  %v423_v32 = vld [vmem:[%s8523_s16 + $0xa8] sm:$0xff] }
 0x152   : > { %1037 = vst.msk [vmem:[#allocation3 + $0x48] sm:$0xf] %vm1027_vm5, %v950_v15  ;;  %v948_v34 = vpop.permute.xlu1 %947  ;;  %v7959_v35 = vld [vmem:[#allocation3 + $0x34] sm:$0xf0]  ;;  %v7407_v15 = vld [vmem:[#allocation3 + $0x58] sm:$0xf0] }
 0x153   : > { %1036 = vst.msk [vmem:[#allocation3 + $0x40] sm:$0xf] %vm1027_vm5, %v948_v34  ;;  %v7390_v36 = vor.u32 %v7959_v35, %v7389_v33  ;;  %v1529_v35 = vld [vmem:[#allocation2 + $0xfa] sm:$0xff] }
 0x154   : > { %502 = vst.msk [vmem:[#allocation2 + $0x111] sm:$0xff] %vm434_vm0, %v423_v32 }
 0x155   : > { %2603 = vmatmul.bf16.gmra.mxu0 %v7390_v36  ;;  %961 = vrot.lane.b32.xlu2 %v8864_v50, %s11960_s29  ;;  %v420_v50 = vld [vmem:[%s8523_s16 + $0x90] sm:$0xff]  ;;  %v9056_v17 = vpop.f32.mrf.mxu1  ;;  %v1978_v36 = vld [vmem:[#allocation2 + $0xf9] sm:$0xff] }
 0x156   : > { %1184 = vrot.lane.b32.xlu0 %v8876_v56, %s11974_s13  ;;  %499 = vst.msk [vmem:[#allocation2 + $0xf1] sm:$0xff] %vm434_vm0, %v420_v50  ;;  %v9099_v41 = vpack.c.bf16 %v1978_v36, %v1978_v36 }
 0x157   : > { %v2074_v37 = vpop.permute.xlu2 %2073 }
 0x158   : > { %1186 = vrot.lane.b32.xlu1 %v8879_v58, %s11974_s13  ;;  %v1173_v38 = vpop.permute.xlu0 %1172  ;;  %v1527_v58 = vld [vmem:[#allocation2 + $0xe2] sm:$0xff] }
 0x159   : > { %1261 = vst.msk [vmem:[#allocation3 + $0x40] sm:$0xf] %vm1252_vm6, %v1173_v38  ;;  %v9022_v63 = vpack.c.bf16 %v1527_v58, %v1527_v58 }
 0x15a   : > { %1486 = vst.msk [vmem:[#allocation3 + $0x40] sm:$0xf] %vm1477_vm7, %v1398_v24  ;;  %v1175_v39 = vpop.permute.xlu1 %1174 }
 0x15b   : > { %1262 = vst.msk [vmem:[#allocation3 + $0x48] sm:$0xf] %vm1252_vm6, %v1175_v39 }
 0x15c   : > { %2265 = vst.msk [vmem:[#allocation3 + $0x7c] sm:$0xf] %vm577_vm3, %v9022_v63 }
 0x15d   : > { %1409 = vrot.lane.b32.xlu2 %v8930_v20, %s11975_s30  ;;  %v1752_v1 = vld [vmem:[#allocation2 + $0xf0] sm:$0xff]  ;;  %v1753_v3 = vld [vmem:[#allocation2 + $0xf8] sm:$0xff]  ;;  %v2683_v24 = vpop.f32.mrf.mxu1 }
 0x15e   : > { %1411 = vrot.lane.b32.xlu0 %v8933_v22, %s11975_s30  ;;  %v9025_v2 = vpack.c.bf16 %v1752_v1, %v1752_v1  ;;  %v9033_v4 = vpack.c.bf16 %v1753_v3, %v1753_v3  ;;  %v1977_v28 = vld [vmem:[#allocation2 + $0xf1] sm:$0xff] }
 0x15f   : > { %v729_v43 = vpop.permute.xlu2 %728  ;;  %v9081_v33 = vpack.c.bf16 %v1977_v28, %v1977_v28 }
 0x160   : > { %1634 = vrot.lane.b32.xlu1 %v8920_v14, %s8334_s25  ;;  %814 = vst.msk [vmem:[#allocation3 + $0x58] sm:$0xf] %vm802_vm4, %v729_v43  ;;  %v1400_v45 = vpop.permute.xlu0 %1399 }
 0x161   : > { %1487 = vst.msk [vmem:[#allocation3 + $0x48] sm:$0xf] %vm1477_vm7, %v1400_v45 }
 0x162   : > { %1712 = vst.msk [vmem:[#allocation3 + $0x48] sm:$0xf] %vm1702_vm8, %v1625_v31  ;;  %v2589_v47 = vpop.f32.mrf.mxu0  ;;  %v1623_v48 = vpop.permute.xlu1 %1622  ;;  %v1528_v31 = vld [vmem:[#allocation2 + $0xf2] sm:$0xff] }
 0x163   : > { %v2590_v49 = vadd.f32 %v8990_v44, %v2589_v47  ;;  %1711 = vst.msk [vmem:[#allocation3 + $0x40] sm:$0xf] %vm1702_vm8, %v1623_v48  ;;  %v9083_v34 = vpack.c.bf16 %v1528_v31, %v1528_v31 }
 0x164   : > { %598 = vst.msk [vmem:[#allocation3 + $0xa0] sm:$0xf] %vm577_vm3, %v9025_v2 }
 0x165   : > { %v9002_v51 = vadd.f32 %v2678_v46, %v2590_v49  ;;  %1636 = vrot.lane.b32.xlu2 %v8935_v23, %s8334_s25  ;;  %599 = vst.msk [vmem:[#allocation3 + $0xa8] sm:$0xf] %vm577_vm3, %v9033_v4  ;;  %v9126_v57 = vpop.f32.mrf.mxu1 }
 0x166   : > { %1860 = vrot.lane.b32.xlu0 %v8957_v29, %s11976_s12  ;;  %2266 = vst.msk [vmem:[#allocation3 + $0x84] sm:$0xf] %vm577_vm3, %v9083_v34 }
 0x167   : > { %v1177_v56 = vpop.permute.xlu2 %1176 }
 0x168   : > { %1862 = vrot.lane.b32.xlu1 %v8963_v30, %s11976_s12  ;;  %v1849_v59 = vpop.permute.xlu0 %1848 }
 0x169   : > { %1937 = vst.msk [vmem:[#allocation3 + $0x40] sm:$0xf] %vm1928_vm9, %v1849_v59 }
 0x16a   : > { %2162 = vst.msk [vmem:[#allocation3 + $0x40] sm:$0xf] %vm2153_vm10, %v2074_v37  ;;  %v1851_v61 = vpop.permute.xlu1 %1850  ;;  %v9058_v19 = vpop.f32.mrf.mxu0  ;;  %v9090_v37 = vpack.c.bf16 %v1529_v35, %v1529_v35 }
 0x16b   : > { %1938 = vst.msk [vmem:[#allocation3 + $0x48] sm:$0xf] %vm1928_vm9, %v1851_v61 }
 0x16c   : > { %2267 = vst.msk [vmem:[#allocation3 + $0x8c] sm:$0xf] %vm577_vm3, %v9090_v37 }
 0x16d   : > { %2085 = vrot.lane.b32.xlu2 %v9017_v60, %s11977_s14  ;;  %v2688_v1 = vpop.f32.mrf.mxu1 }
 0x16e   : > { %2087 = vrot.lane.b32.xlu0 %v9020_v62, %s11977_s14 }
 0x16f   : > { %v1404_v5 = vpop.permute.xlu2 %1403 }
 0x170   : > { %738 = vrot.lane.b32.xlu1 %v8930_v20, %s11978_s15  ;;  %v2076_v6 = vpop.permute.xlu0 %2075 }
 0x171   : > { %2163 = vst.msk [vmem:[#allocation3 + $0x48] sm:$0xf] %vm2153_vm10, %v2076_v6  ;;  %v7397_v8 = vld [vmem:[#allocation3 + $0x40] sm:$0xf] }
 0x172   : > { %v727_v7 = vpop.permute.xlu1 %726 }
 0x173   : > { %813 = vst.msk [vmem:[#allocation3 + $0x50] sm:$0xf] %vm802_vm4, %v727_v7  ;;  %v424_v7 = vld [vmem:[%s8523_s16 + $0xb0] sm:$0xff] }
 0x174   : > { %503 = vst.msk [vmem:[#allocation2 + $0x121] sm:$0xff] %vm434_vm0, %v424_v7 }
 0x175   : > { %740 = vrot.lane.b32.xlu2 %v8933_v22, %s11978_s15  ;;  %v422_v22 = vld [vmem:[%s8523_s16 + $0xa0] sm:$0xff] }
 0x176   : > { %963 = vrot.lane.b32.xlu0 %v8920_v14, %s11960_s29  ;;  %v7962_v14 = vld [vmem:[#allocation3 + $0x54] sm:$0xf]  ;;  %501 = vst.msk [vmem:[#allocation2 + $0x109] sm:$0xff] %vm434_vm0, %v422_v22 }
 0x177   : > { %v1853_v9 = vpop.permute.xlu2 %1852  ;;  %v7410_v16 = vor.u32 %v7962_v14, %v7407_v15 }
 0x178   : > { %965 = vrot.lane.b32.xlu1 %v8935_v23, %s11960_s29  ;;  %v952_v10 = vpop.permute.xlu0 %951  ;;  %v7961_v11 = vld [vmem:[#allocation3 + $0x44] sm:$0xf0] }
 0x179   : > { %1038 = vst.msk [vmem:[#allocation3 + $0x50] sm:$0xf] %vm1027_vm5, %v952_v10  ;;  %v7398_v12 = vor.u32 %v7961_v11, %v7397_v8  ;;  %7532 = vmatmul.msk.bf16.gmra.mxu1 %vm434_vm0, %v7410_v16  ;;  %v425_v8 = vld [vmem:[%s8523_s16 + $0xb8] sm:$0xff] }
 0x17a   : > { %1263 = vst.msk [vmem:[#allocation3 + $0x50] sm:$0xf] %vm1252_vm6, %v1177_v56  ;;  %v954_v13 = vpop.permute.xlu1 %953  ;;  %v1531_v16 = vld [vmem:[#allocation2 + $0x112] sm:$0xff] }
 0x17b   : > { %1039 = vst.msk [vmem:[#allocation3 + $0x58] sm:$0xf] %vm1027_vm5, %v954_v13  ;;  %2608 = vmatmul.bf16.gmra.mxu0 %v7398_v12  ;;  %v1980_v13 = vld [vmem:[#allocation2 + $0x111] sm:$0xff] }
 0x17c   : > { %504 = vst.msk [vmem:[#allocation2 + $0x129] sm:$0xff] %vm434_vm0, %v425_v8 }
 0x17d   : > { %1188 = vrot.lane.b32.xlu2 %v8957_v29, %s11974_s13  ;;  %v1754_v39 = vld [vmem:[#allocation2 + $0x108] sm:$0xff]  ;;  %v1755_v45 = vld [vmem:[#allocation2 + $0x110] sm:$0xff] }
 0x17e   : > { %1190 = vrot.lane.b32.xlu0 %v8963_v30, %s11974_s13  ;;  %v9102_v43 = vpack.c.bf16 %v1754_v39, %v1754_v39  ;;  %v9105_v46 = vpack.c.bf16 %v1755_v45, %v1755_v45  ;;  %v1530_v6 = vld [vmem:[#allocation2 + $0x10a] sm:$0xff] }
 0x17f   : > { %v2080_v18 = vpop.permute.xlu2 %2079  ;;  %v1979_v11 = vld [vmem:[#allocation2 + $0x109] sm:$0xff] }
 0x180   : > { %1413 = vrot.lane.b32.xlu1 %v9017_v60, %s11975_s30  ;;  %v1179_v20 = vpop.permute.xlu0 %1178  ;;  %600 = vst.msk [vmem:[#allocation3 + $0xb0] sm:$0xf] %vm577_vm3, %v9102_v43  ;;  %v9163_v15 = vpack.c.bf16 %v1979_v11, %v1979_v11 }
 0x181   : > { %1264 = vst.msk [vmem:[#allocation3 + $0x58] sm:$0xf] %vm1252_vm6, %v1179_v20  ;;  %v9168_v20 = vpack.c.bf16 %v1531_v16, %v1531_v16 }
 0x182   : > { %1489 = vst.msk [vmem:[#allocation3 + $0x58] sm:$0xf] %vm1477_vm7, %v1404_v5  ;;  %v1402_v21 = vpop.permute.xlu1 %1401 }
 0x183   : > { %1488 = vst.msk [vmem:[#allocation3 + $0x50] sm:$0xf] %vm1477_vm7, %v1402_v21  ;;  %v1756_v21 = vld [vmem:[#allocation2 + $0x120] sm:$0xff] }
 0x184   : > { %601 = vst.msk [vmem:[#allocation3 + $0xb8] sm:$0xf] %vm577_vm3, %v9105_v46  ;;  %v9174_v22 = vpack.c.bf16 %v1756_v21, %v1756_v21 }
 0x185   : > { %1415 = vrot.lane.b32.xlu2 %v9020_v62, %s11975_s30  ;;  %2269 = vst.msk [vmem:[#allocation3 + $0x9c] sm:$0xf] %vm577_vm3, %v9168_v20 }
 0x186   : > { %1638 = vrot.lane.b32.xlu0 %v9009_v55, %s8334_s25  ;;  %602 = vst.msk [vmem:[#allocation3 + $0xc0] sm:$0xf] %vm577_vm3, %v9174_v22 }
 0x187   : > { %v956_v23 = vpop.permute.xlu2 %955 }
 0x188   : > { %1640 = vrot.lane.b32.xlu1 %v9022_v63, %s8334_s25  ;;  %v1627_v25 = vpop.permute.xlu0 %1626  ;;  %v2594_v26 = vpop.f32.mrf.mxu0 }
 0x189   : > { %1713 = vst.msk [vmem:[#allocation3 + $0x50] sm:$0xf] %vm1702_vm8, %v1627_v25  ;;  %v2595_v27 = vadd.f32 %v8990_v44, %v2594_v26 }
 0x18a   : > { %1939 = vst.msk [vmem:[#allocation3 + $0x50] sm:$0xf] %vm1928_vm9, %v1853_v9  ;;  %v1629_v29 = vpop.permute.xlu1 %1628  ;;  %v9153_v9 = vpack.c.bf16 %v1530_v6, %v1530_v6 }
 0x18b   : > { %1714 = vst.msk [vmem:[#allocation3 + $0x58] sm:$0xf] %vm1702_vm8, %v1629_v29  ;;  %v9078_v30 = vadd.f32 %v2683_v24, %v2595_v27 }
 0x18c   : > { %2268 = vst.msk [vmem:[#allocation3 + $0x94] sm:$0xf] %vm577_vm3, %v9153_v9 }
 0x18d   : > { %1864 = vrot.lane.b32.xlu2 %v9025_v2, %s11976_s12 }
 0x18e   : > { %1866 = vrot.lane.b32.xlu0 %v9033_v4, %s11976_s12 }
 0x18f   : > { %v1183_v38 = vpop.permute.xlu2 %1182 }
 0x190   : > { %2089 = vrot.lane.b32.xlu1 %v9081_v33, %s11977_s14  ;;  %v1855_v40 = vpop.permute.xlu0 %1854  ;;  %v9129_v58 = vpop.f32.mrf.mxu0 }
 0x191   : > { %1940 = vst.msk [vmem:[#allocation3 + $0x58] sm:$0xf] %vm1928_vm9, %v1855_v40 }
 0x192   : > { %2165 = vst.msk [vmem:[#allocation3 + $0x58] sm:$0xf] %vm2153_vm10, %v2080_v18  ;;  %v2078_v42 = vpop.permute.xlu1 %2077  ;;  %v9166_v18 = vpack.c.bf16 %v1980_v13, %v1980_v13 }
 0x193   : > { %2164 = vst.msk [vmem:[#allocation3 + $0x50] sm:$0xf] %vm2153_vm10, %v2078_v42 }
 0x195   : > { %2091 = vrot.lane.b32.xlu2 %v9099_v41, %s11977_s14 }
 0x196   : > { %742 = vrot.lane.b32.xlu0 %v9017_v60, %s11978_s15  ;;  %v7415_v60 = vld [vmem:[#allocation3 + $0x68] sm:$0xf0] }
 0x197   : > { %v1631_v47 = vpop.permute.xlu2 %1630 }
 0x198   : > { %744 = vrot.lane.b32.xlu1 %v9020_v62, %s11978_s15  ;;  %v731_v48 = vpop.permute.xlu0 %730 }
 0x199   : > { %815 = vst.msk [vmem:[#allocation3 + $0x60] sm:$0xf] %vm802_vm4, %v731_v48  ;;  %v7963_v49 = vld [vmem:[#allocation3 + $0x54] sm:$0xf0] }
 0x19a   : > { %1040 = vst.msk [vmem:[#allocation3 + $0x60] sm:$0xf] %vm1027_vm5, %v956_v23  ;;  %v733_v50 = vpop.permute.xlu1 %732  ;;  %v7405_v52 = vld [vmem:[#allocation3 + $0x50] sm:$0xf]  ;;  %v1757_v23 = vld [vmem:[#allocation2 + $0x128] sm:$0xff] }
 0x19b   : > { %816 = vst.msk [vmem:[#allocation3 + $0x68] sm:$0xf] %vm802_vm4, %v733_v50  ;;  %v7406_v53 = vor.u32 %v7963_v49, %v7405_v52  ;;  %v9180_v26 = vpack.c.bf16 %v1757_v23, %v1757_v23  ;;  %v426_v50 = vld [vmem:[%s8523_s16 + $0xc0] sm:$0xff] }
 0x19c   : > { %505 = vst.msk [vmem:[#allocation2 + $0x139] sm:$0xff] %vm434_vm0, %v426_v50 }
 0x19d   : > { %967 = vrot.lane.b32.xlu2 %v9009_v55, %s11960_s29  ;;  %2613 = vmatmul.bf16.gmra.mxu0 %v7406_v53  ;;  %v7964_v55 = vld [vmem:[#allocation3 + $0x64] sm:$0xf]  ;;  %603 = vst.msk [vmem:[#allocation3 + $0xc8] sm:$0xf] %vm577_vm3, %v9180_v26  ;;  %v1532_v53 = vld [vmem:[#allocation2 + $0x122] sm:$0xff] }
 0x19e   : > { %969 = vrot.lane.b32.xlu0 %v9022_v63, %s11960_s29  ;;  %v7418_v61 = vor.u32 %v7964_v55, %v7415_v60  ;;  %v1533_v60 = vld [vmem:[#allocation2 + $0x12a] sm:$0xff] }
 0x19f   : > { %v1859_v54 = vpop.permute.xlu2 %1858 }
 0x1a0   : > { %1192 = vrot.lane.b32.xlu1 %v9025_v2, %s11974_s13  ;;  %v958_v56 = vpop.permute.xlu0 %957  ;;  %7533 = vmatmul.msk.bf16.gmra.mxu1 %vm434_vm0, %v7418_v61 }
 0x1a1   : > { %1041 = vst.msk [vmem:[#allocation3 + $0x68] sm:$0xf] %vm1027_vm5, %v958_v56  ;;  %v1981_v56 = vld [vmem:[#allocation2 + $0x121] sm:$0xff] }
 0x1a2   : > { %1266 = vst.msk [vmem:[#allocation3 + $0x68] sm:$0xf] %vm1252_vm6, %v1183_v38  ;;  %v1181_v59 = vpop.permute.xlu1 %1180  ;;  %v9203_v38 = vpop.f32.mrf.mxu1 }
 0x1a3   : > { %1265 = vst.msk [vmem:[#allocation3 + $0x60] sm:$0xf] %vm1252_vm6, %v1181_v59  ;;  %v9231_v59 = vpack.c.bf16 %v1532_v53, %v1532_v53 }
 0x1a5   : > { %1194 = vrot.lane.b32.xlu2 %v9033_v4, %s11974_s13  ;;  %2270 = vst.msk [vmem:[#allocation3 + $0xa4] sm:$0xf] %vm577_vm3, %v9231_v59 }
 0x1a6   : > { %1417 = vrot.lane.b32.xlu0 %v9081_v33, %s11975_s30 }
 0x1a7   : > { %v735_v62 = vpop.permute.xlu2 %734 }
 0x1a8   : > { %1419 = vrot.lane.b32.xlu1 %v9099_v41, %s11975_s30  ;;  %817 = vst.msk [vmem:[#allocation3 + $0x70] sm:$0xf] %vm802_vm4, %v735_v62  ;;  %v1406_v63 = vpop.permute.xlu0 %1405  ;;  %v9239_v62 = vpack.c.bf16 %v1981_v56, %v1981_v56 }
 0x1a9   : > { %1490 = vst.msk [vmem:[#allocation3 + $0x60] sm:$0xf] %vm1477_vm7, %v1406_v63 }
 0x1aa   : > { %1715 = vst.msk [vmem:[#allocation3 + $0x60] sm:$0xf] %vm1702_vm8, %v1631_v47  ;;  %v1408_v2 = vpop.permute.xlu1 %1407  ;;  %v2599_v3 = vpop.f32.mrf.mxu0 }
 0x1ab   : > { %1491 = vst.msk [vmem:[#allocation3 + $0x68] sm:$0xf] %vm1477_vm7, %v1408_v2  ;;  %v2600_v4 = vadd.f32 %v8990_v44, %v2599_v3  ;;  %v9244_v2 = vpack.c.bf16 %v1533_v60, %v1533_v60  ;;  %v1758_v3 = vld [vmem:[#allocation2 + $0x138] sm:$0xff] }
 0x1ad   : > { %v9145_v5 = vadd.f32 %v2688_v1, %v2600_v4  ;;  %1642 = vrot.lane.b32.xlu2 %v9083_v34, %s8334_s25  ;;  %v9247_v4 = vpack.c.bf16 %v1758_v3, %v1758_v3  ;;  %2271 = vst.msk [vmem:[#allocation3 + $0xac] sm:$0xf] %vm577_vm3, %v9244_v2 }
 0x1ae   : > { %1644 = vrot.lane.b32.xlu0 %v9090_v37, %s8334_s25 }
 0x1af   : > { %v962_v10 = vpop.permute.xlu2 %961  ;;  %604 = vst.msk [vmem:[#allocation3 + $0xd0] sm:$0xf] %vm577_vm3, %v9247_v4 }
 0x1b0   : > { %1868 = vrot.lane.b32.xlu1 %v9102_v43, %s11976_s12  ;;  %v1633_v12 = vpop.permute.xlu0 %1632 }
 0x1b1   : > { %1716 = vst.msk [vmem:[#allocation3 + $0x68] sm:$0xf] %vm1702_vm8, %v1633_v12 }
 0x1b2   : > { %1942 = vst.msk [vmem:[#allocation3 + $0x68] sm:$0xf] %vm1928_vm9, %v1859_v54  ;;  %v1857_v14 = vpop.permute.xlu1 %1856  ;;  %v9206_v39 = vpop.f32.mrf.mxu0  ;;  %v427_v54 = vld [vmem:[%s8523_s16 + $0xc8] sm:$0xff] }
 0x1b3   : > { %1941 = vst.msk [vmem:[#allocation3 + $0x60] sm:$0xf] %vm1928_vm9, %v1857_v14 }
 0x1b4   : > { %506 = vst.msk [vmem:[#allocation2 + $0x141] sm:$0xff] %vm434_vm0, %v427_v54 }
 0x1b5   : > { %1870 = vrot.lane.b32.xlu2 %v9105_v46, %s11976_s12 }
 0x1b6   : > { %2093 = vrot.lane.b32.xlu0 %v9163_v15, %s11977_s14 }
 0x1b7   : > { %v1410_v24 = vpop.permute.xlu2 %1409 }
 0x1b8   : > { %2095 = vrot.lane.b32.xlu1 %v9166_v18, %s11977_s14  ;;  %v2082_v25 = vpop.permute.xlu0 %2081 }
 0x1b9   : > { %2166 = vst.msk [vmem:[#allocation3 + $0x60] sm:$0xf] %vm2153_vm10, %v2082_v25 }
 0x1ba   : > { %v2084_v27 = vpop.permute.xlu1 %2083 }
 0x1bb   : > { %2167 = vst.msk [vmem:[#allocation3 + $0x68] sm:$0xf] %vm2153_vm10, %v2084_v27  ;;  %v1759_v6 = vld [vmem:[#allocation2 + $0x140] sm:$0xff] }
 0x1bc   : > { %v9255_v7 = vpack.c.bf16 %v1759_v6, %v1759_v6  ;;  %v430_v6 = vld [vmem:[%s8523_s16 + $0xe0] sm:$0xff] }
 0x1bd   : > { %746 = vrot.lane.b32.xlu2 %v9081_v33, %s11978_s15  ;;  %509 = vst.msk [vmem:[#allocation2 + $0x169] sm:$0xff] %vm434_vm0, %v430_v6 }
 0x1be   : > { %748 = vrot.lane.b32.xlu0 %v9099_v41, %s11978_s15  ;;  %v7423_v41 = vld [vmem:[#allocation3 + $0x78] sm:$0xf0]  ;;  %605 = vst.msk [vmem:[#allocation3 + $0xd8] sm:$0xf] %vm577_vm3, %v9255_v7 }
 0x1bf   : > { %v1637_v28 = vpop.permute.xlu2 %1636 }
 0x1c0   : > { %971 = vrot.lane.b32.xlu1 %v9083_v34, %s11960_s29  ;;  %v737_v29 = vpop.permute.xlu0 %736  ;;  %v7413_v31 = vld [vmem:[#allocation3 + $0x60] sm:$0xf] }
 0x1c1   : > { %818 = vst.msk [vmem:[#allocation3 + $0x78] sm:$0xf] %vm802_vm4, %v737_v29 }
 0x1c2   : > { %1043 = vst.msk [vmem:[#allocation3 + $0x78] sm:$0xf] %vm1027_vm5, %v962_v10  ;;  %v960_v32 = vpop.permute.xlu1 %959  ;;  %v7965_v35 = vld [vmem:[#allocation3 + $0x64] sm:$0xf0] }
 0x1c3   : > { %1042 = vst.msk [vmem:[#allocation3 + $0x70] sm:$0xf] %vm1027_vm5, %v960_v32  ;;  %v7414_v36 = vor.u32 %v7965_v35, %v7413_v31  ;;  %v1534_v31 = vld [vmem:[#allocation2 + $0x13a] sm:$0xff] }
 0x1c4   : > { %v429_v32 = vld [vmem:[%s8523_s16 + $0xd8] sm:$0xff] }
 0x1c5   : > { %2618 = vmatmul.bf16.gmra.mxu0 %v7414_v36  ;;  %973 = vrot.lane.b32.xlu2 %v9090_v37, %s11960_s29  ;;  %v7966_v37 = vld [vmem:[#allocation3 + $0x74] sm:$0xf]  ;;  %v9298_v36 = vpack.c.bf16 %v1534_v31, %v1534_v31  ;;  %508 = vst.msk [vmem:[#allocation2 + $0x159] sm:$0xff] %vm434_vm0, %v429_v32 }
 0x1c6   : > { %1196 = vrot.lane.b32.xlu0 %v9102_v43, %s11974_s13  ;;  %v7426_v42 = vor.u32 %v7966_v37, %v7423_v41 }
 0x1c7   : > { %v2086_v33 = vpop.permute.xlu2 %2085  ;;  %2272 = vst.msk [vmem:[#allocation3 + $0xb4] sm:$0xf] %vm577_vm3, %v9298_v36 }
 0x1c8   : > { %1198 = vrot.lane.b32.xlu1 %v9105_v46, %s11974_s13  ;;  %v1185_v34 = vpop.permute.xlu0 %1184  ;;  %7534 = vmatmul.msk.bf16.gmra.mxu1 %vm434_vm0, %v7426_v42  ;;  %v2693_v46 = vpop.f32.mrf.mxu1 }
 0x1c9   : > { %1267 = vst.msk [vmem:[#allocation3 + $0x70] sm:$0xf] %vm1252_vm6, %v1185_v34  ;;  %v1984_v34 = vld [vmem:[#allocation2 + $0x141] sm:$0xff] }
 0x1ca   : > { %1492 = vst.msk [vmem:[#allocation3 + $0x70] sm:$0xf] %vm1477_vm7, %v1410_v24  ;;  %v1187_v40 = vpop.permute.xlu1 %1186 }
 0x1cb   : > { %1268 = vst.msk [vmem:[#allocation3 + $0x78] sm:$0xf] %vm1252_vm6, %v1187_v40 }
 0x1cd   : > { %1421 = vrot.lane.b32.xlu2 %v9163_v15, %s11975_s30 }
 0x1ce   : > { %1423 = vrot.lane.b32.xlu0 %v9166_v18, %s11975_s30 }
 0x1cf   : > { %v741_v43 = vpop.permute.xlu2 %740 }
 0x1d0   : > { %1646 = vrot.lane.b32.xlu1 %v9153_v9, %s8334_s25  ;;  %820 = vst.msk [vmem:[#allocation3 + $0x88] sm:$0xf] %vm802_vm4, %v741_v43  ;;  %v1412_v45 = vpop.permute.xlu0 %1411  ;;  %v9314_v43 = vpack.c.bf16 %v1984_v34, %v1984_v34 }
 0x1d1   : > { %1493 = vst.msk [vmem:[#allocation3 + $0x78] sm:$0xf] %vm1477_vm7, %v1412_v45 }
 0x1d2   : > { %1718 = vst.msk [vmem:[#allocation3 + $0x78] sm:$0xf] %vm1702_vm8, %v1637_v28  ;;  %v1635_v47 = vpop.permute.xlu1 %1634  ;;  %v2604_v48 = vpop.f32.mrf.mxu0  ;;  %v1983_v28 = vld [vmem:[#allocation2 + $0x139] sm:$0xff] }
 0x1d3   : > { %1717 = vst.msk [vmem:[#allocation3 + $0x70] sm:$0xf] %vm1702_vm8, %v1635_v47  ;;  %v2605_v49 = vadd.f32 %v8990_v44, %v2604_v48  ;;  %v1982_v44 = vld [vmem:[#allocation2 + $0x129] sm:$0xff]  ;;  %v9296_v35 = vpack.c.bf16 %v1983_v28, %v1983_v28 }
 0x1d4   : > { %v9242_v1 = vpack.c.bf16 %v1982_v44, %v1982_v44 }
 0x1d5   : > { %v9224_v52 = vadd.f32 %v2693_v46, %v2605_v49  ;;  %1648 = vrot.lane.b32.xlu2 %v9168_v20, %s8334_s25 }
 0x1d6   : > { %1872 = vrot.lane.b32.xlu0 %v9174_v22, %s11976_s12 }
 0x1d7   : > { %v1189_v55 = vpop.permute.xlu2 %1188 }
 0x1d8   : > { %1874 = vrot.lane.b32.xlu1 %v9180_v26, %s11976_s12  ;;  %v1861_v61 = vpop.permute.xlu0 %1860 }
 0x1d9   : > { %1943 = vst.msk [vmem:[#allocation3 + $0x70] sm:$0xf] %vm1928_vm9, %v1861_v61 }
 0x1da   : > { %2168 = vst.msk [vmem:[#allocation3 + $0x70] sm:$0xf] %vm2153_vm10, %v2086_v33  ;;  %v1863_v63 = vpop.permute.xlu1 %1862  ;;  %v1535_v33 = vld [vmem:[#allocation2 + $0x142] sm:$0xff] }
 0x1db   : > { %1944 = vst.msk [vmem:[#allocation3 + $0x78] sm:$0xf] %vm1928_vm9, %v1863_v63  ;;  %v9305_v40 = vpack.c.bf16 %v1535_v33, %v1535_v33  ;;  %v7439_v63 = vld [vmem:[#allocation3 + $0x98] sm:$0xf0] }
 0x1dd   : > { %2097 = vrot.lane.b32.xlu2 %v9239_v62, %s11977_s14  ;;  %2273 = vst.msk [vmem:[#allocation3 + $0xbc] sm:$0xf] %vm577_vm3, %v9305_v40 }
 0x1de   : > { %2099 = vrot.lane.b32.xlu0 %v9242_v1, %s11977_s14 }
 0x1df   : > { %v1416_v8 = vpop.permute.xlu2 %1415 }
 0x1e0   : > { %750 = vrot.lane.b32.xlu1 %v9163_v15, %s11978_s15  ;;  %v2088_v10 = vpop.permute.xlu0 %2087 }
 0x1e1   : > { %2169 = vst.msk [vmem:[#allocation3 + $0x78] sm:$0xf] %vm2153_vm10, %v2088_v10  ;;  %v7421_v12 = vld [vmem:[#allocation3 + $0x70] sm:$0xf] }
 0x1e2   : > { %v739_v11 = vpop.permute.xlu1 %738 }
 0x1e3   : > { %819 = vst.msk [vmem:[#allocation3 + $0x80] sm:$0xf] %vm802_vm4, %v739_v11 }
 0x1e5   : > { %752 = vrot.lane.b32.xlu2 %v9166_v18, %s11978_s15  ;;  %v7431_v18 = vld [vmem:[#allocation3 + $0x88] sm:$0xf0] }
 0x1e6   : > { %975 = vrot.lane.b32.xlu0 %v9153_v9, %s11960_s29  ;;  %v7968_v9 = vld [vmem:[#allocation3 + $0x84] sm:$0xf] }
 0x1e7   : > { %v1865_v13 = vpop.permute.xlu2 %1864 }
 0x1e8   : > { %977 = vrot.lane.b32.xlu1 %v9168_v20, %s11960_s29  ;;  %v964_v14 = vpop.permute.xlu0 %963  ;;  %v7967_v15 = vld [vmem:[#allocation3 + $0x74] sm:$0xf0]  ;;  %v7434_v20 = vor.u32 %v7968_v9, %v7431_v18 }
 0x1e9   : > { %1044 = vst.msk [vmem:[#allocation3 + $0x80] sm:$0xf] %vm1027_vm5, %v964_v14  ;;  %v7422_v16 = vor.u32 %v7967_v15, %v7421_v12  ;;  %v1762_v18 = vld [vmem:[#allocation2 + $0x168] sm:$0xff] }
 0x1ea   : > { %1269 = vst.msk [vmem:[#allocation3 + $0x80] sm:$0xf] %vm1252_vm6, %v1189_v55  ;;  %v966_v21 = vpop.permute.xlu1 %965  ;;  %7535 = vmatmul.msk.bf16.gmra.mxu1 %vm434_vm0, %v7434_v20  ;;  %v9382_v20 = vpack.c.bf16 %v1762_v18, %v1762_v18 }
 0x1eb   : > { %1045 = vst.msk [vmem:[#allocation3 + $0x88] sm:$0xf] %vm1027_vm5, %v966_v21  ;;  %2623 = vmatmul.bf16.gmra.mxu0 %v7422_v16  ;;  %v1537_v16 = vld [vmem:[#allocation2 + $0x15a] sm:$0xff] }
 0x1ec   : > { %v9376_v9 = vpack.c.bf16 %v1537_v16, %v1537_v16  ;;  %608 = vst.msk [vmem:[#allocation3 + $0xf0] sm:$0xf] %vm577_vm3, %v9382_v20 }
 0x1ed   : > { %1200 = vrot.lane.b32.xlu2 %v9174_v22, %s11974_s13  ;;  %v428_v22 = vld [vmem:[%s8523_s16 + $0xd0] sm:$0xff] }
 0x1ee   : > { %1202 = vrot.lane.b32.xlu0 %v9180_v26, %s11974_s13  ;;  %507 = vst.msk [vmem:[#allocation2 + $0x151] sm:$0xff] %vm434_vm0, %v428_v22 }
 0x1ef   : > { %v2092_v23 = vpop.permute.xlu2 %2091  ;;  %2275 = vst.msk [vmem:[#allocation3 + $0xcc] sm:$0xf] %vm577_vm3, %v9376_v9 }
 0x1f0   : > { %1425 = vrot.lane.b32.xlu1 %v9239_v62, %s11975_s30  ;;  %v1191_v24 = vpop.permute.xlu0 %1190 }
 0x1f1   : > { %1270 = vst.msk [vmem:[#allocation3 + $0x88] sm:$0xf] %vm1252_vm6, %v1191_v24 }
 0x1f2   : > { %1495 = vst.msk [vmem:[#allocation3 + $0x88] sm:$0xf] %vm1477_vm7, %v1416_v8  ;;  %v1414_v25 = vpop.permute.xlu1 %1413 }
 0x1f3   : > { %1494 = vst.msk [vmem:[#allocation3 + $0x80] sm:$0xf] %vm1477_vm7, %v1414_v25 }
 0x1f5   : > { %1427 = vrot.lane.b32.xlu2 %v9242_v1, %s11975_s30  ;;  %v1760_v41 = vld [vmem:[#allocation2 + $0x150] sm:$0xff]  ;;  %v1761_v47 = vld [vmem:[#allocation2 + $0x158] sm:$0xff] }
 0x1f6   : > { %1650 = vrot.lane.b32.xlu0 %v9231_v59, %s8334_s25  ;;  %v9317_v46 = vpack.c.bf16 %v1760_v41, %v1760_v41  ;;  %v9320_v48 = vpack.c.bf16 %v1761_v47, %v1761_v47  ;;  %v1985_v11 = vld [vmem:[#allocation2 + $0x151] sm:$0xff]  ;;  %v7447_v41 = vld [vmem:[#allocation3 + $0xa8] sm:$0xf0] }
 0x1f7   : > { %v968_v26 = vpop.permute.xlu2 %967  ;;  %v9371_v15 = vpack.c.bf16 %v1985_v11, %v1985_v11 }
 0x1f8   : > { %1652 = vrot.lane.b32.xlu1 %v9244_v2, %s8334_s25  ;;  %v1639_v27 = vpop.permute.xlu0 %1638  ;;  %606 = vst.msk [vmem:[#allocation3 + $0xe0] sm:$0xf] %vm577_vm3, %v9317_v46 }
 0x1f9   : > { %1719 = vst.msk [vmem:[#allocation3 + $0x80] sm:$0xf] %vm1702_vm8, %v1639_v27 }
 0x1fa   : > { %1945 = vst.msk [vmem:[#allocation3 + $0x80] sm:$0xf] %vm1928_vm9, %v1865_v13  ;;  %v1641_v29 = vpop.permute.xlu1 %1640  ;;  %v1986_v13 = vld [vmem:[#allocation2 + $0x159] sm:$0xff] }
 0x1fb   : > { %1720 = vst.msk [vmem:[#allocation3 + $0x88] sm:$0xf] %vm1702_vm8, %v1641_v29  ;;  %v9374_v21 = vpack.c.bf16 %v1986_v13, %v1986_v13  ;;  %v7455_v13 = vld [vmem:[#allocation3 + $0xb8] sm:$0xf0] }
 0x1fc   : > { %607 = vst.msk [vmem:[#allocation3 + $0xe8] sm:$0xf] %vm577_vm3, %v9320_v48 }
 0x1fd   : > { %1876 = vrot.lane.b32.xlu2 %v9247_v4, %s11976_s12 }
 0x1fe   : > { %1878 = vrot.lane.b32.xlu0 %v9255_v7, %s11976_s12 }
 0x1ff   : > { %v1195_v37 = vpop.permute.xlu2 %1194 }
 0x200   : > { %2101 = vrot.lane.b32.xlu1 %v9296_v35, %s11977_s14  ;;  %v1867_v42 = vpop.permute.xlu0 %1866 }
 0x201   : > { %1946 = vst.msk [vmem:[#allocation3 + $0x88] sm:$0xf] %vm1928_vm9, %v1867_v42 }
 0x202   : > { %2171 = vst.msk [vmem:[#allocation3 + $0x88] sm:$0xf] %vm2153_vm10, %v2092_v23  ;;  %v2090_v45 = vpop.permute.xlu1 %2089 }
 0x203   : > { %2170 = vst.msk [vmem:[#allocation3 + $0x80] sm:$0xf] %vm2153_vm10, %v2090_v45 }
 0x205   : > { %2103 = vrot.lane.b32.xlu2 %v9314_v43, %s11977_s14 }
 0x206   : > { %754 = vrot.lane.b32.xlu0 %v9239_v62, %s11978_s15  ;;  %v7970_v62 = vld [vmem:[#allocation3 + $0x94] sm:$0xf] }
 0x207   : > { %v1643_v49 = vpop.permute.xlu2 %1642 }
 0x208   : > { %756 = vrot.lane.b32.xlu1 %v9242_v1, %s11978_s15  ;;  %v743_v50 = vpop.permute.xlu0 %742 }
 0x209   : > { %821 = vst.msk [vmem:[#allocation3 + $0x90] sm:$0xf] %vm802_vm4, %v743_v50  ;;  %v7969_v53 = vld [vmem:[#allocation3 + $0x84] sm:$0xf0] }
 0x20a   : > { %1046 = vst.msk [vmem:[#allocation3 + $0x90] sm:$0xf] %vm1027_vm5, %v968_v26  ;;  %v745_v54 = vpop.permute.xlu1 %744  ;;  %v7429_v56 = vld [vmem:[#allocation3 + $0x80] sm:$0xf] }
 0x20b   : > { %822 = vst.msk [vmem:[#allocation3 + $0x98] sm:$0xf] %vm802_vm4, %v745_v54  ;;  %v7430_v55 = vor.u32 %v7969_v53, %v7429_v56 }
 0x20d   : > { %979 = vrot.lane.b32.xlu2 %v9231_v59, %s11960_s29  ;;  %2628 = vmatmul.bf16.gmra.mxu0 %v7430_v55  ;;  %v7442_v59 = vor.u32 %v7970_v62, %v7439_v63 }
 0x20e   : > { %981 = vrot.lane.b32.xlu0 %v9244_v2, %s11960_s29 }
 0x20f   : > { %v1871_v44 = vpop.permute.xlu2 %1870  ;;  %7536 = vmatmul.msk.bf16.gmra.mxu1 %vm434_vm0, %v7442_v59 }
 0x210   : > { %1204 = vrot.lane.b32.xlu1 %v9247_v4, %s11974_s13  ;;  %v970_v60 = vpop.permute.xlu0 %969  ;;  %v1536_v4 = vld [vmem:[#allocation2 + $0x152] sm:$0xff] }
 0x211   : > { %1047 = vst.msk [vmem:[#allocation3 + $0x98] sm:$0xf] %vm1027_vm5, %v970_v60  ;;  %v9361_v8 = vpack.c.bf16 %v1536_v4, %v1536_v4 }
 0x212   : > { %1272 = vst.msk [vmem:[#allocation3 + $0x98] sm:$0xf] %vm1252_vm6, %v1195_v37  ;;  %v1193_v61 = vpop.permute.xlu1 %1192  ;;  %v7972_v37 = vld [vmem:[#allocation3 + $0xa4] sm:$0xf] }
 0x213   : > { %1271 = vst.msk [vmem:[#allocation3 + $0x90] sm:$0xf] %vm1252_vm6, %v1193_v61 }
 0x214   : > { %2274 = vst.msk [vmem:[#allocation3 + $0xc4] sm:$0xf] %vm577_vm3, %v9361_v8 }
 0x215   : > { %1206 = vrot.lane.b32.xlu2 %v9255_v7, %s11974_s13  ;;  %v431_v7 = vld [vmem:[%s8523_s16 + $0xe8] sm:$0xff] }
 0x216   : > { %1429 = vrot.lane.b32.xlu0 %v9296_v35, %s11975_s30  ;;  %510 = vst.msk [vmem:[#allocation2 + $0x171] sm:$0xff] %vm434_vm0, %v431_v7  ;;  %v9464_v7 = vpop.f32.mrf.mxu0 }
 0x217   : > { %v747_v1 = vpop.permute.xlu2 %746 }
 0x218   : > { %1431 = vrot.lane.b32.xlu1 %v9314_v43, %s11975_s30  ;;  %823 = vst.msk [vmem:[#allocation3 + $0xa0] sm:$0xf] %vm802_vm4, %v747_v1  ;;  %v1418_v2 = vpop.permute.xlu0 %1417 }
 0x219   : > { %1496 = vst.msk [vmem:[#allocation3 + $0x90] sm:$0xf] %vm1477_vm7, %v1418_v2 }
 0x21a   : > { %1721 = vst.msk [vmem:[#allocation3 + $0x90] sm:$0xf] %vm1702_vm8, %v1643_v49  ;;  %v1420_v3 = vpop.permute.xlu1 %1419  ;;  %v1987_v49 = vld [vmem:[#allocation2 + $0x169] sm:$0xff] }
 0x21b   : > { %1497 = vst.msk [vmem:[#allocation3 + $0x98] sm:$0xf] %vm1477_vm7, %v1420_v3 }
 0x21d   : > { %1654 = vrot.lane.b32.xlu2 %v9298_v36, %s8334_s25  ;;  %v1763_v23 = vld [vmem:[#allocation2 + $0x170] sm:$0xff] }
 0x21e   : > { %1656 = vrot.lane.b32.xlu0 %v9305_v40, %s8334_s25  ;;  %v9388_v22 = vpack.c.bf16 %v1763_v23, %v1763_v23  ;;  %v1538_v47 = vld [vmem:[#allocation2 + $0x16a] sm:$0xff]  ;;  %v1539_v56 = vld [vmem:[#allocation2 + $0x172] sm:$0xff] }
 0x21f   : > { %v974_v10 = vpop.permute.xlu2 %973  ;;  %v9432_v50 = vpack.c.bf16 %v1538_v47, %v1538_v47  ;;  %v1988_v54 = vld [vmem:[#allocation2 + $0x171] sm:$0xff]  ;;  %v9445_v62 = vpack.c.bf16 %v1539_v56, %v1539_v56 }
 0x220   : > { %1880 = vrot.lane.b32.xlu1 %v9317_v46, %s11976_s12  ;;  %v1645_v12 = vpop.permute.xlu0 %1644  ;;  %609 = vst.msk [vmem:[#allocation3 + $0xf8] sm:$0xf] %vm577_vm3, %v9388_v22  ;;  %v9443_v61 = vpack.c.bf16 %v1988_v54, %v1988_v54 }
 0x221   : > { %1722 = vst.msk [vmem:[#allocation3 + $0x98] sm:$0xf] %vm1702_vm8, %v1645_v12  ;;  %v9469_v12 = vpop.f32.mrf.mxu1 }
 0x222   : > { %1948 = vst.msk [vmem:[#allocation3 + $0x98] sm:$0xf] %vm1928_vm9, %v1871_v44  ;;  %v1869_v14 = vpop.permute.xlu1 %1868  ;;  %v9440_v44 = vpack.c.bf16 %v1987_v49, %v1987_v49 }
 0x223   : > { %1947 = vst.msk [vmem:[#allocation3 + $0x90] sm:$0xf] %vm1928_vm9, %v1869_v14 }
 0x224   : > { %2276 = vst.msk [vmem:[#allocation3 + $0xd4] sm:$0xf] %vm577_vm3, %v9432_v50 }
 0x225   : > { %1882 = vrot.lane.b32.xlu2 %v9320_v48, %s11976_s12  ;;  %2277 = vst.msk [vmem:[#allocation3 + $0xdc] sm:$0xf] %vm577_vm3, %v9445_v62 }
 0x226   : > { %2105 = vrot.lane.b32.xlu0 %v9371_v15, %s11977_s14 }
 0x227   : > { %v1422_v24 = vpop.permute.xlu2 %1421 }
 0x228   : > { %2107 = vrot.lane.b32.xlu1 %v9374_v21, %s11977_s14  ;;  %v2094_v25 = vpop.permute.xlu0 %2093 }
 0x229   : > { %2172 = vst.msk [vmem:[#allocation3 + $0x90] sm:$0xf] %vm2153_vm10, %v2094_v25  ;;  %v9483_v18 = vpop.f32.mrf.mxu1 }
 0x22a   : > { %v2096_v26 = vpop.permute.xlu1 %2095 }
 0x22b   : > { %2173 = vst.msk [vmem:[#allocation3 + $0x98] sm:$0xf] %vm2153_vm10, %v2096_v26 }
 0x22d   : > { %758 = vrot.lane.b32.xlu2 %v9296_v35, %s11978_s15 }
 0x22e   : > { %760 = vrot.lane.b32.xlu0 %v9314_v43, %s11978_s15 }
 0x22f   : > { %v1649_v27 = vpop.permute.xlu2 %1648 }
 0x230   : > { %983 = vrot.lane.b32.xlu1 %v9298_v36, %s11960_s29  ;;  %v749_v28 = vpop.permute.xlu0 %748  ;;  %v7437_v29 = vld [vmem:[#allocation3 + $0x90] sm:$0xf] }
 0x231   : > { %824 = vst.msk [vmem:[#allocation3 + $0xa8] sm:$0xf] %vm802_vm4, %v749_v28 }
 0x232   : > { %1049 = vst.msk [vmem:[#allocation3 + $0xa8] sm:$0xf] %vm1027_vm5, %v974_v10  ;;  %v972_v31 = vpop.permute.xlu1 %971  ;;  %v7971_v32 = vld [vmem:[#allocation3 + $0x94] sm:$0xf0] }
 0x233   : > { %1048 = vst.msk [vmem:[#allocation3 + $0xa0] sm:$0xf] %vm1027_vm5, %v972_v31  ;;  %v7438_v33 = vor.u32 %v7971_v32, %v7437_v29 }
 0x235   : > { %2633 = vmatmul.bf16.gmra.mxu0 %v7438_v33  ;;  %985 = vrot.lane.b32.xlu2 %v9305_v40, %s11960_s29  ;;  %v7450_v40 = vor.u32 %v7972_v37, %v7447_v41  ;;  %v9499_v37 = vpop.f32.mrf.mxu1 }
 0x236   : > { %1208 = vrot.lane.b32.xlu0 %v9317_v46, %s11974_s13  ;;  %v432_v46 = vld [vmem:[%s8523_s16 + $0xf0] sm:$0xff] }
 0x237   : > { %v2098_v35 = vpop.permute.xlu2 %2097  ;;  %7537 = vmatmul.msk.bf16.gmra.mxu1 %vm434_vm0, %v7450_v40  ;;  %511 = vst.msk [vmem:[#allocation2 + $0x181] sm:$0xff] %vm434_vm0, %v432_v46 }
 0x238   : > { %1210 = vrot.lane.b32.xlu1 %v9320_v48, %s11974_s13  ;;  %v1197_v36 = vpop.permute.xlu0 %1196  ;;  %v433_v48 = vld [vmem:[%s8523_s16 + $0xf8] sm:$0xff] }
 0x239   : > { %1273 = vst.msk [vmem:[#allocation3 + $0xa0] sm:$0xf] %vm1252_vm6, %v1197_v36 }
 0x23a   : > { %1498 = vst.msk [vmem:[#allocation3 + $0xa0] sm:$0xf] %vm1477_vm7, %v1422_v24  ;;  %v1199_v34 = vpop.permute.xlu1 %1198 }
 0x23b   : > { %1274 = vst.msk [vmem:[#allocation3 + $0xa8] sm:$0xf] %vm1252_vm6, %v1199_v34 }
 0x23c   : > { %512 = vst.msk [vmem:[#allocation2 + $0x189] sm:$0xff] %vm434_vm0, %v433_v48 }
 0x23d   : > { %1433 = vrot.lane.b32.xlu2 %v9371_v15, %s11975_s30  ;;  %v9511_v46 = vpop.f32.mrf.mxu1 }
 0x23e   : > { %1435 = vrot.lane.b32.xlu0 %v9374_v21, %s11975_s30  ;;  %v1989_v26 = vld [vmem:[#allocation2 + $0x181] sm:$0xff] }
 0x23f   : > { %v753_v42 = vpop.permute.xlu2 %752  ;;  %v2021_v32 = vpack.c.bf16 %v1989_v26, %v1989_v26 }
 0x240   : > { %1658 = vrot.lane.b32.xlu1 %v9361_v8, %s8334_s25  ;;  %826 = vst.msk [vmem:[#allocation3 + $0xb8] sm:$0xf] %vm802_vm4, %v753_v42  ;;  %v1424_v43 = vpop.permute.xlu0 %1423 }
 0x241   : > { %1499 = vst.msk [vmem:[#allocation3 + $0xa8] sm:$0xf] %vm1477_vm7, %v1424_v43 }
 0x242   : > { %1724 = vst.msk [vmem:[#allocation3 + $0xa8] sm:$0xf] %vm1702_vm8, %v1649_v27  ;;  %v1647_v45 = vpop.permute.xlu1 %1646 }
 0x243   : > { %1723 = vst.msk [vmem:[#allocation3 + $0xa0] sm:$0xf] %vm1702_vm8, %v1647_v45  ;;  %v1765_v24 = vld [vmem:[#allocation2 + $0x188] sm:$0xff] }
 0x244   : > { %v1797_v28 = vpack.c.bf16 %v1765_v24, %v1765_v24  ;;  %v1540_v31 = vld [vmem:[#allocation2 + $0x182] sm:$0xff] }
 0x245   : > { %1660 = vrot.lane.b32.xlu2 %v9376_v9, %s8334_s25  ;;  %v1572_v33 = vpack.c.bf16 %v1540_v31, %v1540_v31  ;;  %v1990_v36 = vld [vmem:[#allocation2 + $0x189] sm:$0xff] }
 0x246   : > { %1884 = vrot.lane.b32.xlu0 %v9382_v20, %s11976_s12  ;;  %v2022_v42 = vpack.c.bf16 %v1990_v36, %v1990_v36 }
 0x247   : > { %v1201_v53 = vpop.permute.xlu2 %1200  ;;  %2278 = vst.msk [vmem:[#allocation3 + $0xe4] sm:$0xf] %vm577_vm3, %v1572_v33 }
 0x248   : > { %1886 = vrot.lane.b32.xlu1 %v9388_v22, %s11976_s12  ;;  %v1873_v55 = vpop.permute.xlu0 %1872 }
 0x249   : > { %1949 = vst.msk [vmem:[#allocation3 + $0xa0] sm:$0xf] %vm1928_vm9, %v1873_v55 }
 0x24a   : > { %2174 = vst.msk [vmem:[#allocation3 + $0xa0] sm:$0xf] %vm2153_vm10, %v2098_v35  ;;  %v1875_v60 = vpop.permute.xlu1 %1874  ;;  %v1541_v35 = vld [vmem:[#allocation2 + $0x18a] sm:$0xff] }
 0x24b   : > { %1950 = vst.msk [vmem:[#allocation3 + $0xa8] sm:$0xf] %vm1928_vm9, %v1875_v60  ;;  %v1573_v34 = vpack.c.bf16 %v1541_v35, %v1541_v35 }
 0x24d   : > { %2109 = vrot.lane.b32.xlu2 %v9440_v44, %s11977_s14  ;;  %2279 = vst.msk [vmem:[#allocation3 + $0xec] sm:$0xf] %vm577_vm3, %v1573_v34 }
 0x24e   : > { %2111 = vrot.lane.b32.xlu0 %v9443_v61, %s11977_s14 }
 0x24f   : > { %v1428_v63 = vpop.permute.xlu2 %1427 }
 0x250   : > { %762 = vrot.lane.b32.xlu1 %v9371_v15, %s11978_s15  ;;  %v2100_v59 = vpop.permute.xlu0 %2099 }
 0x251   : > { %2175 = vst.msk [vmem:[#allocation3 + $0xa8] sm:$0xf] %vm2153_vm10, %v2100_v59  ;;  %v7445_v2 = vld [vmem:[#allocation3 + $0xa0] sm:$0xf]  ;;  %v7976_v59 = vld [vmem:[#allocation3 + $0xc4] sm:$0xf] }
 0x252   : > { %v751_v1 = vpop.permute.xlu1 %750 }
 0x253   : > { %825 = vst.msk [vmem:[#allocation3 + $0xb0] sm:$0xf] %vm802_vm4, %v751_v1  ;;  %v7463_v1 = vld [vmem:[#allocation3 + $0xc8] sm:$0xf0] }
 0x255   : > { %764 = vrot.lane.b32.xlu2 %v9374_v21, %s11978_s15  ;;  %v9478_v21 = vpop.f32.mrf.mxu0 }
 0x256   : > { %987 = vrot.lane.b32.xlu0 %v9361_v8, %s11960_s29  ;;  %v7974_v8 = vld [vmem:[#allocation3 + $0xb4] sm:$0xf] }
 0x257   : > { %v1877_v3 = vpop.permute.xlu2 %1876  ;;  %v7458_v14 = vor.u32 %v7974_v8, %v7455_v13  ;;  %v1767_v8 = vld [vmem:[#allocation2 + $0x1a0] sm:$0xff] }
 0x258   : > { %989 = vrot.lane.b32.xlu1 %v9376_v9, %s11960_s29  ;;  %v976_v4 = vpop.permute.xlu0 %975  ;;  %v7973_v6 = vld [vmem:[#allocation3 + $0xa4] sm:$0xf0] }
 0x259   : > { %1050 = vst.msk [vmem:[#allocation3 + $0xb0] sm:$0xf] %vm1027_vm5, %v976_v4  ;;  %v7446_v10 = vor.u32 %v7973_v6, %v7445_v2  ;;  %7538 = vmatmul.msk.bf16.gmra.mxu1 %vm434_vm0, %v7458_v14  ;;  %v1766_v6 = vld [vmem:[#allocation2 + $0x198] sm:$0xff] }
 0x25a   : > { %1275 = vst.msk [vmem:[#allocation3 + $0xb0] sm:$0xf] %vm1252_vm6, %v1201_v53  ;;  %v978_v11 = vpop.permute.xlu1 %977 }
 0x25b   : > { %1051 = vst.msk [vmem:[#allocation3 + $0xb8] sm:$0xf] %vm1027_vm5, %v978_v11  ;;  %2638 = vmatmul.bf16.gmra.mxu0 %v7446_v10  ;;  %v1798_v11 = vpack.c.bf16 %v1766_v6, %v1766_v6 }
 0x25d   : > { %1212 = vrot.lane.b32.xlu2 %v9382_v20, %s11974_s13  ;;  %v1764_v20 = vld [vmem:[#allocation2 + $0x180] sm:$0xff]  ;;  %v9493_v29 = vpop.f32.mrf.mxu0 }
 0x25e   : > { %1214 = vrot.lane.b32.xlu0 %v9388_v22, %s11974_s13  ;;  %v1796_v22 = vpack.c.bf16 %v1764_v20, %v1764_v20  ;;  %v1992_v20 = vld [vmem:[#allocation2 + $0x1a1] sm:$0xff] }
 0x25f   : > { %v2104_v15 = vpop.permute.xlu2 %2103 }
 0x260   : > { %1437 = vrot.lane.b32.xlu1 %v9440_v44, %s11975_s30  ;;  %v1203_v16 = vpop.permute.xlu0 %1202 }
 0x261   : > { %1276 = vst.msk [vmem:[#allocation3 + $0xb8] sm:$0xf] %vm1252_vm6, %v1203_v16 }
 0x262   : > { %1501 = vst.msk [vmem:[#allocation3 + $0xb8] sm:$0xf] %vm1477_vm7, %v1428_v63  ;;  %v1426_v9 = vpop.permute.xlu1 %1425 }
 0x263   : > { %1500 = vst.msk [vmem:[#allocation3 + $0xb0] sm:$0xf] %vm1477_vm7, %v1426_v9  ;;  %v1799_v9 = vpack.c.bf16 %v1767_v8, %v1767_v8 }
 0x265   : > { %1439 = vrot.lane.b32.xlu2 %v9443_v61, %s11975_s30  ;;  %v9505_v45 = vpop.f32.mrf.mxu0 }
 0x266   : > { %1662 = vrot.lane.b32.xlu0 %v9432_v50, %s8334_s25 }
 0x267   : > { %v980_v23 = vpop.permute.xlu2 %979 }
 0x268   : > { %1664 = vrot.lane.b32.xlu1 %v9445_v62, %s8334_s25  ;;  %v1651_v25 = vpop.permute.xlu0 %1650 }
 0x269   : > { %1725 = vst.msk [vmem:[#allocation3 + $0xb0] sm:$0xf] %vm1702_vm8, %v1651_v25 }
 0x26a   : > { %1951 = vst.msk [vmem:[#allocation3 + $0xb0] sm:$0xf] %vm1928_vm9, %v1877_v3  ;;  %v1653_v27 = vpop.permute.xlu1 %1652 }
 0x26b   : > { %1726 = vst.msk [vmem:[#allocation3 + $0xb8] sm:$0xf] %vm1702_vm8, %v1653_v27 }
 0x26d   : > { %1888 = vrot.lane.b32.xlu2 %v1796_v22, %s11976_s12  ;;  %v9518_v55 = vpop.f32.mrf.mxu0 }
 0x26e   : > { %1890 = vrot.lane.b32.xlu0 %v1797_v28, %s11976_s12 }
 0x26f   : > { %v1207_v41 = vpop.permute.xlu2 %1206 }
 0x270   : > { %2113 = vrot.lane.b32.xlu1 %v2021_v32, %s11977_s14  ;;  %v1879_v40 = vpop.permute.xlu0 %1878 }
 0x271   : > { %1952 = vst.msk [vmem:[#allocation3 + $0xb8] sm:$0xf] %vm1928_vm9, %v1879_v40 }
 0x272   : > { %2177 = vst.msk [vmem:[#allocation3 + $0xb8] sm:$0xf] %vm2153_vm10, %v2104_v15  ;;  %v2102_v43 = vpop.permute.xlu1 %2101  ;;  %v1991_v15 = vld [vmem:[#allocation2 + $0x199] sm:$0xff] }
 0x273   : > { %2176 = vst.msk [vmem:[#allocation3 + $0xb0] sm:$0xf] %vm2153_vm10, %v2102_v43  ;;  %v2023_v24 = vpack.c.bf16 %v1991_v15, %v1991_v15 }
 0x275   : > { %2115 = vrot.lane.b32.xlu2 %v2022_v42, %s11977_s14 }
 0x276   : > { %766 = vrot.lane.b32.xlu0 %v9440_v44, %s11978_s15 }
 0x277   : > { %v1655_v47 = vpop.permute.xlu2 %1654 }
 0x278   : > { %768 = vrot.lane.b32.xlu1 %v9443_v61, %s11978_s15  ;;  %v755_v48 = vpop.permute.xlu0 %754  ;;  %v9525_v61 = vpop.f32.mrf.mxu1 }
 0x279   : > { %827 = vst.msk [vmem:[#allocation3 + $0xc0] sm:$0xf] %vm802_vm4, %v755_v48  ;;  %v7975_v49 = vld [vmem:[#allocation3 + $0xb4] sm:$0xf0] }
 0x27a   : > { %1052 = vst.msk [vmem:[#allocation3 + $0xc0] sm:$0xf] %vm1027_vm5, %v980_v23  ;;  %v757_v53 = vpop.permute.xlu1 %756  ;;  %v7453_v54 = vld [vmem:[#allocation3 + $0xb0] sm:$0xf] }
 0x27b   : > { %828 = vst.msk [vmem:[#allocation3 + $0xc8] sm:$0xf] %vm802_vm4, %v757_v53  ;;  %v7454_v56 = vor.u32 %v7975_v49, %v7453_v54 }
 0x27d   : > { %991 = vrot.lane.b32.xlu2 %v9432_v50, %s11960_s29  ;;  %2643 = vmatmul.bf16.gmra.mxu0 %v7454_v56  ;;  %v9530_v50 = vpop.f32.mrf.mxu0 }
 0x27e   : > { %993 = vrot.lane.b32.xlu0 %v9445_v62, %s11960_s29  ;;  %v7466_v62 = vor.u32 %v7976_v59, %v7463_v1 }
 0x27f   : > { %v1883_v44 = vpop.permute.xlu2 %1882 }
 0x280   : > { %1216 = vrot.lane.b32.xlu1 %v1796_v22, %s11974_s13  ;;  %v982_v60 = vpop.permute.xlu0 %981  ;;  %7539 = vmatmul.msk.bf16.gmra.mxu1 %vm434_vm0, %v7466_v62  ;;  %v9537_v4 = vpop.f32.mrf.mxu1  ;;  %v2024_v22 = vpack.c.bf16 %v1992_v20, %v1992_v20 }
 0x281   : > { %1053 = vst.msk [vmem:[#allocation3 + $0xc8] sm:$0xf] %vm1027_vm5, %v982_v60 }
 0x282   : > { %1278 = vst.msk [vmem:[#allocation3 + $0xc8] sm:$0xf] %vm1252_vm6, %v1207_v41  ;;  %v1205_v63 = vpop.permute.xlu1 %1204 }
 0x283   : > { %1277 = vst.msk [vmem:[#allocation3 + $0xc0] sm:$0xf] %vm1252_vm6, %v1205_v63  ;;  %v7978_v63 = vld [vmem:[#allocation3 + $0xd4] sm:$0xf] }
 0x285   : > { %1218 = vrot.lane.b32.xlu2 %v1797_v28, %s11974_s13  ;;  %v9544_v13 = vpop.f32.mrf.mxu0  ;;  %v9559_v28 = vld [vmem:[%s11943_s5] ss:$0 sm:$0xff] }
 0x286   : > { %1441 = vrot.lane.b32.xlu0 %v2021_v32, %s11975_s30  ;;  %v2592_v31 = vadd.f32 %v9559_v28, %v9058_v19  ;;  %v2597_v19 = vadd.f32 %v9559_v28, %v9129_v58  ;;  %v2622_v8 = vadd.f32 %v9559_v28, %v9544_v13 }
 0x287   : > { %v759_v2 = vpop.permute.xlu2 %758 }
 0x288   : > { %1443 = vrot.lane.b32.xlu1 %v2022_v42, %s11975_s30  ;;  %829 = vst.msk [vmem:[#allocation3 + $0xd0] sm:$0xf] %vm802_vm4, %v759_v2  ;;  %v1430_v3 = vpop.permute.xlu0 %1429  ;;  %v9549_v25 = vpop.f32.mrf.mxu1  ;;  %v9569_v36 = vadd.f32 %v9056_v17, %v2592_v31  ;;  %v2602_v17 = vadd.f32 %v9559_v28, %v9206_v39  ;;  %v9586_v48 = vadd.f32 %v9126_v57, %v2597_v19 }
 0x289   : > { %1502 = vst.msk [vmem:[#allocation3 + $0xc0] sm:$0xf] %vm1477_vm7, %v1430_v3  ;;  %v2607_v57 = vadd.f32 %v9559_v28, %v9464_v7  ;;  %v7471_v7 = vld [vmem:[#allocation3 + $0xd8] sm:$0xf0]  ;;  %v9658_v13 = vadd.f32 %v9549_v25, %v2622_v8 }
 0x28a   : > { %1727 = vst.msk [vmem:[#allocation3 + $0xc0] sm:$0xf] %vm1702_vm8, %v1655_v47  ;;  %v1432_v10 = vpop.permute.xlu1 %1431  ;;  %v9594_v53 = vadd.f32 %v9203_v38, %v2602_v17  ;;  %v7474_v1 = vor.u32 %v7978_v63, %v7471_v7 }
 0x28b   : > { %1503 = vst.msk [vmem:[#allocation3 + $0xc8] sm:$0xf] %vm1477_vm7, %v1432_v10  ;;  %v9608_v60 = vadd.f32 %v9469_v12, %v2607_v57  ;;  %v2615_v12 = vadd.f32 %v9559_v28, %v9505_v45 }
 0x28d   : > { %1666 = vrot.lane.b32.xlu2 %v1572_v33, %s8334_s25  ;;  %v9554_v26 = vpop.f32.mrf.mxu0  ;;  %v9634_v45 = vadd.f32 %v9511_v46, %v2615_v12 }
 0x28e   : > { %1668 = vrot.lane.b32.xlu0 %v1573_v34, %s8334_s25 }
 0x28f   : > { %v986_v14 = vpop.permute.xlu2 %985 }
 0x290   : > { %1892 = vrot.lane.b32.xlu1 %v1798_v11, %s11976_s12  ;;  %v1657_v16 = vpop.permute.xlu0 %1656  ;;  %v9565_v35 = vpop.f32.mrf.mxu1  ;;  %7540 = vmatmul.msk.bf16.gmra.mxu1 %vm434_vm0, %v7474_v1 }
 0x291   : > { %1728 = vst.msk [vmem:[#allocation3 + $0xc8] sm:$0xf] %vm1702_vm8, %v1657_v16 }
 0x292   : > { %1954 = vst.msk [vmem:[#allocation3 + $0xc8] sm:$0xf] %vm1928_vm9, %v1883_v44  ;;  %v1881_v23 = vpop.permute.xlu1 %1880  ;;  %v2610_v44 = vadd.f32 %v9559_v28, %v9478_v21  ;;  %v2612_v21 = vadd.f32 %v9559_v28, %v9493_v29 }
 0x293   : > { %1953 = vst.msk [vmem:[#allocation3 + $0xc0] sm:$0xf] %vm1928_vm9, %v1881_v23 }
 0x294   : > { %v9613_v62 = vadd.f32 %v9483_v18, %v2610_v44  ;;  %v2617_v18 = vadd.f32 %v9559_v28, %v9518_v55  ;;  %v9630_v6 = vadd.f32 %v9499_v37, %v2612_v21  ;;  %v2620_v55 = vadd.f32 %v9559_v28, %v9530_v50 }
 0x295   : > { %1894 = vrot.lane.b32.xlu2 %v1799_v9, %s11976_s12  ;;  %v9579_v42 = vpop.f32.mrf.mxu0 }
 0x296   : > { %2117 = vrot.lane.b32.xlu0 %v2023_v24, %s11977_s14  ;;  %v9639_v11 = vadd.f32 %v9525_v61, %v2617_v18  ;;  %v2625_v61 = vadd.f32 %v9559_v28, %v9554_v26  ;;  %v9654_v15 = vadd.f32 %v9537_v4, %v2620_v55  ;;  %v2627_v4 = vadd.f32 %v9559_v28, %v9579_v42  ;;  %v2216_v55 = vld [vmem:[#allocation2 + $0x19a] sm:$0xff] }
 0x297   : > { %v1434_v27 = vpop.permute.xlu2 %1433 }
 0x298   : > { %2119 = vrot.lane.b32.xlu1 %v2024_v22, %s11977_s14  ;;  %v2106_v32 = vpop.permute.xlu0 %2105  ;;  %v9589_v49 = vpop.f32.mrf.mxu1  ;;  %v9663_v9 = vadd.f32 %v9565_v35, %v2625_v61  ;;  %v2248_v61 = vpack.c.bf16 %v2216_v55, %v2216_v55 }
 0x299   : > { %2178 = vst.msk [vmem:[#allocation3 + $0xc0] sm:$0xf] %vm2153_vm10, %v2106_v32  ;;  %v9675_v26 = vadd.f32 %v9589_v49, %v2627_v4  ;;  %v7980_v49 = vld [vmem:[#allocation3 + $0xe4] sm:$0xf] }
 0x29a   : > { %v2108_v33 = vpop.permute.xlu1 %2107  ;;  %2280 = vst.msk [vmem:[#allocation3 + $0xf4] sm:$0xf] %vm577_vm3, %v2248_v61 }
 0x29b   : > { %2179 = vst.msk [vmem:[#allocation3 + $0xc8] sm:$0xf] %vm2153_vm10, %v2108_v33 }
 0x29d   : > { %2873 = vrot.lane.b32.xlu2 %v9002_v51, %s11977_s14  ;;  %v2629_v56 = vpop.f32.mrf.mxu0 }
 0x29e   : > { %2875 = vrot.lane.b32.xlu0 %v9569_v36, %s11977_s14  ;;  %v2630_v23 = vadd.f32 %v9559_v28, %v2629_v56 }
 0x29f   : > { %v1661_v34 = vpop.permute.xlu2 %1660 }
 0x2a0   : > { %2877 = vrot.lane.b32.xlu1 %v9078_v30, %s11977_s14  ;;  %v761_v41 = vpop.permute.xlu0 %760  ;;  %v7461_v40 = vld [vmem:[#allocation3 + $0xc0] sm:$0xf]  ;;  %v2718_v59 = vpop.f32.mrf.mxu1 }
 0x2a1   : > { %830 = vst.msk [vmem:[#allocation3 + $0xd8] sm:$0xf] %vm802_vm4, %v761_v41 }
 0x2a2   : > { %1055 = vst.msk [vmem:[#allocation3 + $0xd8] sm:$0xf] %vm1027_vm5, %v986_v14  ;;  %v984_v43 = vpop.permute.xlu1 %983  ;;  %v7977_v47 = vld [vmem:[#allocation3 + $0xc4] sm:$0xf0] }
 0x2a3   : > { %1054 = vst.msk [vmem:[#allocation3 + $0xd0] sm:$0xf] %vm1027_vm5, %v984_v43  ;;  %v7462_v58 = vor.u32 %v7977_v47, %v7461_v40 }
 0x2a5   : > { %2648 = vmatmul.bf16.gmra.mxu0 %v7462_v58  ;;  %2879 = vrot.lane.b32.xlu2 %v9586_v48, %s11977_s14  ;;  %v2631_v10 = vpop.f32.mrf.mxu0 }
 0x2a6   : > { %2881 = vrot.lane.b32.xlu0 %v9145_v5, %s11977_s14  ;;  %v2632_v25 = vadd.f32 %v9559_v28, %v2631_v10 }
 0x2a7   : > { %v2110_v39 = vpop.permute.xlu2 %2109 }
 0x2a8   : > { %2883 = vrot.lane.b32.xlu1 %v9594_v53, %s11977_s14  ;;  %v1209_v54 = vpop.permute.xlu0 %1208  ;;  %v2720_v37 = vpop.f32.mrf.mxu1 }
 0x2a9   : > { %1279 = vst.msk [vmem:[#allocation3 + $0xd0] sm:$0xf] %vm1252_vm6, %v1209_v54  ;;  %v9682_v33 = vadd.f32 %v2720_v37, %v2632_v25  ;;  %v2217_v37 = vld [vmem:[#allocation2 + $0x1a2] sm:$0xff] }
 0x2aa   : > { %1504 = vst.msk [vmem:[#allocation3 + $0xd0] sm:$0xf] %vm1477_vm7, %v1434_v27  ;;  %v1211_v38 = vpop.permute.xlu1 %1210  ;;  %v9678_v27 = vadd.f32 %v2718_v59, %v2630_v23 }
 0x2ab   : > { %1280 = vst.msk [vmem:[#allocation3 + $0xd8] sm:$0xf] %vm1252_vm6, %v1211_v38 }
 0x2ad   : > { %2885 = vrot.lane.b32.xlu2 %v9224_v52, %s11977_s14 }
 0x2ae   : > { %2887 = vrot.lane.b32.xlu0 %v9608_v60, %s11977_s14 }
 0x2af   : > { %v765_v2 = vpop.permute.xlu2 %764 }
 0x2b0   : > { %832 = vst.msk [vmem:[#allocation3 + $0xe8] sm:$0xf] %vm802_vm4, %v765_v2  ;;  %2889 = vrot.lane.b32.xlu1 %v9613_v62, %s11977_s14  ;;  %v1436_v3 = vpop.permute.xlu0 %1435  ;;  %v2723_v20 = vpop.f32.mrf.mxu1 }
 0x2b1   : > { %1505 = vst.msk [vmem:[#allocation3 + $0xd8] sm:$0xf] %vm1477_vm7, %v1436_v3 }
 0x2b2   : > { %1730 = vst.msk [vmem:[#allocation3 + $0xd8] sm:$0xf] %vm1702_vm8, %v1661_v34  ;;  %v1659_v29 = vpop.permute.xlu1 %1658  ;;  %v2634_v50 = vpop.f32.mrf.mxu0 }
 0x2b3   : > { %1729 = vst.msk [vmem:[#allocation3 + $0xd0] sm:$0xf] %vm1702_vm8, %v1659_v29  ;;  %v2635_v19 = vadd.f32 %v9559_v28, %v2634_v50 }
 0x2b5   : > { %2891 = vrot.lane.b32.xlu2 %v9630_v6, %s11977_s14  ;;  %v9692_v47 = vadd.f32 %v2723_v20, %v2635_v19 }
 0x2b6   : > { %2893 = vrot.lane.b32.xlu0 %v9634_v45, %s11977_s14 }
 0x2b7   : > { %v1213_v16 = vpop.permute.xlu2 %1212 }
 0x2b8   : > { %2895 = vrot.lane.b32.xlu1 %v9639_v11, %s11977_s14  ;;  %v1885_v46 = vpop.permute.xlu0 %1884  ;;  %v2725_v42 = vpop.f32.mrf.mxu1 }
 0x2b9   : > { %1955 = vst.msk [vmem:[#allocation3 + $0xd0] sm:$0xf] %vm1928_vm9, %v1885_v46 }
 0x2ba   : > { %2180 = vst.msk [vmem:[#allocation3 + $0xd0] sm:$0xf] %vm2153_vm10, %v2110_v39  ;;  %v1887_v14 = vpop.permute.xlu1 %1886  ;;  %v2636_v31 = vpop.f32.mrf.mxu0  ;;  %v7479_v39 = vld [vmem:[#allocation3 + $0xe8] sm:$0xf0] }
 0x2bb   : > { %1956 = vst.msk [vmem:[#allocation3 + $0xd8] sm:$0xf] %vm1928_vm9, %v1887_v14  ;;  %v2637_v34 = vadd.f32 %v9559_v28, %v2636_v31  ;;  %v7482_v57 = vor.u32 %v7980_v49, %v7479_v39  ;;  %v2249_v14 = vpack.c.bf16 %v2217_v37, %v2217_v37 }
 0x2bd   : > { %2897 = vrot.lane.b32.xlu2 %v9654_v15, %s11977_s14  ;;  %v9695_v58 = vadd.f32 %v2725_v42, %v2637_v34  ;;  %7541 = vmatmul.msk.bf16.gmra.mxu1 %vm434_vm0, %v7482_v57  ;;  %2281 = vst.msk [vmem:[#allocation3 + $0xfc] sm:$0xf] %vm577_vm3, %v2249_v14 }
 0x2be   : > { %2899 = vrot.lane.b32.xlu0 %v9658_v13, %s11977_s14 }
 0x2bf   : > { %v1440_v32 = vpop.permute.xlu2 %1439 }
 0x2c0   : > { %2901 = vrot.lane.b32.xlu1 %v9663_v9, %s11977_s14  ;;  %v2112_v24 = vpop.permute.xlu0 %2111  ;;  %v2728_v38 = vpop.f32.mrf.mxu1 }
 0x2c1   : > { %2181 = vst.msk [vmem:[#allocation3 + $0xd8] sm:$0xf] %vm2153_vm10, %v2112_v24  ;;  %v7469_v35 = vld [vmem:[#allocation3 + $0xd0] sm:$0xf]  ;;  %v7982_v24 = vld [vmem:[#allocation3 + $0xf4] sm:$0xf] }
 0x2c2   : > { %v763_v22 = vpop.permute.xlu1 %762 }
 0x2c3   : > { %831 = vst.msk [vmem:[#allocation3 + $0xe0] sm:$0xf] %vm802_vm4, %v763_v22 }
 0x2c4   : > { %v7487_v22 = vld [vmem:[#allocation3 + $0xf8] sm:$0xf0] }
 0x2c5   : > { %2903 = vrot.lane.b32.xlu2 %v9675_v26, %s11977_s14  ;;  %v7490_v31 = vor.u32 %v7982_v24, %v7487_v22  ;;  %v2760_v22 = vsel %vm434_vm0, %v9002_v51, 0.0 }
 0x2c6   : > { %2905 = vrot.lane.b32.xlu0 %v9678_v27, %s11977_s14 }
 0x2c7   : > { %v1889_v54 = vpop.permute.xlu2 %1888 }
 0x2c8   : > { %2907 = vrot.lane.b32.xlu1 %v9682_v33, %s11977_s14  ;;  %v988_v41 = vpop.permute.xlu0 %987  ;;  %v7979_v40 = vld [vmem:[#allocation3 + $0xd4] sm:$0xf0]  ;;  %v2730_v12 = vpop.f32.mrf.mxu1 }
 0x2c9   : > { %1056 = vst.msk [vmem:[#allocation3 + $0xe0] sm:$0xf] %vm1027_vm5, %v988_v41  ;;  %v7470_v17 = vor.u32 %v7979_v40, %v7469_v35 }
 0x2ca   : > { %1281 = vst.msk [vmem:[#allocation3 + $0xe0] sm:$0xf] %vm1252_vm6, %v1213_v16  ;;  %v990_v43 = vpop.permute.xlu1 %989 }
 0x2cb   : > { %1057 = vst.msk [vmem:[#allocation3 + $0xe8] sm:$0xf] %vm1027_vm5, %v990_v43  ;;  %2653 = vmatmul.bf16.gmra.mxu0 %v7470_v17 }
 0x2cd   : > { %2909 = vrot.lane.b32.xlu2 %v9692_v47, %s11977_s14  ;;  %7542 = vmatmul.msk.bf16.gmra.mxu1 %vm434_vm0, %v7490_v31  ;;  %v2763_v31 = vsel %vm434_vm0, %v9078_v30, 0.0 }
 0x2ce   : > { %2911 = vrot.lane.b32.xlu0 %v9695_v58, %s11977_s14 }
 0x2cf   : > { %v2116_v59 = vpop.permute.xlu2 %2115 }
 0x2d0   : > { %v1215_v56 = vpop.permute.xlu0 %1214 }
 0x2d1   : > { %1282 = vst.msk [vmem:[#allocation3 + $0xe8] sm:$0xf] %vm1252_vm6, %v1215_v56 }
 0x2d2   : > { %1507 = vst.msk [vmem:[#allocation3 + $0xe8] sm:$0xf] %vm1477_vm7, %v1440_v32  ;;  %v1438_v44 = vpop.permute.xlu1 %1437 }
 0x2d3   : > { %1506 = vst.msk [vmem:[#allocation3 + $0xe0] sm:$0xf] %vm1477_vm7, %v1438_v44 }
 0x2d6   : > { %v2733_v34 = vpop.f32.mrf.mxu1 }
 0x2d7   : > { %v992_v8 = vpop.permute.xlu2 %991 }
 0x2d8   : > { %v1663_v63 = vpop.permute.xlu0 %1662  ;;  %v2639_v7 = vpop.f32.mrf.mxu0 }
 0x2d9   : > { %1731 = vst.msk [vmem:[#allocation3 + $0xe0] sm:$0xf] %vm1702_vm8, %v1663_v63  ;;  %v2640_v1 = vadd.f32 %v9559_v28, %v2639_v7 }
 0x2da   : > { %1957 = vst.msk [vmem:[#allocation3 + $0xe0] sm:$0xf] %vm1928_vm9, %v1889_v54  ;;  %v1665_v21 = vpop.permute.xlu1 %1664 }
 0x2db   : > { %1732 = vst.msk [vmem:[#allocation3 + $0xe8] sm:$0xf] %vm1702_vm8, %v1665_v21  ;;  %v9709_v2 = vadd.f32 %v2728_v38, %v2640_v1 }
 0x2dd   : > { %2913 = vrot.lane.b32.xlu1 %v9709_v2, %s11977_s14 }
 0x2de   : > { %v2735_v57 = vpop.f32.mrf.mxu1 }
 0x2df   : > { %v1219_v25 = vpop.permute.xlu2 %1218 }
 0x2e0   : > { %v1891_v3 = vpop.permute.xlu0 %1890  ;;  %v2641_v18 = vpop.f32.mrf.mxu0 }
 0x2e1   : > { %1958 = vst.msk [vmem:[#allocation3 + $0xe8] sm:$0xf] %vm1928_vm9, %v1891_v3  ;;  %v2642_v29 = vadd.f32 %v9559_v28, %v2641_v18 }
 0x2e2   : > { %2183 = vst.msk [vmem:[#allocation3 + $0xe8] sm:$0xf] %vm2153_vm10, %v2116_v59  ;;  %v2114_v10 = vpop.permute.xlu1 %2113 }
 0x2e3   : > { %2182 = vst.msk [vmem:[#allocation3 + $0xe0] sm:$0xf] %vm2153_vm10, %v2114_v10  ;;  %v9717_v46 = vadd.f32 %v2730_v12, %v2642_v29 }
 0x2e5   : > { %2915 = vrot.lane.b32.xlu2 %v9717_v46, %s11977_s14 }
 0x2e7   : > { %v1667_v19 = vpop.permute.xlu2 %1666 }
 0x2e8   : > { %v767_v50 = vpop.permute.xlu0 %766 }
 0x2e9   : > { %833 = vst.msk [vmem:[#allocation3 + $0xf0] sm:$0xf] %vm802_vm4, %v767_v50  ;;  %v7981_v16 = vld [vmem:[#allocation3 + $0xe4] sm:$0xf0] }
 0x2ea   : > { %1058 = vst.msk [vmem:[#allocation3 + $0xf0] sm:$0xf] %vm1027_vm5, %v992_v8  ;;  %v769_v4 = vpop.permute.xlu1 %768  ;;  %v7477_v20 = vld [vmem:[#allocation3 + $0xe0] sm:$0xf] }
 0x2eb   : > { %834 = vst.msk [vmem:[#allocation3 + $0xf8] sm:$0xf] %vm802_vm4, %v769_v4  ;;  %v7478_v23 = vor.u32 %v7981_v16, %v7477_v20 }
 0x2ed   : > { %2658 = vmatmul.bf16.gmra.mxu0 %v7478_v23 }
 0x2ef   : > { %v1895_v39 = vpop.permute.xlu2 %1894 }
 0x2f0   : > { %v994_v32 = vpop.permute.xlu0 %993 }
 0x2f1   : > { %1059 = vst.msk [vmem:[#allocation3 + $0xf8] sm:$0xf] %vm1027_vm5, %v994_v32  ;;  %vm3735_vm5 = vcmask 254976  }
 0x2f2   : > { %1284 = vst.msk [vmem:[#allocation3 + $0xf8] sm:$0xf] %vm1252_vm6, %v1219_v25  ;;  %v1217_v35 = vpop.permute.xlu1 %1216  ;;  %v2761_v25 = vsel %vm434_vm0, %v9569_v36, 0.0 }
 0x2f3   : > { %1283 = vst.msk [vmem:[#allocation3 + $0xf0] sm:$0xf] %vm1252_vm6, %v1217_v35  ;;  %v2762_v32 = vadd.f32 %v2761_v25, %v2760_v22  ;;  %v2765_v35 = vsel %vm434_vm0, %v9586_v48, 0.0  ;;  %v2787_v25 = vsel %vm434_vm0, %v9663_v9, 0.0  ;;  %vm3737_vm6 = vcmask 253952  }
 0x2f4   : > { %3736 = vst.msk [vmem:[#allocation4 + $0x10] sm:$0x3] %vm3735_vm5, %v8329_v0 }
 0x2f5   : > { %5467 = vst.msk [vmem:[#allocation6 + $0x98] sm:$0x3] %vm3735_vm5, %v8329_v0 }
 0x2f6   : > { %5487 = vst.msk [vmem:[#allocation6 + $0x99] sm:$0x1] %vm3737_vm6, %v8329_v0 }
 0x2f7   : > { %3738 = vst.msk [vmem:[#allocation4] sm:$0x1] %vm3737_vm6, %v8329_v0 }
 0x2f8   : > { %v1442_v41 = vpop.permute.xlu0 %1441  ;;  %3739 = vst.msk [vmem:[#allocation4 + $0x18] sm:$0x1] %vm3737_vm6, %v8329_v0 }
 0x2f9   : > { %1508 = vst.msk [vmem:[#allocation3 + $0xf0] sm:$0xf] %vm1477_vm7, %v1442_v41 }
 0x2fa   : > { %1733 = vst.msk [vmem:[#allocation3 + $0xf0] sm:$0xf] %vm1702_vm8, %v1667_v19  ;;  %v1444_v40 = vpop.permute.xlu1 %1443  ;;  %v2644_v42 = vpop.f32.mrf.mxu0  ;;  %v2764_v19 = vadd.f32 %v2763_v31, %v2762_v32  ;;  %v2789_v31 = vsel %vm434_vm0, %v9675_v26, 0.0 }
 0x2fb   : > { %1509 = vst.msk [vmem:[#allocation3 + $0xf8] sm:$0xf] %vm1477_vm7, %v1444_v40  ;;  %v2645_v17 = vadd.f32 %v9559_v28, %v2644_v42  ;;  %v2769_v42 = vsel %vm434_vm0, %v9594_v53, 0.0 }
 0x2fc   : > { %v2766_v41 = vadd.f32 %v2765_v35, %v2764_v19  ;;  %v2791_v35 = vsel %vm434_vm0, %v9678_v27, 0.0  ;;  %3740 = vst.msk [vmem:[#allocation4 + $0x30] sm:$0x1] %vm3737_vm6, %v8329_v0 }
 0x2fd   : > { %v9734_v43 = vadd.f32 %v2733_v34, %v2645_v17  ;;  %v2738_v12 = vpop.f32.mrf.mxu1  ;;  %v2767_v34 = vsel %vm434_vm0, %v9145_v5, 0.0  ;;  %3741 = vst.msk [vmem:[#allocation4 + $0x48] sm:$0x1] %vm3737_vm6, %v8329_v0 }
 0x2fe   : > { %v2768_v17 = vadd.f32 %v2767_v34, %v2766_v41  ;;  %v2793_v34 = vsel %vm434_vm0, %v9682_v33, 0.0  ;;  %3742 = vst.msk [vmem:[#allocation4 + $0x60] sm:$0x1] %vm3737_vm6, %v8329_v0 }
 0x2ff   : > { %2917 = vrot.lane.b32.xlu0 %v9734_v43, %s11977_s14  ;;  %3743 = vst.msk [vmem:[#allocation4 + $0x78] sm:$0x1] %vm3737_vm6, %v8329_v0 }
 0x300   : > { %v1669_v49 = vpop.permute.xlu0 %1668  ;;  %3744 = vst.msk [vmem:[#allocation4 + $0x90] sm:$0x1] %vm3737_vm6, %v8329_v0 }
 0x301   : > { %1734 = vst.msk [vmem:[#allocation3 + $0xf8] sm:$0xf] %vm1702_vm8, %v1669_v49 }
 0x302   : > { %1960 = vst.msk [vmem:[#allocation3 + $0xf8] sm:$0xf] %vm1928_vm9, %v1895_v39  ;;  %v1893_v54 = vpop.permute.xlu1 %1892  ;;  %v2646_v56 = vpop.f32.mrf.mxu0  ;;  %v2771_v39 = vsel %vm434_vm0, %v9224_v52, 0.0 }
 0x303   : > { %1959 = vst.msk [vmem:[#allocation3 + $0xf0] sm:$0xf] %vm1928_vm9, %v1893_v54  ;;  %v2647_v44 = vadd.f32 %v9559_v28, %v2646_v56  ;;  %v2770_v54 = vadd.f32 %v2769_v42, %v2768_v17  ;;  %v2773_v56 = vsel %vm434_vm0, %v9608_v60, 0.0  ;;  %v2797_v17 = vsel %vm434_vm0, %v9695_v58, 0.0 }
 0x304   : > { %3745 = vst.msk [vmem:[#allocation4 + $0xa8] sm:$0x1] %vm3737_vm6, %v8329_v0 }
 0x305   : > { %v9742_v38 = vadd.f32 %v2735_v57, %v2647_v44  ;;  %v2740_v55 = vpop.f32.mrf.mxu1  ;;  %3746 = vst.msk [vmem:[#allocation4 + $0xc0] sm:$0x1] %vm3737_vm6, %v8329_v0 }
 0x306   : > { %3747 = vst.msk [vmem:[#allocation4 + $0xd8] sm:$0x1] %vm3737_vm6, %v8329_v0 }
 0x307   : > { %2919 = vrot.lane.b32.xlu1 %v9742_v38, %s11977_s14  ;;  %3748 = vst.msk [vmem:[#allocation4 + $0xf0] sm:$0x1] %vm3737_vm6, %v8329_v0 }
 0x308   : > { %v2118_v63 = vpop.permute.xlu0 %2117  ;;  %3749 = vst.msk [vmem:[#allocation4 + $0x108] sm:$0x1] %vm3737_vm6, %v8329_v0 }
 0x309   : > { %2184 = vst.msk [vmem:[#allocation3 + $0xf0] sm:$0xf] %vm2153_vm10, %v2118_v63  ;;  %v2772_v63 = vadd.f32 %v2771_v39, %v2770_v54  ;;  %v2799_v39 = vsel %vm434_vm0, %v9709_v2, 0.0  ;;  %v2801_v54 = vsel %vm434_vm0, %v9717_v46, 0.0 }
 0x30a   : > { %v2120_v7 = vpop.permute.xlu1 %2119  ;;  %3750 = vst.msk [vmem:[#allocation4 + $0x120] sm:$0x1] %vm3737_vm6, %v8329_v0 }
 0x30b   : > { %2185 = vst.msk [vmem:[#allocation3 + $0xf8] sm:$0xf] %vm2153_vm10, %v2120_v7  ;;  %v2775_v7 = vsel %vm434_vm0, %v9613_v62, 0.0 }
 0x30c   : > { %3751 = vst.msk [vmem:[#allocation4 + $0x138] sm:$0x1] %vm3737_vm6, %v8329_v0 }
 0x30d   : > { %v2743_v61 = vpop.f32.mrf.mxu1  ;;  %3752 = vst.msk [vmem:[#allocation4 + $0x150] sm:$0x1] %vm3737_vm6, %v8329_v0 }
 0x30e   : > { %3753 = vst.msk [vmem:[#allocation4 + $0x168] sm:$0x1] %vm3737_vm6, %v8329_v0 }
 0x30f   : > { %3754 = vst.msk [vmem:[#allocation4 + $0x180] sm:$0x1] %vm3737_vm6, %v8329_v0 }
 0x310   : > { %v7485_v59 = vld [vmem:[#allocation3 + $0xf0] sm:$0xf]  ;;  %3756 = vst.msk [vmem:[#allocation4 + $0x11] sm:$0x1] %vm3737_vm6, %v8329_v0 }
 0x311   : > { %3757 = vst.msk [vmem:[#allocation4 + $0x29] sm:$0x1] %vm3737_vm6, %v8329_v0 }
 0x312   : > { %v7983_v1 = vld [vmem:[#allocation3 + $0xf4] sm:$0xf0]  ;;  %3758 = vst.msk [vmem:[#allocation4 + $0x41] sm:$0x1] %vm3737_vm6, %v8329_v0 }
 0x313   : > { %v7486_v21 = vor.u32 %v7983_v1, %v7485_v59  ;;  %v2774_v59 = vadd.f32 %v2773_v56, %v2772_v63  ;;  %v2777_v1 = vsel %vm434_vm0, %v9630_v6, 0.0  ;;  %v2803_v63 = vsel %vm434_vm0, %v9734_v43, 0.0  ;;  %3759 = vst.msk [vmem:[#allocation4 + $0x59] sm:$0x1] %vm3737_vm6, %v8329_v0 }
 0x314   : > { %3760 = vst.msk [vmem:[#allocation4 + $0x71] sm:$0x1] %vm3737_vm6, %v8329_v0 }
 0x315   : > { %2663 = vmatmul.bf16.gmra.mxu0 %v7486_v21  ;;  %v2745_v20 = vpop.f32.mrf.mxu1  ;;  %v2776_v21 = vadd.f32 %v2775_v7, %v2774_v59  ;;  %v2805_v59 = vsel %vm434_vm0, %v9742_v38, 0.0  ;;  %3761 = vst.msk [vmem:[#allocation4 + $0x89] sm:$0x1] %vm3737_vm6, %v8329_v0 }
 0x316   : > { %3762 = vst.msk [vmem:[#allocation4 + $0xa1] sm:$0x1] %vm3737_vm6, %v8329_v0 }
 0x317   : > { %3763 = vst.msk [vmem:[#allocation4 + $0xb9] sm:$0x1] %vm3737_vm6, %v8329_v0 }
 0x318   : > { %3764 = vst.msk [vmem:[#allocation4 + $0xd1] sm:$0x1] %vm3737_vm6, %v8329_v0 }
 0x319   : > { %3765 = vst.msk [vmem:[#allocation4 + $0xe9] sm:$0x1] %vm3737_vm6, %v8329_v0 }
 0x31a   : > { %3766 = vst.msk [vmem:[#allocation4 + $0x101] sm:$0x1] %vm3737_vm6, %v8329_v0 }
 0x31b   : > { %3767 = vst.msk [vmem:[#allocation4 + $0x119] sm:$0x1] %vm3737_vm6, %v8329_v0 }
 0x31c   : > { %3768 = vst.msk [vmem:[#allocation4 + $0x131] sm:$0x1] %vm3737_vm6, %v8329_v0 }
 0x31d   : > { %3769 = vst.msk [vmem:[#allocation4 + $0x149] sm:$0x1] %vm3737_vm6, %v8329_v0 }
 0x31e   : > { %3770 = vst.msk [vmem:[#allocation4 + $0x161] sm:$0x1] %vm3737_vm6, %v8329_v0 }
 0x31f   : > { %3771 = vst.msk [vmem:[#allocation4 + $0x179] sm:$0x1] %vm3737_vm6, %v8329_v0 }
 0x320   : > { %3772 = vst.msk [vmem:[#allocation4 + $0x191] sm:$0x1] %vm3737_vm6, %v8329_v0 }
 0x321   : > { %5464 = vst.msk [vmem:[#allocation6 + $0x8] sm:$0x3] %vm3735_vm5, %v8329_v0 }
 0x322   : > { %v2649_v3 = vpop.f32.mrf.mxu0  ;;  %5468 = vst.msk [vmem:[#allocation6] sm:$0x1] %vm3737_vm6, %v8329_v0 }
 0x323   : > { %v2650_v18 = vadd.f32 %v9559_v28, %v2649_v3  ;;  %5469 = vst.msk [vmem:[#allocation6 + $0x10] sm:$0x1] %vm3737_vm6, %v8329_v0 }
 0x324   : > { %5470 = vst.msk [vmem:[#allocation6 + $0x20] sm:$0x1] %vm3737_vm6, %v8329_v0 }
 0x325   : > { %v9749_v29 = vadd.f32 %v2738_v12, %v2650_v18  ;;  %v2779_v18 = vsel %vm434_vm0, %v9634_v45, 0.0  ;;  %5471 = vst.msk [vmem:[#allocation6 + $0x30] sm:$0x1] %vm3737_vm6, %v8329_v0 }
 0x326   : > { %5472 = vst.msk [vmem:[#allocation6 + $0x40] sm:$0x1] %vm3737_vm6, %v8329_v0 }
 0x327   : > { %2921 = vrot.lane.b32.xlu2 %v9749_v29, %s11977_s14  ;;  %5473 = vst.msk [vmem:[#allocation6 + $0x50] sm:$0x1] %vm3737_vm6, %v8329_v0 }
 0x328   : > { %5474 = vst.msk [vmem:[#allocation6 + $0x60] sm:$0x1] %vm3737_vm6, %v8329_v0 }
 0x329   : > { %5475 = vst.msk [vmem:[#allocation6 + $0x70] sm:$0x1] %vm3737_vm6, %v8329_v0 }
 0x32a   : > { %v2651_v10 = vpop.f32.mrf.mxu0  ;;  %5476 = vst.msk [vmem:[#allocation6 + $0x80] sm:$0x1] %vm3737_vm6, %v8329_v0 }
 0x32b   : > { %v2652_v37 = vadd.f32 %v9559_v28, %v2651_v10  ;;  %5477 = vst.msk [vmem:[#allocation6 + $0x90] sm:$0x1] %vm3737_vm6, %v8329_v0 }
 0x32c   : > { %5479 = vst.msk [vmem:[#allocation6 + $0x19] sm:$0x1] %vm3737_vm6, %v8329_v0 }
 0x32d   : > { %v9754_v8 = vadd.f32 %v2740_v55, %v2652_v37  ;;  %v2778_v55 = vadd.f32 %v2777_v1, %v2776_v21  ;;  %v2781_v37 = vsel %vm434_vm0, %v9639_v11, 0.0  ;;  %v2807_v21 = vsel %vm434_vm0, %v9749_v29, 0.0  ;;  %5480 = vst.msk [vmem:[#allocation6 + $0x29] sm:$0x1] %vm3737_vm6, %v8329_v0 }
 0x32e   : > { %5481 = vst.msk [vmem:[#allocation6 + $0x39] sm:$0x1] %vm3737_vm6, %v8329_v0 }
 0x32f   : > { %2923 = vrot.lane.b32.xlu0 %v9754_v8, %s11977_s14  ;;  %5482 = vst.msk [vmem:[#allocation6 + $0x49] sm:$0x1] %vm3737_vm6, %v8329_v0 }
 0x330   : > { %5483 = vst.msk [vmem:[#allocation6 + $0x59] sm:$0x1] %vm3737_vm6, %v8329_v0 }
 0x331   : > { %5484 = vst.msk [vmem:[#allocation6 + $0x69] sm:$0x1] %vm3737_vm6, %v8329_v0 }
 0x332   : > { %5485 = vst.msk [vmem:[#allocation6 + $0x79] sm:$0x1] %vm3737_vm6, %v8329_v0 }
 0x333   : > { %5486 = vst.msk [vmem:[#allocation6 + $0x89] sm:$0x1] %vm3737_vm6, %v8329_v0 }
 0x334   : > { %6545 = vst.msk [vmem:[#allocation8 + $0x8] sm:$0x3] %vm3735_vm5, %v8329_v0 }
 0x335   : > { %6546 = vst.msk [vmem:[#allocation8] sm:$0x1] %vm3737_vm6, %v8329_v0 }
 0x336   : > { %6547 = vst.msk [vmem:[#allocation8 + $0x10] sm:$0x1] %vm3737_vm6, %v8329_v0 }
 0x337   : > { %6548 = vst.msk [vmem:[#allocation8 + $0x20] sm:$0x1] %vm3737_vm6, %v8329_v0 }
 0x338   : > { %6549 = vst.msk [vmem:[#allocation8 + $0x30] sm:$0x1] %vm3737_vm6, %v8329_v0 }
 0x339   : > { %6550 = vst.msk [vmem:[#allocation8 + $0x40] sm:$0x1] %vm3737_vm6, %v8329_v0 }
 0x33a   : > { %v2748_v40 = vpop.f32.mrf.mxu1  ;;  %6551 = vst.msk [vmem:[#allocation8 + $0x50] sm:$0x1] %vm3737_vm6, %v8329_v0 }
 0x33b   : > { %6552 = vst.msk [vmem:[#allocation8 + $0x60] sm:$0x1] %vm3737_vm6, %v8329_v0 }
 0x33c   : > { %6553 = vst.msk [vmem:[#allocation8 + $0x70] sm:$0x1] %vm3737_vm6, %v8329_v0 }
 0x33d   : > { %6554 = vst.msk [vmem:[#allocation8 + $0x80] sm:$0x1] %vm3737_vm6, %v8329_v0 }
 0x33e   : > { %6557 = vst.msk [vmem:[#allocation8 + $0x19] sm:$0x1] %vm3737_vm6, %v8329_v0 }
 0x33f   : > { %6558 = vst.msk [vmem:[#allocation8 + $0x29] sm:$0x1] %vm3737_vm6, %v8329_v0 }
 0x340   : > { %6559 = vst.msk [vmem:[#allocation8 + $0x39] sm:$0x1] %vm3737_vm6, %v8329_v0 }
 0x341   : > { %6560 = vst.msk [vmem:[#allocation8 + $0x49] sm:$0x1] %vm3737_vm6, %v8329_v0 }
 0x342   : > { %v2750_v3 = vpop.f32.mrf.mxu1  ;;  %6561 = vst.msk [vmem:[#allocation8 + $0x59] sm:$0x1] %vm3737_vm6, %v8329_v0 }
 0x343   : > { %6562 = vst.msk [vmem:[#allocation8 + $0x69] sm:$0x1] %vm3737_vm6, %v8329_v0 }
 0x344   : > { %6563 = vst.msk [vmem:[#allocation8 + $0x79] sm:$0x1] %vm3737_vm6, %v8329_v0 }
 0x345   : > { %6564 = vst.msk [vmem:[#allocation8 + $0x89] sm:$0x1] %vm3737_vm6, %v8329_v0 }
 0x346   : > { %5478 = vst.msk [vmem:[#allocation6 + $0x9] sm:$0x1] %vm3737_vm6, %v8329_v0 }
 0x347   : > { %6556 = vst.msk [vmem:[#allocation8 + $0x9] sm:$0x1] %vm3737_vm6, %v8329_v0 }
 0x348   : > { %v2654_v14 = vpop.f32.mrf.mxu0 }
 0x349   : > { %v2655_v50 = vadd.f32 %v9559_v28, %v2654_v14  ;;  %v2780_v14 = vadd.f32 %v2779_v18, %v2778_v55 }
 0x34b   : > { %v9759_v16 = vadd.f32 %v2743_v61, %v2655_v50  ;;  %v2783_v50 = vsel %vm434_vm0, %v9654_v15, 0.0 }
 0x34d   : > { %2925 = vrot.lane.b32.xlu1 %v9759_v16, %s11977_s14 }
 0x350   : > { %v2656_v4 = vpop.f32.mrf.mxu0 }
 0x351   : > { %v2657_v23 = vadd.f32 %v9559_v28, %v2656_v4  ;;  %v2782_v4 = vadd.f32 %v2781_v37, %v2780_v14  ;;  %v2811_v37 = vsel %vm434_vm0, %v9759_v16, 0.0 }
 0x353   : > { %v9764_v24 = vadd.f32 %v2745_v20, %v2657_v23  ;;  %v2785_v20 = vsel %vm434_vm0, %v9658_v13, 0.0  ;;  %v2784_v23 = vadd.f32 %v2783_v50, %v2782_v4 }
 0x355   : > { %2927 = vrot.lane.b32.xlu2 %v9764_v24, %s11977_s14  ;;  %v2786_v22 = vadd.f32 %v2785_v20, %v2784_v23  ;;  %v2813_v20 = vsel %vm434_vm0, %v9764_v24, 0.0 }
 0x357   : > { %v2788_v32 = vadd.f32 %v2787_v25, %v2786_v22 }
 0x359   : > { %v2790_v19 = vadd.f32 %v2789_v31, %v2788_v32 }
 0x35b   : > { %v2792_v41 = vadd.f32 %v2791_v35, %v2790_v19 }
 0x35d   : > { %v2794_v42 = vadd.f32 %v2793_v34, %v2792_v41 }
 0x36a   : > { %v2659_v49 = vpop.f32.mrf.mxu0 }
 0x36b   : > { %v2660_v57 = vadd.f32 %v9559_v28, %v2659_v49 }
 0x36d   : > { %v9785_v44 = vadd.f32 %v2748_v40, %v2660_v57  ;;  %v2795_v40 = vsel %vm434_vm0, %v9692_v47, 0.0 }
 0x36e   : > { %v2796_v49 = vadd.f32 %v2795_v40, %v2794_v42 }
 0x36f   : > { %2929 = vrot.lane.b32.xlu0 %v9785_v44, %s11977_s14  ;;  %v2815_v25 = vsel %vm434_vm0, %v9785_v44, 0.0 }
 0x370   : > { %v2798_v57 = vadd.f32 %v2797_v17, %v2796_v49 }
 0x372   : > { %v2661_v12 = vpop.f32.mrf.mxu0  ;;  %v2800_v56 = vadd.f32 %v2799_v39, %v2798_v57  ;;  %v2874_v57 = vpop.permute.xlu2 %2873 }
 0x373   : > { %v2662_v10 = vadd.f32 %v9559_v28, %v2661_v12 }
 0x374   : > { %v2802_v7 = vadd.f32 %v2801_v54, %v2800_v56  ;;  %v2876_v54 = vpop.permute.xlu0 %2875  ;;  %v2878_v56 = vpop.permute.xlu1 %2877 }
 0x375   : > { %v9798_v61 = vadd.f32 %v2750_v3, %v2662_v10  ;;  %v2809_v3 = vsel %vm434_vm0, %v9754_v8, 0.0  ;;  %v2753_v10 = vpop.f32.mrf.mxu1 }
 0x376   : > { %v2804_v1 = vadd.f32 %v2803_v63, %v2802_v7  ;;  %v2969_v7 = vsel %vm434_vm0, %v2874_v57, 0.0 }
 0x377   : > { %2931 = vrot.lane.b32.xlu1 %v9798_v61, %s11977_s14  ;;  %v2817_v31 = vsel %vm434_vm0, %v9798_v61, 0.0 }
 0x378   : > { %v2806_v12 = vadd.f32 %v2805_v59, %v2804_v1 }
 0x37a   : > { %v2808_v18 = vadd.f32 %v2807_v21, %v2806_v12  ;;  %v2880_v63 = vpop.permute.xlu2 %2879  ;;  %v2972_v21 = vsel %vm434_vm0, %v2878_v56, 0.0 }
 0x37c   : > { %v2810_v50 = vadd.f32 %v2809_v3, %v2808_v18  ;;  %v2882_v1 = vpop.permute.xlu0 %2881  ;;  %v2884_v3 = vpop.permute.xlu1 %2883  ;;  %v2974_v18 = vsel %vm434_vm0, %v2880_v63, 0.0 }
 0x37d   : > { %v2755_v41 = vpop.f32.mrf.mxu1 }
 0x37e   : > { %v2812_v23 = vadd.f32 %v2811_v37, %v2810_v50 }
 0x380   : > { %v2814_v22 = vadd.f32 %v2813_v20, %v2812_v23  ;;  %v2978_v20 = vsel %vm434_vm0, %v2884_v3, 0.0 }
 0x382   : > { %v2816_v35 = vadd.f32 %v2815_v25, %v2814_v22 }
 0x384   : > { %v2818_v40 = vadd.f32 %v2817_v31, %v2816_v35  ;;  %v2888_v50 = vpop.permute.xlu0 %2887  ;;  %v2890_v25 = vpop.permute.xlu1 %2889 }
 0x385   : > { %v2982_v31 = vsel %vm434_vm0, %v2888_v50, 0.0 }
 0x392   : > { %v2664_v55 = vpop.f32.mrf.mxu0 }
 0x393   : > { %v2665_v14 = vadd.f32 %v9559_v28, %v2664_v55  ;;  %v2886_v55 = vpop.permute.xlu2 %2885 }
 0x394   : > { %v2980_v22 = vsel %vm434_vm0, %v2886_v55, 0.0 }
 0x395   : > { %v9833_v4 = vadd.f32 %v2753_v10, %v2665_v14  ;;  %v2976_v10 = vsel %vm434_vm0, %v2882_v1, 0.0 }
 0x397   : > { %2933 = vrot.lane.b32.xlu2 %v9833_v4, %s11977_s14  ;;  %v2819_v34 = vsel %vm434_vm0, %v9833_v4, 0.0 }
 0x398   : > { %v2820_v17 = vadd.f32 %v2819_v34, %v2818_v40  ;;  %v2894_v34 = vpop.permute.xlu0 %2893 }
 0x39a   : > { %v2666_v32 = vpop.f32.mrf.mxu0 }
 0x39b   : > { %v2667_v19 = vadd.f32 %v9559_v28, %v2666_v32  ;;  %v2970_v28 = vsel %vm434_vm0, %v2876_v54, 0.0  ;;  %v2892_v32 = vpop.permute.xlu2 %2891 }
 0x39c   : > { %v2971_v59 = vadd.f32 %v2970_v28, %v2969_v7 }
 0x39d   : > { %v9846_v42 = vadd.f32 %v2755_v41, %v2667_v19  ;;  %v2984_v41 = vsel %vm434_vm0, %v2890_v25, 0.0 }
 0x39e   : > { %v2973_v12 = vadd.f32 %v2972_v21, %v2971_v59 }
 0x39f   : > { %2935 = vrot.lane.b32.xlu0 %v9846_v42, %s11977_s14  ;;  %v2821_v49 = vsel %vm434_vm0, %v9846_v42, 0.0 }
 0x3a0   : > { %v2822_v39 = vadd.f32 %v2821_v49, %v2820_v17  ;;  %v2975_v37 = vadd.f32 %v2974_v18, %v2973_v12  ;;  %v2896_v17 = vpop.permute.xlu1 %2895  ;;  %v2986_v49 = vsel %vm434_vm0, %v2892_v32, 0.0  ;;  %v2900_v28 = vpop.permute.xlu0 %2899 }
 0x3a1   : > { %v2990_v63 = vsel %vm434_vm0, %v2896_v17, 0.0  ;;  %v2994_v21 = vsel %vm434_vm0, %v2900_v28, 0.0 }
 0x3a2   : > { %2823 = vadd.xlane.f32.xlu1 %v2822_v39  ;;  %v2977_v14 = vadd.f32 %v2976_v10, %v2975_v37  ;;  %v2988_v39 = vsel %vm434_vm0, %v2894_v34, 0.0 }
 0x3a3   : > { %v2898_v57 = vpop.permute.xlu2 %2897 }
 0x3a4   : > { %v2979_v23 = vadd.f32 %v2978_v20, %v2977_v14  ;;  %v2992_v1 = vsel %vm434_vm0, %v2898_v57, 0.0 }
 0x3a6   : > { %v2981_v35 = vadd.f32 %v2980_v22, %v2979_v23 }
 0x3a8   : > { %v2983_v19 = vadd.f32 %v2982_v31, %v2981_v35  ;;  %v2902_v59 = vpop.permute.xlu1 %2901  ;;  %v2906_v10 = vpop.permute.xlu0 %2905 }
 0x3a9   : > { %v2996_v55 = vsel %vm434_vm0, %v2902_v59, 0.0  ;;  %v3000_v20 = vsel %vm434_vm0, %v2906_v10, 0.0 }
 0x3aa   : > { %v2985_v40 = vadd.f32 %v2984_v41, %v2983_v19 }
 0x3ab   : > { %v2904_v12 = vpop.permute.xlu2 %2903 }
 0x3ac   : > { %v2987_v54 = vadd.f32 %v2986_v49, %v2985_v40  ;;  %v2998_v50 = vsel %vm434_vm0, %v2904_v12, 0.0 }
 0x3ae   : > { %v2989_v56 = vadd.f32 %v2988_v39, %v2987_v54 }
 0x3b0   : > { %v2991_v7 = vadd.f32 %v2990_v63, %v2989_v56  ;;  %v2908_v14 = vpop.permute.xlu1 %2907  ;;  %v2912_v31 = vpop.permute.xlu0 %2911 }
 0x3b1   : > { %v3002_v32 = vsel %vm434_vm0, %v2908_v14, 0.0  ;;  %v3006_v40 = vsel %vm434_vm0, %v2912_v31, 0.0 }
 0x3b2   : > { %v2993_v3 = vadd.f32 %v2992_v1, %v2991_v7 }
 0x3b3   : > { %v2910_v23 = vpop.permute.xlu2 %2909 }
 0x3b4   : > { %v2995_v18 = vadd.f32 %v2994_v21, %v2993_v3  ;;  %v3004_v41 = vsel %vm434_vm0, %v2910_v23, 0.0 }
 0x3b6   : > { %v2997_v37 = vadd.f32 %v2996_v55, %v2995_v18 }
 0x3b8   : > { %v2999_v25 = vadd.f32 %v2998_v50, %v2997_v37  ;;  %v2914_v19 = vpop.permute.xlu1 %2913  ;;  %v2918_v57 = vpop.permute.xlu0 %2917 }
 0x3b9   : > { %v3008_v49 = vsel %vm434_vm0, %v2914_v19, 0.0  ;;  %v3012_v7 = vsel %vm434_vm0, %v2918_v57, 0.0 }
 0x3ba   : > { %v3001_v22 = vadd.f32 %v3000_v20, %v2999_v25 }
 0x3bb   : > { %v2916_v34 = vpop.permute.xlu2 %2915 }
 0x3bc   : > { %v3003_v35 = vadd.f32 %v3002_v32, %v3001_v22  ;;  %v3010_v63 = vsel %vm434_vm0, %v2916_v34, 0.0  ;;  %v8337_v22 = vmov 4096.0  }
 0x3bd   : > { %8210 = vrcp.f32 %v8337_v22 }
 0x3be   : > { %v3005_v17 = vadd.f32 %v3004_v41, %v3003_v35 }
 0x3c0   : > { %v3007_v39 = vadd.f32 %v3006_v40, %v3005_v17  ;;  %v2920_v56 = vpop.permute.xlu1 %2919  ;;  %v2924_v12 = vpop.permute.xlu0 %2923 }
 0x3c1   : > { %v3014_v1 = vsel %vm434_vm0, %v2920_v56, 0.0  ;;  %v3018_v55 = vsel %vm434_vm0, %v2924_v12, 0.0 }
 0x3c2   : > { %v3009_v54 = vadd.f32 %v3008_v49, %v3007_v39 }
 0x3c3   : > { %v2922_v28 = vpop.permute.xlu2 %2921  ;;  %v8211_v40 = vpop.eup %8210 }
 0x3c4   : > { %v3011_v59 = vadd.f32 %v3010_v63, %v3009_v54  ;;  %v3016_v3 = vsel %vm434_vm0, %v2922_v28, 0.0  ;;  %v2833_v57 = vmul.f32 4096.0, %v8211_v40  ;;  %vm2837_vm12 = vweird.f32 %v8211_v40 }
 0x3c6   : > { %v3013_v21 = vadd.f32 %v3012_v7, %v3011_v59  ;;  %v2834_v7 = vsub.f32 1.0, %v2833_v57 }
 0x3c8   : > { %v3015_v18 = vadd.f32 %v3014_v1, %v3013_v21  ;;  %v2926_v10 = vpop.permute.xlu1 %2925  ;;  %v2835_v12 = vmul.f32 %v8211_v40, %v2834_v7 }
 0x3c9   : > { %v3020_v50 = vsel %vm434_vm0, %v2926_v10, 0.0 }
 0x3ca   : > { %v3017_v37 = vadd.f32 %v3016_v3, %v3015_v18  ;;  %v2836_v10 = vadd.f32 %v8211_v40, %v2835_v12 }
 0x3cb   : > { %v2928_v14 = vpop.permute.xlu2 %2927 }
 0x3cc   : > { %v3019_v20 = vadd.f32 %v3018_v55, %v3017_v37  ;;  %v3022_v32 = vsel %vm434_vm0, %v2928_v14, 0.0  ;;  %v2838_v14 = vsel %vm2837_vm12, %v8211_v40, %v2836_v10 }
 0x3ce   : > { %v3021_v23 = vadd.f32 %v3020_v50, %v3019_v20 }
 0x3d0   : > { %v3023_v19 = vadd.f32 %v3022_v32, %v3021_v23 }
 0x3e1   : > { %v2930_v25 = vpop.permute.xlu0 %2929 }
 0x3e2   : > { %v3024_v35 = vsel %vm434_vm0, %v2930_v25, 0.0 }
 0x3e3   : > { %v3025_v17 = vadd.f32 %v3024_v35, %v3023_v19 }
 0x3e9   : > { %v2932_v31 = vpop.permute.xlu1 %2931 }
 0x3ea   : > { %v3026_v41 = vsel %vm434_vm0, %v2932_v31, 0.0 }
 0x3eb   : > { %v3027_v39 = vadd.f32 %v3026_v41, %v3025_v17 }
 0x3f1   : > { %v2934_v34 = vpop.permute.xlu2 %2933 }
 0x3f2   : > { %v3028_v49 = vsel %vm434_vm0, %v2934_v34, 0.0 }
 0x3f3   : > { %v3029_v54 = vadd.f32 %v3028_v49, %v3027_v39 }
 0x411   : > { %v2936_v56 = vpop.permute.xlu0 %2935 }
 0x412   : > { %v3030_v28 = vsel %vm434_vm0, %v2936_v56, 0.0 }
 0x413   : > { %v3031_v63 = vadd.f32 %v3030_v28, %v3029_v54 }
 0x415   : > { %3032 = vadd.xlane.f32.xlu2 %v3031_v63  ;;  %v2824_v59 = vpop.xlane.xlu1 %2823 }
 0x416   : > { %v2825_v1 = vrot.slane %v2824_v59, 4 }
 0x418   : > { %v2826_v21 = vadd.f32 %v2825_v1, %v2824_v59 }
 0x41a   : > { %v2827_v3 = vrot.slane %v2826_v21, 2 }
 0x41c   : > { %v2828_v18 = vadd.f32 %v2827_v3, %v2826_v21 }
 0x41e   : > { %v2829_v55 = vrot.slane %v2828_v18, 1 }
 0x420   : > { %v2830_v37 = vadd.f32 %v2829_v55, %v2828_v18 }
 0x422   : > { %8091 = vpush %v2830_v37 }
 0x423   : > { %8093 = vpush %v2838_v14 }
 0x453   : > { %s8092_s13 = spop %8091 }
 0x454   : > { %s9884_s15 = spop %8093 }
 0x455   : > { %s2840_s22 = smul.f32 %s9884_s15, %s8092_s13 }
 0x457   : > { %v9887_v35 = vstv %s2840_s22 }
 0x458   : > { %v3051_v19 = vsub.f32 %v9002_v51, %v9887_v35  ;;  %v3052_v34 = vsub.f32 %v9569_v36, %v9887_v35  ;;  %v3053_v17 = vsub.f32 %v9078_v30, %v9887_v35  ;;  %v3054_v57 = vsub.f32 %v9586_v48, %v9887_v35 }
 0x459   : > { %v3055_v28 = vsub.f32 %v9145_v5, %v9887_v35  ;;  %v3056_v1 = vsub.f32 %v9594_v53, %v9887_v35  ;;  %v3057_v18 = vsub.f32 %v9224_v52, %v9887_v35  ;;  %v3058_v14 = vsub.f32 %v9608_v60, %v9887_v35 }
 0x45a   : > { %v3083_v41 = vmul.f32 %v3051_v19, %v3051_v19  ;;  %v3084_v40 = vmul.f32 %v3052_v34, %v3052_v34  ;;  %v3085_v54 = vmul.f32 %v3053_v17, %v3053_v17  ;;  %v3086_v63 = vmul.f32 %v3054_v57, %v3054_v57 }
 0x45b   : > { %v3087_v21 = vmul.f32 %v3055_v28, %v3055_v28  ;;  %v3088_v10 = vmul.f32 %v3056_v1, %v3056_v1 }
 0x45c   : > { %v3115_v49 = vsel %vm434_vm0, %v3083_v41, 0.0  ;;  %v3116_v39 = vsel %vm434_vm0, %v3084_v40, 0.0  ;;  %v3118_v7 = vsel %vm434_vm0, %v3085_v54, 0.0  ;;  %v3120_v12 = vsel %vm434_vm0, %v3086_v63, 0.0 }
 0x45d   : > { %v3117_v56 = vadd.f32 %v3116_v39, %v3115_v49  ;;  %v3122_v55 = vsel %vm434_vm0, %v3087_v21, 0.0  ;;  %v3061_v21 = vsub.f32 %v9634_v45, %v9887_v35 }
 0x45f   : > { %v3119_v59 = vadd.f32 %v3118_v7, %v3117_v56  ;;  %v3060_v56 = vsub.f32 %v9630_v6, %v9887_v35 }
 0x461   : > { %v3121_v3 = vadd.f32 %v3120_v12, %v3119_v59  ;;  %v3092_v12 = vmul.f32 %v3060_v56, %v3060_v56 }
 0x463   : > { %v3123_v37 = vadd.f32 %v3122_v55, %v3121_v3 }
 0x488   : > { %v3033_v50 = vpop.xlane.xlu2 %3032 }
 0x489   : > { %v3034_v20 = vrot.slane %v3033_v50, 4 }
 0x48b   : > { %v3035_v23 = vadd.f32 %v3034_v20, %v3033_v50  ;;  %v3089_v50 = vmul.f32 %v3057_v18, %v3057_v18  ;;  %v3124_v20 = vsel %vm434_vm0, %v3088_v10, 0.0 }
 0x48d   : > { %v3036_v25 = vrot.slane %v3035_v23, 2 }
 0x48f   : > { %v3037_v22 = vadd.f32 %v3036_v25, %v3035_v23  ;;  %v3125_v23 = vadd.f32 %v3124_v20, %v3123_v37  ;;  %v397_v25 = vlaneseq  ;;  %v3093_v20 = vmul.f32 %v3061_v21, %v3061_v21 }
 0x491   : > { %v3038_v31 = vrot.slane %v3037_v22, 1  ;;  %v398_v54 = vand.u32 127, %v397_v25 }
 0x493   : > { %v3039_v32 = vadd.f32 %v3038_v31, %v3037_v22  ;;  %v3059_v22 = vsub.f32 %v9613_v62, %v9887_v35  ;;  %v3090_v31 = vmul.f32 %v3058_v14, %v3058_v14  ;;  %vm399_vm13 = vcmp.lt.s32.totalorder %v398_v54, 16 }
 0x494   : > { %v9939_v14 = vsel %vm399_vm13, 1.0, %v8329_v0 }
 0x495   : > { %8095 = vpush %v3039_v32  ;;  %v3126_v32 = vsel %vm434_vm0, %v3089_v50, 0.0  ;;  %v3091_v28 = vmul.f32 %v3059_v22, %v3059_v22  ;;  %v3128_v63 = vsel %vm434_vm0, %v3090_v31, 0.0  ;;  %v3062_v50 = vsub.f32 %v9639_v11, %v9887_v35 }
 0x496   : > { %v3127_v17 = vadd.f32 %v3126_v32, %v3125_v23  ;;  %v3132_v23 = vsel %vm434_vm0, %v3092_v12, 0.0  ;;  %v9947_v31 = vsub.f32 1.0, %v9939_v14 }
 0x497   : > { %v3130_v3 = vsel %vm434_vm0, %v3091_v28, 0.0 }
 0x498   : > { %v3129_v7 = vadd.f32 %v3128_v63, %v3127_v17  ;;  %v3134_v17 = vsel %vm434_vm0, %v3093_v20, 0.0 }
 0x49a   : > { %v3131_v10 = vadd.f32 %v3130_v3, %v3129_v7  ;;  %v3064_v7 = vsub.f32 %v9658_v13, %v9887_v35 }
 0x49c   : > { %v3133_v22 = vadd.f32 %v3132_v23, %v3131_v10  ;;  %v3065_v10 = vsub.f32 %v9663_v9, %v9887_v35 }
 0x4c6   : > { %s8096_s24 = spop %8095 }
 0x4c7   : > { %s3049_s16 = smul.f32 %s8096_s24, %s9884_s15 }
 0x4c9   : > { %v9915_v19 = vstv %s3049_s16 }
 0x4ca   : > { %v3203_v34 = vsub.f32 %v9224_v52, %v9915_v19  ;;  %v3202_v41 = vsub.f32 %v9594_v53, %v9915_v19  ;;  %v3197_v40 = vsub.f32 %v9002_v51, %v9915_v19  ;;  %v3208_v59 = vsub.f32 %v9639_v11, %v9915_v19 }
 0x4cb   : > { %v3207_v1 = vsub.f32 %v9634_v45, %v9915_v19  ;;  %v3198_v18 = vsub.f32 %v9569_v36, %v9915_v19  ;;  %v3211_v32 = vsub.f32 %v9663_v9, %v9915_v19  ;;  %v3498_v54 = vmul.f32 %v9947_v31, %v9915_v19 }
 0x4cc   : > { %v3235_v49 = vmul.f32 %v3203_v34, %v3203_v34  ;;  %v3234_v39 = vmul.f32 %v3202_v41, %v3202_v41  ;;  %v3229_v57 = vmul.f32 %v3197_v40, %v3197_v40  ;;  %v3240_v55 = vmul.f32 %v3208_v59, %v3208_v59 }
 0x4cd   : > { %v3239_v37 = vmul.f32 %v3207_v1, %v3207_v1  ;;  %v3230_v25 = vmul.f32 %v3198_v18, %v3198_v18  ;;  %v3210_v34 = vsub.f32 %v9658_v13, %v9915_v19  ;;  %v3063_v41 = vsub.f32 %v9654_v15, %v9887_v35 }
 0x4ce   : > { %3305 = vrot.lane.b32.xlu1 %v3235_v49, %s11977_s14  ;;  %3303 = vrot.lane.b32.xlu2 %v3234_v39, %s11977_s14  ;;  %v3094_v40 = vmul.f32 %v3062_v50, %v3062_v50  ;;  %v3199_v49 = vsub.f32 %v9078_v30, %v9915_v19  ;;  %v3135_v39 = vadd.f32 %v3134_v17, %v3133_v22 }
 0x4cf   : > { %3293 = vrot.lane.b32.xlu0 %v3229_v57, %s11977_s14  ;;  %v3496_v57 = vmul.f32 %v9939_v14, %v9887_v35  ;;  %v3243_v56 = vmul.f32 %v3211_v32, %v3211_v32  ;;  %v3242_v28 = vmul.f32 %v3210_v34, %v3210_v34  ;;  %v3095_v59 = vmul.f32 %v3063_v41, %v3063_v41 }
 0x4d0   : > { %v3136_v1 = vsel %vm434_vm0, %v3094_v40, 0.0  ;;  %v3231_v21 = vmul.f32 %v3199_v49, %v3199_v49  ;;  %v3214_v3 = vsub.f32 %v9682_v33, %v9915_v19  ;;  %v3213_v18 = vsub.f32 %v9678_v27, %v9915_v19 }
 0x4d1   : > { %v9963_v63 = vadd.f32 %v3498_v54, %v3496_v57  ;;  %v3137_v12 = vadd.f32 %v3136_v1, %v3135_v39  ;;  %v3200_v50 = vsub.f32 %v9586_v48, %v9915_v19  ;;  %v3066_v22 = vsub.f32 %v9675_v26, %v9887_v35 }
 0x4d2   : > { %v3246_v23 = vmul.f32 %v3214_v3, %v3214_v3  ;;  %v3097_v32 = vmul.f32 %v3065_v10, %v3065_v10  ;;  %v3217_v17 = vsub.f32 %v9709_v2, %v9915_v19  ;;  %v3216_v49 = vsub.f32 %v9695_v58, %v9915_v19 }
 0x4d3   : > { %v3232_v41 = vmul.f32 %v3200_v50, %v3200_v50  ;;  %v3067_v39 = vsub.f32 %v9678_v27, %v9887_v35  ;;  %v3098_v57 = vmul.f32 %v3066_v22, %v3066_v22  ;;  %v3068_v1 = vsub.f32 %v9682_v33, %v9887_v35 }
 0x4d4   : > { %v3142_v54 = vsel %vm434_vm0, %v3097_v32, 0.0  ;;  %v3220_v10 = vsub.f32 %v9742_v38, %v9915_v19 }
 0x4d5   : > { %v3100_v50 = vmul.f32 %v3068_v1, %v3068_v1 }
 0x4d6   : > { %3315 = vrot.lane.b32.xlu1 %v3240_v55, %s11977_s14  ;;  %3313 = vrot.lane.b32.xlu2 %v3239_v37, %s11977_s14  ;;  %v3096_v55 = vmul.f32 %v3064_v7, %v3064_v7  ;;  %v3138_v37 = vsel %vm434_vm0, %v3095_v59, 0.0  ;;  %v3249_v7 = vmul.f32 %v3217_v17, %v3217_v17  ;;  %v3248_v59 = vmul.f32 %v3216_v49, %v3216_v49 }
 0x4d7   : > { %3295 = vrot.lane.b32.xlu0 %v3230_v25, %s11977_s14  ;;  %v3139_v20 = vadd.f32 %v3138_v37, %v3137_v12  ;;  %v3245_v25 = vmul.f32 %v3213_v18, %v3213_v18  ;;  %v3144_v12 = vsel %vm434_vm0, %v3098_v57, 0.0  ;;  %v3069_v37 = vsub.f32 %v9692_v47, %v9887_v35 }
 0x4d8   : > { %v3140_v34 = vsel %vm434_vm0, %v3096_v55, 0.0  ;;  %v3219_v55 = vsub.f32 %v9734_v43, %v9915_v19  ;;  %v3252_v22 = vmul.f32 %v3220_v10, %v3220_v10  ;;  %v3222_v57 = vsub.f32 %v9754_v8, %v9915_v19 }
 0x4d9   : > { %v3141_v40 = vadd.f32 %v3140_v34, %v3139_v20  ;;  %v3070_v34 = vsub.f32 %v9695_v58, %v9887_v35 }
 0x4da   : > { %v3251_v32 = vmul.f32 %v3219_v55, %v3219_v55 }
 0x4de   : > { %3321 = vrot.lane.b32.xlu1 %v3243_v56, %s11977_s14  ;;  %3319 = vrot.lane.b32.xlu2 %v3242_v28, %s11977_s14  ;;  %v3201_v56 = vsub.f32 %v9145_v5, %v9915_v19  ;;  %v3143_v28 = vadd.f32 %v3142_v54, %v3141_v40  ;;  %v3148_v40 = vsel %vm434_vm0, %v3100_v50, 0.0  ;;  %v3071_v54 = vsub.f32 %v9709_v2, %v9887_v35 }
 0x4df   : > { %3297 = vrot.lane.b32.xlu0 %v3231_v21, %s11977_s14  ;;  %v3099_v21 = vmul.f32 %v3067_v39, %v3067_v39  ;;  %v3223_v39 = vsub.f32 %v9759_v16, %v9915_v19  ;;  %v3225_v50 = vsub.f32 %v9785_v44, %v9915_v19 }
 0x4e0   : > { %v3233_v3 = vmul.f32 %v3201_v56, %v3201_v56  ;;  %v3145_v18 = vadd.f32 %v3144_v12, %v3143_v28  ;;  %v3102_v56 = vmul.f32 %v3070_v34, %v3070_v34  ;;  %v3072_v12 = vsub.f32 %v9717_v46, %v9887_v35 }
 0x4e1   : > { %v3146_v20 = vsel %vm434_vm0, %v3099_v21, 0.0  ;;  %v3255_v1 = vmul.f32 %v3223_v39, %v3223_v39  ;;  %v3254_v21 = vmul.f32 %v3222_v57, %v3222_v57 }
 0x4e6   : > { %3327 = vrot.lane.b32.xlu1 %v3246_v23, %s11977_s14  ;;  %3325 = vrot.lane.b32.xlu2 %v3245_v25, %s11977_s14  ;;  %v3204_v23 = vsub.f32 %v9608_v60, %v9915_v19  ;;  %v3147_v25 = vadd.f32 %v3146_v20, %v3145_v18  ;;  %v3152_v18 = vsel %vm434_vm0, %v3102_v56, 0.0  ;;  %v3073_v20 = vsub.f32 %v9734_v43, %v9887_v35 }
 0x4e7   : > { %3299 = vrot.lane.b32.xlu0 %v3232_v41, %s11977_s14  ;;  %v3101_v41 = vmul.f32 %v3069_v37, %v3069_v37  ;;  %v3226_v37 = vsub.f32 %v9798_v61, %v9915_v19  ;;  %v3075_v56 = vsub.f32 %v9749_v29, %v9887_v35 }
 0x4e8   : > { %v3236_v17 = vmul.f32 %v3204_v23, %v3204_v23  ;;  %v3149_v49 = vadd.f32 %v3148_v40, %v3147_v25  ;;  %v3104_v23 = vmul.f32 %v3072_v12, %v3072_v12  ;;  %v3074_v40 = vsub.f32 %v9742_v38, %v9887_v35 }
 0x4e9   : > { %v3150_v28 = vsel %vm434_vm0, %v3101_v41, 0.0  ;;  %v3258_v34 = vmul.f32 %v3226_v37, %v3226_v37  ;;  %v3257_v41 = vmul.f32 %v3225_v50, %v3225_v50  ;;  %v3076_v12 = vsub.f32 %v9754_v8, %v9887_v35 }
 0x4ea   : > { %v3077_v37 = vsub.f32 %v9759_v16, %v9887_v35 }
 0x4eb   : > { %v3108_v50 = vmul.f32 %v3076_v12, %v3076_v12  ;;  %v3081_v12 = vsub.f32 %v9833_v4, %v9887_v35 }
 0x4ee   : > { %3333 = vrot.lane.b32.xlu1 %v3249_v7, %s11977_s14  ;;  %3331 = vrot.lane.b32.xlu2 %v3248_v59, %s11977_s14  ;;  %v3205_v7 = vsub.f32 %v9613_v62, %v9915_v19  ;;  %v3151_v59 = vadd.f32 %v3150_v28, %v3149_v49  ;;  %v3156_v49 = vsel %vm434_vm0, %v3104_v23, 0.0  ;;  %v3106_v28 = vmul.f32 %v3074_v40, %v3074_v40 }
 0x4ef   : > { %3301 = vrot.lane.b32.xlu0 %v3233_v3, %s11977_s14  ;;  %v3103_v3 = vmul.f32 %v3071_v54, %v3071_v54  ;;  %v3228_v54 = vsub.f32 %v9846_v42, %v9915_v19  ;;  %v3212_v23 = vsub.f32 %v9675_v26, %v9915_v19 }
 0x4f0   : > { %v3237_v10 = vmul.f32 %v3205_v7, %v3205_v7  ;;  %v3153_v55 = vadd.f32 %v3152_v18, %v3151_v59  ;;  %v3209_v59 = vsub.f32 %v9654_v15, %v9915_v19  ;;  %v3160_v18 = vsel %vm434_vm0, %v3106_v28, 0.0 }
 0x4f1   : > { %v3154_v25 = vsel %vm434_vm0, %v3103_v3, 0.0  ;;  %v3107_v3 = vmul.f32 %v3075_v56, %v3075_v56  ;;  %v3080_v28 = vsub.f32 %v9798_v61, %v9887_v35 }
 0x4f6   : > { %3339 = vrot.lane.b32.xlu1 %v3252_v22, %s11977_s14  ;;  %3337 = vrot.lane.b32.xlu2 %v3251_v32, %s11977_s14  ;;  %v3206_v22 = vsub.f32 %v9630_v6, %v9915_v19  ;;  %v3155_v32 = vadd.f32 %v3154_v25, %v3153_v55 }
 0x4f7   : > { %3307 = vrot.lane.b32.xlu0 %v3236_v17, %s11977_s14  ;;  %v3105_v17 = vmul.f32 %v3073_v20, %v3073_v20  ;;  %v3162_v20 = vsel %vm434_vm0, %v3107_v3, 0.0  ;;  %v3112_v3 = vmul.f32 %v3080_v28, %v3080_v28 }
 0x4f8   : > { %v3238_v39 = vmul.f32 %v3206_v22, %v3206_v22  ;;  %v3157_v57 = vadd.f32 %v3156_v49, %v3155_v32  ;;  %v3078_v22 = vsub.f32 %v9764_v24, %v9887_v35  ;;  %v3109_v32 = vmul.f32 %v3077_v37, %v3077_v37 }
 0x4f9   : > { %v3158_v7 = vsel %vm434_vm0, %v3105_v17, 0.0  ;;  %v3079_v17 = vsub.f32 %v9785_v44, %v9887_v35  ;;  %v3082_v37 = vsub.f32 %v9846_v42, %v9887_v35  ;;  %v3224_v35 = vsub.f32 %v9764_v24, %v9915_v19 }
 0x4fa   : > { %v3110_v49 = vmul.f32 %v3078_v22, %v3078_v22 }
 0x4fb   : > { %v3114_v22 = vmul.f32 %v3082_v37, %v3082_v37 }
 0x4fe   : > { %3345 = vrot.lane.b32.xlu1 %v3255_v1, %s11977_s14  ;;  %3343 = vrot.lane.b32.xlu2 %v3254_v21, %s11977_s14  ;;  %v3159_v1 = vadd.f32 %v3158_v7, %v3157_v57  ;;  %v3260_v21 = vmul.f32 %v3228_v54, %v3228_v54  ;;  %v3166_v57 = vsel %vm434_vm0, %v3109_v32, 0.0  ;;  %v3111_v7 = vmul.f32 %v3079_v17, %v3079_v17 }
 0x4ff   : > { %3309 = vrot.lane.b32.xlu0 %v3237_v10, %s11977_s14  ;;  %v3241_v10 = vmul.f32 %v3209_v59, %v3209_v59  ;;  %v3168_v59 = vsel %vm434_vm0, %v3110_v49, 0.0  ;;  %v3256_v49 = vmul.f32 %v3224_v35, %v3224_v35 }
 0x500   : > { %v3161_v55 = vadd.f32 %v3160_v18, %v3159_v1  ;;  %v3170_v18 = vsel %vm434_vm0, %v3111_v7, 0.0 }
 0x502   : > { %v3163_v25 = vadd.f32 %v3162_v20, %v3161_v55  ;;  %v3172_v20 = vsel %vm434_vm0, %v3112_v3, 0.0 }
 0x506   : > { %3351 = vrot.lane.b32.xlu1 %v3258_v34, %s11977_s14  ;;  %3349 = vrot.lane.b32.xlu2 %v3257_v41, %s11977_s14  ;;  %v3164_v34 = vsel %vm434_vm0, %v3108_v50, 0.0  ;;  %v3244_v41 = vmul.f32 %v3212_v23, %v3212_v23  ;;  %v3113_v50 = vmul.f32 %v3081_v12, %v3081_v12 }
 0x507   : > { %3311 = vrot.lane.b32.xlu0 %v3238_v39, %s11977_s14  ;;  %v3165_v40 = vadd.f32 %v3164_v34, %v3163_v25  ;;  %v3215_v39 = vsub.f32 %v9692_v47, %v9915_v19  ;;  %v3221_v25 = vsub.f32 %v9749_v29, %v9915_v19 }
 0x508   : > { %v3174_v32 = vsel %vm434_vm0, %v3113_v50, 0.0 }
 0x509   : > { %v3167_v54 = vadd.f32 %v3166_v57, %v3165_v40  ;;  %v3247_v56 = vmul.f32 %v3215_v39, %v3215_v39  ;;  %v3176_v40 = vsel %vm434_vm0, %v3114_v22, 0.0  ;;  %v3227_v39 = vsub.f32 %v9833_v4, %v9915_v19 }
 0x50b   : > { %v3169_v1 = vadd.f32 %v3168_v59, %v3167_v54  ;;  %v3259_v57 = vmul.f32 %v3227_v39, %v3227_v39 }
 0x50e   : > { %3355 = vrot.lane.b32.xlu2 %v3260_v21, %s11977_s14  ;;  %v3218_v21 = vsub.f32 %v9717_v46, %v9915_v19 }
 0x50f   : > { %3317 = vrot.lane.b32.xlu0 %v3241_v10, %s11977_s14  ;;  %v3171_v10 = vadd.f32 %v3170_v18, %v3169_v1 }
 0x510   : > { %v3250_v55 = vmul.f32 %v3218_v21, %v3218_v21 }
 0x511   : > { %v3173_v23 = vadd.f32 %v3172_v20, %v3171_v10 }
 0x513   : > { %v3175_v34 = vadd.f32 %v3174_v32, %v3173_v23 }
 0x515   : > { %v3177_v17 = vadd.f32 %v3176_v40, %v3175_v34 }
 0x517   : > { %3323 = vrot.lane.b32.xlu0 %v3244_v41, %s11977_s14  ;;  %v3253_v41 = vmul.f32 %v3221_v25, %v3221_v25 }
 0x51f   : > { %3329 = vrot.lane.b32.xlu0 %v3247_v56, %s11977_s14 }
 0x527   : > { %3335 = vrot.lane.b32.xlu0 %v3250_v55, %s11977_s14 }
 0x528   : > { %v3304_v21 = vpop.permute.xlu2 %3303 }
 0x529   : > { %v3398_v34 = vsel %vm434_vm0, %v3304_v21, 0.0 }
 0x52f   : > { %3341 = vrot.lane.b32.xlu0 %v3253_v41, %s11977_s14 }
 0x530   : > { %3178 = vadd.xlane.f32.xlu1 %v3177_v17  ;;  %v3314_v25 = vpop.permute.xlu2 %3313 }
 0x537   : > { %3347 = vrot.lane.b32.xlu0 %v3256_v49, %s11977_s14 }
 0x538   : > { %v3320_v39 = vpop.permute.xlu2 %3319 }
 0x53f   : > { %3353 = vrot.lane.b32.xlu0 %v3259_v57, %s11977_s14 }
 0x540   : > { %v3306_v7 = vpop.permute.xlu1 %3305 }
 0x541   : > { %v3294_v54 = vpop.permute.xlu0 %3293  ;;  %v3400_v35 = vsel %vm434_vm0, %v3306_v7, 0.0 }
 0x542   : > { %v3389_v18 = vsel %vm434_vm0, %v3294_v54, 0.0 }
 0x548   : > { %v3316_v1 = vpop.permute.xlu1 %3315 }
 0x549   : > { %v3296_v56 = vpop.permute.xlu0 %3295 }
 0x54a   : > { %v3390_v3 = vsel %vm434_vm0, %v3296_v56, 0.0 }
 0x54b   : > { %v3391_v55 = vadd.f32 %v3390_v3, %v3389_v18  ;;  %v3408_v18 = vsel %vm434_vm0, %v3314_v25, 0.0 }
 0x550   : > { %v3322_v37 = vpop.permute.xlu1 %3321 }
 0x551   : > { %v3298_v28 = vpop.permute.xlu0 %3297 }
 0x552   : > { %v3392_v10 = vsel %vm434_vm0, %v3298_v28, 0.0 }
 0x553   : > { %v3393_v50 = vadd.f32 %v3392_v10, %v3391_v55  ;;  %v3326_v55 = vpop.permute.xlu2 %3325 }
 0x558   : > { %v3328_v17 = vpop.permute.xlu1 %3327 }
 0x559   : > { %v3300_v59 = vpop.permute.xlu0 %3299 }
 0x55a   : > { %v3394_v19 = vsel %vm434_vm0, %v3300_v59, 0.0 }
 0x55b   : > { %v3395_v22 = vadd.f32 %v3394_v19, %v3393_v50  ;;  %v3410_v19 = vsel %vm434_vm0, %v3316_v1, 0.0 }
 0x560   : > { %v3334_v21 = vpop.permute.xlu1 %3333 }
 0x561   : > { %v3302_v12 = vpop.permute.xlu0 %3301 }
 0x562   : > { %v3396_v23 = vsel %vm434_vm0, %v3302_v12, 0.0 }
 0x563   : > { %v3397_v32 = vadd.f32 %v3396_v23, %v3395_v22  ;;  %v3414_v22 = vsel %vm434_vm0, %v3320_v39, 0.0 }
 0x565   : > { %v3399_v41 = vadd.f32 %v3398_v34, %v3397_v32 }
 0x567   : > { %v3401_v57 = vadd.f32 %v3400_v35, %v3399_v41  ;;  %v3416_v41 = vsel %vm434_vm0, %v3322_v37, 0.0 }
 0x568   : > { %v3340_v34 = vpop.permute.xlu1 %3339 }
 0x569   : > { %v3308_v20 = vpop.permute.xlu0 %3307 }
 0x56a   : > { %v3402_v49 = vsel %vm434_vm0, %v3308_v20, 0.0 }
 0x56b   : > { %v3403_v56 = vadd.f32 %v3402_v49, %v3401_v57 }
 0x571   : > { %v3310_v40 = vpop.permute.xlu0 %3309 }
 0x572   : > { %v3404_v54 = vsel %vm434_vm0, %v3310_v40, 0.0  ;;  %v3332_v40 = vpop.permute.xlu2 %3331 }
 0x573   : > { %v3405_v28 = vadd.f32 %v3404_v54, %v3403_v56  ;;  %v3420_v54 = vsel %vm434_vm0, %v3326_v55, 0.0  ;;  %v3422_v56 = vsel %vm434_vm0, %v3328_v17, 0.0  ;;  %v3426_v37 = vsel %vm434_vm0, %v3332_v40, 0.0 }
 0x579   : > { %v3312_v59 = vpop.permute.xlu0 %3311 }
 0x57a   : > { %v3406_v12 = vsel %vm434_vm0, %v3312_v59, 0.0 }
 0x57b   : > { %v3407_v3 = vadd.f32 %v3406_v12, %v3405_v28  ;;  %v3346_v28 = vpop.permute.xlu1 %3345 }
 0x57d   : > { %v3409_v10 = vadd.f32 %v3408_v18, %v3407_v3  ;;  %v3338_v3 = vpop.permute.xlu2 %3337 }
 0x57e   : > { %v3432_v17 = vsel %vm434_vm0, %v3338_v3, 0.0 }
 0x57f   : > { %v3411_v7 = vadd.f32 %v3410_v19, %v3409_v10  ;;  %v3428_v19 = vsel %vm434_vm0, %v3334_v21, 0.0 }
 0x581   : > { %v3318_v50 = vpop.permute.xlu0 %3317 }
 0x582   : > { %v3412_v20 = vsel %vm434_vm0, %v3318_v50, 0.0 }
 0x583   : > { %v3413_v23 = vadd.f32 %v3412_v20, %v3411_v7  ;;  %v3352_v55 = vpop.permute.xlu1 %3351 }
 0x585   : > { %v3415_v32 = vadd.f32 %v3414_v22, %v3413_v23  ;;  %v3344_v22 = vpop.permute.xlu2 %3343 }
 0x586   : > { %v3438_v21 = vsel %vm434_vm0, %v3344_v22, 0.0 }
 0x587   : > { %v3417_v35 = vadd.f32 %v3416_v41, %v3415_v32  ;;  %v3434_v41 = vsel %vm434_vm0, %v3340_v34, 0.0 }
 0x589   : > { %v3324_v49 = vpop.permute.xlu0 %3323 }
 0x58a   : > { %v3418_v25 = vsel %vm434_vm0, %v3324_v49, 0.0 }
 0x58b   : > { %v3419_v57 = vadd.f32 %v3418_v25, %v3417_v35 }
 0x58d   : > { %v3421_v1 = vadd.f32 %v3420_v54, %v3419_v57 }
 0x58f   : > { %v3423_v59 = vadd.f32 %v3422_v56, %v3421_v1 }
 0x591   : > { %v3330_v12 = vpop.permute.xlu0 %3329 }
 0x592   : > { %v3424_v39 = vsel %vm434_vm0, %v3330_v12, 0.0  ;;  %v3440_v12 = vsel %vm434_vm0, %v3346_v28, 0.0 }
 0x593   : > { %v3425_v18 = vadd.f32 %v3424_v39, %v3423_v59  ;;  %v3350_v59 = vpop.permute.xlu2 %3349 }
 0x595   : > { %v3427_v10 = vadd.f32 %v3426_v37, %v3425_v18 }
 0x597   : > { %v3429_v7 = vadd.f32 %v3428_v19, %v3427_v10  ;;  %v3444_v19 = vsel %vm434_vm0, %v3350_v59, 0.0 }
 0x599   : > { %v3336_v50 = vpop.permute.xlu0 %3335 }
 0x59a   : > { %v3430_v20 = vsel %vm434_vm0, %v3336_v50, 0.0 }
 0x59b   : > { %v3431_v23 = vadd.f32 %v3430_v20, %v3429_v7 }
 0x59d   : > { %v3433_v32 = vadd.f32 %v3432_v17, %v3431_v23  ;;  %v3446_v23 = vsel %vm434_vm0, %v3352_v55, 0.0  ;;  %v3356_v17 = vpop.permute.xlu2 %3355 }
 0x59f   : > { %v3435_v35 = vadd.f32 %v3434_v41, %v3433_v32 }
 0x5a1   : > { %v3342_v49 = vpop.permute.xlu0 %3341 }
 0x5a2   : > { %v3436_v25 = vsel %vm434_vm0, %v3342_v49, 0.0 }
 0x5a3   : > { %v3437_v40 = vadd.f32 %v3436_v25, %v3435_v35  ;;  %v3179_v57 = vpop.xlane.xlu1 %3178  ;;  %v3450_v35 = vsel %vm434_vm0, %v3356_v17, 0.0 }
 0x5a4   : > { %v3180_v54 = vrot.slane %v3179_v57, 4 }
 0x5a5   : > { %v3439_v1 = vadd.f32 %v3438_v21, %v3437_v40 }
 0x5a6   : > { %v3181_v56 = vadd.f32 %v3180_v54, %v3179_v57 }
 0x5a7   : > { %v3441_v3 = vadd.f32 %v3440_v12, %v3439_v1 }
 0x5a8   : > { %v3182_v39 = vrot.slane %v3181_v56, 2 }
 0x5a9   : > { %v3348_v18 = vpop.permute.xlu0 %3347 }
 0x5aa   : > { %v3442_v37 = vsel %vm434_vm0, %v3348_v18, 0.0  ;;  %v3183_v34 = vadd.f32 %v3182_v39, %v3181_v56 }
 0x5ab   : > { %v3443_v10 = vadd.f32 %v3442_v37, %v3441_v3 }
 0x5ac   : > { %v3184_v7 = vrot.slane %v3183_v34, 1 }
 0x5ad   : > { %v3445_v50 = vadd.f32 %v3444_v19, %v3443_v10  ;;  %v3857_v10 = vld [vmem:[#allocation4 + $0x1] sm:$0xff] }
 0x5ae   : > { %v3185_v20 = vadd.f32 %v3184_v7, %v3183_v34  ;;  %v3873_v19 = vpack.c.bf16 %v3857_v10, %v3857_v10  ;;  %v3511_v10 = vsub.f32 %v9594_v53, %v9963_v63  ;;  %v3516_v53 = vsub.f32 %v9634_v45, %v9963_v63 }
 0x5af   : > { %v3447_v22 = vadd.f32 %v3446_v23, %v3445_v50  ;;  %v3522_v45 = vsub.f32 %v9678_v27, %v9963_v63  ;;  %v3527_v27 = vsub.f32 %v9717_v46, %v9963_v63  ;;  %v3532_v46 = vsub.f32 %v9759_v16, %v9963_v63 }
 0x5b0   : > { %8097 = vpush %v3185_v20  ;;  %3905 = vrot.lane.b32.xlu2 %v3873_v19, %s11960_s29  ;;  %v3517_v19 = vsub.f32 %v9639_v11, %v9963_v63  ;;  %v3523_v11 = vsub.f32 %v9682_v33, %v9963_v63  ;;  %v3528_v33 = vsub.f32 %v9734_v43, %v9963_v63 }
 0x5b1   : > { %v3354_v32 = vpop.permute.xlu0 %3353  ;;  %v3533_v43 = vsub.f32 %v9764_v24, %v9963_v63  ;;  %v3537_v16 = vsub.f32 %v9846_v42, %v9963_v63 }
 0x5b2   : > { %v3448_v28 = vsel %vm434_vm0, %v3354_v32, 0.0 }
 0x5b3   : > { %v3449_v41 = vadd.f32 %v3448_v28, %v3447_v22 }
 0x5b5   : > { %v3451_v49 = vadd.f32 %v3450_v35, %v3449_v41  ;;  %v3858_v41 = vld [vmem:[#allocation4 + $0x9] sm:$0xff] }
 0x5b6   : > { %v3874_v35 = vpack.c.bf16 %v3858_v41, %v3858_v41 }
 0x5b7   : > { %3452 = vadd.xlane.f32.xlu0 %v3451_v49  ;;  %v3970_v49 = vld [vmem:[#allocation4 + $0x2] sm:$0xff] }
 0x5b8   : > { %3907 = vrot.lane.b32.xlu2 %v3874_v35, %s11960_s29 }
 0x5e1   : > { %s8098_s25 = spop %8097 }
 0x5e2   : > { %s3195_s13 = smul.f32 %s8098_s25, %s9884_s15 }
 0x5e4   : > { %s3470_s22 = sadd.f32 1e-05, %s3195_s13 }
 0x5e6   : > { %v3471_v25 = vstv %s3470_s22 }
 0x5e7   : > { %8212 = vrsqrt.f32 %v3471_v25  ;;  %vm3478_vm15 = vweird.f32 %v3471_v25 }
 0x5ed   : > { %v8213_v40 = vpop.eup %8212 }
 0x5ee   : > { %v3473_v57 = vmul.f32 %v8213_v40, %v3471_v25  ;;  %vm3479_vm14 = vweird.f32 %v8213_v40  ;;  %v3986_v25 = vpack.c.bf16 %v3970_v49, %v3970_v49 }
 0x5ef   : > { %vm3480_vm1 = vmor %vm3478_vm15, %vm3479_vm14 }
 0x5f0   : > { %v3474_v21 = vmul.f32 %v8213_v40, %v3473_v57  ;;  %4018 = vrot.lane.b32.xlu2 %v3986_v25, %s11975_s30 }
 0x5f2   : > { %v3475_v54 = vmul.f32 0.5, %v3474_v21 }
 0x5f4   : > { %v3476_v59 = vsub.f32 1.5, %v3475_v54 }
 0x5f6   : > { %v3477_v18 = vmul.f32 %v8213_v40, %v3476_v59  ;;  %v2758_v59 = vld [vmem:[%s11944_s6] sm:$0x1] }
 0x5f8   : > { %v3481_v34 = vsel %vm3480_vm1, %v8213_v40, %v3477_v18  ;;  %v3971_v40 = vld [vmem:[#allocation4 + $0xa] sm:$0xff]  ;;  %v3508_v18 = vsub.f32 %v9078_v30, %v9963_v63  ;;  %v3513_v30 = vsub.f32 %v9608_v60, %v9963_v63  ;;  %v3519_v60 = vsub.f32 %v9658_v13, %v9963_v63 }
 0x5f9   : > { %v3987_v57 = vpack.c.bf16 %v3971_v40, %v3971_v40  ;;  %v3525_v13 = vsub.f32 %v9695_v58, %v9963_v63 }
 0x5fb   : > { %4020 = vrot.lane.b32.xlu2 %v3987_v57, %s11975_s30 }
 0x62a   : > { %v3453_v55 = vpop.xlane.xlu0 %3452 }
 0x62b   : > { %v3454_v1 = vrot.slane %v3453_v55, 4 }
 0x62d   : > { %v3455_v56 = vadd.f32 %v3454_v1, %v3453_v55 }
 0x62f   : > { %v3456_v12 = vrot.slane %v3455_v56, 2 }
 0x631   : > { %v3457_v39 = vadd.f32 %v3456_v12, %v3455_v56 }
 0x633   : > { %v3458_v3 = vrot.slane %v3457_v39, 1 }
 0x635   : > { %v3459_v37 = vadd.f32 %v3458_v3, %v3457_v39  ;;  %v3506_v39 = vsub.f32 %v9002_v51, %v9963_v63  ;;  %v3507_v3 = vsub.f32 %v9569_v36, %v9963_v63  ;;  %v3512_v36 = vsub.f32 %v9224_v52, %v9963_v63 }
 0x636   : > { %v3518_v52 = vsub.f32 %v9654_v15, %v9963_v63  ;;  %v3524_v15 = vsub.f32 %v9692_v47, %v9963_v63  ;;  %v3529_v47 = vsub.f32 %v9742_v38, %v9963_v63  ;;  %v3534_v38 = vsub.f32 %v9785_v44, %v9963_v63 }
 0x637   : > { %8099 = vpush %v3459_v37  ;;  %v3509_v37 = vsub.f32 %v9586_v48, %v9963_v63  ;;  %v3514_v48 = vsub.f32 %v9613_v62, %v9963_v63  ;;  %v3520_v62 = vsub.f32 %v9663_v9, %v9963_v63  ;;  %v3526_v9 = vsub.f32 %v9709_v2, %v9963_v63 }
 0x638   : > { %8101 = vpush %v3481_v34  ;;  %v3510_v34 = vsub.f32 %v9145_v5, %v9963_v63  ;;  %v3515_v5 = vsub.f32 %v9630_v6, %v9963_v63  ;;  %v3521_v6 = vsub.f32 %v9675_v26, %v9963_v63  ;;  %v10312_v26 = vld [vmem:[%s11945_s7] ss:$0 sm:$0xff]  ;;  %v3530_v2 = vsub.f32 %v9749_v29, %v9963_v63 }
 0x639   : > { %v3536_v29 = vsub.f32 %v9833_v4, %v9963_v63 }
 0x668   : > { %s8100_s24 = spop %8099 }
 0x669   : > { %s3469_s16 = smul.f32 %s8100_s24, %s9884_s15  ;;  %s8102_s15 = spop %8101 }
 0x66a   : > { %v3500_v55 = vstv %s8102_s15  ;;  %s10368_s15 = sand.u32 1, %s8319_s18  }
 0x66b   : > { %s3483_s25 = sadd.f32 1e-05, %s3469_s16  ;;  %v3501_v1 = vmul.f32 %v9939_v14, %v3500_v55 }
 0x66d   : > { %v3484_v7 = vstv %s3483_s25 }
 0x66e   : > { %8214 = vrsqrt.f32 %v3484_v7  ;;  %vm3491_vm3 = vweird.f32 %v3484_v7 }
 0x674   : > { %v8215_v50 = vpop.eup %8214 }
 0x675   : > { %v3486_v20 = vmul.f32 %v8215_v50, %v3484_v7  ;;  %vm3492_vm2 = vweird.f32 %v8215_v50  ;;  %v3531_v7 = vsub.f32 %v9754_v8, %v9963_v63 }
 0x676   : > { %vm3493_vm4 = vmor %vm3491_vm3, %vm3492_vm2 }
 0x677   : > { %v3487_v23 = vmul.f32 %v8215_v50, %v3486_v20 }
 0x679   : > { %v3488_v17 = vmul.f32 0.5, %v3487_v23 }
 0x67b   : > { %v3489_v22 = vsub.f32 1.5, %v3488_v17 }
 0x67d   : > { %v3490_v32 = vmul.f32 %v8215_v50, %v3489_v22 }
 0x67f   : > { %v3494_v28 = vsel %vm3493_vm4, %v8215_v50, %v3490_v32  ;;  %v3535_v50 = vsub.f32 %v9798_v61, %v9963_v63 }
 0x680   : > { %8103 = vpush %v3494_v28 }
 0x6b1   : > { %s8104_s13 = spop %8103 }
 0x6b2   : > { %v3502_v21 = vstv %s8104_s13  ;;  %s7358_s13 = sshll.u32 %s10368_s15, 8 }
 0x6b3   : > { %v3503_v54 = vmul.f32 %v3502_v21, %v9947_v31  ;;  %s10449_s22 = scalar_lea.vmem [#allocation10], %s7358_s13 }
 0x6b5   : > { %v3504_v56 = vadd.f32 %v3503_v54, %v3501_v1 }
 0x6b7   : > { %v3505_v12 = vmul.f32 %v3504_v56, %v2758_v59 }
 0x6b9   : > { %v10269_v51 = vperm.slane %v3505_v12, 0 }
 0x6bb   : > { %v3542_v58 = vmul.f32 %v10269_v51, %v3509_v37  ;;  %v3539_v8 = vmul.f32 %v10269_v51, %v3506_v39  ;;  %v3540_v24 = vmul.f32 %v10269_v51, %v3507_v3  ;;  %v3541_v20 = vmul.f32 %v10269_v51, %v3508_v18 }
 0x6bc   : > { %v3543_v44 = vmul.f32 %v10269_v51, %v3510_v34  ;;  %v3544_v61 = vmul.f32 %v10269_v51, %v3511_v10  ;;  %v3545_v23 = vmul.f32 %v10269_v51, %v3512_v36  ;;  %v3546_v4 = vmul.f32 %v10269_v51, %v3513_v30 }
 0x6bd   : > { %v3575_v17 = vadd.f32 %v10312_v26, %v3542_v58  ;;  %v3547_v42 = vmul.f32 %v10269_v51, %v3514_v48  ;;  %v3548_v63 = vmul.f32 %v10269_v51, %v3515_v5  ;;  %v3549_v22 = vmul.f32 %v10269_v51, %v3516_v53 }
 0x6be   : > { %v3550_v32 = vmul.f32 %v10269_v51, %v3517_v19  ;;  %v3551_v28 = vmul.f32 %v10269_v51, %v3518_v52  ;;  %v3552_v41 = vmul.f32 %v10269_v51, %v3519_v60  ;;  %v10362_v35 = vmul.f32 %v10269_v51, %v3520_v62 }
 0x6bf   : > { %v3572_v49 = vadd.f32 %v10312_v26, %v3539_v8  ;;  %v10371_v25 = vmul.f32 %v10269_v51, %v3521_v6  ;;  %v10374_v40 = vmul.f32 %v10269_v51, %v3522_v45  ;;  %v10377_v57 = vmul.f32 %v10269_v51, %v3523_v11 }
 0x6c0   : > { %v3573_v21 = vadd.f32 %v10312_v26, %v3540_v24  ;;  %v10383_v55 = vmul.f32 %v10269_v51, %v3524_v15  ;;  %v10386_v54 = vmul.f32 %v10269_v51, %v3525_v13  ;;  %v10389_v1 = vmul.f32 %v10269_v51, %v3526_v9 }
 0x6c1   : > { %v3639_v56 = vmul.f32 0.2, %v3575_v17  ;;  %v10394_v59 = vmul.f32 %v10269_v51, %v3527_v27  ;;  %v10397_v12 = vmul.f32 %v10269_v51, %v3528_v33  ;;  %v10400_v39 = vmul.f32 %v10269_v51, %v3529_v47 }
 0x6c2   : > { %vm3607_vm7 = vcmp.ge.f32.partialorder %v3575_v17, 0.0  ;;  %v10406_v3 = vmul.f32 %v10269_v51, %v3530_v2  ;;  %v10409_v18 = vmul.f32 %v10269_v51, %v3531_v7  ;;  %v3574_v37 = vadd.f32 %v10312_v26, %v3541_v20 }
 0x6c3   : > { %v3636_v34 = vmul.f32 0.2, %v3572_v49  ;;  %v10415_v10 = vmul.f32 %v10269_v51, %v3532_v46  ;;  %v3576_v36 = vadd.f32 %v10312_v26, %v3543_v44  ;;  %vm3604_vm8 = vcmp.ge.f32.partialorder %v3572_v49, 0.0 }
 0x6c4   : > { %v3637_v30 = vmul.f32 0.2, %v3573_v21  ;;  %v10421_v48 = vmul.f32 %v10269_v51, %v3533_v43  ;;  %v3577_v5 = vadd.f32 %v10312_v26, %v3544_v61  ;;  %vm3605_vm9 = vcmp.ge.f32.partialorder %v3573_v21, 0.0 }
 0x6c5   : > { %v3671_v53 = vsel %vm3607_vm7, %v3575_v17, %v3639_v56  ;;  %v10425_v19 = vmul.f32 %v10269_v51, %v3534_v38  ;;  %v10428_v52 = vmul.f32 %v10269_v51, %v3535_v50  ;;  %v10431_v60 = vmul.f32 %v10269_v51, %v3536_v29 }
 0x6c6   : > { %v3578_v62 = vadd.f32 %v10312_v26, %v3545_v23  ;;  %v10437_v6 = vmul.f32 %v10269_v51, %v3537_v16  ;;  %v3579_v45 = vadd.f32 %v10312_v26, %v3546_v4  ;;  %v3638_v11 = vmul.f32 0.2, %v3574_v37  ;;  %3793 = vst.msk [vmem:[#allocation4 + $0x39] sm:$0xff] %vm3700_vm11, %v3671_v53 }
 0x6c7   : > { %v3668_v15 = vsel %vm3604_vm8, %v3572_v49, %v3636_v34  ;;  %v3580_v13 = vadd.f32 %v10312_v26, %v3547_v42  ;;  %vm3606_vm10 = vcmp.ge.f32.partialorder %v3574_v37, 0.0  ;;  %v3640_v9 = vmul.f32 0.2, %v3576_v36  ;;  %3704 = vst.msk [vmem:[%s10449_s22 + $0x18] sm:$0xff] %vm3700_vm11, %v3671_v53 }
 0x6c8   : > { %v3669_v27 = vsel %vm3605_vm9, %v3573_v21, %v3637_v30  ;;  %v3581_v33 = vadd.f32 %v10312_v26, %v3548_v63  ;;  %v3582_v51 = vadd.f32 %v10312_v26, %v3549_v22  ;;  %vm3608_vm12 = vcmp.ge.f32.partialorder %v3576_v36, 0.0  ;;  %3775 = vst.msk [vmem:[#allocation4 + $0x19] sm:$0xff] %vm3700_vm11, %v3668_v15 }
 0x6c9   : > { %v3641_v47 = vmul.f32 0.2, %v3577_v5  ;;  %v3583_v0 = vadd.f32 %v10312_v26, %v3550_v32  ;;  %v3584_v58 = vadd.f32 %v10312_v26, %v3551_v28  ;;  %vm3609_vm13 = vcmp.ge.f32.partialorder %v3577_v5, 0.0  ;;  %3776 = vst.msk [vmem:[#allocation4 + $0x21] sm:$0xff] %vm3700_vm11, %v3669_v27 }
 0x6ca   : > { %v3642_v2 = vmul.f32 0.2, %v3578_v62  ;;  %v3585_v7 = vadd.f32 %v10312_v26, %v3552_v41  ;;  %vm3610_vm14 = vcmp.ge.f32.partialorder %v3578_v62, 0.0  ;;  %v3643_v46 = vmul.f32 0.2, %v3579_v45  ;;  %3701 = vst.msk [vmem:[%s10449_s22] sm:$0xff] %vm3700_vm11, %v3668_v15 }
 0x6cb   : > { %v10458_v43 = vsel %vm3606_vm10, %v3574_v37, %v3638_v11  ;;  %v3586_v38 = vadd.f32 %v10312_v26, %v10362_v35  ;;  %vm3611_vm15 = vcmp.ge.f32.partialorder %v3579_v45, 0.0  ;;  %v3644_v50 = vmul.f32 0.2, %v3580_v13  ;;  %3702 = vst.msk [vmem:[%s10449_s22 + $0x8] sm:$0xff] %vm3700_vm11, %v3669_v27 }
 0x6cc   : > { %v10464_v29 = vsel %vm3608_vm12, %v3576_v36, %v3640_v9  ;;  %v3587_v8 = vadd.f32 %v10312_v26, %v10371_v25  ;;  %vm3612_vm1 = vcmp.ge.f32.partialorder %v3580_v13, 0.0  ;;  %v3645_v16 = vmul.f32 0.2, %v3581_v33  ;;  %3703 = vst.msk [vmem:[%s10449_s22 + $0x10] sm:$0xff] %vm3700_vm11, %v10458_v43 }
 0x6cd   : > { %v10471_v24 = vsel %vm3609_vm13, %v3577_v5, %v3641_v47  ;;  %v3588_v20 = vadd.f32 %v10312_v26, %v10374_v40  ;;  %vm3613_vm2 = vcmp.ge.f32.partialorder %v3581_v33, 0.0  ;;  %v3646_v44 = vmul.f32 0.2, %v3582_v51  ;;  %v3860_v17 = vld [vmem:[#allocation4 + $0x39] sm:$0xff]  ;;  %3705 = vst.msk [vmem:[%s10449_s22 + $0x20] sm:$0xff] %vm3700_vm11, %v10464_v29 }
 0x6ce   : > { %v10478_v61 = vsel %vm3610_vm14, %v3578_v62, %v3642_v2  ;;  %v3589_v23 = vadd.f32 %v10312_v26, %v10377_v57  ;;  %vm3614_vm3 = vcmp.ge.f32.partialorder %v3582_v51, 0.0  ;;  %v3647_v4 = vmul.f32 0.2, %v3583_v0  ;;  %3706 = vst.msk [vmem:[%s10449_s22 + $0x28] sm:$0xff] %vm3700_vm11, %v10471_v24 }
 0x6cf   : > { %v10486_v42 = vsel %vm3611_vm15, %v3579_v45, %v3643_v46  ;;  %vm3615_vm4 = vcmp.ge.f32.partialorder %v3583_v0, 0.0  ;;  %v3648_v63 = vmul.f32 0.2, %v3584_v58  ;;  %v10491_v22 = vpack.c.bf16 %v3860_v17, %v3860_v17  ;;  %3707 = vst.msk [vmem:[%s10449_s22 + $0x30] sm:$0xff] %vm3700_vm11, %v10478_v61 }
 0x6d0   : > { %v10494_v32 = vsel %vm3612_vm1, %v3580_v13, %v3644_v50  ;;  %v3590_v28 = vadd.f32 %v10312_v26, %v10383_v55  ;;  %vm3616_vm5 = vcmp.ge.f32.partialorder %v3584_v58, 0.0  ;;  %v3649_v41 = vmul.f32 0.2, %v3585_v7  ;;  %v4084_v57 = vld [vmem:[#allocation4 + $0x20] sm:$0xff]  ;;  %3708 = vst.msk [vmem:[%s10449_s22 + $0x38] sm:$0xff] %vm3700_vm11, %v10486_v42 }
 0x6d1   : > { %v10502_v35 = vsel %vm3613_vm2, %v3581_v33, %v3645_v16  ;;  %v3591_v49 = vadd.f32 %v10312_v26, %v10386_v54  ;;  %vm3617_vm6 = vcmp.ge.f32.partialorder %v3585_v7, 0.0  ;;  %v3650_v25 = vmul.f32 0.2, %v3586_v38  ;;  %3911 = vrot.lane.b32.xlu0 %v10491_v22, %s11960_s29  ;;  %3709 = vst.msk [vmem:[%s10449_s22 + $0x40] sm:$0xff] %vm3700_vm11, %v10494_v32 }
 0x6d2   : > { %v10512_v40 = vsel %vm3614_vm3, %v3582_v51, %v3646_v44  ;;  %vm3618_vm7 = vcmp.ge.f32.partialorder %v3586_v38, 0.0  ;;  %v3651_v21 = vmul.f32 0.2, %v3587_v8  ;;  %v10518_v55 = vsel %vm3615_vm4, %v3583_v0, %v3647_v4  ;;  %3710 = vst.msk [vmem:[%s10449_s22 + $0x48] sm:$0xff] %vm3700_vm11, %v10502_v35 }
 0x6d3   : > { %v4100_v54 = vpack.c.bf16 %v4084_v57, %v4084_v57  ;;  %v3592_v56 = vadd.f32 %v10312_v26, %v10389_v1  ;;  %vm3619_vm8 = vcmp.ge.f32.partialorder %v3587_v8, 0.0  ;;  %v3652_v37 = vmul.f32 0.2, %v3588_v20  ;;  %3711 = vst.msk [vmem:[%s10449_s22 + $0x50] sm:$0xff] %vm3700_vm11, %v10512_v40 }
 0x6d4   : > { %v10526_v34 = vsel %vm3616_vm5, %v3584_v58, %v3648_v63  ;;  %v3593_v36 = vadd.f32 %v10312_v26, %v10394_v59  ;;  %vm3620_vm9 = vcmp.ge.f32.partialorder %v3588_v20, 0.0  ;;  %v3653_v30 = vmul.f32 0.2, %v3589_v23  ;;  %3712 = vst.msk [vmem:[%s10449_s22 + $0x58] sm:$0xff] %vm3700_vm11, %v10518_v55 }
 0x6d5   : > { %v10534_v5 = vsel %vm3617_vm6, %v3585_v7, %v3649_v41  ;;  %4133 = vrot.lane.b32.xlu1 %v4100_v54, %s11976_s12  ;;  %v3594_v1 = vadd.f32 %v10312_v26, %v10397_v12  ;;  %vm3621_vm10 = vcmp.ge.f32.partialorder %v3589_v23, 0.0  ;;  %v3654_v53 = vmul.f32 0.2, %v3590_v28  ;;  %3713 = vst.msk [vmem:[%s10449_s22 + $0x60] sm:$0xff] %vm3700_vm11, %v10526_v34 }
 0x6d6   : > { %v10543_v62 = vsel %vm3618_vm7, %v3586_v38, %v3650_v25  ;;  %v3595_v59 = vadd.f32 %v10312_v26, %v10400_v39  ;;  %vm3622_vm12 = vcmp.ge.f32.partialorder %v3590_v28, 0.0  ;;  %v3655_v45 = vmul.f32 0.2, %v3591_v49  ;;  %3714 = vst.msk [vmem:[%s10449_s22 + $0x68] sm:$0xff] %vm3700_vm11, %v10534_v5  ;;  %v4083_v25 = vld [vmem:[#allocation4 + $0x18] sm:$0xff] }
 0x6d7   : > { %v10551_v11 = vsel %vm3619_vm8, %v3587_v8, %v3651_v21  ;;  %v3596_v12 = vadd.f32 %v10312_v26, %v10406_v3  ;;  %vm3623_vm13 = vcmp.ge.f32.partialorder %v3591_v49, 0.0  ;;  %v3656_v15 = vmul.f32 0.2, %v3592_v56  ;;  %3715 = vst.msk [vmem:[%s10449_s22 + $0x70] sm:$0xff] %vm3700_vm11, %v10543_v62 }
 0x6d8   : > { %v10559_v13 = vsel %vm3620_vm9, %v3588_v20, %v3652_v37  ;;  %v3597_v39 = vadd.f32 %v10312_v26, %v10409_v18  ;;  %vm3624_vm14 = vcmp.ge.f32.partialorder %v3592_v56, 0.0  ;;  %v3657_v9 = vmul.f32 0.2, %v3593_v36  ;;  %3716 = vst.msk [vmem:[%s10449_s22 + $0x78] sm:$0xff] %vm3700_vm11, %v10551_v11 }
 0x6d9   : > { %v10567_v27 = vsel %vm3621_vm10, %v3589_v23, %v3653_v30  ;;  %v3598_v3 = vadd.f32 %v10312_v26, %v10415_v10  ;;  %vm3625_vm15 = vcmp.ge.f32.partialorder %v3593_v36, 0.0  ;;  %v3658_v33 = vmul.f32 0.2, %v3594_v1  ;;  %3717 = vst.msk [vmem:[%s10449_s22 + $0x80] sm:$0xff] %vm3700_vm11, %v10559_v13 }
 0x6da   : > { %v10575_v51 = vsel %vm3622_vm12, %v3590_v28, %v3654_v53  ;;  %v3599_v18 = vadd.f32 %v10312_v26, %v10421_v48  ;;  %vm3626_vm1 = vcmp.ge.f32.partialorder %v3594_v1, 0.0  ;;  %v3659_v47 = vmul.f32 0.2, %v3595_v59  ;;  %3718 = vst.msk [vmem:[%s10449_s22 + $0x88] sm:$0xff] %vm3700_vm11, %v10567_v27 }
 0x6db   : > { %v10583_v0 = vsel %vm3623_vm13, %v3591_v49, %v3655_v45  ;;  %v3600_v10 = vadd.f32 %v10312_v26, %v10425_v19  ;;  %vm3627_vm2 = vcmp.ge.f32.partialorder %v3595_v59, 0.0  ;;  %v3660_v58 = vmul.f32 0.2, %v3596_v12  ;;  %3719 = vst.msk [vmem:[%s10449_s22 + $0x90] sm:$0xff] %vm3700_vm11, %v10575_v51 }
 0x6dc   : > { %v3688_v2 = vsel %vm3624_vm14, %v3592_v56, %v3656_v15  ;;  %v3601_v48 = vadd.f32 %v10312_v26, %v10428_v52  ;;  %vm3628_vm3 = vcmp.ge.f32.partialorder %v3596_v12, 0.0  ;;  %v3661_v7 = vmul.f32 0.2, %v3597_v39  ;;  %3720 = vst.msk [vmem:[%s10449_s22 + $0x98] sm:$0xff] %vm3700_vm11, %v10583_v0 }
 0x6dd   : > { %v3689_v46 = vsel %vm3625_vm15, %v3593_v36, %v3657_v9  ;;  %v3602_v19 = vadd.f32 %v10312_v26, %v10431_v60  ;;  %vm3629_vm4 = vcmp.ge.f32.partialorder %v3597_v39, 0.0  ;;  %v3662_v38 = vmul.f32 0.2, %v3598_v3  ;;  %3721 = vst.msk [vmem:[%s10449_s22 + $0xa0] sm:$0xff] %vm3700_vm11, %v3688_v2 }
 0x6de   : > { %v10603_v50 = vsel %vm3626_vm1, %v3594_v1, %v3658_v33  ;;  %v3603_v52 = vadd.f32 %v10312_v26, %v10437_v6  ;;  %vm3630_vm5 = vcmp.ge.f32.partialorder %v3598_v3, 0.0  ;;  %v3663_v8 = vmul.f32 0.2, %v3599_v18  ;;  %3722 = vst.msk [vmem:[%s10449_s22 + $0xa8] sm:$0xff] %vm3700_vm11, %v3689_v46 }
 0x6df   : > { %v10611_v16 = vsel %vm3627_vm2, %v3595_v59, %v3659_v47  ;;  %vm3631_vm6 = vcmp.ge.f32.partialorder %v3599_v18, 0.0  ;;  %v3664_v60 = vmul.f32 0.2, %v3600_v10  ;;  %v3692_v20 = vsel %vm3628_vm3, %v3596_v12, %v3660_v58  ;;  %3723 = vst.msk [vmem:[%s10449_s22 + $0xb0] sm:$0xff] %vm3700_vm11, %v10603_v50 }
 0x6e0   : > { %vm3632_vm7 = vcmp.ge.f32.partialorder %v3600_v10, 0.0  ;;  %v3665_v44 = vmul.f32 0.2, %v3601_v48  ;;  %v3693_v26 = vsel %vm3629_vm4, %v3597_v39, %v3661_v7  ;;  %vm3633_vm8 = vcmp.ge.f32.partialorder %v3601_v48, 0.0  ;;  %3724 = vst.msk [vmem:[%s10449_s22 + $0xb8] sm:$0xff] %vm3700_vm11, %v10611_v16  ;;  %v3973_v7 = vld [vmem:[#allocation4 + $0x3a] sm:$0xff] }
 0x6e1   : > { %v3666_v6 = vmul.f32 0.2, %v3602_v19  ;;  %v3694_v23 = vsel %vm3630_vm5, %v3598_v3, %v3662_v38  ;;  %vm3634_vm9 = vcmp.ge.f32.partialorder %v3602_v19, 0.0  ;;  %v3667_v4 = vmul.f32 0.2, %v3603_v52  ;;  %3725 = vst.msk [vmem:[%s10449_s22 + $0xc0] sm:$0xff] %vm3700_vm11, %v3692_v20 }
 0x6e2   : > { %v3695_v17 = vsel %vm3631_vm6, %v3599_v18, %v3663_v8  ;;  %vm3635_vm10 = vcmp.ge.f32.partialorder %v3603_v52, 0.0  ;;  %v3696_v63 = vsel %vm3632_vm7, %v3600_v10, %v3664_v60  ;;  %3726 = vst.msk [vmem:[%s10449_s22 + $0xc8] sm:$0xff] %vm3700_vm11, %v3693_v26  ;;  %v3697_v28 = vsel %vm3633_vm8, %v3601_v48, %v3665_v44  ;;  %v4197_v44 = vld [vmem:[#allocation4 + $0x21] sm:$0xff] }
 0x6e3   : > { %3727 = vst.msk [vmem:[%s10449_s22 + $0xd0] sm:$0xff] %vm3700_vm11, %v3694_v23  ;;  %v3698_v41 = vsel %vm3634_vm9, %v3602_v19, %v3666_v6  ;;  %v3699_v49 = vsel %vm3635_vm10, %v3603_v52, %v3667_v4  ;;  %v4099_v57 = vpack.c.bf16 %v4083_v25, %v4083_v25  ;;  %vm3840_vm12 = vcmask 257024   ;;  %v3906_v4 = vpop.permute.xlu2 %3905 }
 0x6e4   : > { %3728 = vst.msk [vmem:[%s10449_s22 + $0xd8] sm:$0xff] %vm3700_vm11, %v3695_v17  ;;  %vm3953_vm13 = vcmask 519424   ;;  %vm4066_vm14 = vcmask 781824   ;;  %vm4179_vm15 = vcmask 1044224  }
 0x6e5   : > { %3729 = vst.msk [vmem:[%s10449_s22 + $0xe0] sm:$0xff] %vm3700_vm11, %v3696_v63  ;;  %4131 = vrot.lane.b32.xlu2 %v4099_v57, %s11976_s12 }
 0x6e6   : > { %3730 = vst.msk [vmem:[%s10449_s22 + $0xe8] sm:$0xff] %vm3700_vm11, %v3697_v28 }
 0x6e7   : > { %3731 = vst.msk [vmem:[%s10449_s22 + $0xf0] sm:$0xff] %vm3700_vm11, %v3698_v41 }
 0x6e8   : > { %3732 = vst.msk [vmem:[%s10449_s22 + $0xf8] sm:$0xff] %vm3700_vm11, %v3699_v49 }
 0x6e9   : > { %3777 = vst.msk [vmem:[#allocation4 + $0x49] sm:$0xff] %vm3700_vm11, %v10464_v29 }
 0x6ea   : > { %3778 = vst.msk [vmem:[#allocation4 + $0x51] sm:$0xff] %vm3700_vm11, %v10471_v24 }
 0x6eb   : > { %3779 = vst.msk [vmem:[#allocation4 + $0x79] sm:$0xff] %vm3700_vm11, %v10494_v32 }
 0x6ec   : > { %3780 = vst.msk [vmem:[#allocation4 + $0x81] sm:$0xff] %vm3700_vm11, %v10502_v35 }
 0x6ed   : > { %3781 = vst.msk [vmem:[#allocation4 + $0xa9] sm:$0xff] %vm3700_vm11, %v10526_v34 }
 0x6ee   : > { %3782 = vst.msk [vmem:[#allocation4 + $0xb1] sm:$0xff] %vm3700_vm11, %v10534_v5 }
 0x6ef   : > { %3783 = vst.msk [vmem:[#allocation4 + $0xd9] sm:$0xff] %vm3700_vm11, %v10559_v13 }
 0x6f0   : > { %3784 = vst.msk [vmem:[#allocation4 + $0xe1] sm:$0xff] %vm3700_vm11, %v10567_v27  ;;  %v4085_v29 = vld [vmem:[#allocation4 + $0x48] sm:$0xff] }
 0x6f1   : > { %3785 = vst.msk [vmem:[#allocation4 + $0x109] sm:$0xff] %vm3700_vm11, %v3688_v2  ;;  %v4101_v24 = vpack.c.bf16 %v4085_v29, %v4085_v29  ;;  %v4086_v32 = vld [vmem:[#allocation4 + $0x50] sm:$0xff] }
 0x6f2   : > { %3786 = vst.msk [vmem:[#allocation4 + $0x111] sm:$0xff] %vm3700_vm11, %v3689_v46  ;;  %v4102_v35 = vpack.c.bf16 %v4086_v32, %v4086_v32  ;;  %v4200_v25 = vld [vmem:[#allocation4 + $0x79] sm:$0xff] }
 0x6f3   : > { %3787 = vst.msk [vmem:[#allocation4 + $0x139] sm:$0xff] %vm3700_vm11, %v3692_v20  ;;  %4135 = vrot.lane.b32.xlu0 %v4101_v24, %s11976_s12  ;;  %v4088_v12 = vld [vmem:[#allocation4 + $0x80] sm:$0xff] }
 0x6f4   : > { %3788 = vst.msk [vmem:[#allocation4 + $0x141] sm:$0xff] %vm3700_vm11, %v3693_v26  ;;  %4137 = vrot.lane.b32.xlu1 %v4102_v35, %s11976_s12  ;;  %v4104_v18 = vpack.c.bf16 %v4088_v12, %v4088_v12  ;;  %v4196_v20 = vld [vmem:[#allocation4 + $0x19] sm:$0xff]  ;;  %v4089_v35 = vld [vmem:[#allocation4 + $0xa8] sm:$0xff] }
 0x6f5   : > { %3789 = vst.msk [vmem:[#allocation4 + $0x169] sm:$0xff] %vm3700_vm11, %v3696_v63 }
 0x6f6   : > { %3790 = vst.msk [vmem:[#allocation4 + $0x171] sm:$0xff] %vm3700_vm11, %v3697_v28  ;;  %v4212_v28 = vpack.c.bf16 %v4196_v20, %v4196_v20 }
 0x6f7   : > { %3792 = vst.msk [vmem:[#allocation4 + $0x31] sm:$0xff] %vm3700_vm11, %v10458_v43 }
 0x6f8   : > { %3794 = vst.msk [vmem:[#allocation4 + $0x61] sm:$0xff] %vm3700_vm11, %v10478_v61 }
 0x6f9   : > { %3795 = vst.msk [vmem:[#allocation4 + $0x69] sm:$0xff] %vm3700_vm11, %v10486_v42 }
 0x6fa   : > { %3796 = vst.msk [vmem:[#allocation4 + $0x91] sm:$0xff] %vm3700_vm11, %v10512_v40 }
 0x6fb   : > { %3797 = vst.msk [vmem:[#allocation4 + $0x99] sm:$0xff] %vm3700_vm11, %v10518_v55 }
 0x6fc   : > { %3798 = vst.msk [vmem:[#allocation4 + $0xc1] sm:$0xff] %vm3700_vm11, %v10543_v62 }
 0x6fd   : > { %3799 = vst.msk [vmem:[#allocation4 + $0xc9] sm:$0xff] %vm3700_vm11, %v10551_v11  ;;  %v4087_v11 = vld [vmem:[#allocation4 + $0x78] sm:$0xff] }
 0x6fe   : > { %3800 = vst.msk [vmem:[#allocation4 + $0xf1] sm:$0xff] %vm3700_vm11, %v10575_v51  ;;  %v3859_v43 = vld [vmem:[#allocation4 + $0x31] sm:$0xff]  ;;  %v4103_v51 = vpack.c.bf16 %v4087_v11, %v4087_v11 }
 0x6ff   : > { %3801 = vst.msk [vmem:[#allocation4 + $0xf9] sm:$0xff] %vm3700_vm11, %v10583_v0  ;;  %v10683_v61 = vpack.c.bf16 %v3859_v43, %v3859_v43  ;;  %v3810_v42 = vld [vmem:[#allocation4 + $0x30] sm:$0xff]  ;;  %v3811_v55 = vld [vmem:[#allocation4 + $0x38] sm:$0xff]  ;;  %v3812_v37 = vld [vmem:[#allocation4 + $0x60] sm:$0xff] }
 0x700   : > { %3802 = vst.msk [vmem:[#allocation4 + $0x121] sm:$0xff] %vm3700_vm11, %v10603_v50  ;;  %v3862_v40 = vld [vmem:[#allocation4 + $0x69] sm:$0xff]  ;;  %v10694_v34 = vpack.c.bf16 %v3810_v42, %v3810_v42  ;;  %v10700_v30 = vpack.c.bf16 %v3811_v55, %v3811_v55  ;;  %v3972_v1 = vld [vmem:[#allocation4 + $0x32] sm:$0xff]  ;;  %v10703_v53 = vpack.c.bf16 %v3812_v37, %v3812_v37  ;;  %v3861_v57 = vld [vmem:[#allocation4 + $0x61] sm:$0xff]  ;;  %v4216_v42 = vpack.c.bf16 %v4200_v25, %v4200_v25 }
 0x701   : > { %v3974_v21 = vld [vmem:[#allocation4 + $0x62] sm:$0xff]  ;;  %3803 = vst.msk [vmem:[#allocation4 + $0x129] sm:$0xff] %vm3700_vm11, %v10611_v16  ;;  %3909 = vrot.lane.b32.xlu2 %v10683_v61, %s11960_s29  ;;  %v10691_v54 = vpack.c.bf16 %v3862_v40, %v3862_v40  ;;  %v3814_v5 = vld [vmem:[#allocation4 + $0x90] sm:$0xff]  ;;  %v3988_v39 = vpack.c.bf16 %v3972_v1, %v3972_v1  ;;  %v3989_v16 = vpack.c.bf16 %v3973_v7, %v3973_v7  ;;  %v3908_v1 = vpop.permute.xlu2 %3907 }
 0x702   : > { %v3990_v56 = vpack.c.bf16 %v3974_v21, %v3974_v21  ;;  %3804 = vst.msk [vmem:[#allocation4 + $0x151] sm:$0xff] %vm3700_vm11, %v3694_v23  ;;  %v3813_v36 = vld [vmem:[#allocation4 + $0x68] sm:$0xff]  ;;  %v3815_v62 = vld [vmem:[#allocation4 + $0x98] sm:$0xff]  ;;  %v10710_v15 = vpack.c.bf16 %v3814_v5, %v3814_v5  ;;  %v3808_v23 = vld [vmem:[#allocation4] sm:$0xff]  ;;  %v10768_v40 = vpack.c.bf16 %v3861_v57, %v3861_v57  ;;  %v4105_v37 = vpack.c.bf16 %v4089_v35, %v4089_v35 }
 0x703   : > { %3805 = vst.msk [vmem:[#allocation4 + $0x159] sm:$0xff] %vm3700_vm11, %v3695_v17  ;;  %3915 = vrot.lane.b32.xlu0 %v10691_v54, %s11960_s29  ;;  %v10706_v59 = vpack.c.bf16 %v3813_v36, %v3813_v36  ;;  %v3816_v45 = vld [vmem:[#allocation4 + $0xc0] sm:$0xff]  ;;  %v10714_v9 = vpack.c.bf16 %v3815_v62, %v3815_v62  ;;  %v3976_v52 = vld [vmem:[#allocation4 + $0x92] sm:$0xff]  ;;  %v4198_v17 = vld [vmem:[#allocation4 + $0x49] sm:$0xff]  ;;  %v3824_v63 = vpack.c.bf16 %v3808_v23, %v3808_v23 }
 0x704   : > { %4026 = vrot.lane.b32.xlu1 %v3990_v56, %s11975_s30  ;;  %3806 = vst.msk [vmem:[#allocation4 + $0x181] sm:$0xff] %vm3700_vm11, %v3698_v41  ;;  %v3817_v13 = vld [vmem:[#allocation4 + $0xc8] sm:$0xff]  ;;  %v10718_v3 = vpack.c.bf16 %v3816_v45, %v3816_v45  ;;  %v3864_v50 = vld [vmem:[#allocation4 + $0x99] sm:$0xff]  ;;  %v3992_v6 = vpack.c.bf16 %v3976_v52, %v3976_v52  ;;  %v4199_v41 = vld [vmem:[#allocation4 + $0x51] sm:$0xff]  ;;  %v4214_v29 = vpack.c.bf16 %v4198_v17, %v4198_v17 }
 0x705   : > { %3807 = vst.msk [vmem:[#allocation4 + $0x189] sm:$0xff] %vm3700_vm11, %v3699_v49  ;;  %v3818_v27 = vld [vmem:[#allocation4 + $0xf0] sm:$0xff]  ;;  %v10723_v47 = vpack.c.bf16 %v3817_v13, %v3817_v13  ;;  %v10754_v26 = vpack.c.bf16 %v3864_v50, %v3864_v50  ;;  %v4213_v49 = vpack.c.bf16 %v4197_v44, %v4197_v44  ;;  %v4215_v32 = vpack.c.bf16 %v4199_v41, %v4199_v41  ;;  %v4581_v21 = vld [vmem:[#allocation4 + $0x3a] sm:$0xff]  ;;  %v3809_v5 = vld [vmem:[#allocation4 + $0x8] sm:$0xff] }
 0x706   : > { %3843 = vst.msk [vmem:[#allocation5 + $0x18] sm:$0xf] %vm3840_vm12, %v10694_v34  ;;  %v3819_v33 = vld [vmem:[#allocation4 + $0xf8] sm:$0xff]  ;;  %v10727_v10 = vpack.c.bf16 %v3818_v27, %v3818_v27  ;;  %v4090_v43 = vld [vmem:[#allocation4 + $0xb0] sm:$0xff]  ;;  %v4201_v56 = vld [vmem:[#allocation4 + $0x81] sm:$0xff]  ;;  %v3825_v45 = vpack.c.bf16 %v3809_v5, %v3809_v5  ;;  %v4597_v11 = vpack.c.bf16 %v4581_v21, %v4581_v21 }
 0x707   : > { %3844 = vst.msk [vmem:[#allocation5 + $0x24] sm:$0xf] %vm3840_vm12, %v10700_v30  ;;  %v3820_v0 = vld [vmem:[#allocation4 + $0x120] sm:$0xff]  ;;  %v10733_v2 = vpack.c.bf16 %v3819_v33, %v3819_v33  ;;  %v4580_v24 = vld [vmem:[#allocation4 + $0x32] sm:$0xff]  ;;  %v4106_v36 = vpack.c.bf16 %v4090_v43, %v4090_v43  ;;  %v4202_v62 = vld [vmem:[#allocation4 + $0xa9] sm:$0xff]  ;;  %v4217_v13 = vpack.c.bf16 %v4201_v56, %v4201_v56 }
 0x708   : > { %3845 = vst.msk [vmem:[#allocation5 + $0x30] sm:$0xf] %vm3840_vm12, %v10703_v53  ;;  %v3821_v58 = vld [vmem:[#allocation4 + $0x128] sm:$0xff]  ;;  %v10737_v46 = vpack.c.bf16 %v3820_v0, %v3820_v0  ;;  %v4596_v55 = vpack.c.bf16 %v4580_v24, %v4580_v24  ;;  %v4218_v27 = vpack.c.bf16 %v4202_v62, %v4202_v62  ;;  %v4584_v50 = vld [vmem:[#allocation4 + $0x92] sm:$0xff]  ;;  %v4589_v62 = vld [vmem:[#allocation4 + $0xfa] sm:$0xff] }
 0x709   : > { %4022 = vrot.lane.b32.xlu2 %v3988_v39, %s11975_s30  ;;  %3846 = vst.msk [vmem:[#allocation5 + $0x3c] sm:$0xf] %vm3840_vm12, %v10706_v59  ;;  %v3822_v48 = vld [vmem:[#allocation4 + $0x150] sm:$0xff]  ;;  %v10741_v38 = vpack.c.bf16 %v3821_v58, %v3821_v58  ;;  %v4582_v12 = vld [vmem:[#allocation4 + $0x62] sm:$0xff]  ;;  %v4600_v17 = vpack.c.bf16 %v4584_v50, %v4584_v50  ;;  %v4091_v24 = vld [vmem:[#allocation4 + $0xd8] sm:$0xff] }
 0x70a   : > { %3847 = vst.msk [vmem:[#allocation5 + $0x48] sm:$0xf] %vm3840_vm12, %v10710_v15  ;;  %v3823_v19 = vld [vmem:[#allocation4 + $0x158] sm:$0xff]  ;;  %v10745_v8 = vpack.c.bf16 %v3822_v48, %v3822_v48  ;;  %v3975_v39 = vld [vmem:[#allocation4 + $0x6a] sm:$0xff]  ;;  %v3978_v58 = vld [vmem:[#allocation4 + $0xc2] sm:$0xff] }
 0x70b   : > { %4139 = vrot.lane.b32.xlu0 %v4103_v51, %s11976_s12  ;;  %3848 = vst.msk [vmem:[#allocation5 + $0x54] sm:$0xf] %vm3840_vm12, %v10714_v9  ;;  %v10749_v60 = vpack.c.bf16 %v3823_v19, %v3823_v19  ;;  %v4583_v33 = vld [vmem:[#allocation4 + $0x6a] sm:$0xff]  ;;  %v4598_v51 = vpack.c.bf16 %v4582_v12, %v4582_v12  ;;  %v4204_v48 = vld [vmem:[#allocation4 + $0xd9] sm:$0xff]  ;;  %v3991_v7 = vpack.c.bf16 %v3975_v39, %v3975_v39  ;;  %v4586_v25 = vld [vmem:[#allocation4 + $0xc2] sm:$0xff] }
 0x70c   : > { %4141 = vrot.lane.b32.xlu1 %v4104_v18, %s11976_s12  ;;  %3849 = vst.msk [vmem:[#allocation5 + $0x60] sm:$0xf] %vm3840_vm12, %v10718_v3  ;;  %v4203_v18 = vld [vmem:[#allocation4 + $0xb1] sm:$0xff]  ;;  %v3866_v0 = vld [vmem:[#allocation4 + $0xc9] sm:$0xff]  ;;  %v4599_v19 = vpack.c.bf16 %v4583_v33, %v4583_v33  ;;  %v3994_v44 = vpack.c.bf16 %v3978_v58, %v3978_v58  ;;  %v4220_v23 = vpack.c.bf16 %v4204_v48, %v4204_v48  ;;  %v4208_v21 = vld [vmem:[#allocation4 + $0x139] sm:$0xff] }
 0x70d   : > { %3850 = vst.msk [vmem:[#allocation5 + $0x6c] sm:$0xf] %vm3840_vm12, %v10723_v47  ;;  %v4219_v52 = vpack.c.bf16 %v4203_v18, %v4203_v18  ;;  %v10785_v20 = vpack.c.bf16 %v3866_v0, %v3866_v0  ;;  %v3863_v41 = vld [vmem:[#allocation4 + $0x91] sm:$0xff]  ;;  %v3977_v39 = vld [vmem:[#allocation4 + $0x9a] sm:$0xff]  ;;  %v4590_v33 = vld [vmem:[#allocation4 + $0x122] sm:$0xff] }
 0x70e   : > { %3851 = vst.msk [vmem:[#allocation5 + $0x78] sm:$0xf] %vm3840_vm12, %v10727_v10  ;;  %v4207_v35 = vld [vmem:[#allocation4 + $0x111] sm:$0xff]  ;;  %v10796_v43 = vpack.c.bf16 %v3863_v41, %v3863_v41  ;;  %v3868_v0 = vld [vmem:[#allocation4 + $0xf9] sm:$0xff]  ;;  %v4606_v50 = vpack.c.bf16 %v4590_v33, %v4590_v33 }
 0x70f   : > { %3852 = vst.msk [vmem:[#allocation5 + $0x84] sm:$0xf] %vm3840_vm12, %v10733_v2  ;;  %v4588_v56 = vld [vmem:[#allocation4 + $0xf2] sm:$0xff]  ;;  %v4591_v18 = vld [vmem:[#allocation4 + $0x12a] sm:$0xff]  ;;  %v4096_v33 = vld [vmem:[#allocation4 + $0x140] sm:$0xff] }
 0x710   : > { %3853 = vst.msk [vmem:[#allocation5 + $0x90] sm:$0xf] %vm3840_vm12, %v10737_v46  ;;  %v4604_v12 = vpack.c.bf16 %v4588_v56, %v4588_v56  ;;  %v3980_v58 = vld [vmem:[#allocation4 + $0xf2] sm:$0xff]  ;;  %v4595_v41 = vld [vmem:[#allocation4 + $0x18a] sm:$0xff] }
 0x711   : > { %4024 = vrot.lane.b32.xlu2 %v3989_v16, %s11975_s30  ;;  %3854 = vst.msk [vmem:[#allocation5 + $0x9c] sm:$0xf] %vm3840_vm12, %v10741_v38  ;;  %v4585_v16 = vld [vmem:[#allocation4 + $0x9a] sm:$0xff]  ;;  %v3979_v56 = vld [vmem:[#allocation4 + $0xca] sm:$0xff] }
 0x712   : > { %3855 = vst.msk [vmem:[#allocation5 + $0xa8] sm:$0xf] %vm3840_vm12, %v10745_v8 }
 0x713   : > { %3919 = vrot.lane.b32.xlu0 %v10754_v26, %s11960_s29  ;;  %3856 = vst.msk [vmem:[#allocation5 + $0xb4] sm:$0xf] %vm3840_vm12, %v10749_v60 }
 0x714   : > { %4030 = vrot.lane.b32.xlu1 %v3992_v6, %s11975_s30  ;;  %3841 = vst.msk [vmem:[#allocation5] sm:$0xf] %vm3840_vm12, %v3824_v63  ;;  %v4019_v6 = vpop.permute.xlu2 %4018  ;;  %v4206_v63 = vld [vmem:[#allocation4 + $0x109] sm:$0xff] }
 0x715   : > { %3954 = vst.msk [vmem:[#allocation5] sm:$0xf] %vm3953_vm13, %v3906_v4  ;;  %v4205_v4 = vld [vmem:[#allocation4 + $0xe1] sm:$0xff]  ;;  %v4222_v57 = vpack.c.bf16 %v4206_v63, %v4206_v63 }
 0x716   : > { %4228 = vst.msk [vmem:[#allocation5 + $0x4] sm:$0xf] %vm3840_vm12, %v4212_v28  ;;  %v4601_v28 = vpack.c.bf16 %v4585_v16, %v4585_v16  ;;  %v4607_v16 = vpack.c.bf16 %v4591_v18, %v4591_v18  ;;  %v4594_v63 = vld [vmem:[#allocation4 + $0x182] sm:$0xff] }
 0x717   : > { %4229 = vst.msk [vmem:[#allocation5 + $0x10] sm:$0xf] %vm3840_vm12, %v4213_v49  ;;  %v4221_v49 = vpack.c.bf16 %v4205_v4, %v4205_v4  ;;  %v8024_v4 = vld [vmem:[%s11979_s2 + $0x38] sm:$0xff] }
 0x718   : > { %4230 = vst.msk [vmem:[#allocation5 + $0x1c] sm:$0xf] %vm3840_vm12, %v4214_v29  ;;  %v4587_v29 = vld [vmem:[#allocation4 + $0xca] sm:$0xff]  ;;  %4948 = vmatpush.bf16.msra.mxu2 %v8024_v4 }
 0x719   : > { %3913 = vrot.lane.b32.xlu2 %v10768_v40, %s11960_s29  ;;  %4231 = vst.msk [vmem:[#allocation5 + $0x28] sm:$0xf] %vm3840_vm12, %v4215_v32  ;;  %v4092_v32 = vld [vmem:[#allocation4 + $0xe0] sm:$0xff] }
 0x71a   : > { %4232 = vst.msk [vmem:[#allocation5 + $0x34] sm:$0xf] %vm3840_vm12, %v4216_v42  ;;  %v4602_v42 = vpack.c.bf16 %v4586_v25, %v4586_v25  ;;  %v3865_v25 = vld [vmem:[#allocation4 + $0xc1] sm:$0xff] }
 0x71b   : > { %4143 = vrot.lane.b32.xlu0 %v4105_v37, %s11976_s12  ;;  %4612 = vst.msk [vmem:[#allocation5 + $0x8] sm:$0xf] %vm3840_vm12, %v4596_v55  ;;  %v4603_v55 = vpack.c.bf16 %v4587_v29, %v4587_v29  ;;  %v4107_v37 = vpack.c.bf16 %v4091_v24, %v4091_v24  ;;  %v4611_v29 = vpack.c.bf16 %v4595_v41, %v4595_v41  ;;  %v4093_v24 = vld [vmem:[#allocation4 + $0x108] sm:$0xff] }
 0x71c   : > { %4145 = vrot.lane.b32.xlu1 %v4106_v36, %s11976_s12  ;;  %3842 = vst.msk [vmem:[#allocation5 + $0xc] sm:$0xf] %vm3840_vm12, %v3825_v45  ;;  %v4108_v36 = vpack.c.bf16 %v4092_v32, %v4092_v32  ;;  %v4021_v5 = vpop.permute.xlu2 %4020  ;;  %v4224_v45 = vpack.c.bf16 %v4208_v21, %v4208_v21  ;;  %v4094_v32 = vld [vmem:[#allocation4 + $0x110] sm:$0xff] }
 0x71d   : > { %3955 = vst.msk [vmem:[#allocation5 + $0xc] sm:$0xf] %vm3953_vm13, %v3908_v1  ;;  %v4223_v1 = vpack.c.bf16 %v4207_v35, %v4207_v35  ;;  %v10827_v35 = vpack.c.bf16 %v3865_v25, %v3865_v25  ;;  %v4110_v21 = vpack.c.bf16 %v4094_v32, %v4094_v32  ;;  %v4097_v25 = vld [vmem:[#allocation4 + $0x168] sm:$0xff] }
 0x71e   : > { %4613 = vst.msk [vmem:[#allocation5 + $0x14] sm:$0xf] %vm3840_vm12, %v4597_v11  ;;  %v4209_v11 = vld [vmem:[#allocation4 + $0x141] sm:$0xff] }
 0x71f   : > { %4233 = vst.msk [vmem:[#allocation5 + $0x40] sm:$0xf] %vm3840_vm12, %v4217_v13  ;;  %v4210_v13 = vld [vmem:[#allocation4 + $0x169] sm:$0xff] }
 0x720   : > { %4234 = vst.msk [vmem:[#allocation5 + $0x4c] sm:$0xf] %vm3840_vm12, %v4218_v27  ;;  %v4605_v27 = vpack.c.bf16 %v4589_v62, %v4589_v62  ;;  %v4226_v48 = vpack.c.bf16 %v4210_v13, %v4210_v13  ;;  %v3867_v13 = vld [vmem:[#allocation4 + $0xf1] sm:$0xff] }
 0x721   : > { %4028 = vrot.lane.b32.xlu2 %v3991_v7, %s11975_s30  ;;  %4614 = vst.msk [vmem:[#allocation5 + $0x20] sm:$0xf] %vm3840_vm12, %v4598_v51  ;;  %v4225_v51 = vpack.c.bf16 %v4209_v11, %v4209_v11  ;;  %v4211_v7 = vld [vmem:[#allocation4 + $0x171] sm:$0xff] }
 0x722   : > { %4067 = vst.msk [vmem:[#allocation5] sm:$0xf] %vm4066_vm14, %v4019_v6  ;;  %v10813_v6 = vpack.c.bf16 %v3868_v0, %v3868_v0  ;;  %v8021_v11 = vld [vmem:[%s11979_s2 + $0x20] sm:$0xff]  ;;  %v4112_v0 = vpack.c.bf16 %v4096_v33, %v4096_v33 }
 0x723   : > { %3923 = vrot.lane.b32.xlu0 %v10785_v20, %s11960_s29  ;;  %4615 = vst.msk [vmem:[#allocation5 + $0x2c] sm:$0xf] %vm3840_vm12, %v4599_v19  ;;  %v3993_v19 = vpack.c.bf16 %v3977_v39, %v3977_v39  ;;  %v8020_v39 = vld [vmem:[%s11979_s2 + $0x18] sm:$0xff] }
 0x724   : > { %4034 = vrot.lane.b32.xlu1 %v3994_v44, %s11975_s30  ;;  %4235 = vst.msk [vmem:[#allocation5 + $0x58] sm:$0xf] %vm3840_vm12, %v4219_v52  ;;  %v4592_v52 = vld [vmem:[#allocation4 + $0x152] sm:$0xff]  ;;  %v4593_v44 = vld [vmem:[#allocation4 + $0x15a] sm:$0xff] }
 0x725   : > { %4236 = vst.msk [vmem:[#allocation5 + $0x64] sm:$0xf] %vm3840_vm12, %v4220_v23  ;;  %v3996_v23 = vpack.c.bf16 %v3980_v58, %v3980_v58  ;;  %v8019_v58 = vld [vmem:[%s11979_s2 + $0x10] sm:$0xff] }
 0x726   : > { %4616 = vst.msk [vmem:[#allocation5 + $0x38] sm:$0xf] %vm3840_vm12, %v4600_v17  ;;  %v4227_v17 = vpack.c.bf16 %v4211_v7, %v4211_v7 }
 0x727   : > { %4617 = vst.msk [vmem:[#allocation5 + $0x44] sm:$0xf] %vm3840_vm12, %v4601_v28  ;;  %v4608_v28 = vpack.c.bf16 %v4592_v52, %v4592_v52  ;;  %v3872_v52 = vld [vmem:[#allocation4 + $0x159] sm:$0xff] }
 0x728   : > { %4237 = vst.msk [vmem:[#allocation5 + $0x70] sm:$0xf] %vm3840_vm12, %v4221_v49  ;;  %v4609_v49 = vpack.c.bf16 %v4593_v44, %v4593_v44 }
 0x729   : > { %3917 = vrot.lane.b32.xlu2 %v10796_v43, %s11960_s29  ;;  %4238 = vst.msk [vmem:[#allocation5 + $0x7c] sm:$0xf] %vm3840_vm12, %v4222_v57  ;;  %v4610_v57 = vpack.c.bf16 %v4594_v63, %v4594_v63  ;;  %v3869_v63 = vld [vmem:[#allocation4 + $0x121] sm:$0xff] }
 0x72a   : > { %4068 = vst.msk [vmem:[#allocation5 + $0xc] sm:$0xf] %vm4066_vm14, %v4021_v5  ;;  %v3982_v5 = vld [vmem:[#allocation4 + $0x122] sm:$0xff] }
 0x72b   : > { %4147 = vrot.lane.b32.xlu0 %v4107_v37, %s11976_s12  ;;  %4618 = vst.msk [vmem:[#allocation5 + $0x50] sm:$0xf] %vm3840_vm12, %v4602_v42  ;;  %v4109_v42 = vpack.c.bf16 %v4093_v24, %v4093_v24  ;;  %v8022_v37 = vld [vmem:[%s11979_s2 + $0x28] sm:$0xff]  ;;  %v4113_v24 = vpack.c.bf16 %v4097_v25, %v4097_v25 }
 0x72c   : > { %4149 = vrot.lane.b32.xlu1 %v4108_v36, %s11976_s12  ;;  %4619 = vst.msk [vmem:[#allocation5 + $0x5c] sm:$0xf] %vm3840_vm12, %v4603_v55  ;;  %v8023_v55 = vld [vmem:[%s11979_s2 + $0x30] sm:$0xff]  ;;  %v3870_v36 = vld [vmem:[#allocation4 + $0x129] sm:$0xff]  ;;  %v4251_v25 = vld [vmem:[#allocation4 + $0xb2] sm:$0xff] }
 0x72d   : > { %4239 = vst.msk [vmem:[#allocation5 + $0x88] sm:$0xf] %vm3840_vm12, %v4223_v1  ;;  %4949 = vmatpush.bf16.msra.mxu2 %v8023_v55  ;;  %v3995_v1 = vpack.c.bf16 %v3979_v56, %v3979_v56  ;;  %v10843_v62 = vpack.c.bf16 %v3870_v36, %v3870_v36  ;;  %v4245_v55 = vld [vmem:[#allocation4 + $0x22] sm:$0xff] }
 0x72e   : > { %4240 = vst.msk [vmem:[#allocation5 + $0x94] sm:$0xf] %vm3840_vm12, %v4224_v45  ;;  %v3998_v45 = vpack.c.bf16 %v3982_v5, %v3982_v5  ;;  %v3871_v5 = vld [vmem:[#allocation4 + $0x151] sm:$0xff] }
 0x72f   : > { %4620 = vst.msk [vmem:[#allocation5 + $0x68] sm:$0xf] %vm3840_vm12, %v4604_v12 }
 0x730   : > { %4621 = vst.msk [vmem:[#allocation5 + $0x74] sm:$0xf] %vm3840_vm12, %v4605_v27  ;;  %v4095_v27 = vld [vmem:[#allocation4 + $0x138] sm:$0xff] }
 0x731   : > { %4032 = vrot.lane.b32.xlu2 %v3993_v19, %s11975_s30  ;;  %4241 = vst.msk [vmem:[#allocation5 + $0xa0] sm:$0xf] %vm3840_vm12, %v4225_v51  ;;  %4950 = vmatpush.bf16.msra.mxu2 %v8022_v37  ;;  %v10855_v51 = vpack.c.bf16 %v3867_v13, %v3867_v13  ;;  %v4111_v18 = vpack.c.bf16 %v4095_v27, %v4095_v27  ;;  %v3981_v19 = vld [vmem:[#allocation4 + $0xfa] sm:$0xff]  ;;  %v4247_v13 = vld [vmem:[#allocation4 + $0x52] sm:$0xff] }
 0x732   : > { %4242 = vst.msk [vmem:[#allocation5 + $0xac] sm:$0xf] %vm3840_vm12, %v4226_v48  ;;  %v3997_v44 = vpack.c.bf16 %v3981_v19, %v3981_v19  ;;  %v4261_v37 = vpack.c.bf16 %v4245_v55, %v4245_v55  ;;  %v4263_v27 = vpack.c.bf16 %v4247_v13, %v4247_v13 }
 0x733   : > { %3927 = vrot.lane.b32.xlu0 %v10813_v6, %s11960_s29  ;;  %4622 = vst.msk [vmem:[#allocation5 + $0x80] sm:$0xf] %vm3840_vm12, %v4606_v50  ;;  %v8018_v50 = vld [vmem:[%s11979_s2 + $0x8] sm:$0xff] }
 0x734   : > { %4038 = vrot.lane.b32.xlu1 %v3996_v23, %s11975_s30  ;;  %4623 = vst.msk [vmem:[#allocation5 + $0x8c] sm:$0xf] %vm3840_vm12, %v4607_v16  ;;  %v3984_v16 = vld [vmem:[#allocation4 + $0x152] sm:$0xff]  ;;  %v10870_v23 = vpack.c.bf16 %v3872_v52, %v3872_v52  ;;  %v4249_v52 = vld [vmem:[#allocation4 + $0x82] sm:$0xff] }
 0x735   : > { %4243 = vst.msk [vmem:[#allocation5 + $0xb8] sm:$0xf] %vm3840_vm12, %v4227_v17  ;;  %4951 = vmatpush.bf16.msra.mxu2 %v8021_v11  ;;  %v4000_v4 = vpack.c.bf16 %v3984_v16, %v3984_v16  ;;  %v8017_v17 = vld [vmem:[%s11979_s2] sm:$0xff]  ;;  %v4265_v16 = vpack.c.bf16 %v4249_v52, %v4249_v52 }
 0x736   : > { %4624 = vst.msk [vmem:[#allocation5 + $0x98] sm:$0xf] %vm3840_vm12, %v4608_v28 }
 0x737   : > { %4625 = vst.msk [vmem:[#allocation5 + $0xa4] sm:$0xf] %vm3840_vm12, %v4609_v49 }
 0x738   : > { %4626 = vst.msk [vmem:[#allocation5 + $0xb0] sm:$0xf] %vm3840_vm12, %v4610_v57  ;;  %v4098_v57 = vld [vmem:[#allocation4 + $0x170] sm:$0xff] }
 0x739   : > { %3921 = vrot.lane.b32.xlu2 %v10827_v35, %s11960_s29  ;;  %4627 = vst.msk [vmem:[#allocation5 + $0xbc] sm:$0xf] %vm3840_vm12, %v4611_v29  ;;  %4952 = vmatpush.bf16.msra.mxu2 %v8020_v39  ;;  %v10878_v29 = vpack.c.bf16 %v3869_v63, %v3869_v63  ;;  %v4114_v32 = vpack.c.bf16 %v4098_v57, %v4098_v57 }
 0x73a   : > { %v4267_v57 = vpack.c.bf16 %v4251_v25, %v4251_v25 }
 0x73b   : > { %4151 = vrot.lane.b32.xlu0 %v4109_v42, %s11976_s12 }
 0x73c   : > { %4153 = vrot.lane.b32.xlu1 %v4110_v21, %s11976_s12  ;;  %v3983_v21 = vld [vmem:[#allocation4 + $0x12a] sm:$0xff] }
 0x73d   : > { %4953 = vmatpush.bf16.msra.mxu2 %v8019_v58  ;;  %v3999_v56 = vpack.c.bf16 %v3983_v21, %v3983_v21 }
 0x73f   : > { %v4132_v12 = vpop.permute.xlu2 %4131 }
 0x740   : > { %4180 = vst.msk [vmem:[#allocation5] sm:$0xf] %vm4179_vm15, %v4132_v12 }
 0x741   : > { %4036 = vrot.lane.b32.xlu2 %v3995_v1, %s11975_s30  ;;  %4954 = vmatpush.bf16.msra.mxu2 %v8018_v50 }
 0x743   : > { %3931 = vrot.lane.b32.xlu0 %v10843_v62, %s11960_s29  ;;  %v3912_v48 = vpop.permute.xlu0 %3911 }
 0x744   : > { %4042 = vrot.lane.b32.xlu1 %v3998_v45, %s11975_s30  ;;  %3957 = vst.msk [vmem:[#allocation5 + $0x24] sm:$0xf] %vm3953_vm13, %v3912_v48  ;;  %v10891_v45 = vpack.c.bf16 %v3871_v5, %v3871_v5 }
 0x745   : > { %4955 = vmatpush.bf16.msra.mxu2 %v8017_v17 }
 0x747   : > { %v4134_v7 = vpop.permute.xlu1 %4133  ;;  %v7545_v28 = vld [vmem:[#allocation5] sm:$0xf] }
 0x748   : > { %4181 = vst.msk [vmem:[#allocation5 + $0xc] sm:$0xf] %vm4179_vm15, %v4134_v7 }
 0x749   : > { %3925 = vrot.lane.b32.xlu2 %v10855_v51, %s11960_s29 }
 0x74b   : > { %4155 = vrot.lane.b32.xlu0 %v4111_v18, %s11976_s12 }
 0x74c   : > { %4157 = vrot.lane.b32.xlu1 %v4112_v0, %s11976_s12 }
 0x74f   : > { %v7994_v41 = vld [vmem:[#allocation5 + $0x8] sm:$0xf0] }
 0x750   : > { %v7546_v49 = vor.u32 %v7994_v41, %v7545_v28 }
 0x751   : > { %4040 = vrot.lane.b32.xlu2 %v3997_v44, %s11975_s30 }
 0x752   : > { %4956 = vmatmul.bf16.vlgmr.msra.gmra.mxu2 %v7546_v49 }
 0x753   : > { %3935 = vrot.lane.b32.xlu0 %v10870_v23, %s11960_s29 }
 0x754   : > { %4046 = vrot.lane.b32.xlu1 %v4000_v4, %s11975_s30 }
 0x759   : > { %3929 = vrot.lane.b32.xlu2 %v10878_v29, %s11960_s29 }
 0x75b   : > { %v3910_v42 = vpop.permute.xlu2 %3909  ;;  %4159 = vrot.lane.b32.xlu0 %v4113_v24, %s11976_s12 }
 0x75c   : > { %4161 = vrot.lane.b32.xlu1 %v4114_v32, %s11976_s12  ;;  %3956 = vst.msk [vmem:[#allocation5 + $0x18] sm:$0xf] %vm3953_vm13, %v3910_v42 }
 0x761   : > { %4044 = vrot.lane.b32.xlu2 %v3999_v56, %s11975_s30 }
 0x763   : > { %v4023_v36 = vpop.permute.xlu2 %4022  ;;  %4294 = vrot.lane.b32.xlu0 %v4261_v37, %s11960_s29 }
 0x764   : > { %4404 = vrot.lane.b32.xlu1 %v10694_v34, %s11975_s30  ;;  %4069 = vst.msk [vmem:[#allocation5 + $0x18] sm:$0xf] %vm4066_vm14, %v4023_v36  ;;  %v3985_v34 = vld [vmem:[#allocation4 + $0x15a] sm:$0xff]  ;;  %v4253_v36 = vld [vmem:[#allocation4 + $0xe2] sm:$0xff] }
 0x765   : > { %v4136_v1 = vpop.permute.xlu0 %4135  ;;  %v4001_v39 = vpack.c.bf16 %v3985_v34, %v3985_v34  ;;  %v4269_v5 = vpack.c.bf16 %v4253_v36, %v4253_v36 }
 0x766   : > { %4182 = vst.msk [vmem:[#allocation5 + $0x18] sm:$0xf] %vm4179_vm15, %v4136_v1  ;;  %v4138_v11 = vpop.permute.xlu1 %4137 }
 0x769   : > { %3933 = vrot.lane.b32.xlu2 %v10891_v45, %s11960_s29 }
 0x76b   : > { %v4025_v12 = vpop.permute.xlu2 %4024  ;;  %4516 = vrot.lane.b32.xlu0 %v10683_v61, %s11976_s12 }
 0x76c   : > { %4518 = vrot.lane.b32.xlu1 %v10491_v22, %s11976_s12  ;;  %4070 = vst.msk [vmem:[#allocation5 + $0x24] sm:$0xf] %vm4066_vm14, %v4025_v12  ;;  %v4244_v22 = vld [vmem:[#allocation4 + $0x1a] sm:$0xff] }
 0x76d   : > { %4183 = vst.msk [vmem:[#allocation5 + $0x24] sm:$0xf] %vm4179_vm15, %v4138_v11  ;;  %v7557_v33 = vld [vmem:[#allocation5 + $0x18] sm:$0xf]  ;;  %v4260_v7 = vpack.c.bf16 %v4244_v22, %v4244_v22 }
 0x771   : > { %4048 = vrot.lane.b32.xlu2 %v4001_v39, %s11975_s30 }
 0x773   : > { %v3914_v18 = vpop.permute.xlu2 %3913  ;;  %4298 = vrot.lane.b32.xlu0 %v4263_v27, %s11960_s29 }
 0x774   : > { %4408 = vrot.lane.b32.xlu1 %v10703_v53, %s11975_s30  ;;  %3958 = vst.msk [vmem:[#allocation5 + $0x30] sm:$0xf] %vm3953_vm13, %v3914_v18  ;;  %v7997_v61 = vld [vmem:[#allocation5 + $0x20] sm:$0xf0] }
 0x775   : > { %v3916_v0 = vpop.permute.xlu0 %3915  ;;  %v7558_v48 = vor.u32 %v7997_v61, %v7557_v33  ;;  %v4255_v18 = vld [vmem:[#allocation4 + $0x112] sm:$0xff]  ;;  %v4252_v61 = vld [vmem:[#allocation4 + $0xda] sm:$0xff] }
 0x776   : > { %v4027_v58 = vpop.permute.xlu1 %4026  ;;  %3959 = vst.msk [vmem:[#allocation5 + $0x3c] sm:$0xf] %vm3953_vm13, %v3916_v0  ;;  %v8030_v0 = vld [vmem:[%s11979_s2 + $0x68] sm:$0xff] }
 0x777   : > { %4071 = vst.msk [vmem:[#allocation5 + $0x30] sm:$0xf] %vm4066_vm14, %v4027_v58  ;;  %4961 = vmatmul.bf16.gmra.mxu2 %v7558_v48 }
 0x779   : > { %4292 = vrot.lane.b32.xlu2 %v4260_v7, %s11960_s29 }
 0x77b   : > { %v4029_v19 = vpop.permute.xlu2 %4028  ;;  %4520 = vrot.lane.b32.xlu0 %v10768_v40, %s11976_s12 }
 0x77c   : > { %4522 = vrot.lane.b32.xlu1 %v10691_v54, %s11976_s12  ;;  %4072 = vst.msk [vmem:[#allocation5 + $0x3c] sm:$0xf] %vm4066_vm14, %v4029_v19  ;;  %v4246_v54 = vld [vmem:[#allocation4 + $0x4a] sm:$0xff] }
 0x77d   : > { %v4140_v53 = vpop.permute.xlu0 %4139  ;;  %v4262_v28 = vpack.c.bf16 %v4246_v54, %v4246_v54 }
 0x77e   : > { %v4142_v50 = vpop.permute.xlu1 %4141  ;;  %4184 = vst.msk [vmem:[#allocation5 + $0x30] sm:$0xf] %vm4179_vm15, %v4140_v53 }
 0x77f   : > { %4185 = vst.msk [vmem:[#allocation5 + $0x3c] sm:$0xf] %vm4179_vm15, %v4142_v50  ;;  %v8029_v50 = vld [vmem:[%s11979_s2 + $0x60] sm:$0xff] }
 0x781   : > { %4406 = vrot.lane.b32.xlu2 %v10700_v30, %s11975_s30 }
 0x783   : > { %v3918_v44 = vpop.permute.xlu2 %3917  ;;  %4302 = vrot.lane.b32.xlu0 %v4265_v16, %s11960_s29  ;;  %v8028_v16 = vld [vmem:[%s11979_s2 + $0x58] sm:$0xff] }
 0x784   : > { %4412 = vrot.lane.b32.xlu1 %v10710_v15, %s11975_s30  ;;  %3960 = vst.msk [vmem:[#allocation5 + $0x48] sm:$0xf] %vm3953_vm13, %v3918_v44 }
 0x785   : > { %v3920_v40 = vpop.permute.xlu0 %3919  ;;  %v7569_v17 = vld [vmem:[#allocation5 + $0x30] sm:$0xf] }
 0x786   : > { %v4031_v4 = vpop.permute.xlu1 %4030  ;;  %3961 = vst.msk [vmem:[#allocation5 + $0x54] sm:$0xf] %vm3953_vm13, %v3920_v40  ;;  %v8000_v63 = vld [vmem:[#allocation5 + $0x38] sm:$0xf0]  ;;  %v4257_v40 = vld [vmem:[#allocation4 + $0x142] sm:$0xff] }
 0x787   : > { %4073 = vst.msk [vmem:[#allocation5 + $0x48] sm:$0xf] %vm4066_vm14, %v4031_v4  ;;  %v7570_v30 = vor.u32 %v8000_v63, %v7569_v17  ;;  %v4254_v17 = vld [vmem:[#allocation4 + $0x10a] sm:$0xff]  ;;  %v8026_v63 = vld [vmem:[%s11979_s2 + $0x48] sm:$0xff] }
 0x789   : > { %4296 = vrot.lane.b32.xlu2 %v4262_v28, %s11960_s29  ;;  %4966 = vmatmul.bf16.gmra.mxu2 %v7570_v30 }
 0x78b   : > { %v4033_v41 = vpop.permute.xlu2 %4032  ;;  %4524 = vrot.lane.b32.xlu0 %v10796_v43, %s11976_s12 }
 0x78c   : > { %4526 = vrot.lane.b32.xlu1 %v10754_v26, %s11976_s12  ;;  %4074 = vst.msk [vmem:[#allocation5 + $0x54] sm:$0xf] %vm4066_vm14, %v4033_v41  ;;  %v4248_v26 = vld [vmem:[#allocation4 + $0x7a] sm:$0xff] }
 0x78d   : > { %v4144_v15 = vpop.permute.xlu0 %4143  ;;  %v4264_v55 = vpack.c.bf16 %v4248_v26, %v4248_v26  ;;  %v4259_v26 = vld [vmem:[#allocation4 + $0x172] sm:$0xff] }
 0x78e   : > { %v4146_v49 = vpop.permute.xlu1 %4145  ;;  %4186 = vst.msk [vmem:[#allocation5 + $0x48] sm:$0xf] %vm4179_vm15, %v4144_v15  ;;  %v4270_v15 = vpack.c.bf16 %v4254_v17, %v4254_v17 }
 0x78f   : > { %4187 = vst.msk [vmem:[#allocation5 + $0x54] sm:$0xf] %vm4179_vm15, %v4146_v49 }
 0x791   : > { %4410 = vrot.lane.b32.xlu2 %v10706_v59, %s11975_s30 }
 0x793   : > { %v3922_v24 = vpop.permute.xlu2 %3921  ;;  %4306 = vrot.lane.b32.xlu0 %v4267_v57, %s11960_s29 }
 0x794   : > { %4416 = vrot.lane.b32.xlu1 %v10718_v3, %s11975_s30  ;;  %3962 = vst.msk [vmem:[#allocation5 + $0x60] sm:$0xf] %vm3953_vm13, %v3922_v24 }
 0x795   : > { %v3924_v43 = vpop.permute.xlu0 %3923  ;;  %v7581_v42 = vld [vmem:[#allocation5 + $0x48] sm:$0xf] }
 0x796   : > { %v4035_v32 = vpop.permute.xlu1 %4034  ;;  %3963 = vst.msk [vmem:[#allocation5 + $0x6c] sm:$0xf] %vm3953_vm13, %v3924_v43  ;;  %v8003_v21 = vld [vmem:[#allocation5 + $0x50] sm:$0xf0] }
 0x797   : > { %4075 = vst.msk [vmem:[#allocation5 + $0x60] sm:$0xf] %vm4066_vm14, %v4035_v32  ;;  %v7582_v59 = vor.u32 %v8003_v21, %v7581_v42  ;;  %v4370_v43 = vld [vmem:[#allocation4 + $0x180] sm:$0xff]  ;;  %v4275_v32 = vpack.c.bf16 %v4259_v26, %v4259_v26 }
 0x798   : > { %v4386_v42 = vpack.c.bf16 %v4370_v43, %v4370_v43  ;;  %v4256_v21 = vld [vmem:[#allocation4 + $0x13a] sm:$0xff] }
 0x799   : > { %4300 = vrot.lane.b32.xlu2 %v4264_v55, %s11960_s29  ;;  %4971 = vmatmul.bf16.gmra.mxu2 %v7582_v59  ;;  %v4272_v36 = vpack.c.bf16 %v4256_v21, %v4256_v21 }
 0x79b   : > { %v4037_v56 = vpop.permute.xlu2 %4036  ;;  %4528 = vrot.lane.b32.xlu0 %v10827_v35, %s11976_s12 }
 0x79c   : > { %4530 = vrot.lane.b32.xlu1 %v10785_v20, %s11976_s12  ;;  %4076 = vst.msk [vmem:[#allocation5 + $0x6c] sm:$0xf] %vm4066_vm14, %v4037_v56  ;;  %v4250_v20 = vld [vmem:[#allocation4 + $0xaa] sm:$0xff] }
 0x79d   : > { %v4148_v3 = vpop.permute.xlu0 %4147  ;;  %v4266_v13 = vpack.c.bf16 %v4250_v20, %v4250_v20 }
 0x79e   : > { %v4150_v37 = vpop.permute.xlu1 %4149  ;;  %4188 = vst.msk [vmem:[#allocation5 + $0x60] sm:$0xf] %vm4179_vm15, %v4148_v3  ;;  %v4483_v3 = vld [vmem:[#allocation4 + $0x189] sm:$0xff] }
 0x79f   : > { %4189 = vst.msk [vmem:[#allocation5 + $0x6c] sm:$0xf] %vm4179_vm15, %v4150_v37  ;;  %v4499_v20 = vpack.c.bf16 %v4483_v3, %v4483_v3 }
 0x7a1   : > { %4414 = vrot.lane.b32.xlu2 %v10714_v9, %s11975_s30 }
 0x7a3   : > { %v3926_v1 = vpop.permute.xlu2 %3925  ;;  %4310 = vrot.lane.b32.xlu0 %v4269_v5, %s11960_s29 }
 0x7a4   : > { %4420 = vrot.lane.b32.xlu1 %v10727_v10, %s11975_s30  ;;  %3964 = vst.msk [vmem:[#allocation5 + $0x78] sm:$0xf] %vm3953_vm13, %v3926_v1  ;;  %v8032_v10 = vld [vmem:[%s11979_s2 + $0x78] sm:$0xff] }
 0x7a5   : > { %v3928_v35 = vpop.permute.xlu0 %3927  ;;  %v7593_v12 = vld [vmem:[#allocation5 + $0x60] sm:$0xf]  ;;  %4997 = vmatpush.bf16.msra.mxu3 %v8032_v10 }
 0x7a6   : > { %v4039_v11 = vpop.permute.xlu1 %4038  ;;  %3965 = vst.msk [vmem:[#allocation5 + $0x84] sm:$0xf] %vm3953_vm13, %v3928_v35  ;;  %v8006_v34 = vld [vmem:[#allocation5 + $0x68] sm:$0xf0] }
 0x7a7   : > { %4077 = vst.msk [vmem:[#allocation5 + $0x78] sm:$0xf] %vm4066_vm14, %v4039_v11  ;;  %v7594_v9 = vor.u32 %v8006_v34, %v7593_v12 }
 0x7a9   : > { %4304 = vrot.lane.b32.xlu2 %v4266_v13, %s11960_s29  ;;  %4976 = vmatmul.bf16.gmra.mxu2 %v7594_v9  ;;  %v4258_v13 = vld [vmem:[#allocation4 + $0x16a] sm:$0xff] }
 0x7ab   : > { %v4041_v39 = vpop.permute.xlu2 %4040  ;;  %4532 = vrot.lane.b32.xlu0 %v10855_v51, %s11976_s12  ;;  %v4271_v51 = vpack.c.bf16 %v4255_v18, %v4255_v18 }
 0x7ac   : > { %4534 = vrot.lane.b32.xlu1 %v10813_v6, %s11976_s12  ;;  %4078 = vst.msk [vmem:[#allocation5 + $0x84] sm:$0xf] %vm4066_vm14, %v4041_v39  ;;  %v8031_v6 = vld [vmem:[%s11979_s2 + $0x70] sm:$0xff] }
 0x7ad   : > { %v4152_v27 = vpop.permute.xlu0 %4151  ;;  %4998 = vmatpush.bf16.msra.mxu3 %v8031_v6  ;;  %v4274_v6 = vpack.c.bf16 %v4258_v13, %v4258_v13 }
 0x7ae   : > { %v4154_v33 = vpop.permute.xlu1 %4153  ;;  %4190 = vst.msk [vmem:[#allocation5 + $0x78] sm:$0xf] %vm4179_vm15, %v4152_v27  ;;  %v7553_v27 = vld [vmem:[#allocation5 + $0x8] sm:$0xf] }
 0x7af   : > { %4191 = vst.msk [vmem:[#allocation5 + $0x84] sm:$0xf] %vm4179_vm15, %v4154_v33  ;;  %v7995_v33 = vld [vmem:[#allocation5 + $0x10] sm:$0xf0] }
 0x7b1   : > { %4418 = vrot.lane.b32.xlu2 %v10723_v47, %s11975_s30  ;;  %v8034_v47 = vld [vmem:[%s11979_s2 + $0x88] sm:$0xff]  ;;  %4999 = vmatpush.bf16.msra.mxu3 %v8030_v0  ;;  %v4371_v0 = vld [vmem:[#allocation4 + $0x188] sm:$0xff] }
 0x7b2   : > { %5052 = vmatpush.bf16.msrb.mxu2 %v8034_v47 }
 0x7b3   : > { %v3930_v22 = vpop.permute.xlu2 %3929  ;;  %4314 = vrot.lane.b32.xlu0 %v4271_v51, %s11960_s29 }
 0x7b4   : > { %4424 = vrot.lane.b32.xlu1 %v10737_v46, %s11975_s30  ;;  %3966 = vst.msk [vmem:[#allocation5 + $0x90] sm:$0xf] %vm3953_vm13, %v3930_v22  ;;  %v4268_v46 = vpack.c.bf16 %v4252_v61, %v4252_v61  ;;  %v7554_v61 = vor.u32 %v7995_v33, %v7553_v27 }
 0x7b5   : > { %v3932_v58 = vpop.permute.xlu0 %3931  ;;  %v7605_v7 = vld [vmem:[#allocation5 + $0x78] sm:$0xf]  ;;  %5000 = vmatpush.bf16.msra.mxu3 %v8029_v50 }
 0x7b6   : > { %v4043_v48 = vpop.permute.xlu1 %4042  ;;  %3967 = vst.msk [vmem:[#allocation5 + $0x9c] sm:$0xf] %vm3953_vm13, %v3932_v58  ;;  %v8009_v19 = vld [vmem:[#allocation5 + $0x80] sm:$0xf0] }
 0x7b7   : > { %4079 = vst.msk [vmem:[#allocation5 + $0x90] sm:$0xf] %vm4066_vm14, %v4043_v48  ;;  %v7606_v53 = vor.u32 %v8009_v19, %v7605_v7  ;;  %v4387_v48 = vpack.c.bf16 %v4371_v0, %v4371_v0 }
 0x7b9   : > { %4308 = vrot.lane.b32.xlu2 %v4268_v46, %s11960_s29  ;;  %4981 = vmatmul.bf16.gmra.mxu2 %v7606_v53 }
 0x7ba   : > { %5001 = vmatpush.bf16.msra.mxu3 %v8028_v16  ;;  %v7998_v16 = vld [vmem:[#allocation5 + $0x28] sm:$0xf0] }
 0x7bb   : > { %v4045_v52 = vpop.permute.xlu2 %4044  ;;  %4536 = vrot.lane.b32.xlu0 %v10878_v29, %s11976_s12  ;;  %v4273_v29 = vpack.c.bf16 %v4257_v40, %v4257_v40 }
 0x7bc   : > { %4538 = vrot.lane.b32.xlu1 %v10843_v62, %s11976_s12  ;;  %4080 = vst.msk [vmem:[#allocation5 + $0x9c] sm:$0xf] %vm4066_vm14, %v4045_v52  ;;  %v8027_v62 = vld [vmem:[%s11979_s2 + $0x50] sm:$0xff]  ;;  %v7565_v52 = vld [vmem:[#allocation5 + $0x20] sm:$0xf] }
 0x7bd   : > { %v4156_v44 = vpop.permute.xlu0 %4155  ;;  %v7566_v40 = vor.u32 %v7998_v16, %v7565_v52 }
 0x7be   : > { %v4158_v54 = vpop.permute.xlu1 %4157  ;;  %4192 = vst.msk [vmem:[#allocation5 + $0x90] sm:$0xf] %vm4179_vm15, %v4156_v44  ;;  %5002 = vmatpush.bf16.msra.mxu3 %v8027_v62 }
 0x7bf   : > { %4193 = vst.msk [vmem:[#allocation5 + $0x9c] sm:$0xf] %vm4179_vm15, %v4158_v54 }
 0x7c1   : > { %4422 = vrot.lane.b32.xlu2 %v10733_v2, %s11975_s30 }
 0x7c2   : > { %5003 = vmatpush.bf16.msra.mxu3 %v8026_v63 }
 0x7c3   : > { %v3934_v4 = vpop.permute.xlu2 %3933  ;;  %4318 = vrot.lane.b32.xlu0 %v4273_v29, %s11960_s29 }
 0x7c4   : > { %4428 = vrot.lane.b32.xlu1 %v10745_v8, %s11975_s30  ;;  %3968 = vst.msk [vmem:[#allocation5 + $0xa8] sm:$0xf] %vm3953_vm13, %v3934_v4  ;;  %v8025_v8 = vld [vmem:[%s11979_s2 + $0x40] sm:$0xff] }
 0x7c5   : > { %v3936_v2 = vpop.permute.xlu0 %3935  ;;  %v7617_v30 = vld [vmem:[#allocation5 + $0x90] sm:$0xf] }
 0x7c6   : > { %v4047_v28 = vpop.permute.xlu1 %4046  ;;  %3969 = vst.msk [vmem:[#allocation5 + $0xb4] sm:$0xf] %vm3953_vm13, %v3936_v2  ;;  %v8012_v41 = vld [vmem:[#allocation5 + $0x98] sm:$0xf0]  ;;  %5004 = vmatpush.bf16.msra.mxu3 %v8025_v8 }
 0x7c7   : > { %4081 = vst.msk [vmem:[#allocation5 + $0xa8] sm:$0xf] %vm4066_vm14, %v4047_v28  ;;  %v7618_v49 = vor.u32 %v8012_v41, %v7617_v30 }
 0x7c9   : > { %4312 = vrot.lane.b32.xlu2 %v4270_v15, %s11960_s29  ;;  %4986 = vmatmul.bf16.gmra.mxu2 %v7618_v49  ;;  %v7577_v15 = vld [vmem:[#allocation5 + $0x38] sm:$0xf]  ;;  %v8001_v49 = vld [vmem:[#allocation5 + $0x40] sm:$0xf0] }
 0x7cb   : > { %v4049_v25 = vpop.permute.xlu2 %4048  ;;  %4540 = vrot.lane.b32.xlu0 %v10891_v45, %s11976_s12 }
 0x7cc   : > { %4542 = vrot.lane.b32.xlu1 %v10870_v23, %s11976_s12  ;;  %4082 = vst.msk [vmem:[#allocation5 + $0xb4] sm:$0xf] %vm4066_vm14, %v4049_v25  ;;  %v8033_v23 = vld [vmem:[%s11979_s2 + $0x80] sm:$0xff] }
 0x7cd   : > { %v4160_v57 = vpop.permute.xlu0 %4159  ;;  %5053 = vmatpush.bf16.msrb.mxu2 %v8033_v23 }
 0x7ce   : > { %v4162_v24 = vpop.permute.xlu1 %4161  ;;  %4194 = vst.msk [vmem:[#allocation5 + $0xa8] sm:$0xf] %vm4179_vm15, %v4160_v57  ;;  %v7578_v57 = vor.u32 %v8001_v49, %v7577_v15 }
 0x7cf   : > { %4195 = vst.msk [vmem:[#allocation5 + $0xb4] sm:$0xf] %vm4179_vm15, %v4162_v24 }
 0x7d1   : > { %4426 = vrot.lane.b32.xlu2 %v10741_v38, %s11975_s30  ;;  %v4482_v38 = vld [vmem:[#allocation4 + $0x181] sm:$0xff] }
 0x7d2   : > { %v4498_v1 = vpack.c.bf16 %v4482_v38, %v4482_v38 }
 0x7d3   : > { %v4293_v45 = vpop.permute.xlu2 %4292  ;;  %4322 = vrot.lane.b32.xlu0 %v4275_v32, %s11960_s29 }
 0x7d4   : > { %4432 = vrot.lane.b32.xlu1 %v4386_v42, %s11975_s30  ;;  %4340 = vst.msk [vmem:[#allocation5 + $0x4] sm:$0xf] %vm3953_vm13, %v4293_v45 }
 0x7d5   : > { %v4295_v55 = vpop.permute.xlu0 %4294  ;;  %v7629_v56 = vld [vmem:[#allocation5 + $0xa8] sm:$0xf]  ;;  %v11043_v51 = vpop.f32.mrf.mxu2 }
 0x7d6   : > { %v4405_v59 = vpop.permute.xlu1 %4404  ;;  %4341 = vst.msk [vmem:[#allocation5 + $0x10] sm:$0xf] %vm3953_vm13, %v4295_v55  ;;  %v8015_v37 = vld [vmem:[#allocation5 + $0xb0] sm:$0xf0] }
 0x7d7   : > { %4452 = vst.msk [vmem:[#allocation5 + $0x4] sm:$0xf] %vm4066_vm14, %v4405_v59  ;;  %v7630_v5 = vor.u32 %v8015_v37, %v7629_v56  ;;  %v7589_v59 = vld [vmem:[#allocation5 + $0x50] sm:$0xf]  ;;  %v8004_v56 = vld [vmem:[#allocation5 + $0x58] sm:$0xf0] }
 0x7d8   : > { %v7590_v37 = vor.u32 %v8004_v56, %v7589_v59 }
 0x7d9   : > { %4316 = vrot.lane.b32.xlu2 %v4272_v36, %s11960_s29  ;;  %4991 = vmatmul.bf16.gmra.mxu2 %v7630_v5 }
 0x7db   : > { %v4407_v35 = vpop.permute.xlu2 %4406  ;;  %4544 = vrot.lane.b32.xlu0 %v4498_v1, %s11976_s12 }
 0x7dc   : > { %4546 = vrot.lane.b32.xlu1 %v4499_v20, %s11976_s12  ;;  %4453 = vst.msk [vmem:[#allocation5 + $0x10] sm:$0xf] %vm4066_vm14, %v4407_v35 }
 0x7dd   : > { %v4517_v11 = vpop.permute.xlu0 %4516  ;;  %v11051_v7 = vpop.f32.mrf.mxu2 }
 0x7de   : > { %v4519_v12 = vpop.permute.xlu1 %4518  ;;  %4564 = vst.msk [vmem:[#allocation5 + $0x4] sm:$0xf] %vm4179_vm15, %v4517_v11 }
 0x7df   : > { %4565 = vst.msk [vmem:[#allocation5 + $0x10] sm:$0xf] %vm4179_vm15, %v4519_v12 }
 0x7e1   : > { %4430 = vrot.lane.b32.xlu2 %v10749_v60, %s11975_s30 }
 0x7e3   : > { %v4297_v34 = vpop.permute.xlu2 %4296 }
 0x7e4   : > { %4342 = vst.msk [vmem:[#allocation5 + $0x1c] sm:$0xf] %vm3953_vm13, %v4297_v34 }
 0x7e5   : > { %v4299_v9 = vpop.permute.xlu0 %4298  ;;  %v7993_v10 = vld [vmem:[#allocation5 + $0x4] sm:$0xf] }
 0x7e6   : > { %v4409_v39 = vpop.permute.xlu1 %4408  ;;  %4343 = vst.msk [vmem:[#allocation5 + $0x28] sm:$0xf] %vm3953_vm13, %v4299_v9  ;;  %v7547_v18 = vld [vmem:[#allocation5 + $0xc] sm:$0xf0]  ;;  %v7601_v9 = vld [vmem:[#allocation5 + $0x68] sm:$0xf] }
 0x7e7   : > { %4454 = vst.msk [vmem:[#allocation5 + $0x1c] sm:$0xf] %vm4066_vm14, %v4409_v39  ;;  %v7550_v22 = vor.u32 %v7993_v10, %v7547_v18  ;;  %v8007_v39 = vld [vmem:[#allocation5 + $0x70] sm:$0xf0] }
 0x7e8   : > { %v7602_v33 = vor.u32 %v8007_v39, %v7601_v9 }
 0x7e9   : > { %4320 = vrot.lane.b32.xlu2 %v4274_v6, %s11960_s29  ;;  %5005 = vmatmul.bf16.vlgmr.msra.gmra.mxu3 %v7550_v22 }
 0x7ea   : > { %7711 = vmatmul.msk.bf16.vlgmr.msrb.gmra.mxu2 %vm3700_vm11, %v7554_v61 }
 0x7eb   : > { %v4411_v60 = vpop.permute.xlu2 %4410 }
 0x7ec   : > { %4455 = vst.msk [vmem:[#allocation5 + $0x28] sm:$0xf] %vm4066_vm14, %v4411_v60 }
 0x7ed   : > { %v4521_v47 = vpop.permute.xlu0 %4520 }
 0x7ee   : > { %v4523_v58 = vpop.permute.xlu1 %4522  ;;  %4566 = vst.msk [vmem:[#allocation5 + $0x1c] sm:$0xf] %vm4179_vm15, %v4521_v47 }
 0x7ef   : > { %4567 = vst.msk [vmem:[#allocation5 + $0x28] sm:$0xf] %vm4179_vm15, %v4523_v58 }
 0x7f1   : > { %4434 = vrot.lane.b32.xlu2 %v4387_v48, %s11975_s30 }
 0x7f3   : > { %v4301_v19 = vpop.permute.xlu2 %4300 }
 0x7f4   : > { %4344 = vst.msk [vmem:[#allocation5 + $0x34] sm:$0xf] %vm3953_vm13, %v4301_v19  ;;  %v7613_v19 = vld [vmem:[#allocation5 + $0x80] sm:$0xf] }
 0x7f5   : > { %v4303_v46 = vpop.permute.xlu0 %4302  ;;  %v7996_v50 = vld [vmem:[#allocation5 + $0x1c] sm:$0xf] }
 0x7f6   : > { %v4413_v53 = vpop.permute.xlu1 %4412  ;;  %4345 = vst.msk [vmem:[#allocation5 + $0x40] sm:$0xf] %vm3953_vm13, %v4303_v46  ;;  %v7559_v44 = vld [vmem:[#allocation5 + $0x24] sm:$0xf0]  ;;  %v8010_v46 = vld [vmem:[#allocation5 + $0x88] sm:$0xf0] }
 0x7f7   : > { %4456 = vst.msk [vmem:[#allocation5 + $0x34] sm:$0xf] %vm4066_vm14, %v4413_v53  ;;  %v7562_v54 = vor.u32 %v7996_v50, %v7559_v44  ;;  %v7614_v52 = vor.u32 %v8010_v46, %v7613_v19 }
 0x7f9   : > { %5010 = vmatmul.bf16.gmra.mxu3 %v7562_v54 }
 0x7fa   : > { %7712 = vmatmul.msk.bf16.gmra.mxu2 %vm3700_vm11, %v7566_v40  ;;  %v11058_v29 = vpop.f32.mrf.mxu2 }
 0x7fb   : > { %v4415_v62 = vpop.permute.xlu2 %4414 }
 0x7fc   : > { %4457 = vst.msk [vmem:[#allocation5 + $0x40] sm:$0xf] %vm4066_vm14, %v4415_v62 }
 0x7fd   : > { %v4525_v4 = vpop.permute.xlu0 %4524 }
 0x7fe   : > { %v4527_v17 = vpop.permute.xlu1 %4526  ;;  %4568 = vst.msk [vmem:[#allocation5 + $0x34] sm:$0xf] %vm4179_vm15, %v4525_v4 }
 0x7ff   : > { %4569 = vst.msk [vmem:[#allocation5 + $0x40] sm:$0xf] %vm4179_vm15, %v4527_v17 }
 0x802   : > { %v11063_v63 = vpop.f32.mrf.mxu2 }
 0x803   : > { %v4305_v2 = vpop.permute.xlu2 %4304 }
 0x804   : > { %4346 = vst.msk [vmem:[#allocation5 + $0x4c] sm:$0xf] %vm3953_vm13, %v4305_v2 }
 0x805   : > { %v4307_v28 = vpop.permute.xlu0 %4306  ;;  %v7999_v41 = vld [vmem:[#allocation5 + $0x34] sm:$0xf] }
 0x806   : > { %v4417_v30 = vpop.permute.xlu1 %4416  ;;  %4347 = vst.msk [vmem:[#allocation5 + $0x58] sm:$0xf] %vm3953_vm13, %v4307_v28  ;;  %v7571_v8 = vld [vmem:[#allocation5 + $0x3c] sm:$0xf0] }
 0x807   : > { %4458 = vst.msk [vmem:[#allocation5 + $0x4c] sm:$0xf] %vm4066_vm14, %v4417_v30  ;;  %v7574_v25 = vor.u32 %v7999_v41, %v7571_v8  ;;  %v7625_v30 = vld [vmem:[#allocation5 + $0x98] sm:$0xf]  ;;  %v8013_v41 = vld [vmem:[#allocation5 + $0xa0] sm:$0xf0] }
 0x808   : > { %v7626_v8 = vor.u32 %v8013_v41, %v7625_v30 }
 0x809   : > { %5015 = vmatmul.bf16.gmra.mxu3 %v7574_v25 }
 0x80a   : > { %7713 = vmatmul.msk.bf16.gmra.mxu2 %vm3700_vm11, %v7578_v57 }
 0x80b   : > { %v4419_v24 = vpop.permute.xlu2 %4418 }
 0x80c   : > { %4459 = vst.msk [vmem:[#allocation5 + $0x58] sm:$0xf] %vm4066_vm14, %v4419_v24  ;;  %v11070_v26 = vpop.f32.mrf.mxu2 }
 0x80d   : > { %v4529_v43 = vpop.permute.xlu0 %4528 }
 0x80e   : > { %v4531_v32 = vpop.permute.xlu1 %4530  ;;  %4570 = vst.msk [vmem:[#allocation5 + $0x4c] sm:$0xf] %vm4179_vm15, %v4529_v43 }
 0x80f   : > { %4571 = vst.msk [vmem:[#allocation5 + $0x58] sm:$0xf] %vm4179_vm15, %v4531_v32 }
 0x813   : > { %v4309_v42 = vpop.permute.xlu2 %4308 }
 0x814   : > { %4348 = vst.msk [vmem:[#allocation5 + $0x64] sm:$0xf] %vm3953_vm13, %v4309_v42  ;;  %v11075_v23 = vpop.f32.mrf.mxu2 }
 0x815   : > { %v4311_v45 = vpop.permute.xlu0 %4310  ;;  %v8002_v55 = vld [vmem:[#allocation5 + $0x4c] sm:$0xf] }
 0x816   : > { %v4421_v21 = vpop.permute.xlu1 %4420  ;;  %4349 = vst.msk [vmem:[#allocation5 + $0x70] sm:$0xf] %vm3953_vm13, %v4311_v45  ;;  %v7583_v38 = vld [vmem:[#allocation5 + $0x54] sm:$0xf0]  ;;  %v7637_v45 = vld [vmem:[#allocation5 + $0xb0] sm:$0xf] }
 0x817   : > { %4460 = vst.msk [vmem:[#allocation5 + $0x64] sm:$0xf] %vm4066_vm14, %v4421_v21  ;;  %v7586_v3 = vor.u32 %v8002_v55, %v7583_v38  ;;  %v8016_v21 = vld [vmem:[#allocation5 + $0xb8] sm:$0xf0] }
 0x818   : > { %v7638_v56 = vor.u32 %v8016_v21, %v7637_v45 }
 0x819   : > { %5020 = vmatmul.bf16.gmra.mxu3 %v7586_v3 }
 0x81a   : > { %7714 = vmatmul.msk.bf16.gmra.mxu2 %vm3700_vm11, %v7590_v37 }
 0x81b   : > { %v4423_v36 = vpop.permute.xlu2 %4422 }
 0x81c   : > { %4461 = vst.msk [vmem:[#allocation5 + $0x70] sm:$0xf] %vm4066_vm14, %v4423_v36  ;;  %v11081_v5 = vpop.f32.mrf.mxu2 }
 0x81d   : > { %v4533_v1 = vpop.permute.xlu0 %4532 }
 0x81e   : > { %v4535_v20 = vpop.permute.xlu1 %4534  ;;  %4572 = vst.msk [vmem:[#allocation5 + $0x64] sm:$0xf] %vm4179_vm15, %v4533_v1 }
 0x81f   : > { %4573 = vst.msk [vmem:[#allocation5 + $0x70] sm:$0xf] %vm4179_vm15, %v4535_v20 }
 0x823   : > { %v4313_v35 = vpop.permute.xlu2 %4312 }
 0x824   : > { %4350 = vst.msk [vmem:[#allocation5 + $0x7c] sm:$0xf] %vm3953_vm13, %v4313_v35  ;;  %v11086_v11 = vpop.f32.mrf.mxu2 }
 0x825   : > { %v4315_v12 = vpop.permute.xlu0 %4314  ;;  %v8005_v13 = vld [vmem:[#allocation5 + $0x64] sm:$0xf] }
 0x826   : > { %v4425_v34 = vpop.permute.xlu1 %4424  ;;  %4351 = vst.msk [vmem:[#allocation5 + $0x88] sm:$0xf] %vm3953_vm13, %v4315_v12  ;;  %v7595_v10 = vld [vmem:[#allocation5 + $0x6c] sm:$0xf0] }
 0x827   : > { %4462 = vst.msk [vmem:[#allocation5 + $0x7c] sm:$0xf] %vm4066_vm14, %v4425_v34  ;;  %v7598_v27 = vor.u32 %v8005_v13, %v7595_v10 }
 0x829   : > { %5025 = vmatmul.bf16.gmra.mxu3 %v7598_v27 }
 0x82a   : > { %7715 = vmatmul.msk.bf16.gmra.mxu2 %vm3700_vm11, %v7602_v33 }
 0x82b   : > { %v4427_v18 = vpop.permute.xlu2 %4426 }
 0x82c   : > { %4463 = vst.msk [vmem:[#allocation5 + $0x88] sm:$0xf] %vm4066_vm14, %v4427_v18  ;;  %v11092_v6 = vpop.f32.mrf.mxu2 }
 0x82d   : > { %v4537_v22 = vpop.permute.xlu0 %4536 }
 0x82e   : > { %v4539_v61 = vpop.permute.xlu1 %4538  ;;  %4574 = vst.msk [vmem:[#allocation5 + $0x7c] sm:$0xf] %vm4179_vm15, %v4537_v22 }
 0x82f   : > { %4575 = vst.msk [vmem:[#allocation5 + $0x88] sm:$0xf] %vm4179_vm15, %v4539_v61 }
 0x833   : > { %v4317_v60 = vpop.permute.xlu2 %4316 }
 0x834   : > { %4352 = vst.msk [vmem:[#allocation5 + $0x94] sm:$0xf] %vm3953_vm13, %v4317_v60  ;;  %v11097_v0 = vpop.f32.mrf.mxu2 }
 0x835   : > { %v4319_v47 = vpop.permute.xlu0 %4318  ;;  %v8008_v48 = vld [vmem:[#allocation5 + $0x7c] sm:$0xf] }
 0x836   : > { %v4429_v58 = vpop.permute.xlu1 %4428  ;;  %4353 = vst.msk [vmem:[#allocation5 + $0xa0] sm:$0xf] %vm3953_vm13, %v4319_v47  ;;  %v7607_v53 = vld [vmem:[#allocation5 + $0x84] sm:$0xf0] }
 0x837   : > { %4464 = vst.msk [vmem:[#allocation5 + $0x94] sm:$0xf] %vm4066_vm14, %v4429_v58  ;;  %v7610_v50 = vor.u32 %v8008_v48, %v7607_v53 }
 0x839   : > { %5030 = vmatmul.bf16.gmra.mxu3 %v7610_v50 }
 0x83a   : > { %7716 = vmatmul.msk.bf16.gmra.mxu2 %vm3700_vm11, %v7614_v52 }
 0x83b   : > { %v4431_v16 = vpop.permute.xlu2 %4430 }
 0x83c   : > { %4465 = vst.msk [vmem:[#allocation5 + $0xa0] sm:$0xf] %vm4066_vm14, %v4431_v16  ;;  %v11103_v44 = vpop.f32.mrf.mxu2 }
 0x83d   : > { %v4541_v54 = vpop.permute.xlu0 %4540 }
 0x83e   : > { %v4543_v40 = vpop.permute.xlu1 %4542  ;;  %4576 = vst.msk [vmem:[#allocation5 + $0x94] sm:$0xf] %vm4179_vm15, %v4541_v54 }
 0x83f   : > { %4577 = vst.msk [vmem:[#allocation5 + $0xa0] sm:$0xf] %vm4179_vm15, %v4543_v40 }
 0x843   : > { %v4321_v62 = vpop.permute.xlu2 %4320 }
 0x844   : > { %4354 = vst.msk [vmem:[#allocation5 + $0xac] sm:$0xf] %vm3953_vm13, %v4321_v62  ;;  %v11108_v4 = vpop.f32.mrf.mxu2 }
 0x845   : > { %v4323_v17 = vpop.permute.xlu0 %4322  ;;  %v8011_v28 = vld [vmem:[#allocation5 + $0x94] sm:$0xf] }
 0x846   : > { %v4433_v2 = vpop.permute.xlu1 %4432  ;;  %4355 = vst.msk [vmem:[#allocation5 + $0xb8] sm:$0xf] %vm3953_vm13, %v4323_v17  ;;  %v7619_v15 = vld [vmem:[#allocation5 + $0x9c] sm:$0xf0] }
 0x847   : > { %4466 = vst.msk [vmem:[#allocation5 + $0xac] sm:$0xf] %vm4066_vm14, %v4433_v2  ;;  %v7622_v49 = vor.u32 %v8011_v28, %v7619_v15 }
 0x849   : > { %5035 = vmatmul.bf16.gmra.mxu3 %v7622_v49 }
 0x84a   : > { %7717 = vmatmul.msk.bf16.gmra.mxu2 %vm3700_vm11, %v7626_v8 }
 0x84b   : > { %v4435_v25 = vpop.permute.xlu2 %4434 }
 0x84c   : > { %4467 = vst.msk [vmem:[#allocation5 + $0xb8] sm:$0xf] %vm4066_vm14, %v4435_v25  ;;  %v11114_v57 = vpop.f32.mrf.mxu2 }
 0x84d   : > { %v4545_v24 = vpop.permute.xlu0 %4544 }
 0x84e   : > { %v4547_v43 = vpop.permute.xlu1 %4546  ;;  %4578 = vst.msk [vmem:[#allocation5 + $0xac] sm:$0xf] %vm4179_vm15, %v4545_v24 }
 0x84f   : > { %4579 = vst.msk [vmem:[#allocation5 + $0xb8] sm:$0xf] %vm4179_vm15, %v4547_v43 }
 0x854   : > { %v4989_v32 = vpop.f32.mrf.mxu2 }
 0x855   : > { %v8014_v42 = vld [vmem:[#allocation5 + $0xac] sm:$0xf] }
 0x856   : > { %v7631_v55 = vld [vmem:[#allocation5 + $0xb4] sm:$0xf0] }
 0x857   : > { %v7634_v59 = vor.u32 %v8014_v42, %v7631_v55 }
 0x859   : > { %5040 = vmatmul.bf16.gmra.mxu3 %v7634_v59 }
 0x85a   : > { %7718 = vmatmul.msk.bf16.gmra.mxu2 %vm3700_vm11, %v7638_v56 }
 0x85c   : > { %v4992_v38 = vpop.f32.mrf.mxu2 }
 0x864   : > { %v4994_v3 = vpop.f32.mrf.mxu2 }
 0x86c   : > { %v5006_v37 = vpop.f32.mrf.mxu3 }
 0x86d   : > { %v5007_v36 = vadd.f32 %v5006_v37, %v11043_v51  ;;  %v5055_v1 = vpop.f32.mrf.mxu2 }
 0x86f   : > { %v11120_v20 = vadd.f32 %v5055_v1, %v5007_v36 }
 0x874   : > { %v11122_v35 = vpop.f32.mrf.mxu3 }
 0x875   : > { %v11124_v12 = vpop.f32.mrf.mxu2 }
 0x87c   : > { %v5011_v34 = vpop.f32.mrf.mxu3 }
 0x87d   : > { %v5012_v13 = vadd.f32 %v5011_v34, %v11058_v29  ;;  %v5060_v9 = vpop.f32.mrf.mxu2 }
 0x87f   : > { %v11127_v39 = vadd.f32 %v5060_v9, %v5012_v13 }
 0x884   : > { %v5013_v10 = vpop.f32.mrf.mxu3 }
 0x885   : > { %v5062_v27 = vpop.f32.mrf.mxu2 }
 0x88c   : > { %v5016_v33 = vpop.f32.mrf.mxu3 }
 0x88d   : > { %v5017_v18 = vadd.f32 %v5016_v33, %v11070_v26  ;;  %v5065_v22 = vpop.f32.mrf.mxu2 }
 0x88f   : > { %v5066_v51 = vadd.f32 %v5065_v22, %v5017_v18 }
 0x894   : > { %v5018_v61 = vpop.f32.mrf.mxu3 }
 0x895   : > { %v5067_v60 = vpop.f32.mrf.mxu2  ;;  %v5019_v34 = vadd.f32 %v5018_v61, %v11075_v23  ;;  %v5095_v23 = vld [vmem:[%s11946_s8] sm:$0xff] }
 0x89c   : > { %v5021_v47 = vpop.f32.mrf.mxu3 }
 0x89d   : > { %v5022_v58 = vadd.f32 %v5021_v47, %v11081_v5  ;;  %v5070_v48 = vpop.f32.mrf.mxu2 }
 0x89f   : > { %v5071_v19 = vadd.f32 %v5070_v48, %v5022_v58 }
 0x8a4   : > { %v5023_v46 = vpop.f32.mrf.mxu3 }
 0x8a5   : > { %v5072_v53 = vpop.f32.mrf.mxu2 }
 0x8ac   : > { %v5026_v29 = vpop.f32.mrf.mxu3 }
 0x8ad   : > { %v5027_v50 = vadd.f32 %v5026_v29, %v11092_v6  ;;  %v5075_v52 = vpop.f32.mrf.mxu2 }
 0x8af   : > { %v5076_v16 = vadd.f32 %v5075_v52, %v5027_v50 }
 0x8b4   : > { %v5028_v54 = vpop.f32.mrf.mxu3 }
 0x8b5   : > { %v5077_v40 = vpop.f32.mrf.mxu2 }
 0x8bc   : > { %v5031_v62 = vpop.f32.mrf.mxu3 }
 0x8bd   : > { %v5080_v26 = vpop.f32.mrf.mxu2  ;;  %v5032_v37 = vadd.f32 %v5031_v62, %v11103_v44  ;;  %v5014_v44 = vadd.f32 %v5013_v10, %v11063_v63  ;;  %v5096_v63 = vld [vmem:[%s11946_s8 + $0x8] sm:$0xff]  ;;  %v8204_v10 = vld [vmem:[%s11943_s5 + $0x1] ss:$0 sm:$0xff] }
 0x8bf   : > { %v5081_v1 = vadd.f32 %v5080_v26, %v5032_v37  ;;  %v5063_v13 = vadd.f32 %v5062_v27, %v5014_v44 }
 0x8c4   : > { %v5033_v17 = vpop.f32.mrf.mxu3 }
 0x8c5   : > { %v5082_v2 = vpop.f32.mrf.mxu2  ;;  %v5034_v59 = vadd.f32 %v5033_v17, %v11108_v4  ;;  %v5068_v4 = vadd.f32 %v5067_v60, %v5019_v34 }
 0x8c7   : > { %v5083_v36 = vadd.f32 %v5082_v2, %v5034_v59 }
 0x8cc   : > { %v5036_v28 = vpop.f32.mrf.mxu3 }
 0x8cd   : > { %v5085_v30 = vpop.f32.mrf.mxu2  ;;  %v5037_v21 = vadd.f32 %v5036_v28, %v11114_v57 }
 0x8cf   : > { %v5086_v56 = vadd.f32 %v5085_v30, %v5037_v21 }
 0x8d4   : > { %v5038_v41 = vpop.f32.mrf.mxu3 }
 0x8d5   : > { %v5087_v15 = vpop.f32.mrf.mxu2  ;;  %v5039_v6 = vadd.f32 %v5038_v41, %v4989_v32  ;;  %v5024_v32 = vadd.f32 %v5023_v46, %v11086_v11  ;;  %v5098_v11 = vld [vmem:[%s11946_s8 + $0x18] sm:$0xff] }
 0x8d7   : > { %v5088_v55 = vadd.f32 %v5087_v15, %v5039_v6  ;;  %v5073_v57 = vadd.f32 %v5072_v53, %v5024_v32 }
 0x8dc   : > { %v5041_v5 = vpop.f32.mrf.mxu3 }
 0x8dd   : > { %v5090_v49 = vpop.f32.mrf.mxu2  ;;  %v5042_v43 = vadd.f32 %v5041_v5, %v4992_v38 }
 0x8df   : > { %v5091_v45 = vadd.f32 %v5090_v49, %v5042_v43 }
 0x8e4   : > { %v5043_v8 = vpop.f32.mrf.mxu3 }
 0x8e5   : > { %v5044_v25 = vadd.f32 %v5043_v8, %v4994_v3  ;;  %v5092_v24 = vpop.f32.mrf.mxu2  ;;  %v5029_v3 = vadd.f32 %v5028_v54, %v11097_v0  ;;  %v5009_v0 = vadd.f32 %v11122_v35, %v11051_v7  ;;  %v5097_v7 = vld [vmem:[%s11946_s8 + $0x10] sm:$0xff]  ;;  %v5100_v35 = vld [vmem:[%s11946_s8 + $0x28] sm:$0xff] }
 0x8e7   : > { %v5093_v42 = vadd.f32 %v5092_v24, %v5044_v25  ;;  %v5078_v38 = vadd.f32 %v5077_v40, %v5029_v3  ;;  %v5058_v9 = vadd.f32 %v11124_v12, %v5009_v0  ;;  %v5101_v12 = vld [vmem:[%s11946_s8 + $0x30] sm:$0xff] }
 0x8e9   : > { %5105 = vmatpush.msrb.mxu3 %v5093_v42 }
 0x8eb   : > { %5106 = vmatpush.msrb.mxu3 %v5091_v45 }
 0x8ed   : > { %5107 = vmatpush.msrb.mxu3 %v5088_v55 }
 0x8ef   : > { %5108 = vmatpush.msrb.mxu3 %v5086_v56 }
 0x8f1   : > { %5109 = vmatpush.msrb.mxu3 %v5083_v36 }
 0x8f3   : > { %5110 = vmatpush.msrb.mxu3 %v5081_v1 }
 0x8f5   : > { %5111 = vmatpush.msrb.mxu3 %v5078_v38 }
 0x8f7   : > { %5112 = vmatpush.msrb.mxu3 %v5076_v16 }
 0x8f9   : > { %5113 = vmatpush.msrb.mxu3 %v5073_v57 }
 0x8fb   : > { %5114 = vmatpush.msrb.mxu3 %v5071_v19 }
 0x8fd   : > { %5115 = vmatpush.msrb.mxu3 %v5068_v4 }
 0x8ff   : > { %5116 = vmatpush.msrb.mxu3 %v5066_v51 }
 0x901   : > { %5117 = vmatpush.msrb.mxu3 %v5063_v13 }
 0x903   : > { %5118 = vmatpush.msrb.mxu3 %v11127_v39  ;;  %v5102_v39 = vld [vmem:[%s11946_s8 + $0x38] sm:$0xff] }
 0x905   : > { %5119 = vmatpush.msrb.mxu3 %v5058_v9 }
 0x907   : > { %5120 = vmatpush.msrb.mxu3 %v11120_v20  ;;  %v5099_v20 = vld [vmem:[%s11946_s8 + $0x20] sm:$0xff] }
 0x908   : > { %5121 = vmatmul.f32.vlgmr.msrb.gmra.mxu3 %v5095_v23 }
 0x910   : > { %5124 = vmatmul.f32.gmra.mxu3 %v5096_v63  ;;  %v8338_v63 = vmov 1024.0  }
 0x911   : > { %8216 = vrcp.f32 %v8338_v63 }
 0x918   : > { %5127 = vmatmul.f32.gmra.mxu3 %v5097_v7  ;;  %v8217_v7 = vpop.eup %8216 }
 0x919   : > { %vm5177_vm1 = vweird.f32 %v8217_v7 }
 0x920   : > { %5130 = vmatmul.f32.gmra.mxu3 %v5098_v11  ;;  %v5173_v11 = vmul.f32 1024.0, %v8217_v7 }
 0x928   : > { %5133 = vmatmul.f32.gmra.mxu3 %v5099_v20  ;;  %v5174_v20 = vsub.f32 1.0, %v5173_v11 }
 0x930   : > { %5136 = vmatmul.f32.gmra.mxu3 %v5100_v35 }
 0x938   : > { %5139 = vmatmul.f32.gmra.mxu3 %v5101_v12 }
 0x940   : > { %5142 = vmatmul.f32.gmra.mxu3 %v5102_v39 }
 0x98b   : > { %v5122_v27 = vpop.f32.mrf.mxu3 }
 0x98c   : > { %v11171_v33 = vadd.f32 %v8204_v10, %v5122_v27 }
 0x98e   : > { %5189 = vrot.lane.b32.xlu2 %v11171_v33, %s11977_s14  ;;  %v5148_v54 = vsel %vm434_vm0, %v11171_v33, 0.0 }
 0x993   : > { %v5125_v18 = vpop.f32.mrf.mxu3 }
 0x994   : > { %v11175_v22 = vadd.f32 %v8204_v10, %v5125_v18 }
 0x996   : > { %5191 = vrot.lane.b32.xlu0 %v11175_v22, %s11977_s14  ;;  %v5149_v16 = vsel %vm434_vm0, %v11175_v22, 0.0 }
 0x997   : > { %v5150_v62 = vadd.f32 %v5149_v16, %v5148_v54 }
 0x99b   : > { %v5128_v51 = vpop.f32.mrf.mxu3 }
 0x99c   : > { %v11179_v61 = vadd.f32 %v8204_v10, %v5128_v51 }
 0x99e   : > { %5193 = vrot.lane.b32.xlu1 %v11179_v61, %s11977_s14  ;;  %v5151_v40 = vsel %vm434_vm0, %v11179_v61, 0.0 }
 0x99f   : > { %v5152_v17 = vadd.f32 %v5151_v40, %v5150_v62 }
 0x9a3   : > { %v5131_v60 = vpop.f32.mrf.mxu3 }
 0x9a4   : > { %v11183_v47 = vadd.f32 %v8204_v10, %v5131_v60 }
 0x9a6   : > { %5195 = vrot.lane.b32.xlu2 %v11183_v47, %s11977_s14  ;;  %v5153_v26 = vsel %vm434_vm0, %v11183_v47, 0.0 }
 0x9a7   : > { %v5154_v28 = vadd.f32 %v5153_v26, %v5152_v17 }
 0x9ab   : > { %v5134_v58 = vpop.f32.mrf.mxu3 }
 0x9ac   : > { %v11187_v48 = vadd.f32 %v8204_v10, %v5134_v58 }
 0x9ae   : > { %5197 = vrot.lane.b32.xlu0 %v11187_v48, %s11977_s14  ;;  %v5155_v2 = vsel %vm434_vm0, %v11187_v48, 0.0 }
 0x9af   : > { %v5156_v41 = vadd.f32 %v5155_v2, %v5154_v28 }
 0x9b3   : > { %v5137_v19 = vpop.f32.mrf.mxu3 }
 0x9b4   : > { %v11191_v46 = vadd.f32 %v8204_v10, %v5137_v19 }
 0x9b6   : > { %5199 = vrot.lane.b32.xlu1 %v11191_v46, %s11977_s14  ;;  %v5157_v30 = vsel %vm434_vm0, %v11191_v46, 0.0 }
 0x9b7   : > { %v5158_v5 = vadd.f32 %v5157_v30, %v5156_v41 }
 0x9bb   : > { %v5140_v53 = vpop.f32.mrf.mxu3 }
 0x9bc   : > { %v11195_v29 = vadd.f32 %v8204_v10, %v5140_v53 }
 0x9be   : > { %5201 = vrot.lane.b32.xlu2 %v11195_v29, %s11977_s14  ;;  %v5159_v15 = vsel %vm434_vm0, %v11195_v29, 0.0 }
 0x9bf   : > { %v5160_v8 = vadd.f32 %v5159_v15, %v5158_v5 }
 0x9c3   : > { %v5143_v50 = vpop.f32.mrf.mxu3 }
 0x9c4   : > { %v11199_v52 = vadd.f32 %v8204_v10, %v5143_v50  ;;  %v5175_v10 = vmul.f32 %v8217_v7, %v5174_v20 }
 0x9c6   : > { %5203 = vrot.lane.b32.xlu0 %v11199_v52, %s11977_s14  ;;  %v5161_v49 = vsel %vm434_vm0, %v11199_v52, 0.0  ;;  %v5176_v51 = vadd.f32 %v8217_v7, %v5175_v10 }
 0x9c7   : > { %v5162_v25 = vadd.f32 %v5161_v49, %v5160_v8 }
 0x9c8   : > { %v5178_v19 = vsel %vm5177_vm1, %v8217_v7, %v5176_v51 }
 0x9e0   : > { %5163 = vadd.xlane.f32.xlu1 %v5162_v25 }
 0x9e8   : > { %v5190_v24 = vpop.permute.xlu2 %5189 }
 0x9e9   : > { %v5213_v45 = vsel %vm434_vm0, %v5190_v24, 0.0 }
 0xa00   : > { %v5196_v56 = vpop.permute.xlu2 %5195 }
 0xa01   : > { %v5218_v3 = vsel %vm434_vm0, %v5196_v56, 0.0 }
 0xa08   : > { %v5192_v43 = vpop.permute.xlu0 %5191 }
 0xa09   : > { %v5214_v6 = vsel %vm434_vm0, %v5192_v43, 0.0 }
 0xa0a   : > { %v5215_v55 = vadd.f32 %v5214_v6, %v5213_v45 }
 0xa10   : > { %v5194_v42 = vpop.permute.xlu1 %5193 }
 0xa11   : > { %v5216_v21 = vsel %vm434_vm0, %v5194_v42, 0.0 }
 0xa12   : > { %v5217_v59 = vadd.f32 %v5216_v21, %v5215_v55 }
 0xa14   : > { %v5219_v38 = vadd.f32 %v5218_v3, %v5217_v59 }
 0xa18   : > { %v5202_v4 = vpop.permute.xlu2 %5201 }
 0xa19   : > { %v5224_v44 = vsel %vm434_vm0, %v5202_v4, 0.0 }
 0xa20   : > { %v5198_v37 = vpop.permute.xlu0 %5197 }
 0xa21   : > { %v5220_v1 = vsel %vm434_vm0, %v5198_v37, 0.0 }
 0xa22   : > { %v5221_v57 = vadd.f32 %v5220_v1, %v5219_v38 }
 0xa28   : > { %v5200_v36 = vpop.permute.xlu1 %5199 }
 0xa29   : > { %v5222_v32 = vsel %vm434_vm0, %v5200_v36, 0.0 }
 0xa2a   : > { %v5223_v34 = vadd.f32 %v5222_v32, %v5221_v57 }
 0xa2c   : > { %v5225_v13 = vadd.f32 %v5224_v44, %v5223_v34 }
 0xa38   : > { %v5204_v0 = vpop.permute.xlu0 %5203 }
 0xa39   : > { %v5226_v9 = vsel %vm434_vm0, %v5204_v0, 0.0 }
 0xa3a   : > { %v5227_v23 = vadd.f32 %v5226_v9, %v5225_v13 }
 0xa3c   : > { %5228 = vadd.xlane.f32.xlu2 %v5227_v23 }
 0xa53   : > { %v5164_v35 = vpop.xlane.xlu1 %5163 }
 0xa54   : > { %v5165_v12 = vrot.slane %v5164_v35, 4 }
 0xa56   : > { %v5166_v39 = vadd.f32 %v5165_v12, %v5164_v35 }
 0xa58   : > { %v5167_v27 = vrot.slane %v5166_v39, 2 }
 0xa5a   : > { %v5168_v18 = vadd.f32 %v5167_v27, %v5166_v39 }
 0xa5c   : > { %v5169_v60 = vrot.slane %v5168_v18, 1 }
 0xa5e   : > { %v5170_v58 = vadd.f32 %v5169_v60, %v5168_v18 }
 0xa60   : > { %8105 = vpush %v5170_v58 }
 0xa61   : > { %8107 = vpush %v5178_v19 }
 0xa91   : > { %s8106_s19 = spop %8105 }
 0xa92   : > { %s11227_s26 = spop %8107 }
 0xa93   : > { %s5180_s25 = smul.f32 %s11227_s26, %s8106_s19 }
 0xa95   : > { %v5246_v17 = vstv %s5180_s25  ;;  %s11980_s25 = smov 32  }
 0xa96   : > { %v5404_v28 = vmul.f32 %v9939_v14, %v5246_v17  ;;  %v5247_v3 = vsub.f32 %v11171_v33, %v5246_v17  ;;  %v5248_v1 = vsub.f32 %v11175_v22, %v5246_v17  ;;  %v5249_v57 = vsub.f32 %v11179_v61, %v5246_v17 }
 0xa97   : > { %v5250_v44 = vsub.f32 %v11183_v47, %v5246_v17  ;;  %v5251_v9 = vsub.f32 %v11187_v48, %v5246_v17  ;;  %v5252_v11 = vsub.f32 %v11191_v46, %v5246_v17  ;;  %v5253_v39 = vsub.f32 %v11195_v29, %v5246_v17 }
 0xa98   : > { %v5255_v38 = vmul.f32 %v5247_v3, %v5247_v3  ;;  %v5256_v32 = vmul.f32 %v5248_v1, %v5248_v1  ;;  %v5257_v13 = vmul.f32 %v5249_v57, %v5249_v57  ;;  %v5254_v51 = vsub.f32 %v11199_v52, %v5246_v17 }
 0xa99   : > { %v5258_v23 = vmul.f32 %v5250_v44, %v5250_v44  ;;  %v5259_v20 = vmul.f32 %v5251_v9, %v5251_v9  ;;  %v5260_v10 = vmul.f32 %v5252_v11, %v5252_v11  ;;  %v5261_v60 = vmul.f32 %v5253_v39, %v5253_v39 }
 0xa9a   : > { %v5263_v34 = vsel %vm434_vm0, %v5255_v38, 0.0  ;;  %v5264_v4 = vsel %vm434_vm0, %v5256_v32, 0.0  ;;  %v5266_v63 = vsel %vm434_vm0, %v5257_v13, 0.0 }
 0xa9b   : > { %v5265_v0 = vadd.f32 %v5264_v4, %v5263_v34  ;;  %v5268_v35 = vsel %vm434_vm0, %v5258_v23, 0.0  ;;  %v5270_v27 = vsel %vm434_vm0, %v5259_v20, 0.0  ;;  %v5272_v58 = vsel %vm434_vm0, %v5260_v10, 0.0 }
 0xa9d   : > { %v5267_v7 = vadd.f32 %v5266_v63, %v5265_v0 }
 0xa9f   : > { %v5269_v12 = vadd.f32 %v5268_v35, %v5267_v7 }
 0xaa1   : > { %v5271_v18 = vadd.f32 %v5270_v27, %v5269_v12 }
 0xaa3   : > { %v5273_v19 = vadd.f32 %v5272_v58, %v5271_v18 }
 0xaaf   : > { %v5229_v53 = vpop.xlane.xlu2 %5228 }
 0xab0   : > { %v5230_v50 = vrot.slane %v5229_v53, 4 }
 0xab2   : > { %v5231_v16 = vadd.f32 %v5230_v50, %v5229_v53  ;;  %v5262_v53 = vmul.f32 %v5254_v51, %v5254_v51  ;;  %v5274_v50 = vsel %vm434_vm0, %v5261_v60, 0.0 }
 0xab4   : > { %v5232_v54 = vrot.slane %v5231_v16, 2 }
 0xab6   : > { %v5233_v40 = vadd.f32 %v5232_v54, %v5231_v16  ;;  %v5275_v16 = vadd.f32 %v5274_v50, %v5273_v19  ;;  %v5276_v54 = vsel %vm434_vm0, %v5262_v53, 0.0 }
 0xab8   : > { %v5234_v62 = vrot.slane %v5233_v40, 1 }
 0xaba   : > { %v5235_v26 = vadd.f32 %v5234_v62, %v5233_v40  ;;  %v5277_v40 = vadd.f32 %v5276_v54, %v5275_v16 }
 0xabc   : > { %8109 = vpush %v5235_v26 }
 0xaed   : > { %s8110_s13 = spop %8109 }
 0xaee   : > { %s5245_s0 = smul.f32 %s8110_s13, %s11227_s26 }
 0xaf0   : > { %v5296_v2 = vstv %s5245_s0 }
 0xaf1   : > { %v5405_v30 = vmul.f32 %v5296_v2, %v9947_v31  ;;  %v5303_v41 = vsub.f32 %v11195_v29, %v5296_v2  ;;  %v5302_v15 = vsub.f32 %v11191_v46, %v5296_v2  ;;  %v5297_v5 = vsub.f32 %v11171_v33, %v5296_v2 }
 0xaf2   : > { %v5298_v43 = vsub.f32 %v11175_v22, %v5296_v2  ;;  %v5299_v6 = vsub.f32 %v11179_v61, %v5296_v2  ;;  %v5300_v21 = vsub.f32 %v11183_v47, %v5296_v2  ;;  %v5301_v59 = vsub.f32 %v11187_v48, %v5296_v2 }
 0xaf3   : > { %v11236_v49 = vadd.f32 %v5405_v30, %v5404_v28  ;;  %v5311_v8 = vmul.f32 %v5303_v41, %v5303_v41  ;;  %v5310_v25 = vmul.f32 %v5302_v15, %v5302_v15  ;;  %v5305_v24 = vmul.f32 %v5297_v5, %v5297_v5 }
 0xaf4   : > { %v5306_v42 = vmul.f32 %v5298_v43, %v5298_v43  ;;  %v5307_v45 = vmul.f32 %v5299_v6, %v5299_v6  ;;  %v5308_v55 = vmul.f32 %v5300_v21, %v5300_v21  ;;  %v5309_v56 = vmul.f32 %v5301_v59, %v5301_v59 }
 0xaf5   : > { %5333 = vrot.lane.b32.xlu2 %v5311_v8, %s11977_s14  ;;  %5331 = vrot.lane.b32.xlu1 %v5310_v25, %s11977_s14  ;;  %v5304_v37 = vsub.f32 %v11199_v52, %v5296_v2 }
 0xaf6   : > { %5321 = vrot.lane.b32.xlu0 %v5305_v24, %s11977_s14 }
 0xaf7   : > { %v5312_v36 = vmul.f32 %v5304_v37, %v5304_v37 }
 0xafe   : > { %5323 = vrot.lane.b32.xlu0 %v5306_v42, %s11977_s14 }
 0xb06   : > { %5325 = vrot.lane.b32.xlu0 %v5307_v45, %s11977_s14 }
 0xb0e   : > { %5327 = vrot.lane.b32.xlu0 %v5308_v55, %s11977_s14 }
 0xb16   : > { %5329 = vrot.lane.b32.xlu0 %v5309_v56, %s11977_s14 }
 0xb1e   : > { %5335 = vrot.lane.b32.xlu0 %v5312_v36, %s11977_s14 }
 0xb48   : > { %5278 = vadd.xlane.f32.xlu0 %v5277_v40 }
 0xb4f   : > { %v5334_v21 = vpop.permute.xlu2 %5333 }
 0xb50   : > { %v5356_v59 = vsel %vm434_vm0, %v5334_v21, 0.0  ;;  %v5416_v21 = vsub.f32 %v11183_v47, %v11236_v49 }
 0xb67   : > { %v5332_v25 = vpop.permute.xlu1 %5331 }
 0xb68   : > { %v5322_v62 = vpop.permute.xlu0 %5321  ;;  %v5354_v45 = vsel %vm434_vm0, %v5332_v25, 0.0 }
 0xb69   : > { %v5345_v17 = vsel %vm434_vm0, %v5322_v62, 0.0  ;;  %v5521_v62 = vld [vmem:[#allocation6 + $0x1] sm:$0xff] }
 0xb70   : > { %v5324_v26 = vpop.permute.xlu0 %5323 }
 0xb71   : > { %v5346_v30 = vsel %vm434_vm0, %v5324_v26, 0.0  ;;  %v5529_v26 = vpack.c.bf16 %v5521_v62, %v5521_v62 }
 0xb72   : > { %v5347_v15 = vadd.f32 %v5346_v30, %v5345_v17 }
 0xb73   : > { %5545 = vrot.lane.b32.xlu2 %v5529_v26, %s11980_s25 }
 0xb78   : > { %v5326_v2 = vpop.permute.xlu0 %5325 }
 0xb79   : > { %v5348_v41 = vsel %vm434_vm0, %v5326_v2, 0.0  ;;  %v5577_v2 = vld [vmem:[#allocation6 + $0x2] sm:$0xff] }
 0xb7a   : > { %v5349_v8 = vadd.f32 %v5348_v41, %v5347_v15 }
 0xb80   : > { %v5328_v28 = vpop.permute.xlu0 %5327 }
 0xb81   : > { %v5350_v5 = vsel %vm434_vm0, %v5328_v28, 0.0  ;;  %v5585_v28 = vpack.c.bf16 %v5577_v2, %v5577_v2 }
 0xb82   : > { %v5351_v24 = vadd.f32 %v5350_v5, %v5349_v8  ;;  %v8064_v5 = vld [vmem:[%s11981_s3 + $0x88] sm:$0xff]  ;;  %v5146_v8 = vld [vmem:[%s11944_s6 + $0x1] sm:$0x1] }
 0xb83   : > { %5601 = vrot.lane.b32.xlu2 %v5585_v28, %s11975_s30  ;;  %6204 = vmatpush.bf16.msrb.mxu0 %v8064_v5 }
 0xb88   : > { %v5330_v43 = vpop.permute.xlu0 %5329 }
 0xb89   : > { %v5352_v42 = vsel %vm434_vm0, %v5330_v43, 0.0 }
 0xb8a   : > { %v5353_v6 = vadd.f32 %v5352_v42, %v5351_v24  ;;  %v8063_v24 = vld [vmem:[%s11981_s3 + $0x80] sm:$0xff]  ;;  %v5413_v42 = vsub.f32 %v11171_v33, %v11236_v49  ;;  %v5418_v33 = vsub.f32 %v11191_v46, %v11236_v49 }
 0xb8b   : > { %6205 = vmatpush.bf16.msrb.mxu0 %v8063_v24 }
 0xb8c   : > { %v5355_v55 = vadd.f32 %v5354_v45, %v5353_v6  ;;  %v5414_v6 = vsub.f32 %v11175_v22, %v11236_v49  ;;  %v5415_v45 = vsub.f32 %v11179_v61, %v11236_v49  ;;  %v5419_v22 = vsub.f32 %v11195_v29, %v11236_v49 }
 0xb8d   : > { %v5420_v61 = vsub.f32 %v11199_v52, %v11236_v49 }
 0xb8e   : > { %v5357_v56 = vadd.f32 %v5356_v59, %v5355_v55  ;;  %v8205_v59 = vld [vmem:[%s11945_s7 + $0x1] ss:$0 sm:$0xff] }
 0xb90   : > { %v5336_v37 = vpop.permute.xlu0 %5335 }
 0xb91   : > { %v5358_v36 = vsel %vm434_vm0, %v5336_v37, 0.0 }
 0xb92   : > { %v5359_v3 = vadd.f32 %v5358_v36, %v5357_v56  ;;  %v5417_v56 = vsub.f32 %v11187_v48, %v11236_v49 }
 0xb94   : > { %5360 = vadd.xlane.f32.xlu1 %v5359_v3 }
 0xbbb   : > { %v5279_v1 = vpop.xlane.xlu0 %5278 }
 0xbbc   : > { %v5280_v38 = vrot.slane %v5279_v1, 4 }
 0xbbe   : > { %v5281_v32 = vadd.f32 %v5280_v38, %v5279_v1 }
 0xbc0   : > { %v5282_v57 = vrot.slane %v5281_v32, 2 }
 0xbc2   : > { %v5283_v34 = vadd.f32 %v5282_v57, %v5281_v32 }
 0xbc4   : > { %v5284_v4 = vrot.slane %v5283_v34, 1 }
 0xbc6   : > { %v5285_v44 = vadd.f32 %v5284_v4, %v5283_v34 }
 0xbc8   : > { %8111 = vpush %v5285_v44 }
 0xbf9   : > { %s8112_s1 = spop %8111 }
 0xbfa   : > { %s5295_s24 = smul.f32 %s8112_s1, %s11227_s26 }
 0xbfc   : > { %s5378_s16 = sadd.f32 1e-05, %s5295_s24 }
 0xbfe   : > { %v5379_v13 = vstv %s5378_s16 }
 0xbff   : > { %8218 = vrsqrt.f32 %v5379_v13  ;;  %vm5386_vm3 = vweird.f32 %v5379_v13 }
 0xc05   : > { %v8219_v0 = vpop.eup %8218 }
 0xc06   : > { %v5381_v9 = vmul.f32 %v8219_v0, %v5379_v13  ;;  %vm5387_vm2 = vweird.f32 %v8219_v0 }
 0xc07   : > { %v5361_v23 = vpop.xlane.xlu1 %5360  ;;  %vm5388_vm4 = vmor %vm5386_vm3, %vm5387_vm2 }
 0xc08   : > { %v5382_v63 = vmul.f32 %v8219_v0, %v5381_v9  ;;  %v5362_v7 = vrot.slane %v5361_v23, 4 }
 0xc0a   : > { %v5383_v11 = vmul.f32 0.5, %v5382_v63  ;;  %v5363_v20 = vadd.f32 %v5362_v7, %v5361_v23 }
 0xc0c   : > { %v5384_v35 = vsub.f32 1.5, %v5383_v11  ;;  %v5364_v12 = vrot.slane %v5363_v20, 2 }
 0xc0e   : > { %v5365_v39 = vadd.f32 %v5364_v12, %v5363_v20  ;;  %v5385_v27 = vmul.f32 %v8219_v0, %v5384_v35 }
 0xc10   : > { %v5366_v10 = vrot.slane %v5365_v39, 1  ;;  %v5389_v51 = vsel %vm5388_vm4, %v8219_v0, %v5385_v27 }
 0xc12   : > { %v5367_v18 = vadd.f32 %v5366_v10, %v5365_v39 }
 0xc14   : > { %8113 = vpush %v5367_v18 }
 0xc15   : > { %8115 = vpush %v5389_v51 }
 0xc45   : > { %s8114_s2 = spop %8113 }
 0xc46   : > { %s5377_s29 = smul.f32 %s8114_s2, %s11227_s26  ;;  %s8116_s13 = spop %8115 }
 0xc47   : > { %v5407_v30 = vstv %s8116_s13 }
 0xc48   : > { %s5391_s19 = sadd.f32 1e-05, %s5377_s29  ;;  %v5408_v41 = vmul.f32 %v9939_v14, %v5407_v30 }
 0xc4a   : > { %v5392_v60 = vstv %s5391_s19 }
 0xc4b   : > { %8220 = vrsqrt.f32 %v5392_v60  ;;  %vm5399_vm6 = vweird.f32 %v5392_v60 }
 0xc51   : > { %v8221_v58 = vpop.eup %8220 }
 0xc52   : > { %v5394_v19 = vmul.f32 %v8221_v58, %v5392_v60  ;;  %vm5400_vm5 = vweird.f32 %v8221_v58 }
 0xc53   : > { %vm5401_vm7 = vmor %vm5399_vm6, %vm5400_vm5 }
 0xc54   : > { %v5395_v53 = vmul.f32 %v8221_v58, %v5394_v19 }
 0xc56   : > { %v5396_v50 = vmul.f32 0.5, %v5395_v53  ;;  %v8062_v53 = vld [vmem:[%s11981_s3 + $0x78] sm:$0xff] }
 0xc57   : > { %6169 = vmatpush.bf16.msrb.mxu1 %v8062_v53 }
 0xc58   : > { %v5397_v16 = vsub.f32 1.5, %v5396_v50 }
 0xc5a   : > { %v5398_v54 = vmul.f32 %v8221_v58, %v5397_v16 }
 0xc5c   : > { %v5402_v40 = vsel %vm5401_vm7, %v8221_v58, %v5398_v54 }
 0xc5d   : > { %8117 = vpush %v5402_v40 }
 0xc8e   : > { %s8118_s0 = spop %8117 }
 0xc8f   : > { %v5409_v17 = vstv %s8118_s0 }
 0xc90   : > { %v5410_v15 = vmul.f32 %v5409_v17, %v9947_v31 }
 0xc92   : > { %v5411_v25 = vadd.f32 %v5410_v15, %v5408_v41 }
 0xc94   : > { %v5412_v43 = vmul.f32 %v5411_v25, %v5146_v8 }
 0xc96   : > { %v5421_v55 = vperm.slane %v5412_v43, 0 }
 0xc98   : > { %v5422_v37 = vmul.f32 %v5421_v55, %v5413_v42  ;;  %v5423_v47 = vmul.f32 %v5421_v55, %v5414_v6  ;;  %v5424_v36 = vmul.f32 %v5421_v55, %v5415_v45  ;;  %v5425_v3 = vmul.f32 %v5421_v55, %v5416_v21 }
 0xc99   : > { %v5426_v1 = vmul.f32 %v5421_v55, %v5417_v56  ;;  %v5427_v38 = vmul.f32 %v5421_v55, %v5418_v33  ;;  %v5428_v32 = vmul.f32 %v5421_v55, %v5419_v22  ;;  %v5429_v57 = vmul.f32 %v5421_v55, %v5420_v61 }
 0xc9a   : > { %v5431_v34 = vadd.f32 %v8205_v59, %v5422_v37  ;;  %v5432_v4 = vadd.f32 %v8205_v59, %v5423_v47  ;;  %v5433_v0 = vadd.f32 %v8205_v59, %v5424_v36  ;;  %v5434_v9 = vadd.f32 %v8205_v59, %v5425_v3 }
 0xc9b   : > { %v5435_v48 = vadd.f32 %v8205_v59, %v5426_v1  ;;  %v5436_v44 = vadd.f32 %v8205_v59, %v5427_v38  ;;  %v5437_v13 = vadd.f32 %v8205_v59, %v5428_v32  ;;  %v5438_v46 = vadd.f32 %v8205_v59, %v5429_v57 }
 0xc9c   : > { %v5447_v29 = vmul.f32 0.2, %v5431_v34  ;;  %v5448_v52 = vmul.f32 0.2, %v5432_v4  ;;  %vm5440_vm2 = vcmp.ge.f32.partialorder %v5432_v4, 0.0  ;;  %vm5439_vm3 = vcmp.ge.f32.partialorder %v5431_v34, 0.0 }
 0xc9d   : > { %vm5443_vm8 = vcmp.ge.f32.partialorder %v5435_v48, 0.0  ;;  %vm5444_vm9 = vcmp.ge.f32.partialorder %v5436_v44, 0.0  ;;  %vm5445_vm10 = vcmp.ge.f32.partialorder %v5437_v13, 0.0  ;;  %vm5446_vm1 = vcmp.ge.f32.partialorder %v5438_v46, 0.0 }
 0xc9e   : > { %v5451_v49 = vmul.f32 0.2, %v5435_v48  ;;  %v5452_v23 = vmul.f32 0.2, %v5436_v44  ;;  %v5453_v63 = vmul.f32 0.2, %v5437_v13  ;;  %v5456_v27 = vsel %vm5440_vm2, %v5432_v4, %v5448_v52 }
 0xc9f   : > { %v5454_v7 = vmul.f32 0.2, %v5438_v46  ;;  %v5449_v11 = vmul.f32 0.2, %v5433_v0  ;;  %v5450_v12 = vmul.f32 0.2, %v5434_v9  ;;  %v5455_v18 = vsel %vm5439_vm3, %v5431_v34, %v5447_v29 }
 0xca0   : > { %v5459_v20 = vsel %vm5443_vm8, %v5435_v48, %v5451_v49  ;;  %v5460_v35 = vsel %vm5444_vm9, %v5436_v44, %v5452_v23  ;;  %v5461_v39 = vsel %vm5445_vm10, %v5437_v13, %v5453_v63  ;;  %vm5441_vm4 = vcmp.ge.f32.partialorder %v5433_v0, 0.0  ;;  %5490 = vst.msk [vmem:[#allocation6 + $0x21] sm:$0xff] %vm3700_vm11, %v5456_v27  ;;  %v5889_v44 = vld [vmem:[#allocation6 + $0x92] sm:$0xff]  ;;  %v5497_v27 = vld [vmem:[#allocation6] sm:$0xff] }
 0xca1   : > { %v5462_v10 = vsel %vm5446_vm1, %v5438_v46, %v5454_v7  ;;  %5493 = vst.msk [vmem:[#allocation6 + $0x51] sm:$0xff] %vm3700_vm11, %v5459_v20  ;;  %vm5442_vm5 = vcmp.ge.f32.partialorder %v5434_v9, 0.0  ;;  %v5457_v51 = vsel %vm5441_vm4, %v5433_v0, %v5449_v11  ;;  %v5897_v0 = vpack.c.bf16 %v5889_v44, %v5889_v44 }
 0xca2   : > { %5494 = vst.msk [vmem:[#allocation6 + $0x61] sm:$0xff] %vm3700_vm11, %v5460_v35  ;;  %v5458_v60 = vsel %vm5442_vm5, %v5434_v9, %v5450_v12  ;;  %v8061_v9 = vld [vmem:[%s11981_s3 + $0x70] sm:$0xff] }
 0xca3   : > { %5495 = vst.msk [vmem:[#allocation6 + $0x71] sm:$0xff] %vm3700_vm11, %v5461_v39  ;;  %6170 = vmatpush.bf16.msrb.mxu1 %v8061_v9 }
 0xca4   : > { %5496 = vst.msk [vmem:[#allocation6 + $0x81] sm:$0xff] %vm3700_vm11, %v5462_v10 }
 0xca5   : > { %5489 = vst.msk [vmem:[#allocation6 + $0x11] sm:$0xff] %vm3700_vm11, %v5455_v18 }
 0xca6   : > { %5491 = vst.msk [vmem:[#allocation6 + $0x31] sm:$0xff] %vm3700_vm11, %v5457_v51  ;;  %v5505_v51 = vpack.c.bf16 %v5497_v27, %v5497_v27 }
 0xca7   : > { %5492 = vst.msk [vmem:[#allocation6 + $0x41] sm:$0xff] %vm3700_vm11, %v5458_v60  ;;  %v5714_v16 = vld [vmem:[#allocation6 + $0x22] sm:$0xff]  ;;  %v5546_v60 = vpop.permute.xlu2 %5545 }
 0xca8   : > { %v5885_v58 = vld [vmem:[#allocation6 + $0x52] sm:$0xff]  ;;  %v5722_v40 = vpack.c.bf16 %v5714_v16, %v5714_v16  ;;  %v5634_v41 = vld [vmem:[#allocation6 + $0x20] sm:$0xff]  ;;  %5905 = vst.msk [vmem:[#allocation7 + $0x5c] sm:$0xf] %vm3840_vm12, %v5897_v0 }
 0xca9   : > { %v11317_v19 = vpack.c.bf16 %v5885_v58, %v5885_v58  ;;  %v5829_v50 = vld [vmem:[#allocation6 + $0x51] sm:$0xff]  ;;  %v5642_v42 = vpack.c.bf16 %v5634_v41, %v5634_v41  ;;  %v5826_v33 = vld [vmem:[#allocation6 + $0x21] sm:$0xff]  ;;  %5513 = vst.msk [vmem:[#allocation7] sm:$0xf] %vm3840_vm12, %v5505_v51 }
 0xcaa   : > { %v11324_v54 = vpack.c.bf16 %v5829_v50, %v5829_v50  ;;  %5739 = vrot.lane.b32.xlu1 %v5722_v40, %s11980_s25  ;;  %5898 = vst.msk [vmem:[#allocation7 + $0x8] sm:$0xf] %vm3840_vm12, %v5722_v40  ;;  %v5886_v22 = vld [vmem:[#allocation6 + $0x62] sm:$0xff]  ;;  %v5834_v37 = vpack.c.bf16 %v5826_v33, %v5826_v33  ;;  %v5887_v47 = vld [vmem:[#allocation6 + $0x72] sm:$0xff] }
 0xcab   : > { %5901 = vst.msk [vmem:[#allocation7 + $0x2c] sm:$0xf] %vm3840_vm12, %v11317_v19  ;;  %v11349_v36 = vpack.c.bf16 %v5886_v22, %v5886_v22  ;;  %v11351_v3 = vpack.c.bf16 %v5887_v47, %v5887_v47  ;;  %v5638_v1 = vld [vmem:[#allocation6 + $0x60] sm:$0xff]  ;;  %v5831_v29 = vld [vmem:[#allocation6 + $0x71] sm:$0xff] }
 0xcac   : > { %v5633_v62 = vld [vmem:[#allocation6 + $0x10] sm:$0xff]  ;;  %5709 = vst.msk [vmem:[#allocation7 + $0x34] sm:$0xf] %vm3840_vm12, %v11324_v54  ;;  %v5646_v38 = vpack.c.bf16 %v5638_v1, %v5638_v1  ;;  %v5888_v48 = vld [vmem:[#allocation6 + $0x82] sm:$0xff]  ;;  %v11379_v52 = vpack.c.bf16 %v5831_v29, %v5831_v29 }
 0xcad   : > { %v5522_v26 = vld [vmem:[#allocation6 + $0x11] sm:$0xff]  ;;  %v5641_v2 = vpack.c.bf16 %v5633_v62, %v5633_v62  ;;  %5515 = vst.msk [vmem:[#allocation7 + $0x18] sm:$0xf] %vm3840_vm12, %v5642_v42  ;;  %v11370_v46 = vpack.c.bf16 %v5888_v48, %v5888_v48  ;;  %v5830_v63 = vld [vmem:[#allocation6 + $0x61] sm:$0xff] }
 0xcae   : > { %v5530_v28 = vpack.c.bf16 %v5522_v26, %v5522_v26  ;;  %v5771_v30 = vld [vmem:[#allocation6 + $0x30] sm:$0xff]  ;;  %v5884_v8 = vld [vmem:[#allocation6 + $0x42] sm:$0xff]  ;;  %5902 = vst.msk [vmem:[#allocation7 + $0x38] sm:$0xf] %vm3840_vm12, %v11349_v36  ;;  %v11387_v11 = vpack.c.bf16 %v5830_v63, %v5830_v63 }
 0xcaf   : > { %v5883_v17 = vld [vmem:[#allocation6 + $0x32] sm:$0xff]  ;;  %5657 = vrot.lane.b32.xlu0 %v5641_v2, %s11976_s12  ;;  %v5779_v25 = vpack.c.bf16 %v5771_v30, %v5771_v30  ;;  %v5636_v24 = vld [vmem:[#allocation6 + $0x40] sm:$0xff]  ;;  %v11334_v43 = vpack.c.bf16 %v5884_v8, %v5884_v8  ;;  %5514 = vst.msk [vmem:[#allocation7 + $0xc] sm:$0xf] %vm3840_vm12, %v5641_v2  ;;  %v8046_v53 = vld [vmem:[#allocation7 + $0x58] sm:$0xf0]  ;;  %v5602_v16 = vpop.permute.xlu2 %5601 }
 0xcb0   : > { %v11329_v15 = vpack.c.bf16 %v5883_v17, %v5883_v17  ;;  %v5827_v5 = vld [vmem:[#allocation6 + $0x31] sm:$0xff]  ;;  %5547 = vrot.lane.b32.xlu2 %v5530_v28, %s11980_s25  ;;  %v5644_v21 = vpack.c.bf16 %v5636_v24, %v5636_v24  ;;  %5705 = vst.msk [vmem:[#allocation7 + $0x4] sm:$0xf] %vm3840_vm12, %v5530_v28  ;;  %v5828_v32 = vld [vmem:[#allocation6 + $0x41] sm:$0xff] }
 0xcb1   : > { %v5835_v6 = vpack.c.bf16 %v5827_v5, %v5827_v5  ;;  %5900 = vst.msk [vmem:[#allocation7 + $0x20] sm:$0xf] %vm3840_vm12, %v11334_v43  ;;  %v5578_v45 = vld [vmem:[#allocation6 + $0x12] sm:$0xff]  ;;  %v7729_v59 = vld [vmem:[#allocation7 + $0x8] sm:$0xf]  ;;  %v11363_v57 = vpack.c.bf16 %v5828_v32, %v5828_v32  ;;  %v8051_v2 = vld [vmem:[%s11981_s3 + $0x20] sm:$0xff] }
 0xcb2   : > { %5899 = vst.msk [vmem:[#allocation7 + $0x14] sm:$0xf] %vm3840_vm12, %v11329_v15  ;;  %v5586_v55 = vpack.c.bf16 %v5578_v45, %v5578_v45  ;;  %5605 = vrot.lane.b32.xlu1 %v5722_v40, %s11975_s30  ;;  %v8040_v4 = vld [vmem:[#allocation7 + $0x28] sm:$0xf0]  ;;  %v5637_v49 = vld [vmem:[#allocation6 + $0x50] sm:$0xff]  ;;  %v5832_v35 = vld [vmem:[#allocation6 + $0x81] sm:$0xff] }
 0xcb3   : > { %5516 = vst.msk [vmem:[#allocation7 + $0x24] sm:$0xf] %vm3840_vm12, %v5779_v25  ;;  %v5645_v23 = vpack.c.bf16 %v5637_v49, %v5637_v49  ;;  %v5639_v7 = vld [vmem:[#allocation6 + $0x70] sm:$0xff]  ;;  %v11391_v12 = vpack.c.bf16 %v5832_v35, %v5832_v35  ;;  %v8054_v40 = vld [vmem:[%s11981_s3 + $0x38] sm:$0xff]  ;;  %v8060_v62 = vld [vmem:[%s11981_s3 + $0x68] sm:$0xff] }
 0xcb4   : > { %5707 = vst.msk [vmem:[#allocation7 + $0x1c] sm:$0xf] %vm3840_vm12, %v5835_v6  ;;  %v11389_v20 = vpack.c.bf16 %v5639_v7, %v5639_v7  ;;  %6140 = vmatpush.bf16.msra.mxu3 %v8054_v40  ;;  %6171 = vmatpush.bf16.msrb.mxu1 %v8060_v62  ;;  %v8052_v26 = vld [vmem:[%s11981_s3 + $0x28] sm:$0xff]  ;;  %v5640_v28 = vld [vmem:[#allocation6 + $0x80] sm:$0xff]  ;;  %v8050_v30 = vld [vmem:[%s11981_s3 + $0x18] sm:$0xff] }
 0xcb5   : > { %5517 = vst.msk [vmem:[#allocation7 + $0x30] sm:$0xf] %vm3840_vm12, %v5644_v21  ;;  %v7753_v39 = vld [vmem:[#allocation7 + $0x38] sm:$0xf]  ;;  %v5648_v17 = vpack.c.bf16 %v5640_v28, %v5640_v28  ;;  %v8049_v41 = vld [vmem:[%s11981_s3 + $0x10] sm:$0xff]  ;;  %v8047_v8 = vld [vmem:[%s11981_s3] sm:$0xff] }
 0xcb6   : > { %5903 = vst.msk [vmem:[#allocation7 + $0x44] sm:$0xf] %vm3840_vm12, %v11351_v3  ;;  %v5833_v5 = vld [vmem:[#allocation6 + $0x91] sm:$0xff] }
 0xcb7   : > { %5796 = vrot.lane.b32.xlu0 %v5779_v25, %s11975_s30  ;;  %5706 = vst.msk [vmem:[#allocation7 + $0x10] sm:$0xf] %vm3840_vm12, %v5834_v37  ;;  %v5777_v32 = vld [vmem:[#allocation6 + $0x90] sm:$0xff] }
 0xcb8   : > { %5603 = vrot.lane.b32.xlu2 %v5586_v55, %s11975_s30  ;;  %5519 = vst.msk [vmem:[#allocation7 + $0x48] sm:$0xf] %vm3840_vm12, %v5646_v38  ;;  %v7741_v34 = vld [vmem:[#allocation7 + $0x20] sm:$0xf] }
 0xcb9   : > { %v8037_v56 = vld [vmem:[#allocation7 + $0x10] sm:$0xf0]  ;;  %5708 = vst.msk [vmem:[#allocation7 + $0x28] sm:$0xf] %vm3840_vm12, %v11363_v57  ;;  %v7742_v13 = vor.u32 %v8040_v4, %v7741_v34  ;;  %v5785_v4 = vpack.c.bf16 %v5777_v32, %v5777_v32 }
 0xcba   : > { %v7730_v61 = vor.u32 %v8037_v56, %v7729_v59  ;;  %5663 = vrot.lane.b32.xlu1 %v5644_v21, %s11976_s12  ;;  %5904 = vst.msk [vmem:[#allocation7 + $0x50] sm:$0xf] %vm3840_vm12, %v11370_v46 }
 0xcbb   : > { %5711 = vst.msk [vmem:[#allocation7 + $0x4c] sm:$0xf] %vm3840_vm12, %v11379_v52 }
 0xcbc   : > { %7839 = vmatmul.msk.bf16.vlgmr.msrb.gmra.mxu0 %vm3700_vm11, %v7730_v61  ;;  %5518 = vst.msk [vmem:[#allocation7 + $0x3c] sm:$0xf] %vm3840_vm12, %v5645_v23 }
 0xcbd   : > { %5710 = vst.msk [vmem:[#allocation7 + $0x40] sm:$0xf] %vm3840_vm12, %v11387_v11  ;;  %v8043_v10 = vld [vmem:[#allocation7 + $0x40] sm:$0xf0] }
 0xcbe   : > { %5520 = vst.msk [vmem:[#allocation7 + $0x54] sm:$0xf] %vm3840_vm12, %v11389_v20  ;;  %v7754_v18 = vor.u32 %v8043_v10, %v7753_v39 }
 0xcbf   : > { %5852 = vrot.lane.b32.xlu0 %v5835_v6, %s11976_s12  ;;  %5712 = vst.msk [vmem:[#allocation7 + $0x58] sm:$0xf] %vm3840_vm12, %v11391_v12 }
 0xcc0   : > { %5659 = vrot.lane.b32.xlu2 %v5642_v42, %s11976_s12  ;;  %5569 = vst.msk [vmem:[#allocation7] sm:$0xf] %vm3953_vm13, %v5546_v60 }
 0xcc1   : > { %v7765_v58 = vld [vmem:[#allocation7 + $0x50] sm:$0xf]  ;;  %5625 = vst.msk [vmem:[#allocation7] sm:$0xf] %vm4066_vm14, %v5602_v16 }
 0xcc2   : > { %5798 = vrot.lane.b32.xlu1 %v5644_v21, %s11975_s30  ;;  %v7766_v50 = vor.u32 %v8046_v53, %v7765_v58  ;;  %v8056_v21 = vld [vmem:[%s11981_s3 + $0x48] sm:$0xff] }
 0xcc7   : > { %5551 = vrot.lane.b32.xlu0 %v5835_v6, %s11980_s25  ;;  %v8057_v6 = vld [vmem:[%s11981_s3 + $0x50] sm:$0xff] }
 0xcc8   : > { %5737 = vrot.lane.b32.xlu2 %v5586_v55, %s11980_s25 }
 0xcca   : > { %5856 = vrot.lane.b32.xlu1 %v11324_v54, %s11976_s12 }
 0xccc   : > { %7840 = vmatmul.msk.bf16.gmra.mxu0 %vm3700_vm11, %v7742_v13 }
 0xccf   : > { %5661 = vrot.lane.b32.xlu0 %v5779_v25, %s11976_s12  ;;  %v8059_v25 = vld [vmem:[%s11981_s3 + $0x60] sm:$0xff] }
 0xcd0   : > { %5794 = vrot.lane.b32.xlu2 %v5642_v42, %s11975_s30  ;;  %6172 = vmatpush.bf16.msrb.mxu1 %v8059_v25  ;;  %v8058_v42 = vld [vmem:[%s11981_s3 + $0x58] sm:$0xff] }
 0xcd2   : > { %5609 = vrot.lane.b32.xlu1 %v11334_v43, %s11975_s30 }
 0xcd4   : > { %6173 = vmatpush.bf16.msrb.mxu1 %v8058_v42 }
 0xcd7   : > { %5743 = vrot.lane.b32.xlu0 %v11334_v43, %s11980_s25  ;;  %v5841_v43 = vpack.c.bf16 %v5833_v5, %v5833_v5 }
 0xcd8   : > { %5850 = vrot.lane.b32.xlu2 %v5834_v37, %s11976_s12  ;;  %6174 = vmatpush.bf16.msrb.mxu1 %v8057_v6 }
 0xcda   : > { %5667 = vrot.lane.b32.xlu1 %v5646_v38, %s11976_s12 }
 0xcdc   : > { %7841 = vmatmul.msk.bf16.gmra.mxu0 %vm3700_vm11, %v7754_v18  ;;  %6175 = vmatpush.bf16.msrb.mxu1 %v8056_v21 }
 0xcdf   : > { %5854 = vrot.lane.b32.xlu0 %v11363_v57, %s11976_s12 }
 0xce0   : > { %5549 = vrot.lane.b32.xlu2 %v5834_v37, %s11980_s25 }
 0xce2   : > { %5802 = vrot.lane.b32.xlu1 %v5646_v38, %s11975_s30 }
 0xce7   : > { %5555 = vrot.lane.b32.xlu0 %v11324_v54, %s11980_s25  ;;  %v8053_v54 = vld [vmem:[%s11981_s3 + $0x30] sm:$0xff] }
 0xce8   : > { %5607 = vrot.lane.b32.xlu2 %v11329_v15, %s11975_s30  ;;  %6141 = vmatpush.bf16.msra.mxu3 %v8053_v54 }
 0xcea   : > { %5860 = vrot.lane.b32.xlu1 %v11379_v52, %s11976_s12 }
 0xcec   : > { %7842 = vmatmul.msk.bf16.gmra.mxu0 %vm3700_vm11, %v7766_v50  ;;  %6142 = vmatpush.bf16.msra.mxu3 %v8052_v26 }
 0xcef   : > { %5665 = vrot.lane.b32.xlu0 %v5645_v23, %s11976_s12 }
 0xcf0   : > { %5741 = vrot.lane.b32.xlu2 %v11329_v15, %s11980_s25  ;;  %6143 = vmatpush.bf16.msra.mxu3 %v8051_v2  ;;  %v8048_v15 = vld [vmem:[%s11981_s3 + $0x8] sm:$0xff] }
 0xcf2   : > { %5613 = vrot.lane.b32.xlu1 %v11349_v36, %s11975_s30 }
 0xcf4   : > { %6144 = vmatpush.bf16.msra.mxu3 %v8050_v30 }
 0xcf7   : > { %5747 = vrot.lane.b32.xlu0 %v11349_v36, %s11980_s25 }
 0xcf8   : > { %5800 = vrot.lane.b32.xlu2 %v5645_v23, %s11975_s30  ;;  %6145 = vmatpush.bf16.msra.mxu3 %v8049_v41 }
 0xcfa   : > { %5671 = vrot.lane.b32.xlu1 %v5648_v17, %s11976_s12 }
 0xcfc   : > { %6146 = vmatpush.bf16.msra.mxu3 %v8048_v15 }
 0xcff   : > { %5858 = vrot.lane.b32.xlu0 %v11387_v11, %s11976_s12 }
 0xd00   : > { %5553 = vrot.lane.b32.xlu2 %v11363_v57, %s11980_s25  ;;  %6147 = vmatpush.bf16.msra.mxu3 %v8047_v8 }
 0xd02   : > { %5806 = vrot.lane.b32.xlu1 %v5648_v17, %s11975_s30 }
 0xd07   : > { %5559 = vrot.lane.b32.xlu0 %v11379_v52, %s11980_s25 }
 0xd08   : > { %5611 = vrot.lane.b32.xlu2 %v11317_v19, %s11975_s30 }
 0xd0a   : > { %v5548_v24 = vpop.permute.xlu2 %5547  ;;  %5864 = vrot.lane.b32.xlu1 %v5841_v43, %s11976_s12 }
 0xd0b   : > { %5570 = vst.msk [vmem:[#allocation7 + $0xc] sm:$0xf] %vm3953_vm13, %v5548_v24 }
 0xd0f   : > { %5669 = vrot.lane.b32.xlu0 %v11389_v20, %s11976_s12 }
 0xd10   : > { %5745 = vrot.lane.b32.xlu2 %v11317_v19, %s11980_s25  ;;  %v8055_v19 = vld [vmem:[%s11981_s3 + $0x40] sm:$0xff] }
 0xd11   : > { %6176 = vmatpush.bf16.msrb.mxu1 %v8055_v19 }
 0xd12   : > { %v5604_v45 = vpop.permute.xlu2 %5603 }
 0xd13   : > { %5626 = vst.msk [vmem:[#allocation7 + $0xc] sm:$0xf] %vm4066_vm14, %v5604_v45 }
 0xd17   : > { %5751 = vrot.lane.b32.xlu0 %v11370_v46, %s11980_s25 }
 0xd18   : > { %5804 = vrot.lane.b32.xlu2 %v11389_v20, %s11975_s30 }
 0xd1a   : > { %v5660_v55 = vpop.permute.xlu2 %5659 }
 0xd1b   : > { %5682 = vst.msk [vmem:[#allocation7 + $0xc] sm:$0xf] %vm4179_vm15, %v5660_v55 }
 0xd1c   : > { %v5740_v59 = vpop.permute.xlu1 %5739 }
 0xd1d   : > { %5762 = vst.msk [vmem:[#allocation7 + $0x10] sm:$0xf] %vm3953_vm13, %v5740_v59 }
 0xd1f   : > { %5862 = vrot.lane.b32.xlu0 %v11391_v12, %s11976_s12 }
 0xd20   : > { %5557 = vrot.lane.b32.xlu2 %v11387_v11, %s11980_s25 }
 0xd21   : > { %v5658_v56 = vpop.permute.xlu0 %5657 }
 0xd22   : > { %v5738_v33 = vpop.permute.xlu2 %5737  ;;  %5681 = vst.msk [vmem:[#allocation7] sm:$0xf] %vm4179_vm15, %v5658_v56  ;;  %v8036_v36 = vld [vmem:[#allocation7 + $0x8] sm:$0xf0] }
 0xd23   : > { %5761 = vst.msk [vmem:[#allocation7 + $0x4] sm:$0xf] %vm3953_vm13, %v5738_v33 }
 0xd24   : > { %v5606_v22 = vpop.permute.xlu1 %5605 }
 0xd28   : > { %5615 = vrot.lane.b32.xlu2 %v11351_v3, %s11975_s30 }
 0xd29   : > { %v5797_v61 = vpop.permute.xlu0 %5796  ;;  %v7721_v47 = vld [vmem:[#allocation7] sm:$0xf] }
 0xd2a   : > { %v5795_v37 = vpop.permute.xlu2 %5794  ;;  %5819 = vst.msk [vmem:[#allocation7 + $0x10] sm:$0xf] %vm4066_vm14, %v5797_v61  ;;  %v7722_v1 = vor.u32 %v8036_v36, %v7721_v47 }
 0xd2b   : > { %5818 = vst.msk [vmem:[#allocation7 + $0x4] sm:$0xf] %vm4066_vm14, %v5795_v37 }
 0xd2c   : > { %6148 = vmatmul.bf16.vlgmr.msra.gmra.mxu3 %v7722_v1  ;;  %v5664_v38 = vpop.permute.xlu1 %5663  ;;  %v8206_v1 = vld [vmem:[%s11943_s5 + $0x2] ss:$0 sm:$0xff] }
 0xd30   : > { %5749 = vrot.lane.b32.xlu2 %v11351_v3, %s11980_s25 }
 0xd31   : > { %v5853_v57 = vpop.permute.xlu0 %5852 }
 0xd32   : > { %v5851_v34 = vpop.permute.xlu2 %5850  ;;  %5875 = vst.msk [vmem:[#allocation7 + $0x10] sm:$0xf] %vm4179_vm15, %v5853_v57 }
 0xd33   : > { %5874 = vst.msk [vmem:[#allocation7 + $0x4] sm:$0xf] %vm4179_vm15, %v5851_v34 }
 0xd34   : > { %v5799_v48 = vpop.permute.xlu1 %5798 }
 0xd38   : > { %5808 = vrot.lane.b32.xlu2 %v5785_v4, %s11975_s30 }
 0xd39   : > { %v5552_v44 = vpop.permute.xlu0 %5551  ;;  %v7723_v46 = vld [vmem:[#allocation7 + $0xc] sm:$0xf0]  ;;  %v6207_v32 = vpop.f32.mrf.mxu0 }
 0xd3a   : > { %v5550_v13 = vpop.permute.xlu2 %5549  ;;  %5572 = vst.msk [vmem:[#allocation7 + $0x24] sm:$0xf] %vm3953_vm13, %v5552_v44  ;;  %v8035_v0 = vld [vmem:[#allocation7 + $0x4] sm:$0xf] }
 0xd3b   : > { %5571 = vst.msk [vmem:[#allocation7 + $0x18] sm:$0xf] %vm3953_vm13, %v5550_v13  ;;  %v7726_v3 = vor.u32 %v8035_v0, %v7723_v46 }
 0xd3c   : > { %5627 = vst.msk [vmem:[#allocation7 + $0x18] sm:$0xf] %vm4066_vm14, %v5606_v22  ;;  %v5857_v52 = vpop.permute.xlu1 %5856 }
 0xd3d   : > { %6177 = vmatmul.bf16.vlgmr.msrb.gmra.mxu1 %v7726_v3 }
 0xd41   : > { %v5662_v9 = vpop.permute.xlu0 %5661  ;;  %v6209_v0 = vpop.f32.mrf.mxu0 }
 0xd42   : > { %v5608_v29 = vpop.permute.xlu2 %5607  ;;  %5683 = vst.msk [vmem:[#allocation7 + $0x18] sm:$0xf] %vm4179_vm15, %v5662_v9 }
 0xd43   : > { %5628 = vst.msk [vmem:[#allocation7 + $0x24] sm:$0xf] %vm4066_vm14, %v5608_v29 }
 0xd44   : > { %5684 = vst.msk [vmem:[#allocation7 + $0x24] sm:$0xf] %vm4179_vm15, %v5664_v38  ;;  %v5610_v11 = vpop.permute.xlu1 %5609 }
 0xd49   : > { %v5744_v49 = vpop.permute.xlu0 %5743  ;;  %v7733_v63 = vld [vmem:[#allocation7 + $0x18] sm:$0xf] }
 0xd4a   : > { %v5742_v23 = vpop.permute.xlu2 %5741  ;;  %5764 = vst.msk [vmem:[#allocation7 + $0x28] sm:$0xf] %vm3953_vm13, %v5744_v49 }
 0xd4b   : > { %5763 = vst.msk [vmem:[#allocation7 + $0x1c] sm:$0xf] %vm3953_vm13, %v5742_v23  ;;  %v8039_v7 = vld [vmem:[#allocation7 + $0x20] sm:$0xf0] }
 0xd4c   : > { %5820 = vst.msk [vmem:[#allocation7 + $0x1c] sm:$0xf] %vm4066_vm14, %v5799_v48  ;;  %v7734_v20 = vor.u32 %v8039_v7, %v7733_v63  ;;  %v5668_v39 = vpop.permute.xlu1 %5667 }
 0xd4e   : > { %6153 = vmatmul.bf16.gmra.mxu3 %v7734_v20 }
 0xd51   : > { %v5855_v35 = vpop.permute.xlu0 %5854 }
 0xd52   : > { %v5801_v12 = vpop.permute.xlu2 %5800  ;;  %5876 = vst.msk [vmem:[#allocation7 + $0x1c] sm:$0xf] %vm4179_vm15, %v5855_v35 }
 0xd53   : > { %5821 = vst.msk [vmem:[#allocation7 + $0x28] sm:$0xf] %vm4066_vm14, %v5801_v12 }
 0xd54   : > { %5877 = vst.msk [vmem:[#allocation7 + $0x28] sm:$0xf] %vm4179_vm15, %v5857_v52  ;;  %v5803_v58 = vpop.permute.xlu1 %5802  ;;  %v6212_v52 = vpop.f32.mrf.mxu0 }
 0xd59   : > { %v5556_v10 = vpop.permute.xlu0 %5555  ;;  %v8038_v18 = vld [vmem:[#allocation7 + $0x1c] sm:$0xf] }
 0xd5a   : > { %v5554_v27 = vpop.permute.xlu2 %5553  ;;  %5574 = vst.msk [vmem:[#allocation7 + $0x3c] sm:$0xf] %vm3953_vm13, %v5556_v10 }
 0xd5b   : > { %5573 = vst.msk [vmem:[#allocation7 + $0x30] sm:$0xf] %vm3953_vm13, %v5554_v27  ;;  %v7735_v51 = vld [vmem:[#allocation7 + $0x24] sm:$0xf0] }
 0xd5c   : > { %5629 = vst.msk [vmem:[#allocation7 + $0x30] sm:$0xf] %vm4066_vm14, %v5610_v11  ;;  %v7738_v60 = vor.u32 %v8038_v18, %v7735_v51  ;;  %v5861_v54 = vpop.permute.xlu1 %5860  ;;  %v6214_v12 = vpop.f32.mrf.mxu0 }
 0xd5e   : > { %6182 = vmatmul.bf16.gmra.mxu1 %v7738_v60 }
 0xd61   : > { %v5666_v53 = vpop.permute.xlu0 %5665 }
 0xd62   : > { %v5612_v50 = vpop.permute.xlu2 %5611  ;;  %5685 = vst.msk [vmem:[#allocation7 + $0x30] sm:$0xf] %vm4179_vm15, %v5666_v53 }
 0xd63   : > { %5630 = vst.msk [vmem:[#allocation7 + $0x3c] sm:$0xf] %vm4066_vm14, %v5612_v50 }
 0xd64   : > { %5686 = vst.msk [vmem:[#allocation7 + $0x3c] sm:$0xf] %vm4179_vm15, %v5668_v39  ;;  %v5614_v17 = vpop.permute.xlu1 %5613  ;;  %v6217_v18 = vpop.f32.mrf.mxu0 }
 0xd69   : > { %v5748_v16 = vpop.permute.xlu0 %5747  ;;  %v7745_v62 = vld [vmem:[#allocation7 + $0x30] sm:$0xf] }
 0xd6a   : > { %v5746_v40 = vpop.permute.xlu2 %5745  ;;  %5766 = vst.msk [vmem:[#allocation7 + $0x40] sm:$0xf] %vm3953_vm13, %v5748_v16 }
 0xd6b   : > { %5765 = vst.msk [vmem:[#allocation7 + $0x34] sm:$0xf] %vm3953_vm13, %v5746_v40  ;;  %v8042_v26 = vld [vmem:[#allocation7 + $0x38] sm:$0xf0] }
 0xd6c   : > { %5822 = vst.msk [vmem:[#allocation7 + $0x34] sm:$0xf] %vm4066_vm14, %v5803_v58  ;;  %v7746_v2 = vor.u32 %v8042_v26, %v7745_v62  ;;  %v5672_v24 = vpop.permute.xlu1 %5671  ;;  %v6219_v62 = vpop.f32.mrf.mxu0 }
 0xd6e   : > { %6158 = vmatmul.bf16.gmra.mxu3 %v7746_v2 }
 0xd71   : > { %v5859_v28 = vpop.permute.xlu0 %5858 }
 0xd72   : > { %v5805_v30 = vpop.permute.xlu2 %5804  ;;  %5878 = vst.msk [vmem:[#allocation7 + $0x34] sm:$0xf] %vm4179_vm15, %v5859_v28 }
 0xd73   : > { %5823 = vst.msk [vmem:[#allocation7 + $0x40] sm:$0xf] %vm4066_vm14, %v5805_v30 }
 0xd74   : > { %5879 = vst.msk [vmem:[#allocation7 + $0x40] sm:$0xf] %vm4179_vm15, %v5861_v54  ;;  %v5807_v6 = vpop.permute.xlu1 %5806  ;;  %v6222_v28 = vpop.f32.mrf.mxu0 }
 0xd79   : > { %v5560_v41 = vpop.permute.xlu0 %5559  ;;  %v8041_v5 = vld [vmem:[#allocation7 + $0x34] sm:$0xf] }
 0xd7a   : > { %v5558_v15 = vpop.permute.xlu2 %5557  ;;  %5576 = vst.msk [vmem:[#allocation7 + $0x54] sm:$0xf] %vm3953_vm13, %v5560_v41 }
 0xd7b   : > { %5575 = vst.msk [vmem:[#allocation7 + $0x48] sm:$0xf] %vm3953_vm13, %v5558_v15  ;;  %v7747_v8 = vld [vmem:[#allocation7 + $0x3c] sm:$0xf0] }
 0xd7c   : > { %5631 = vst.msk [vmem:[#allocation7 + $0x48] sm:$0xf] %vm4066_vm14, %v5614_v17  ;;  %v7750_v25 = vor.u32 %v8041_v5, %v7747_v8  ;;  %v5865_v56 = vpop.permute.xlu1 %5864 }
 0xd7e   : > { %6187 = vmatmul.bf16.gmra.mxu1 %v7750_v25 }
 0xd81   : > { %v5670_v43 = vpop.permute.xlu0 %5669 }
 0xd82   : > { %v5616_v42 = vpop.permute.xlu2 %5615  ;;  %5687 = vst.msk [vmem:[#allocation7 + $0x48] sm:$0xf] %vm4179_vm15, %v5670_v43 }
 0xd83   : > { %5632 = vst.msk [vmem:[#allocation7 + $0x54] sm:$0xf] %vm4066_vm14, %v5616_v42 }
 0xd84   : > { %5688 = vst.msk [vmem:[#allocation7 + $0x54] sm:$0xf] %vm4179_vm15, %v5672_v24 }
 0xd89   : > { %v5752_v45 = vpop.permute.xlu0 %5751  ;;  %v7757_v19 = vld [vmem:[#allocation7 + $0x48] sm:$0xf] }
 0xd8a   : > { %v5750_v21 = vpop.permute.xlu2 %5749  ;;  %5768 = vst.msk [vmem:[#allocation7 + $0x58] sm:$0xf] %vm3953_vm13, %v5752_v45  ;;  %v6224_v45 = vpop.f32.mrf.mxu0 }
 0xd8b   : > { %5767 = vst.msk [vmem:[#allocation7 + $0x4c] sm:$0xf] %vm3953_vm13, %v5750_v21  ;;  %v8045_v55 = vld [vmem:[#allocation7 + $0x50] sm:$0xf0] }
 0xd8c   : > { %5824 = vst.msk [vmem:[#allocation7 + $0x4c] sm:$0xf] %vm4066_vm14, %v5807_v6  ;;  %v7758_v59 = vor.u32 %v8045_v55, %v7757_v19 }
 0xd8e   : > { %6163 = vmatmul.bf16.gmra.mxu3 %v7758_v59 }
 0xd91   : > { %v5863_v33 = vpop.permute.xlu0 %5862 }
 0xd92   : > { %v5809_v22 = vpop.permute.xlu2 %5808  ;;  %5880 = vst.msk [vmem:[#allocation7 + $0x4c] sm:$0xf] %vm4179_vm15, %v5863_v33 }
 0xd93   : > { %5825 = vst.msk [vmem:[#allocation7 + $0x58] sm:$0xf] %vm4066_vm14, %v5809_v22 }
 0xd94   : > { %5881 = vst.msk [vmem:[#allocation7 + $0x58] sm:$0xf] %vm4179_vm15, %v5865_v56 }
 0xd99   : > { %v8044_v61 = vld [vmem:[#allocation7 + $0x4c] sm:$0xf] }
 0xd9b   : > { %v7759_v37 = vld [vmem:[#allocation7 + $0x54] sm:$0xf0] }
 0xd9c   : > { %v7762_v47 = vor.u32 %v8044_v61, %v7759_v37 }
 0xd9e   : > { %6192 = vmatmul.bf16.gmra.mxu1 %v7762_v47 }
 0xdaf   : > { %v6149_v36 = vpop.f32.mrf.mxu3 }
 0xdb0   : > { %v6150_v38 = vadd.f32 %v8206_v1, %v6149_v36 }
 0xdb7   : > { %v6151_v48 = vpop.f32.mrf.mxu3 }
 0xdb8   : > { %v6152_v44 = vadd.f32 %v8206_v1, %v6151_v48 }
 0xdba   : > { %v6178_v57 = vpop.f32.mrf.mxu1 }
 0xdbb   : > { %v6179_v34 = vadd.f32 %v6178_v57, %v6150_v38 }
 0xdbd   : > { %v11548_v4 = vadd.f32 %v6207_v32, %v6179_v34 }
 0xdbf   : > { %6270 = vrot.lane.b32.xlu2 %v11548_v4, %s11977_s14  ;;  %v6229_v25 = vsel %vm434_vm0, %v11548_v4, 0.0 }
 0xdc2   : > { %v6180_v13 = vpop.f32.mrf.mxu1 }
 0xdc3   : > { %v6181_v46 = vadd.f32 %v6180_v13, %v6152_v44 }
 0xdc5   : > { %v11552_v3 = vadd.f32 %v6209_v0, %v6181_v46 }
 0xdc7   : > { %6272 = vrot.lane.b32.xlu0 %v11552_v3, %s11977_s14  ;;  %v6230_v5 = vsel %vm434_vm0, %v11552_v3, 0.0 }
 0xdc8   : > { %v6231_v6 = vadd.f32 %v6230_v5, %v6229_v25 }
 0xdd1   : > { %v6154_v9 = vpop.f32.mrf.mxu3 }
 0xdd2   : > { %v6155_v29 = vadd.f32 %v8206_v1, %v6154_v9 }
 0xdd9   : > { %v6156_v7 = vpop.f32.mrf.mxu3 }
 0xdda   : > { %v6157_v11 = vadd.f32 %v8206_v1, %v6156_v7 }
 0xddb   : > { %v6183_v49 = vpop.f32.mrf.mxu1 }
 0xddc   : > { %v6184_v23 = vadd.f32 %v6183_v49, %v6155_v29 }
 0xdde   : > { %v11556_v63 = vadd.f32 %v6212_v52, %v6184_v23 }
 0xde0   : > { %6274 = vrot.lane.b32.xlu1 %v11556_v63, %s11977_s14  ;;  %v6232_v43 = vsel %vm434_vm0, %v11556_v63, 0.0 }
 0xde1   : > { %v6233_v55 = vadd.f32 %v6232_v43, %v6231_v6 }
 0xde3   : > { %v6185_v20 = vpop.f32.mrf.mxu1 }
 0xde4   : > { %v6186_v35 = vadd.f32 %v6185_v20, %v6157_v11 }
 0xde6   : > { %v11560_v39 = vadd.f32 %v6214_v12, %v6186_v35 }
 0xde8   : > { %6276 = vrot.lane.b32.xlu2 %v11560_v39, %s11977_s14  ;;  %v6234_v21 = vsel %vm434_vm0, %v11560_v39, 0.0 }
 0xde9   : > { %v6235_v56 = vadd.f32 %v6234_v21, %v6233_v55 }
 0xdf1   : > { %v6159_v10 = vpop.f32.mrf.mxu3 }
 0xdf2   : > { %v6160_v27 = vadd.f32 %v8206_v1, %v6159_v10 }
 0xdf9   : > { %v6161_v53 = vpop.f32.mrf.mxu3 }
 0xdfa   : > { %v6162_v50 = vadd.f32 %v8206_v1, %v6161_v53 }
 0xdfb   : > { %v6188_v51 = vpop.f32.mrf.mxu1 }
 0xdfc   : > { %v6189_v60 = vadd.f32 %v6188_v51, %v6160_v27 }
 0xdfe   : > { %v11564_v58 = vadd.f32 %v6217_v18, %v6189_v60 }
 0xe00   : > { %6278 = vrot.lane.b32.xlu0 %v11564_v58, %s11977_s14  ;;  %v6236_v59 = vsel %vm434_vm0, %v11564_v58, 0.0 }
 0xe01   : > { %v6237_v22 = vadd.f32 %v6236_v59, %v6235_v56 }
 0xe03   : > { %v6190_v16 = vpop.f32.mrf.mxu1 }
 0xe04   : > { %v6191_v40 = vadd.f32 %v6190_v16, %v6162_v50 }
 0xe06   : > { %v11568_v54 = vadd.f32 %v6219_v62, %v6191_v40 }
 0xe08   : > { %6280 = vrot.lane.b32.xlu1 %v11568_v54, %s11977_s14  ;;  %v6238_v33 = vsel %vm434_vm0, %v11568_v54, 0.0 }
 0xe09   : > { %v6239_v37 = vadd.f32 %v6238_v33, %v6237_v22 }
 0xe11   : > { %v6164_v26 = vpop.f32.mrf.mxu3 }
 0xe12   : > { %v6165_v2 = vadd.f32 %v8206_v1, %v6164_v26 }
 0xe19   : > { %v6166_v15 = vpop.f32.mrf.mxu3  ;;  %v6271_v38 = vpop.permute.xlu2 %6270 }
 0xe1a   : > { %v6167_v8 = vadd.f32 %v8206_v1, %v6166_v15  ;;  %v6294_v48 = vsel %vm434_vm0, %v6271_v38, 0.0 }
 0xe1b   : > { %v6193_v30 = vpop.f32.mrf.mxu1 }
 0xe1c   : > { %v6194_v17 = vadd.f32 %v6193_v30, %v6165_v2 }
 0xe1e   : > { %v11572_v41 = vadd.f32 %v6222_v28, %v6194_v17 }
 0xe20   : > { %6282 = vrot.lane.b32.xlu2 %v11572_v41, %s11977_s14  ;;  %v6240_v61 = vsel %vm434_vm0, %v11572_v41, 0.0 }
 0xe21   : > { %v6241_v36 = vadd.f32 %v6240_v61, %v6239_v37 }
 0xe23   : > { %v6195_v24 = vpop.f32.mrf.mxu1 }
 0xe24   : > { %v6196_v42 = vadd.f32 %v6195_v24, %v6167_v8 }
 0xe26   : > { %v11584_v19 = vadd.f32 %v6224_v45, %v6196_v42 }
 0xe28   : > { %6284 = vrot.lane.b32.xlu0 %v11584_v19, %s11977_s14  ;;  %v6242_v47 = vsel %vm434_vm0, %v11584_v19, 0.0 }
 0xe29   : > { %v6243_v1 = vadd.f32 %v6242_v47, %v6241_v36 }
 0xe32   : > { %6244 = vadd.xlane.f32.xlu1 %v6243_v1 }
 0xe39   : > { %v6273_v32 = vpop.permute.xlu0 %6272 }
 0xe3a   : > { %v6295_v34 = vsel %vm434_vm0, %v6273_v32, 0.0 }
 0xe3b   : > { %v6296_v13 = vadd.f32 %v6295_v34, %v6294_v48 }
 0xe42   : > { %v6277_v46 = vpop.permute.xlu2 %6276 }
 0xe43   : > { %v6299_v52 = vsel %vm434_vm0, %v6277_v46, 0.0 }
 0xe52   : > { %v6275_v57 = vpop.permute.xlu1 %6274 }
 0xe53   : > { %v6297_v44 = vsel %vm434_vm0, %v6275_v57, 0.0 }
 0xe54   : > { %v6298_v0 = vadd.f32 %v6297_v44, %v6296_v13 }
 0xe56   : > { %v6300_v23 = vadd.f32 %v6299_v52, %v6298_v0 }
 0xe72   : > { %v6279_v9 = vpop.permute.xlu0 %6278 }
 0xe73   : > { %v6301_v49 = vsel %vm434_vm0, %v6279_v9, 0.0 }
 0xe74   : > { %v6302_v11 = vadd.f32 %v6301_v49, %v6300_v23 }
 0xe7a   : > { %v6281_v29 = vpop.permute.xlu1 %6280  ;;  %v6283_v35 = vpop.permute.xlu2 %6282 }
 0xe7b   : > { %v6303_v7 = vsel %vm434_vm0, %v6281_v29, 0.0  ;;  %v6305_v12 = vsel %vm434_vm0, %v6283_v35, 0.0 }
 0xe7c   : > { %v6304_v20 = vadd.f32 %v6303_v7, %v6302_v11 }
 0xe7e   : > { %v6306_v10 = vadd.f32 %v6305_v12, %v6304_v20 }
 0xe9a   : > { %v6285_v27 = vpop.permute.xlu0 %6284 }
 0xe9b   : > { %v6307_v18 = vsel %vm434_vm0, %v6285_v27, 0.0 }
 0xe9c   : > { %v6308_v51 = vadd.f32 %v6307_v18, %v6306_v10 }
 0xe9e   : > { %6309 = vadd.xlane.f32.xlu2 %v6308_v51 }
 0xea5   : > { %v6245_v60 = vpop.xlane.xlu1 %6244 }
 0xea6   : > { %v6246_v53 = vrot.slane %v6245_v60, 4 }
 0xea8   : > { %v6247_v50 = vadd.f32 %v6246_v53, %v6245_v60 }
 0xeaa   : > { %v6248_v16 = vrot.slane %v6247_v50, 2 }
 0xeac   : > { %v6249_v40 = vadd.f32 %v6248_v16, %v6247_v50 }
 0xeae   : > { %v6250_v62 = vrot.slane %v6249_v40, 1 }
 0xeb0   : > { %v6251_v26 = vadd.f32 %v6250_v62, %v6249_v40 }
 0xeb2   : > { %8119 = vpush %v6251_v26 }
 0xee3   : > { %s8120_s16 = spop %8119 }
 0xee4   : > { %s6261_s2 = smul.f32 %s8120_s16, %s11227_s26 }
 0xee6   : > { %v6327_v25 = vstv %s6261_s2 }
 0xee7   : > { %v6485_v24 = vmul.f32 %v9939_v14, %v6327_v25  ;;  %v6328_v48 = vsub.f32 %v11548_v4, %v6327_v25  ;;  %v6329_v44 = vsub.f32 %v11552_v3, %v6327_v25  ;;  %v6330_v0 = vsub.f32 %v11556_v63, %v6327_v25 }
 0xee8   : > { %v6331_v52 = vsub.f32 %v11560_v39, %v6327_v25  ;;  %v6332_v7 = vsub.f32 %v11564_v58, %v6327_v25  ;;  %v6333_v12 = vsub.f32 %v11568_v54, %v6327_v25  ;;  %v6334_v51 = vsub.f32 %v11572_v41, %v6327_v25 }
 0xee9   : > { %v6336_v13 = vmul.f32 %v6328_v48, %v6328_v48  ;;  %v6337_v46 = vmul.f32 %v6329_v44, %v6329_v44  ;;  %v6338_v49 = vmul.f32 %v6330_v0, %v6330_v0  ;;  %v6335_v16 = vsub.f32 %v11584_v19, %v6327_v25 }
 0xeea   : > { %v6339_v11 = vmul.f32 %v6331_v52, %v6331_v52  ;;  %v6340_v10 = vmul.f32 %v6332_v7, %v6332_v7  ;;  %v6341_v60 = vmul.f32 %v6333_v12, %v6333_v12  ;;  %v6342_v40 = vmul.f32 %v6334_v51, %v6334_v51 }
 0xeeb   : > { %v6344_v9 = vsel %vm434_vm0, %v6336_v13, 0.0  ;;  %v6345_v29 = vsel %vm434_vm0, %v6337_v46, 0.0  ;;  %v6347_v20 = vsel %vm434_vm0, %v6338_v49, 0.0 }
 0xeec   : > { %v6346_v23 = vadd.f32 %v6345_v29, %v6344_v9  ;;  %v6349_v27 = vsel %vm434_vm0, %v6339_v11, 0.0  ;;  %v6351_v53 = vsel %vm434_vm0, %v6340_v10, 0.0  ;;  %v6353_v62 = vsel %vm434_vm0, %v6341_v60, 0.0 }
 0xeee   : > { %v6348_v35 = vadd.f32 %v6347_v20, %v6346_v23 }
 0xef0   : > { %v6350_v18 = vadd.f32 %v6349_v27, %v6348_v35 }
 0xef2   : > { %v6352_v50 = vadd.f32 %v6351_v53, %v6350_v18 }
 0xef4   : > { %v6354_v26 = vadd.f32 %v6353_v62, %v6352_v50 }
 0xf11   : > { %v6310_v2 = vpop.xlane.xlu2 %6309 }
 0xf12   : > { %v6311_v28 = vrot.slane %v6310_v2, 4 }
 0xf14   : > { %v6312_v30 = vadd.f32 %v6311_v28, %v6310_v2  ;;  %v6343_v2 = vmul.f32 %v6335_v16, %v6335_v16  ;;  %v6355_v28 = vsel %vm434_vm0, %v6342_v40, 0.0 }
 0xf16   : > { %v6313_v17 = vrot.slane %v6312_v30, 2 }
 0xf18   : > { %v6314_v15 = vadd.f32 %v6313_v17, %v6312_v30  ;;  %v6356_v30 = vadd.f32 %v6355_v28, %v6354_v26  ;;  %v6357_v17 = vsel %vm434_vm0, %v6343_v2, 0.0 }
 0xf1a   : > { %v6315_v5 = vrot.slane %v6314_v15, 1 }
 0xf1c   : > { %v6316_v8 = vadd.f32 %v6315_v5, %v6314_v15  ;;  %v6358_v15 = vadd.f32 %v6357_v17, %v6356_v30 }
 0xf1e   : > { %8121 = vpush %v6316_v8 }
 0xf4f   : > { %s8122_s29 = spop %8121 }
 0xf50   : > { %s6326_s19 = smul.f32 %s8122_s29, %s11227_s26 }
 0xf52   : > { %v6377_v43 = vstv %s6326_s19 }
 0xf53   : > { %v6486_v42 = vmul.f32 %v6377_v43, %v9947_v31  ;;  %v6384_v6 = vsub.f32 %v11572_v41, %v6377_v43  ;;  %v6383_v45 = vsub.f32 %v11568_v54, %v6377_v43  ;;  %v6378_v21 = vsub.f32 %v11548_v4, %v6377_v43 }
 0xf54   : > { %v6379_v22 = vsub.f32 %v11552_v3, %v6377_v43  ;;  %v6380_v37 = vsub.f32 %v11556_v63, %v6377_v43  ;;  %v6381_v36 = vsub.f32 %v11560_v39, %v6377_v43  ;;  %v6382_v38 = vsub.f32 %v11564_v58, %v6377_v43 }
 0xf55   : > { %v11611_v55 = vadd.f32 %v6486_v42, %v6485_v24  ;;  %v6392_v59 = vmul.f32 %v6384_v6, %v6384_v6  ;;  %v6391_v56 = vmul.f32 %v6383_v45, %v6383_v45  ;;  %v6386_v33 = vmul.f32 %v6378_v21, %v6378_v21 }
 0xf56   : > { %v6387_v61 = vmul.f32 %v6379_v22, %v6379_v22  ;;  %v6388_v47 = vmul.f32 %v6380_v37, %v6380_v37  ;;  %v6389_v1 = vmul.f32 %v6381_v36, %v6381_v36  ;;  %v6390_v32 = vmul.f32 %v6382_v38, %v6382_v38 }
 0xf57   : > { %6414 = vrot.lane.b32.xlu2 %v6392_v59, %s11977_s14  ;;  %6412 = vrot.lane.b32.xlu1 %v6391_v56, %s11977_s14  ;;  %v6385_v57 = vsub.f32 %v11584_v19, %v6377_v43 }
 0xf58   : > { %6402 = vrot.lane.b32.xlu0 %v6386_v33, %s11977_s14 }
 0xf59   : > { %v6393_v34 = vmul.f32 %v6385_v57, %v6385_v57 }
 0xf60   : > { %6404 = vrot.lane.b32.xlu0 %v6387_v61, %s11977_s14 }
 0xf68   : > { %6406 = vrot.lane.b32.xlu0 %v6388_v47, %s11977_s14 }
 0xf70   : > { %6408 = vrot.lane.b32.xlu0 %v6389_v1, %s11977_s14 }
 0xf78   : > { %6410 = vrot.lane.b32.xlu0 %v6390_v32, %s11977_s14 }
 0xf80   : > { %6416 = vrot.lane.b32.xlu0 %v6393_v34, %s11977_s14 }
 0xfaa   : > { %6359 = vadd.xlane.f32.xlu0 %v6358_v15 }
 0xfb1   : > { %v6415_v36 = vpop.permute.xlu2 %6414 }
 0xfb2   : > { %v6437_v38 = vsel %vm434_vm0, %v6415_v36, 0.0  ;;  %v11672_v36 = vld [vmem:[%s11945_s7 + $0x2] ss:$0 sm:$0xff] }
 0xfc9   : > { %v6413_v56 = vpop.permute.xlu1 %6412 }
 0xfca   : > { %v6403_v5 = vpop.permute.xlu0 %6402  ;;  %v6435_v47 = vsel %vm434_vm0, %v6413_v56, 0.0 }
 0xfcb   : > { %v6426_v25 = vsel %vm434_vm0, %v6403_v5, 0.0  ;;  %v6588_v5 = vld [vmem:[#allocation8 + $0x1] sm:$0xff] }
 0xfd2   : > { %v6405_v8 = vpop.permute.xlu0 %6404 }
 0xfd3   : > { %v6427_v42 = vsel %vm434_vm0, %v6405_v8, 0.0  ;;  %v6592_v8 = vpack.c.bf16 %v6588_v5, %v6588_v5 }
 0xfd4   : > { %v6428_v45 = vadd.f32 %v6427_v42, %v6426_v25 }
 0xfd5   : > { %6600 = vrot.lane.b32.xlu2 %v6592_v8, %s11980_s25 }
 0xfda   : > { %v6407_v24 = vpop.permute.xlu0 %6406 }
 0xfdb   : > { %v6429_v6 = vsel %vm434_vm0, %v6407_v24, 0.0  ;;  %v6616_v24 = vld [vmem:[#allocation8 + $0x2] sm:$0xff] }
 0xfdc   : > { %v6430_v59 = vadd.f32 %v6429_v6, %v6428_v45 }
 0xfe2   : > { %v6409_v43 = vpop.permute.xlu0 %6408 }
 0xfe3   : > { %v6431_v21 = vsel %vm434_vm0, %v6409_v43, 0.0  ;;  %v6620_v43 = vpack.c.bf16 %v6616_v24, %v6616_v24  ;;  %v6501_v24 = vsub.f32 %v11584_v19, %v11611_v55 }
 0xfe4   : > { %v6432_v33 = vadd.f32 %v6431_v21, %v6430_v59  ;;  %v6227_v21 = vld [vmem:[%s11944_s6 + $0x2] sm:$0x1] }
 0xfe5   : > { %6628 = vrot.lane.b32.xlu2 %v6620_v43, %s11975_s30 }
 0xfea   : > { %v6411_v22 = vpop.permute.xlu0 %6410 }
 0xfeb   : > { %v6433_v61 = vsel %vm434_vm0, %v6411_v22, 0.0  ;;  %v6495_v22 = vsub.f32 %v11552_v3, %v11611_v55  ;;  %v6500_v3 = vsub.f32 %v11572_v41, %v11611_v55 }
 0xfec   : > { %v6434_v37 = vadd.f32 %v6433_v61, %v6432_v33  ;;  %v6494_v33 = vsub.f32 %v11548_v4, %v11611_v55  ;;  %v6496_v61 = vsub.f32 %v11556_v63, %v11611_v55  ;;  %v6499_v4 = vsub.f32 %v11568_v54, %v11611_v55 }
 0xfee   : > { %v6436_v1 = vadd.f32 %v6435_v47, %v6434_v37  ;;  %v6497_v37 = vsub.f32 %v11560_v39, %v11611_v55 }
 0xff0   : > { %v6438_v32 = vadd.f32 %v6437_v38, %v6436_v1  ;;  %v6498_v1 = vsub.f32 %v11564_v58, %v11611_v55 }
 0xff2   : > { %v6417_v57 = vpop.permute.xlu0 %6416 }
 0xff3   : > { %v6439_v34 = vsel %vm434_vm0, %v6417_v57, 0.0 }
 0xff4   : > { %v6440_v48 = vadd.f32 %v6439_v34, %v6438_v32 }
 0xff6   : > { %6441 = vadd.xlane.f32.xlu1 %v6440_v48 }
0x101d   : > { %v6360_v44 = vpop.xlane.xlu0 %6359 }
0x101e   : > { %v6361_v13 = vrot.slane %v6360_v44, 4 }
0x1020   : > { %v6362_v46 = vadd.f32 %v6361_v13, %v6360_v44 }
0x1022   : > { %v6363_v0 = vrot.slane %v6362_v46, 2 }
0x1024   : > { %v6364_v9 = vadd.f32 %v6363_v0, %v6362_v46 }
0x1026   : > { %v6365_v29 = vrot.slane %v6364_v9, 1 }
0x1028   : > { %v6366_v52 = vadd.f32 %v6365_v29, %v6364_v9 }
0x102a   : > { %8123 = vpush %v6366_v52 }
0x105b   : > { %s8124_s13 = spop %8123 }
0x105c   : > { %s6376_s0 = smul.f32 %s8124_s13, %s11227_s26 }
0x105e   : > { %s6459_s1 = sadd.f32 1e-05, %s6376_s0 }
0x1060   : > { %v6460_v49 = vstv %s6459_s1 }
0x1061   : > { %8222 = vrsqrt.f32 %v6460_v49  ;;  %vm6467_vm7 = vweird.f32 %v6460_v49 }
0x1067   : > { %v8223_v23 = vpop.eup %8222 }
0x1068   : > { %v6462_v7 = vmul.f32 %v8223_v23, %v6460_v49  ;;  %vm6468_vm6 = vweird.f32 %v8223_v23 }
0x1069   : > { %v6442_v11 = vpop.xlane.xlu1 %6441  ;;  %vm6469_vm8 = vmor %vm6467_vm7, %vm6468_vm6 }
0x106a   : > { %v6463_v20 = vmul.f32 %v8223_v23, %v6462_v7  ;;  %v6443_v35 = vrot.slane %v6442_v11, 4 }
0x106c   : > { %v6464_v12 = vmul.f32 0.5, %v6463_v20  ;;  %v6444_v10 = vadd.f32 %v6443_v35, %v6442_v11 }
0x106e   : > { %v6465_v27 = vsub.f32 1.5, %v6464_v12  ;;  %v6445_v18 = vrot.slane %v6444_v10, 2 }
0x1070   : > { %v6446_v51 = vadd.f32 %v6445_v18, %v6444_v10  ;;  %v6466_v53 = vmul.f32 %v8223_v23, %v6465_v27 }
0x1072   : > { %v6447_v60 = vrot.slane %v6446_v51, 1  ;;  %v6470_v16 = vsel %vm6469_vm8, %v8223_v23, %v6466_v53 }
0x1074   : > { %v6448_v50 = vadd.f32 %v6447_v60, %v6446_v51 }
0x1076   : > { %8125 = vpush %v6448_v50 }
0x1077   : > { %8127 = vpush %v6470_v16 }
0x10a7   : > { %s8126_s24 = spop %8125 }
0x10a8   : > { %s6458_s16 = smul.f32 %s8126_s24, %s11227_s26  ;;  %s8128_s26 = spop %8127 }
0x10a9   : > { %v6488_v42 = vstv %s8128_s26 }
0x10aa   : > { %s6472_s2 = sadd.f32 1e-05, %s6458_s16  ;;  %v6489_v6 = vmul.f32 %v9939_v14, %v6488_v42  ;;  %s8089_s16 = sshll.u32 %s8423_s21, 8 }
0x10ac   : > { %v6473_v40 = vstv %s6472_s2 }
0x10ad   : > { %8224 = vrsqrt.f32 %v6473_v40  ;;  %vm6480_vm10 = vweird.f32 %v6473_v40 }
0x10b3   : > { %v8225_v62 = vpop.eup %8224 }
0x10b4   : > { %v6475_v26 = vmul.f32 %v8225_v62, %v6473_v40  ;;  %vm6481_vm9 = vweird.f32 %v8225_v62 }
0x10b5   : > { %vm6482_vm1 = vmor %vm6480_vm10, %vm6481_vm9 }
0x10b6   : > { %v6476_v2 = vmul.f32 %v8225_v62, %v6475_v26 }
0x10b8   : > { %v6477_v28 = vmul.f32 0.5, %v6476_v2 }
0x10ba   : > { %v6478_v30 = vsub.f32 1.5, %v6477_v28 }
0x10bc   : > { %v6479_v17 = vmul.f32 %v8225_v62, %v6478_v30 }
0x10be   : > { %v6483_v15 = vsel %vm6482_vm1, %v8225_v62, %v6479_v17 }
0x10bf   : > { %8129 = vpush %v6483_v15 }
0x10f0   : > { %s8130_s29 = spop %8129 }
0x10f1   : > { %v6490_v25 = vstv %s8130_s29  ;;  %s7239_s29 = sshll.u32 %s10449_s22, 4  ;;  %s7240_s29 = int_to_ptr.vmem [resolvable:$true] %s7239_s29 }
0x10f2   : > { %v6491_v45 = vmul.f32 %v6490_v25, %v9947_v31 }
0x10f4   : > { %v6492_v59 = vadd.f32 %v6491_v45, %v6489_v6 }
0x10f6   : > { %v6493_v56 = vmul.f32 %v6492_v59, %v6227_v21 }
0x10f8   : > { %v11667_v47 = vperm.slane %v6493_v56, 0 }
0x10fa   : > { %v6503_v63 = vmul.f32 %v11667_v47, %v6494_v33  ;;  %v6504_v39 = vmul.f32 %v11667_v47, %v6495_v22  ;;  %v6505_v38 = vmul.f32 %v11667_v47, %v6496_v61  ;;  %v6506_v32 = vmul.f32 %v11667_v47, %v6497_v37 }
0x10fb   : > { %v6507_v57 = vmul.f32 %v11667_v47, %v6498_v1  ;;  %v6508_v34 = vmul.f32 %v11667_v47, %v6499_v4  ;;  %v6509_v58 = vmul.f32 %v11667_v47, %v6500_v3  ;;  %v6510_v42 = vmul.f32 %v11667_v47, %v6501_v24  ;;  %v8081_v24 = vld [vmem:[%s11982_s4 + $0x50] sm:$0xff] }
0x10fc   : > { %v6512_v48 = vadd.f32 %v11672_v36, %v6503_v63  ;;  %v6513_v54 = vadd.f32 %v11672_v36, %v6504_v39  ;;  %v6514_v41 = vadd.f32 %v11672_v36, %v6505_v38  ;;  %v6515_v44 = vadd.f32 %v11672_v36, %v6506_v32 }
0x10fd   : > { %v6516_v13 = vadd.f32 %v11672_v36, %v6507_v57  ;;  %v6517_v46 = vadd.f32 %v11672_v36, %v6508_v34  ;;  %v6518_v0 = vadd.f32 %v11672_v36, %v6509_v58  ;;  %v6519_v6 = vadd.f32 %v11672_v36, %v6510_v42  ;;  %v8087_v42 = vld [vmem:[%s11982_s4 + $0x80] sm:$0xff] }
0x10fe   : > { %v6528_v9 = vmul.f32 0.2, %v6512_v48  ;;  %v6529_v29 = vmul.f32 0.2, %v6513_v54  ;;  %v6530_v52 = vmul.f32 0.2, %v6514_v41 }
0x10ff   : > { %v6531_v49 = vmul.f32 0.2, %v6515_v44  ;;  %v6532_v23 = vmul.f32 0.2, %v6516_v13  ;;  %v6533_v7 = vmul.f32 0.2, %v6517_v46 }
0x1100   : > { %v6534_v11 = vmul.f32 0.2, %v6518_v0  ;;  %vm6523_vm2 = vcmp.ge.f32.partialorder %v6515_v44, 0.0  ;;  %vm6521_vm3 = vcmp.ge.f32.partialorder %v6513_v54, 0.0  ;;  %vm6520_vm4 = vcmp.ge.f32.partialorder %v6512_v48, 0.0 }
0x1101   : > { %v6539_v20 = vsel %vm6523_vm2, %v6515_v44, %v6531_v49  ;;  %v6537_v35 = vsel %vm6521_vm3, %v6513_v54, %v6529_v29  ;;  %vm6522_vm5 = vcmp.ge.f32.partialorder %v6514_v41, 0.0  ;;  %v6536_v12 = vsel %vm6520_vm4, %v6512_v48, %v6528_v9  ;;  %v6576_v29 = vld [vmem:[#allocation8] sm:$0xff] }
0x1102   : > { %6573 = vst.msk [vmem:[#allocation8 + $0x41] sm:$0xff] %vm3700_vm11, %v6539_v20  ;;  %v6538_v10 = vsel %vm6522_vm5, %v6514_v41, %v6530_v52  ;;  %vm6524_vm6 = vcmp.ge.f32.partialorder %v6516_v13, 0.0  ;;  %vm6526_vm7 = vcmp.ge.f32.partialorder %v6518_v0, 0.0  ;;  %vm6525_vm8 = vcmp.ge.f32.partialorder %v6517_v46, 0.0  ;;  %v8078_v20 = vld [vmem:[%s11982_s4 + $0x38] sm:$0xff] }
0x1103   : > { %6572 = vst.msk [vmem:[#allocation8 + $0x21] sm:$0xff] %vm3700_vm11, %v6537_v35  ;;  %v6540_v27 = vsel %vm6524_vm6, %v6516_v13, %v6532_v23  ;;  %v6542_v18 = vsel %vm6526_vm7, %v6518_v0, %v6534_v11  ;;  %v6541_v51 = vsel %vm6525_vm8, %v6517_v46, %v6533_v7  ;;  %v6535_v55 = vmul.f32 0.2, %v6519_v6  ;;  %v6601_v7 = vpop.permute.xlu2 %6600  ;;  %6968 = vmatpush.bf16.msra.mxu2 %v8078_v20  ;;  %v8077_v35 = vld [vmem:[%s11982_s4 + $0x30] sm:$0xff] }
0x1104   : > { %6567 = vst.msk [vmem:[#allocation8 + $0x11] sm:$0xff] %vm3700_vm11, %v6536_v12  ;;  %vm6527_vm9 = vcmp.ge.f32.partialorder %v6519_v6, 0.0  ;;  %v6580_v52 = vpack.c.bf16 %v6576_v29, %v6576_v29 }
0x1105   : > { %6568 = vst.msk [vmem:[#allocation8 + $0x31] sm:$0xff] %vm3700_vm11, %v6538_v10  ;;  %v6543_v22 = vsel %vm6527_vm9, %v6519_v6, %v6535_v55  ;;  %v8076_v10 = vld [vmem:[%s11982_s4 + $0x28] sm:$0xff] }
0x1106   : > { %6569 = vst.msk [vmem:[#allocation8 + $0x51] sm:$0xff] %vm3700_vm11, %v6540_v27  ;;  %v8075_v27 = vld [vmem:[%s11982_s4 + $0x20] sm:$0xff] }
0x1107   : > { %6570 = vst.msk [vmem:[#allocation8 + $0x71] sm:$0xff] %vm3700_vm11, %v6542_v18  ;;  %6969 = vmatpush.bf16.msra.mxu2 %v8077_v35 }
0x1108   : > { %6574 = vst.msk [vmem:[#allocation8 + $0x61] sm:$0xff] %vm3700_vm11, %v6541_v51  ;;  %v8074_v51 = vld [vmem:[%s11982_s4 + $0x18] sm:$0xff] }
0x1109   : > { %v6590_v60 = vld [vmem:[#allocation8 + $0x41] sm:$0xff]  ;;  %6575 = vst.msk [vmem:[#allocation8 + $0x81] sm:$0xff] %vm3700_vm11, %v6543_v22 }
0x110a   : > { %v6618_v53 = vld [vmem:[#allocation8 + $0x42] sm:$0xff]  ;;  %v11701_v50 = vpack.c.bf16 %v6590_v60, %v6590_v60  ;;  %6584 = vst.msk [vmem:[#allocation9] sm:$0xf] %vm3840_vm12, %v6580_v52  ;;  %v8073_v60 = vld [vmem:[%s11982_s4 + $0x10] sm:$0xff] }
0x110b   : > { %v6589_v16 = vld [vmem:[#allocation8 + $0x21] sm:$0xff]  ;;  %v6622_v62 = vpack.c.bf16 %v6618_v53, %v6618_v53  ;;  %v6644_v2 = vld [vmem:[#allocation8 + $0x10] sm:$0xff]  ;;  %6612 = vst.msk [vmem:[#allocation9] sm:$0xf] %vm3953_vm13, %v6601_v7  ;;  %v6629_v11 = vpop.permute.xlu2 %6628  ;;  %6970 = vmatpush.bf16.msra.mxu2 %v8076_v10 }
0x110c   : > { %v6617_v40 = vld [vmem:[#allocation8 + $0x22] sm:$0xff]  ;;  %v6593_v26 = vpack.c.bf16 %v6589_v16, %v6589_v16  ;;  %6604 = vrot.lane.b32.xlu1 %v11701_v50, %s11980_s25  ;;  %v6648_v30 = vpack.c.bf16 %v6644_v2, %v6644_v2  ;;  %v6685_v5 = vld [vmem:[#allocation8 + $0x32] sm:$0xff]  ;;  %6640 = vst.msk [vmem:[#allocation9] sm:$0xf] %vm4066_vm14, %v6629_v11 }
0x110d   : > { %v6621_v28 = vpack.c.bf16 %v6617_v40, %v6617_v40  ;;  %6777 = vst.msk [vmem:[#allocation9 + $0x14] sm:$0xf] %vm3840_vm12, %v6622_v62  ;;  %v6713_v17 = vld [vmem:[#allocation8 + $0x40] sm:$0xff]  ;;  %v6689_v25 = vpack.c.bf16 %v6685_v5, %v6685_v5  ;;  %v6645_v59 = vld [vmem:[#allocation8 + $0x30] sm:$0xff]  ;;  %v8072_v53 = vld [vmem:[%s11982_s4 + $0x8] sm:$0xff] }
0x110e   : > { %6602 = vrot.lane.b32.xlu2 %v6593_v26, %s11980_s25  ;;  %6656 = vrot.lane.b32.xlu0 %v6648_v30, %s11976_s12  ;;  %v6717_v15 = vpack.c.bf16 %v6713_v17, %v6713_v17  ;;  %v6712_v45 = vld [vmem:[#allocation8 + $0x20] sm:$0xff]  ;;  %v6646_v19 = vld [vmem:[#allocation8 + $0x50] sm:$0xff]  ;;  %v6649_v56 = vpack.c.bf16 %v6645_v59, %v6645_v59  ;;  %v8086_v40 = vld [vmem:[%s11982_s4 + $0x78] sm:$0xff] }
0x110f   : > { %6776 = vst.msk [vmem:[#allocation9 + $0x8] sm:$0xf] %vm3840_vm12, %v6621_v28  ;;  %v6619_v8 = vld [vmem:[#allocation8 + $0x62] sm:$0xff]  ;;  %v6716_v21 = vpack.c.bf16 %v6712_v45, %v6712_v45  ;;  %v6650_v33 = vpack.c.bf16 %v6646_v19, %v6646_v19  ;;  %v6687_v61 = vld [vmem:[#allocation8 + $0x72] sm:$0xff]  ;;  %6971 = vmatpush.bf16.msra.mxu2 %v8075_v27  ;;  %6987 = vmatpush.bf16.msrb.mxu3 %v8086_v40 }
0x1110   : > { %v6623_v43 = vpack.c.bf16 %v6619_v8, %v6619_v8  ;;  %6586 = vst.msk [vmem:[#allocation9 + $0x18] sm:$0xf] %vm3840_vm12, %v6717_v15  ;;  %v6591_v37 = vld [vmem:[#allocation8 + $0x61] sm:$0xff]  ;;  %v6684_v47 = vld [vmem:[#allocation8 + $0x12] sm:$0xff]  ;;  %v6691_v36 = vpack.c.bf16 %v6687_v61, %v6687_v61 }
0x1111   : > { %6585 = vst.msk [vmem:[#allocation9 + $0xc] sm:$0xf] %vm3840_vm12, %v6716_v21  ;;  %v6595_v1 = vpack.c.bf16 %v6591_v37, %v6591_v37  ;;  %v6688_v4 = vpack.c.bf16 %v6684_v47, %v6684_v47  ;;  %v6714_v3 = vld [vmem:[#allocation8 + $0x60] sm:$0xff]  ;;  %v6673_v39 = vld [vmem:[#allocation8 + $0x31] sm:$0xff]  ;;  %v8084_v2 = vld [vmem:[%s11982_s4 + $0x68] sm:$0xff] }
0x1112   : > { %6778 = vst.msk [vmem:[#allocation9 + $0x20] sm:$0xf] %vm3840_vm12, %v6623_v43  ;;  %v6718_v63 = vpack.c.bf16 %v6714_v3, %v6714_v3  ;;  %v6675_v38 = vld [vmem:[#allocation8 + $0x71] sm:$0xff]  ;;  %v6677_v32 = vpack.c.bf16 %v6673_v39, %v6673_v39  ;;  %v6771_v48 = vld [vmem:[#allocation8 + $0x82] sm:$0xff] }
0x1113   : > { %v6679_v57 = vpack.c.bf16 %v6675_v38, %v6675_v38  ;;  %v6672_v34 = vld [vmem:[#allocation8 + $0x11] sm:$0xff]  ;;  %v6775_v44 = vpack.c.bf16 %v6771_v48, %v6771_v48  ;;  %v6715_v49 = vld [vmem:[#allocation8 + $0x80] sm:$0xff]  ;;  %6972 = vmatpush.bf16.msra.mxu2 %v8074_v51 }
0x1114   : > { %6698 = vrot.lane.b32.xlu1 %v6689_v25, %s11980_s25  ;;  %6587 = vst.msk [vmem:[#allocation9 + $0x24] sm:$0xf] %vm3840_vm12, %v6718_v63  ;;  %v6674_v58 = vld [vmem:[#allocation8 + $0x51] sm:$0xff]  ;;  %v6676_v54 = vpack.c.bf16 %v6672_v34, %v6672_v34  ;;  %v6719_v23 = vpack.c.bf16 %v6715_v49, %v6715_v49  ;;  %v6743_v12 = vld [vmem:[#allocation8 + $0x81] sm:$0xff] }
0x1115   : > { %v6678_v41 = vpack.c.bf16 %v6674_v58, %v6674_v58  ;;  %6681 = vst.msk [vmem:[#allocation9 + $0x10] sm:$0xf] %vm3840_vm12, %v6677_v32  ;;  %v6647_v13 = vld [vmem:[#allocation8 + $0x70] sm:$0xff]  ;;  %v6747_v18 = vpack.c.bf16 %v6743_v12, %v6743_v12  ;;  %v8083_v30 = vld [vmem:[%s11982_s4 + $0x60] sm:$0xff]  ;;  %v8082_v17 = vld [vmem:[%s11982_s4 + $0x58] sm:$0xff] }
0x1116   : > { %6630 = vrot.lane.b32.xlu2 %v6621_v28, %s11975_s30  ;;  %6632 = vrot.lane.b32.xlu0 %v6622_v62, %s11975_s30  ;;  %6683 = vst.msk [vmem:[#allocation9 + $0x28] sm:$0xf] %vm3840_vm12, %v6679_v57  ;;  %v6686_v46 = vld [vmem:[#allocation8 + $0x52] sm:$0xff]  ;;  %v6651_v0 = vpack.c.bf16 %v6647_v13, %v6647_v13  ;;  %v8080_v25 = vld [vmem:[%s11982_s4 + $0x48] sm:$0xff] }
0x1117   : > { %6680 = vst.msk [vmem:[#allocation9 + $0x4] sm:$0xf] %vm3840_vm12, %v6676_v54  ;;  %v6690_v9 = vpack.c.bf16 %v6686_v46, %v6686_v46  ;;  %6973 = vmatpush.bf16.msra.mxu2 %v8073_v60  ;;  %v7853_v38 = vld [vmem:[#allocation9 + $0x8] sm:$0xf]  ;;  %v8067_v32 = vld [vmem:[#allocation9 + $0x10] sm:$0xf0] }
0x1118   : > { %6682 = vst.msk [vmem:[#allocation9 + $0x1c] sm:$0xf] %vm3840_vm12, %v6678_v41  ;;  %v7854_v58 = vor.u32 %v8067_v32, %v7853_v38 }
0x1119   : > { %6779 = vst.msk [vmem:[#allocation9 + $0x2c] sm:$0xf] %vm3840_vm12, %v6775_v44 }
0x111b   : > { %6974 = vmatpush.bf16.msra.mxu2 %v8072_v53 }
0x111c   : > { %6752 = vrot.lane.b32.xlu1 %v6593_v26, %s11976_s12  ;;  %v8085_v26 = vld [vmem:[%s11982_s4 + $0x70] sm:$0xff] }
0x111d   : > { %6988 = vmatpush.bf16.msrb.mxu3 %v8085_v26 }
0x111e   : > { %6658 = vrot.lane.b32.xlu2 %v6649_v56, %s11976_s12  ;;  %6660 = vrot.lane.b32.xlu0 %v6650_v33, %s11976_s12  ;;  %v8079_v56 = vld [vmem:[%s11982_s4 + $0x40] sm:$0xff] }
0x1121   : > { %6989 = vmatpush.bf16.msrb.mxu3 %v8084_v2 }
0x1124   : > { %6702 = vrot.lane.b32.xlu1 %v6691_v36, %s11980_s25 }
0x1125   : > { %6990 = vmatpush.bf16.msrb.mxu3 %v8083_v30 }
0x1126   : > { %6606 = vrot.lane.b32.xlu2 %v6595_v1, %s11980_s25  ;;  %6696 = vrot.lane.b32.xlu0 %v6688_v4, %s11980_s25 }
0x1129   : > { %6991 = vmatpush.bf16.msrb.mxu3 %v8082_v17 }
0x112c   : > { %6756 = vrot.lane.b32.xlu1 %v6595_v1, %s11976_s12 }
0x112d   : > { %6992 = vmatpush.bf16.msrb.mxu3 %v8081_v24 }
0x112e   : > { %6634 = vrot.lane.b32.xlu2 %v6623_v43, %s11975_s30  ;;  %6726 = vrot.lane.b32.xlu0 %v6717_v15, %s11975_s30  ;;  %v8088_v43 = vld [vmem:[%s11982_s4 + $0x88] sm:$0xff] }
0x1131   : > { %6993 = vmatpush.bf16.msrb.mxu3 %v8080_v25 }
0x1135   : > { %6994 = vmatpush.bf16.msrb.mxu3 %v8079_v56 }
0x1136   : > { %6662 = vrot.lane.b32.xlu2 %v6651_v0, %s11976_s12  ;;  %6700 = vrot.lane.b32.xlu0 %v6690_v9, %s11980_s25  ;;  %v7865_v0 = vld [vmem:[#allocation9 + $0x20] sm:$0xf]  ;;  %v8070_v9 = vld [vmem:[#allocation9 + $0x28] sm:$0xf0] }
0x1137   : > { %v7866_v29 = vor.u32 %v8070_v9, %v7865_v0 }
0x113e   : > { %6724 = vrot.lane.b32.xlu2 %v6716_v21, %s11975_s30  ;;  %6730 = vrot.lane.b32.xlu0 %v6719_v23, %s11975_s30 }
0x1146   : > { %6754 = vrot.lane.b32.xlu2 %v11701_v50, %s11976_s12  ;;  %v8071_v50 = vld [vmem:[%s11982_s4] sm:$0xff] }
0x1147   : > { %6975 = vmatpush.bf16.msra.mxu2 %v8071_v50 }
0x114b   : > { %7012 = vmatpush.bf16.msrb.mxu2 %v8088_v43 }
0x114e   : > { %6728 = vrot.lane.b32.xlu2 %v6718_v63, %s11975_s30 }
0x114f   : > { %7013 = vmatpush.bf16.msrb.mxu2 %v8087_v42 }
0x1156   : > { %6758 = vrot.lane.b32.xlu2 %v6747_v18, %s11976_s12  ;;  %s7238_s12 = scalar_lea.hbm %s11948_s10, %s8089_s16 }
0x1168   : > { %v6603_v16 = vpop.permute.xlu2 %6602 }
0x1169   : > { %6613 = vst.msk [vmem:[#allocation9 + $0xc] sm:$0xf] %vm3953_vm13, %v6603_v16 }
0x1170   : > { %v6631_v62 = vpop.permute.xlu2 %6630 }
0x1171   : > { %6641 = vst.msk [vmem:[#allocation9 + $0xc] sm:$0xf] %vm4066_vm14, %v6631_v62 }
0x1178   : > { %v6659_v28 = vpop.permute.xlu2 %6658 }
0x1179   : > { %6669 = vst.msk [vmem:[#allocation9 + $0xc] sm:$0xf] %vm4179_vm15, %v6659_v28 }
0x117e   : > { %v6605_v15 = vpop.permute.xlu1 %6604 }
0x117f   : > { %6614 = vst.msk [vmem:[#allocation9 + $0x18] sm:$0xf] %vm3953_vm13, %v6605_v15  ;;  %v7025_v15 = vld [vmem:[%s11947_s9] sm:$0xff] }
0x1180   : > { %v6607_v5 = vpop.permute.xlu2 %6606  ;;  %v6657_v8 = vpop.permute.xlu0 %6656  ;;  %v8066_v19 = vld [vmem:[#allocation9 + $0x8] sm:$0xf0] }
0x1181   : > { %6615 = vst.msk [vmem:[#allocation9 + $0x24] sm:$0xf] %vm3953_vm13, %v6607_v5  ;;  %v7026_v5 = vld [vmem:[%s11947_s9 + $0x8] sm:$0xff] }
0x1182   : > { %6668 = vst.msk [vmem:[#allocation9] sm:$0xf] %vm4179_vm15, %v6657_v8  ;;  %v8208_v8 = vld [vmem:[%s11943_s5 + $0x3] ss:$0 sm:$0xff] }
0x1186   : > { %v6699_v6 = vpop.permute.xlu1 %6698 }
0x1187   : > { %6709 = vst.msk [vmem:[#allocation9 + $0x10] sm:$0xf] %vm3953_vm13, %v6699_v6 }
0x1188   : > { %v6635_v45 = vpop.permute.xlu2 %6634  ;;  %v6633_v21 = vpop.permute.xlu0 %6632 }
0x1189   : > { %6643 = vst.msk [vmem:[#allocation9 + $0x24] sm:$0xf] %vm4066_vm14, %v6635_v45  ;;  %v7845_v59 = vld [vmem:[#allocation9] sm:$0xf] }
0x118a   : > { %6642 = vst.msk [vmem:[#allocation9 + $0x18] sm:$0xf] %vm4066_vm14, %v6633_v21  ;;  %v7846_v55 = vor.u32 %v8066_v19, %v7845_v59  ;;  %v8339_v59 = vmov 256.0  }
0x118b   : > { %8226 = vrcp.f32 %v8339_v59 }
0x118c   : > { %6976 = vmatmul.bf16.vlgmr.msra.gmra.mxu2 %v7846_v55 }
0x118e   : > { %v6753_v33 = vpop.permute.xlu1 %6752 }
0x1190   : > { %v6663_v22 = vpop.permute.xlu2 %6662  ;;  %v6661_v61 = vpop.permute.xlu0 %6660 }
0x1191   : > { %6671 = vst.msk [vmem:[#allocation9 + $0x24] sm:$0xf] %vm4179_vm15, %v6663_v22  ;;  %v8227_v19 = vpop.eup %8226 }
0x1192   : > { %6670 = vst.msk [vmem:[#allocation9 + $0x18] sm:$0xf] %vm4179_vm15, %v6661_v61  ;;  %v7073_v56 = vmul.f32 256.0, %v8227_v19  ;;  %vm7077_vm12 = vweird.f32 %v8227_v19 }
0x1196   : > { %v6703_v37 = vpop.permute.xlu1 %6702 }
0x1197   : > { %6711 = vst.msk [vmem:[#allocation9 + $0x28] sm:$0xf] %vm3953_vm13, %v6703_v37 }
0x1198   : > { %v6725_v47 = vpop.permute.xlu2 %6724  ;;  %v8069_v36 = vld [vmem:[#allocation9 + $0x20] sm:$0xf0]  ;;  %v6697_v1 = vpop.permute.xlu0 %6696 }
0x1199   : > { %v7857_v4 = vld [vmem:[#allocation9 + $0x18] sm:$0xf]  ;;  %6708 = vst.msk [vmem:[#allocation9 + $0x4] sm:$0xf] %vm3953_vm13, %v6697_v1 }
0x119a   : > { %v7858_v3 = vor.u32 %v8069_v36, %v7857_v4  ;;  %6736 = vst.msk [vmem:[#allocation9 + $0x4] sm:$0xf] %vm4066_vm14, %v6725_v47  ;;  %v7074_v47 = vsub.f32 1.0, %v7073_v56 }
0x119b   : > { %6764 = vst.msk [vmem:[#allocation9 + $0x4] sm:$0xf] %vm4179_vm15, %v6753_v33 }
0x119c   : > { %6981 = vmatmul.bf16.gmra.mxu2 %v7858_v3  ;;  %v7075_v3 = vmul.f32 %v8227_v19, %v7074_v47 }
0x119e   : > { %v6757_v41 = vpop.permute.xlu1 %6756  ;;  %v7076_v38 = vadd.f32 %v8227_v19, %v7075_v3 }
0x11a0   : > { %v6755_v63 = vpop.permute.xlu2 %6754  ;;  %v6727_v39 = vpop.permute.xlu0 %6726 }
0x11a1   : > { %6737 = vst.msk [vmem:[#allocation9 + $0x10] sm:$0xf] %vm4066_vm14, %v6727_v39 }
0x11a2   : > { %6765 = vst.msk [vmem:[#allocation9 + $0x10] sm:$0xf] %vm4179_vm15, %v6755_v63  ;;  %v8065_v48 = vld [vmem:[#allocation9 + $0x4] sm:$0xf] }
0x11a8   : > { %v6729_v57 = vpop.permute.xlu2 %6728  ;;  %v6701_v34 = vpop.permute.xlu0 %6700 }
0x11a9   : > { %6710 = vst.msk [vmem:[#allocation9 + $0x1c] sm:$0xf] %vm3953_vm13, %v6701_v34  ;;  %v7847_v54 = vld [vmem:[#allocation9 + $0xc] sm:$0xf0]  ;;  %v7078_v34 = vsel %vm7077_vm12, %v8227_v19, %v7076_v38 }
0x11aa   : > { %6738 = vst.msk [vmem:[#allocation9 + $0x1c] sm:$0xf] %vm4066_vm14, %v6729_v57  ;;  %v7850_v44 = vor.u32 %v8065_v48, %v7847_v54 }
0x11ab   : > { %6766 = vst.msk [vmem:[#allocation9 + $0x1c] sm:$0xf] %vm4179_vm15, %v6757_v41 }
0x11ac   : > { %7939 = vmatmul.msk.bf16.vlgmr.msrb.gmra.mxu2 %vm3700_vm11, %v7854_v58  ;;  %6995 = vmatmul.bf16.vlgmr.msrb.gmra.mxu3 %v7850_v44 }
0x11b0   : > { %v6759_v13 = vpop.permute.xlu2 %6758  ;;  %v6731_v46 = vpop.permute.xlu0 %6730 }
0x11b1   : > { %6739 = vst.msk [vmem:[#allocation9 + $0x28] sm:$0xf] %vm4066_vm14, %v6731_v46 }
0x11b2   : > { %6767 = vst.msk [vmem:[#allocation9 + $0x28] sm:$0xf] %vm4179_vm15, %v6759_v13  ;;  %v8068_v52 = vld [vmem:[#allocation9 + $0x1c] sm:$0xf] }
0x11b9   : > { %v7859_v49 = vld [vmem:[#allocation9 + $0x24] sm:$0xf0] }
0x11ba   : > { %v7862_v23 = vor.u32 %v8068_v52, %v7859_v49 }
0x11bc   : > { %7940 = vmatmul.msk.bf16.gmra.mxu2 %vm3700_vm11, %v7866_v29  ;;  %7000 = vmatmul.bf16.gmra.mxu3 %v7862_v23 }
0x120f   : > { %v6977_v7 = vpop.f32.mrf.mxu2 }
0x1217   : > { %v6979_v11 = vpop.f32.mrf.mxu2 }
0x121f   : > { %v6982_v20 = vpop.f32.mrf.mxu2 }
0x1227   : > { %v6984_v35 = vpop.f32.mrf.mxu2 }
0x122f   : > { %v7015_v12 = vpop.f32.mrf.mxu2  ;;  %v6996_v10 = vpop.f32.mrf.mxu3 }
0x1230   : > { %v6997_v2 = vadd.f32 %v6996_v10, %v6977_v7 }
0x1232   : > { %v7016_v17 = vadd.f32 %v7015_v12, %v6997_v2 }
0x1237   : > { %v7017_v27 = vpop.f32.mrf.mxu2  ;;  %v6998_v18 = vpop.f32.mrf.mxu3 }
0x1238   : > { %v6999_v62 = vadd.f32 %v6998_v18, %v6979_v11 }
0x123a   : > { %v7018_v30 = vadd.f32 %v7017_v27, %v6999_v62 }
0x123f   : > { %v7020_v51 = vpop.f32.mrf.mxu2  ;;  %v7001_v60 = vpop.f32.mrf.mxu3 }
0x1240   : > { %v7002_v50 = vadd.f32 %v7001_v60, %v6982_v20 }
0x1242   : > { %v7021_v28 = vadd.f32 %v7020_v51, %v7002_v50 }
0x1247   : > { %v7003_v53 = vpop.f32.mrf.mxu3  ;;  %v7022_v40 = vpop.f32.mrf.mxu2 }
0x1248   : > { %v7004_v16 = vadd.f32 %v7003_v53, %v6984_v35 }
0x124a   : > { %v7023_v26 = vadd.f32 %v7022_v40, %v7004_v16 }
0x124c   : > { %7047 = vmatpush.msra.mxu3 %v7023_v26 }
0x124e   : > { %7048 = vmatpush.msra.mxu3 %v7021_v28 }
0x1250   : > { %7049 = vmatpush.msra.mxu3 %v7018_v30 }
0x1252   : > { %7050 = vmatpush.msra.mxu3 %v7016_v17 }
0x1253   : > { %7941 = vmatmul.msk.f32.vlgmr.msra.gmra.mxu3 %vm3700_vm11, %v7025_v15 }
0x125b   : > { %7942 = vmatmul.msk.f32.gmra.mxu3 %vm3700_vm11, %v7026_v5 }
0x12d6   : > { %v7052_v24 = vpop.f32.mrf.mxu3 }
0x12d7   : > { %v11835_v43 = vadd.f32 %v8208_v8, %v7052_v24 }
0x12d9   : > { %7083 = vrot.lane.b32.xlu0 %v11835_v43, %s11977_s14  ;;  %v7060_v6 = vsel %vm434_vm0, %v11835_v43, 0.0 }
0x12de   : > { %v7055_v42 = vpop.f32.mrf.mxu3 }
0x12df   : > { %v11839_v25 = vadd.f32 %v8208_v8, %v7055_v42 }
0x12e1   : > { %7085 = vrot.lane.b32.xlu1 %v11839_v25, %s11977_s14  ;;  %v7061_v45 = vsel %vm434_vm0, %v11839_v25, 0.0 }
0x12e2   : > { %v7062_v21 = vadd.f32 %v7061_v45, %v7060_v6 }
0x12e4   : > { %7063 = vadd.xlane.f32.xlu2 %v7062_v21 }
0x134b   : > { %v7084_v55 = vpop.permute.xlu0 %7083 }
0x134c   : > { %v7089_v61 = vsel %vm434_vm0, %v7084_v55, 0.0 }
0x1353   : > { %v7086_v33 = vpop.permute.xlu1 %7085 }
0x1354   : > { %v7090_v22 = vsel %vm434_vm0, %v7086_v33, 0.0 }
0x1355   : > { %v7091_v37 = vadd.f32 %v7090_v22, %v7089_v61 }
0x1357   : > { %7092 = vadd.xlane.f32.xlu0 %v7091_v37  ;;  %v7064_v36 = vpop.xlane.xlu2 %7063 }
0x1358   : > { %v7065_v1 = vrot.slane %v7064_v36, 4 }
0x135a   : > { %v7066_v4 = vadd.f32 %v7065_v1, %v7064_v36 }
0x135c   : > { %v7067_v63 = vrot.slane %v7066_v4, 2 }
0x135e   : > { %v7068_v39 = vadd.f32 %v7067_v63, %v7066_v4 }
0x1360   : > { %v7069_v32 = vrot.slane %v7068_v39, 1 }
0x1362   : > { %v7070_v57 = vadd.f32 %v7069_v32, %v7068_v39 }
0x1364   : > { %8131 = vpush %v7070_v57 }
0x1365   : > { %8133 = vpush %v7078_v34 }
0x1395   : > { %s8132_s19 = spop %8131 }
0x1396   : > { %s11849_s13 = spop %8133 }
0x1397   : > { %s7080_s0 = smul.f32 %s11849_s13, %s8132_s19  ;;  %s7241_s19 = sshll.u32 %s7238_s12, 4  ;;  %s7242_s19 = int_to_ptr.hbm [resolvable:$true] %s7241_s19 }
0x1399   : > { %v7110_v0 = vstv %s7080_s0  ;;  %s7222_s0 = scalar_lea.sflag [#allocation11], %s10368_s15 }
0x139a   : > { %v7196_v52 = vmul.f32 %v9939_v14, %v7110_v0  ;;  %v7111_v35 = vsub.f32 %v11835_v43, %v7110_v0  ;;  %v7112_v12 = vsub.f32 %v11839_v25, %v7110_v0 }
0x139c   : > { %v7113_v10 = vmul.f32 %v7111_v35, %v7111_v35  ;;  %v7114_v27 = vmul.f32 %v7112_v12, %v7112_v12 }
0x139e   : > { %v7115_v18 = vsel %vm434_vm0, %v7113_v10, 0.0  ;;  %v7116_v51 = vsel %vm434_vm0, %v7114_v27, 0.0 }
0x139f   : > { %v7117_v60 = vadd.f32 %v7116_v51, %v7115_v18 }
0x13ca   : > { %v7093_v58 = vpop.xlane.xlu0 %7092 }
0x13cb   : > { %v7094_v48 = vrot.slane %v7093_v58, 4 }
0x13cd   : > { %v7095_v54 = vadd.f32 %v7094_v48, %v7093_v58 }
0x13cf   : > { %v7096_v41 = vrot.slane %v7095_v54, 2 }
0x13d1   : > { %v7097_v44 = vadd.f32 %v7096_v41, %v7095_v54 }
0x13d3   : > { %v7098_v13 = vrot.slane %v7097_v44, 1 }
0x13d5   : > { %v7099_v46 = vadd.f32 %v7098_v13, %v7097_v44 }
0x13d7   : > { %8135 = vpush %v7099_v46 }
0x1408   : > { %s8136_s1 = spop %8135 }
0x1409   : > { %s7109_s30 = smul.f32 %s8136_s1, %s11849_s13  ;;  %s8247_s1 = sshra.s32 %s7242_s19, 4  ;;  %s8248_s1 = int_to_ptr.hbm [resolvable:$true] %s8247_s1 }
0x140a   : > { %p8254_p0 = scmp.lt.s32.totalorder %s8248_s1, %s11948_s10 }
0x140b   : > { %v7136_v9 = vstv %s7109_s30  ;;  %s8249_s30 = scalar_lea.hbm %s8248_s1, 256 }
0x140c   : > { %v7137_v29 = vsub.f32 %v11835_v43, %v7136_v9  ;;  %v7197_v49 = vmul.f32 %v7136_v9, %v9947_v31  ;;  %v7138_v11 = vsub.f32 %v11839_v25, %v7136_v9  ;;  %p8250_p11 = scmp.ne.s32.totalorder %s8248_s1, %s8249_s30 }
0x140e   : > { %v7139_v23 = vmul.f32 %v7137_v29, %v7137_v29  ;;  %v11856_v7 = vadd.f32 %v7197_v49, %v7196_v52  ;;  %v7140_v20 = vmul.f32 %v7138_v11, %v7138_v11  ;;  %p8251_p12 = pnand %p8250_p11, %p8440_p5 }
0x1410   : > { %7143 = vrot.lane.b32.xlu1 %v7139_v23, %s11977_s14  ;;  %p8252_p13 = pneg %p8251_p12 }
0x1418   : > { %7145 = vrot.lane.b32.xlu1 %v7140_v20, %s11977_s14 }
0x1442   : > { %7118 = vadd.xlane.f32.xlu1 %v7117_v60 }
0x1482   : > { %v7144_v53 = vpop.permute.xlu1 %7143 }
0x1483   : > { %v7149_v16 = vsel %vm434_vm0, %v7144_v53, 0.0 }
0x148a   : > { %v7146_v50 = vpop.permute.xlu1 %7145 }
0x148b   : > { %v7150_v40 = vsel %vm434_vm0, %v7146_v50, 0.0 }
0x148c   : > { %v7151_v62 = vadd.f32 %v7150_v40, %v7149_v16 }
0x148e   : > { %7152 = vadd.xlane.f32.xlu2 %v7151_v62 }
0x14b5   : > { %v7119_v26 = vpop.xlane.xlu1 %7118 }
0x14b6   : > { %v7120_v2 = vrot.slane %v7119_v26, 4 }
0x14b8   : > { %v7121_v28 = vadd.f32 %v7120_v2, %v7119_v26 }
0x14ba   : > { %v7122_v30 = vrot.slane %v7121_v28, 2 }
0x14bc   : > { %v7123_v17 = vadd.f32 %v7122_v30, %v7121_v28 }
0x14be   : > { %v7124_v15 = vrot.slane %v7123_v17, 1 }
0x14c0   : > { %v7125_v5 = vadd.f32 %v7124_v15, %v7123_v17 }
0x14c2   : > { %8137 = vpush %v7125_v5 }
0x14f3   : > { %s8138_s14 = spop %8137 }
0x14f4   : > { %s7135_s24 = smul.f32 %s8138_s14, %s11849_s13 }
0x14f6   : > { %s7170_s25 = sadd.f32 1e-05, %s7135_s24 }
0x14f8   : > { %v7171_v8 = vstv %s7170_s25  ;;  %s8253_s25 = scalar_lea.hbm %s11948_s10, 512 }
0x14f9   : > { %8228 = vrsqrt.f32 %v7171_v8  ;;  %vm7178_vm13 = vweird.f32 %v7171_v8  ;;  %p8255_p1 = scmp.lt.s32.totalorder %s8253_s25, %s8249_s30 }
0x14fb   : > { %p8256_p2 = por %p8255_p1, %p8254_p0 }
0x14fd   : > { %p8257_p3 = pnand %p8256_p2, %p8252_p13 }
0x14ff   : > { %v8229_v24 = vpop.eup %8228 }
0x1500   : > { %v7173_v42 = vmul.f32 %v8229_v24, %v7171_v8  ;;  %vm7179_vm0 = vweird.f32 %v8229_v24 }
0x1501   : > { %v7153_v6 = vpop.xlane.xlu2 %7152  ;;  %vm7180_vm14 = vmor %vm7178_vm13, %vm7179_vm0 }
0x1502   : > { %v7174_v45 = vmul.f32 %v8229_v24, %v7173_v42  ;;  %v7154_v21 = vrot.slane %v7153_v6, 4 }
0x1504   : > { %v7175_v59 = vmul.f32 0.5, %v7174_v45  ;;  %v7155_v19 = vadd.f32 %v7154_v21, %v7153_v6 }
0x1506   : > { %v7176_v55 = vsub.f32 1.5, %v7175_v59  ;;  %v7156_v56 = vrot.slane %v7155_v19, 2 }
0x1508   : > { %v7157_v33 = vadd.f32 %v7156_v56, %v7155_v19  ;;  %v7177_v61 = vmul.f32 %v8229_v24, %v7176_v55 }
0x150a   : > { %v7158_v22 = vrot.slane %v7157_v33, 1  ;;  %v7181_v47 = vsel %vm7180_vm14, %v8229_v24, %v7177_v61 }
0x150c   : > { %v7159_v37 = vadd.f32 %v7158_v22, %v7157_v33 }
0x150e   : > { %8139 = vpush %v7159_v37 }
0x150f   : > { %8141 = vpush %v7181_v47 }
0x1510   : > { %8260 = shalt.err (!%p8257_p3)
}
0x1511   : > { %s8340_s22 = smov 128   ;;  %s8341_s16 = smov 8   ;;  %v7058_v54 = vld [vmem:[%s11944_s6 + $0x3] sm:$0x1]  ;;  %v7205_v13 = vsub.f32 %v11835_v43, %v11856_v7  ;;  %v7206_v46 = vsub.f32 %v11839_v25, %v11856_v7 }
0x1512   : > { %8145 = dma.vmem_to_hbm [thread:$0]  (%p8440_p5), %s7240_s29, 4096, %s7242_s19, %s7222_s0, %s8340_s22, %s8340_s22, %s8341_s16  }
0x1513   : > { %s7359_s19 = sshll.u32 %s10368_s15, 4  ;;  %s8090_s0 = sshll.u32 %s8423_s21, 4 }
0x1514   : > { %s7255_s25 = scalar_lea.hbm %s11949_s11, %s8090_s0  ;;  %s390_s21 = scalar_lea.vmem [#allocation12], %s7359_s19 }
0x1515   : > { %s8281_s19 = scalar_lea.hbm %s11949_s11, 32 }
0x153f   : > { %s8140_s2 = spop %8139 }
0x1540   : > { %s7169_s26 = smul.f32 %s8140_s2, %s11849_s13  ;;  %s8142_s3 = spop %8141 }
0x1541   : > { %v7199_v57 = vstv %s8142_s3  ;;  %s7256_s2 = sshll.u32 %s390_s21, 4  ;;  %s7257_s2 = int_to_ptr.vmem [resolvable:$true] %s7256_s2 }
0x1542   : > { %s7183_s12 = sadd.f32 1e-05, %s7169_s26  ;;  %v7200_v58 = vmul.f32 %v9939_v14, %v7199_v57  ;;  %v8209_v14 = vld [vmem:[%s11945_s7 + $0x3] ss:$0 sm:$0xff]  ;;  %s7258_s26 = sshll.u32 %s7255_s25, 4  ;;  %s7259_s26 = int_to_ptr.hbm [resolvable:$true] %s7258_s26 }
0x1543   : > { %s8275_s3 = sshra.s32 %s7259_s26, 4  ;;  %s8276_s3 = int_to_ptr.hbm [resolvable:$true] %s8275_s3 }
0x1544   : > { %v7184_v36 = vstv %s7183_s12  ;;  %s7227_s12 = scalar_lea.sflag [#allocation13], %s10368_s15  ;;  %p8282_p9 = scmp.lt.s32.totalorder %s8276_s3, %s11949_s11 }
0x1545   : > { %8230 = vrsqrt.f32 %v7184_v36  ;;  %vm7191_vm10 = vweird.f32 %v7184_v36 }
0x154b   : > { %v8231_v1 = vpop.eup %8230 }
0x154c   : > { %v7186_v4 = vmul.f32 %v8231_v1, %v7184_v36  ;;  %vm7192_vm15 = vweird.f32 %v8231_v1 }
0x154d   : > { %vm7193_vm1 = vmor %vm7191_vm10, %vm7192_vm15 }
0x154e   : > { %v7187_v3 = vmul.f32 %v8231_v1, %v7186_v4 }
0x1550   : > { %v7188_v63 = vmul.f32 0.5, %v7187_v3 }
0x1552   : > { %v7189_v39 = vsub.f32 1.5, %v7188_v63 }
0x1554   : > { %v7190_v38 = vmul.f32 %v8231_v1, %v7189_v39 }
0x1556   : > { %v7194_v32 = vsel %vm7193_vm1, %v8231_v1, %v7190_v38 }
0x1557   : > { %8143 = vpush %v7194_v32 }
0x1588   : > { %s8144_s4 = spop %8143 }
0x1589   : > { %v7201_v34 = vstv %s8144_s4  ;;  %s8277_s4 = scalar_lea.hbm %s8276_s3, 16 }
0x158a   : > { %v7202_v48 = vmul.f32 %v7201_v34, %v9947_v31  ;;  %p8278_p4 = scmp.ne.s32.totalorder %s8276_s3, %s8277_s4  ;;  %p8283_p10 = scmp.lt.s32.totalorder %s8281_s19, %s8277_s4 }
0x158c   : > { %v7203_v41 = vadd.f32 %v7202_v48, %v7200_v58  ;;  %p8279_p7 = pnand %p8278_p4, %p8440_p5  ;;  %p8284_p11 = por %p8283_p10, %p8282_p9 }
0x158e   : > { %v7204_v44 = vmul.f32 %v7203_v41, %v7058_v54  ;;  %p8280_p8 = pneg %p8279_p7 }
0x1590   : > { %v7207_v0 = vperm.slane %v7204_v44, 0  ;;  %p8285_p12 = pnand %p8284_p11, %p8280_p8 }
0x1592   : > { %v7208_v31 = vmul.f32 %v7207_v0, %v7205_v13  ;;  %v7209_v9 = vmul.f32 %v7207_v0, %v7206_v46 }
0x1594   : > { %v7211_v29 = vadd.f32 %v8209_v14, %v7208_v31  ;;  %v7212_v52 = vadd.f32 %v8209_v14, %v7209_v9 }
0x1596   : > { %vm7213_vm2 = vcmp.ge.f32.partialorder %v7211_v29, 0.0  ;;  %vm7214_vm3 = vcmp.ge.f32.partialorder %v7212_v52, 0.0  ;;  %v7215_v43 = vmul.f32 0.2, %v7211_v29  ;;  %v7216_v25 = vmul.f32 0.2, %v7212_v52 }
0x1598   : > { %v7217_v49 = vsel %vm7213_vm2, %v7211_v29, %v7215_v43  ;;  %v7218_v23 = vsel %vm7214_vm3, %v7212_v52, %v7216_v25 }
0x1599   : > { %7219 = vst.msk [vmem:[%s390_s21] sm:$0xff] %vm3700_vm11, %v7217_v49 }
0x159a   : > { %7220 = vst.msk [vmem:[%s390_s21 + $0x8] sm:$0xff] %vm3700_vm11, %v7218_v23 }
0x159b   : > { %8288 = shalt.err (!%p8285_p12)
}
0x159c   : > { %8146 = dma.vmem_to_hbm [thread:$0]  (%p8440_p5), %s7257_s2, 256, %s7259_s26, %s7227_s12, %s8340_s22, %s8340_s22, %s8341_s16  }
0x159d PF: > { %p8156_p13 = scmp.ge.s32.totalorder %s8327_s20, 2  ;;  %s7273_s15 = sand.u32 1, %s8315_s17  }
0x159e   : > { %s7274_s30 = scalar_lea.sflag [#allocation11], %s7273_s15 }
0x159f   : > { %p8150_p0 = pnand %p8156_p13, %p8444_p6 }
0x15a1   : > { %p8151_p1 = pneg %p8150_p0 }
0x15a3   : > { %8306 = dma.done.wait (%p8151_p1), %s7274_s30, 4096  }
0x15a4   : > { %8308 = vsyncadd (%p8151_p1), %s7274_s30, 4294963200  ;;  %s7284_s14 = scalar_lea.sflag [#allocation13], %s7273_s15 }
0x15a5   : > { %8310 = dma.done.wait (%p8151_p1), %s7284_s14, 256  }
0x15a6   : > { %8312 = vsyncadd (%p8151_p1), %s7284_s14, 4294967040  ;;  %s11983_s27 = sld [smem:[#allocation16_spill]]  ;;  %p25_p5 = scmp.ge.s32.totalorder %s8427_s23, 4  }
0x15a7   : > { %s11984_s19 = sld [smem:[#allocation17_spill]]  ;;  %s11985_s17 = smov %s8319_s18 }
0x15a8   : > { %s11987_s20 = smov %s8427_s23  ;;  %27 = sbr.rel (!%p25_p5) target bundleno = 11 (0xb), region = 122 }
0x15ac   : > { %s11986_s18 = smov %s11983_s27 }
0x15ad   :  { %7290 = vsyncpa [#allocation11], 1 }
0x15ae   :  { %7292 = vsyncpa [#allocation11 + $0x1], 1 }
0x15af   :  { %7293 = vsyncpa [#allocation13], 1 }
0x15b0   :  { %7295 = vsyncpa [#allocation13 + $0x1], 1 }

</bundles_post_ra>
